<compile_context>
chip_gen: v5e
topology: v5e:2x2
jax: 0.10.0
libtpu: 0.0.40
codegen_flags: <defaults>
</compile_context>

<pallas_src>
import math
from functools import partial

import jax
import jax.numpy as jnp
from jax.experimental import pallas as pl
from jax.experimental.pallas import tpu as pltpu


def _pick_chunk(seq_len, max_chunk=8):
    """Largest divisor of seq_len that is <= max_chunk (bounds in-kernel unroll)."""
    for c in range(min(seq_len, max_chunk), 0, -1):
        if seq_len % c == 0:
            return c
    return 1


# ----------------------------------------------------------------------------
# ImprovedGRU (+ fused LayerNorm epilogue).
#   grid = (S // T_CHUNK,)  -- sequential ("arbitrary") over time chunks.
#   Hidden state carried across chunks in a VMEM scratch.
# ----------------------------------------------------------------------------
def _gru_ln_kernel(x_ref, w_in, u_za, u_h, b_z, v_a, b_h, ln_g, ln_b,
                   out_ref, hfin_ref, h_state, *, t_chunk, hidden):
    c = pl.program_id(0)
    H = hidden

    @pl.when(c == 0)
    def _():
        h_state[...] = jnp.zeros_like(h_state)

    x = x_ref[...].astype(jnp.float32)                     # (B, T, Din)
    B, T, Din = x.shape

    # --- hoisted input projections: one matmul per chunk instead of 3 per step
    xp = jnp.dot(x.reshape(B * T, Din), w_in[...],
                 preferred_element_type=jnp.float32)       # (B*T, 3H)
    xz_all = xp[:, 0 * H:1 * H].reshape(B, T, H)
    xa_all = xp[:, 1 * H:2 * H].reshape(B, T, H)
    xh_all = xp[:, 2 * H:3 * H].reshape(B, T, H)

    bz = b_z[...]
    va = v_a[...]
    bh = b_h[...]

    h = h_state[...]                                       # (B, H)

    # --- recurrence: only h-dependent matmuls remain on the critical path
    for t in range(t_chunk):                               # static unroll
        g = jnp.dot(h, u_za[...], preferred_element_type=jnp.float32)  # (B, 2H)
        z = jax.nn.sigmoid(xz_all[:, t, :] + g[:, :H] + bz)
        a_in = jnp.tanh(xa_all[:, t, :] + g[:, H:])
        s = a_in * va
        s = s - jnp.max(s, axis=-1, keepdims=True)
        e = jnp.exp(s)
        aw = e * pl.reciprocal(jnp.sum(e, axis=-1, keepdims=True), approx=True)
        attended = aw * h
        h_tilde = jnp.tanh(
            xh_all[:, t, :]
            + jnp.dot(attended, u_h[...], preferred_element_type=jnp.float32)
            + bh)
        h = (1.0 - z) * h + z * h_tilde
        out_ref[:, t, :] = h                               # VMEM staging only

    h_state[...] = h

    # --- LayerNorm epilogue over the whole chunk (single lane-dense rewrite)
    seq = out_ref[...]                                     # (B, T, H)
    mean = jnp.mean(seq, axis=-1, keepdims=True)
    var = jnp.mean(jnp.square(seq - mean), axis=-1, keepdims=True)
    normed = (seq - mean) * jax.lax.rsqrt(var + 1e-5) * ln_g[...] + ln_b[...]
    out_ref[...] = normed.astype(out_ref.dtype)

    # --- final hidden (pre-LayerNorm), stored only once
    @pl.when(c == pl.num_programs(0) - 1)
    def _():
        hfin_ref[...] = h.astype(hfin_ref.dtype)


def improved_gru_ln(x, p, ln_g, ln_b):
    """x: (B, S, Din) -> (LayerNorm(GRU outputs) (B, S, H), final hidden (B, H))."""
    B, S, Din = x.shape
    H = p["U_h"].shape[0]
    t_chunk = _pick_chunk(S)
    num_chunks = S // t_chunk

    def fixed(shape):
        return pl.BlockSpec(shape, lambda c: (0,) * len(shape))

    out, h_fin = pl.pallas_call(
        partial(_gru_ln_kernel, t_chunk=t_chunk, hidden=H),
        grid=(num_chunks,),
        in_specs=[
            pl.BlockSpec((B, t_chunk, Din), lambda c: (0, c, 0)),
            fixed((Din, 3 * H)),      # W_in = [W_z | W_a | W_h]
            fixed((H, 2 * H)),        # U_za = [U_z | U_a]
            fixed((H, H)),            # U_h
            fixed((1, H)),            # b_z
            fixed((1, H)),            # v_a
            fixed((1, H)),            # b_h
            fixed((1, H)),            # ln gamma
            fixed((1, H)),            # ln beta
        ],
        out_specs=(
            pl.BlockSpec((B, t_chunk, H), lambda c: (0, c, 0)),
            pl.BlockSpec((B, H), lambda c: (0, 0)),
        ),
        out_shape=(
            jax.ShapeDtypeStruct((B, S, H), jnp.float32),
            jax.ShapeDtypeStruct((B, H), jnp.float32),
        ),
        scratch_shapes=[pltpu.VMEM((B, H), jnp.float32)],
        compiler_params=pltpu.CompilerParams(
            dimension_semantics=("arbitrary",)),
    )(x, p["W_in"], p["U_za"], p["U_h"], p["b_z"], p["v_a"], p["b_h"],
      ln_g, ln_b)
    return out, h_fin


# ----------------------------------------------------------------------------
# Projections + multi-head cross-attention + residual + fused MLP head.
#   grid = (B,), batch axis "parallel" (sharded across TensorCores on v7x).
# ----------------------------------------------------------------------------
def _attn_mlp_kernel(x_ref, wt, bt, wc, bc, wq, bq, wk, bk, wv, bv, wo, bo,
                     w1, b1, w2, b2, w3, b3,
                     out_ref, aw_ref, *, num_heads):
    x = x_ref[0].astype(jnp.float32)          # (S, H) = layer_norm2(gru2_output)
    S, H = x.shape
    dk = H // num_heads
    scale = 1.0 / math.sqrt(dk)

    def lin(inp, w, b):
        return jnp.dot(inp, w[...], preferred_element_type=jnp.float32) + b[...]

    temporal = lin(x, wt, bt)                 # temporal_projection  (query)
    cross = lin(x, wc, bc)                    # cross_sectional_projection (k/v)
    q = lin(temporal, wq, bq)
    k = lin(cross, wk, bk)
    v = lin(cross, wv, bv)

    ctx_parts = []
    for hd in range(num_heads):               # static unroll; tiny heads (dk=8)
        qh = q[:, hd * dk:(hd + 1) * dk]
        kh = k[:, hd * dk:(hd + 1) * dk]
        vh = v[:, hd * dk:(hd + 1) * dk]
        s = jnp.dot(qh, kh.T, preferred_element_type=jnp.float32) * scale
        s = s - jnp.max(s, axis=-1, keepdims=True)
        e = jnp.exp(s)
        aw = e * pl.reciprocal(jnp.sum(e, axis=-1, keepdims=True), approx=True)
        aw_ref[0, hd, :, :] = aw.astype(aw_ref.dtype)
        ctx_parts.append(jnp.dot(aw, vh, preferred_element_type=jnp.float32))
    ctx = jnp.concatenate(ctx_parts, axis=-1)               # (S, H)

    # W_o projection + residual with (post-LN) gru2 output (dropout = identity)
    attended = lin(ctx, wo, bo) + x                          # (S, H)

    # Fused MLP head on the last-timestep row:
    # Linear(H,128)-ReLU-[Dropout]-Linear(128,64)-ReLU-Linear(64,OUT)
    f = attended[S - 1:S, :]                                 # (1, H)
    h1 = jnp.maximum(lin(f, w1, b1), 0.0)
    h2 = jnp.maximum(lin(h1, w2, b2), 0.0)
    out = lin(h2, w3, b3)                                    # (1, OUT)
    out_ref[0] = out.astype(out_ref.dtype)


def attention_mlp(x, pa, pm, num_heads):
    B, S, H = x.shape
    out_dim = pm["W3"].shape[1]

    def fixed(shape):
        return pl.BlockSpec(shape, lambda b: (0,) * len(shape))

    weights = (pa["Wt"], pa["bt"], pa["Wc"], pa["bc"],
               pa["Wq"], pa["bq"], pa["Wk"], pa["bk"],
               pa["Wv"], pa["bv"], pa["Wo"], pa["bo"],
               pm["W1"], pm["b1"], pm["W2"], pm["b2"], pm["W3"], pm["b3"])

    out3, aw = pl.pallas_call(
        partial(_attn_mlp_kernel, num_heads=num_heads),
        grid=(B,),
        in_specs=[pl.BlockSpec((1, S, H), lambda b: (b, 0, 0))]
                 + [fixed(w.shape) for w in weights],
        out_specs=(
            pl.BlockSpec((1, 1, out_dim), lambda b: (b, 0, 0)),
            pl.BlockSpec((1, num_heads, S, S), lambda b: (b, 0, 0, 0)),
        ),
        out_shape=(
            jax.ShapeDtypeStruct((B, 1, out_dim), jnp.float32),
            jax.ShapeDtypeStruct((B, num_heads, S, S), jnp.float32),
        ),
        compiler_params=pltpu.CompilerParams(
            dimension_semantics=("parallel",)),
    )(x, *weights)
    return out3[:, 0, :], aw


# ----------------------------------------------------------------------------
# Full MCI_GRU_Model forward (3 pallas_calls total).
# ----------------------------------------------------------------------------
def mci_gru_forward(x, params, num_heads):
    gru1_ln, _ = improved_gru_ln(x, params["gru1"],
                                 params["ln1_g"], params["ln1_b"])
    gru2_ln, _final_hidden = improved_gru_ln(gru1_ln, params["gru2"],
                                             params["ln2_g"], params["ln2_b"])
    out, attn_w = attention_mlp(gru2_ln, params["attn"], params["mlp"], num_heads)
    return out, attn_w


# ----------------------------------------------------------------------------
# Deterministic parameter initialization (shapes from the nn.Module __init__).
# GRU input/gate weights are pre-fused: W_in = [W_z|W_a|W_h], U_za = [U_z|U_a].
# ----------------------------------------------------------------------------
def init_params(key, input_size, hidden, output_size):
    keys = iter(jax.random.split(key, 64))

    def nrm(shape, scale=0.1):
        return (scale * jax.random.normal(next(keys), shape)).astype(jnp.float32)

    def gru_params(din, h):
        W_z, W_a, W_h = nrm((din, h)), nrm((din, h)), nrm((din, h))
        U_z, U_a, U_h = nrm((h, h)), nrm((h, h)), nrm((h, h))
        return dict(
            W_in=jnp.concatenate([W_z, W_a, W_h], axis=1),   # (din, 3h)
            U_za=jnp.concatenate([U_z, U_a], axis=1),        # (h, 2h)
            U_h=U_h,
            b_z=jnp.zeros((1, h), jnp.float32),
            v_a=nrm((1, h), 1.0),                            # torch.randn(hidden)
            b_h=jnp.zeros((1, h), jnp.float32),
        )

    return dict(
        gru1=gru_params(input_size, hidden),
        gru2=gru_params(hidden, hidden),
        ln1_g=jnp.ones((1, hidden), jnp.float32),
        ln1_b=jnp.zeros((1, hidden), jnp.float32),
        ln2_g=jnp.ones((1, hidden), jnp.float32),
        ln2_b=jnp.zeros((1, hidden), jnp.float32),
        attn=dict(
            Wt=nrm((hidden, hidden)), bt=nrm((1, hidden), 0.02),
            Wc=nrm((hidden, hidden)), bc=nrm((1, hidden), 0.02),
            Wq=nrm((hidden, hidden)), bq=nrm((1, hidden), 0.02),
            Wk=nrm((hidden, hidden)), bk=nrm((1, hidden), 0.02),
            Wv=nrm((hidden, hidden)), bv=nrm((1, hidden), 0.02),
            Wo=nrm((hidden, hidden)), bo=nrm((1, hidden), 0.02),
        ),
        mlp=dict(
            W1=nrm((hidden, 128)), b1=nrm((1, 128), 0.02),
            W2=nrm((128, 64)), b2=nrm((1, 64), 0.02),
            W3=nrm((64, output_size)), b3=nrm((1, output_size), 0.02),
        ),
    )


if __name__ == "__main__":
    B, S, F = 2, 8, 4          # batch, seq, input features
    H, NH, OUT = 32, 4, 1      # hidden, num_heads, output_size

    key = jax.random.PRNGKey(0)
    kx, kp = jax.random.split(key)
    x = jax.random.normal(kx, (B, S, F), dtype=jnp.float32)
    params = init_params(kp, F, H, OUT)

    fwd = jax.jit(lambda xx, pp: mci_gru_forward(xx, pp, NH))
    out, attn_w = fwd(x, params)
    jax.block_until_ready((out, attn_w))

    assert out.shape == (B, OUT)
    assert attn_w.shape == (B, NH, S, S)
    assert bool(jnp.all(jnp.isfinite(out)))
    assert bool(jnp.all(jnp.isfinite(attn_w)))
    print("KERNEL_OK")
</pallas_src>

<mosaic_0001>
module attributes {stable_mosaic.version = 11 : i64} {
  func.func @_gru_ln_kernel(%arg0: i32, %arg1: memref<2x8x32xf32, #tpu.memory_space<vmem>>, %arg2: memref<32x96xf32, #tpu.memory_space<vmem>>, %arg3: memref<32x64xf32, #tpu.memory_space<vmem>>, %arg4: memref<32x32xf32, #tpu.memory_space<vmem>>, %arg5: memref<1x32xf32, #tpu.memory_space<vmem>>, %arg6: memref<1x32xf32, #tpu.memory_space<vmem>>, %arg7: memref<1x32xf32, #tpu.memory_space<vmem>>, %arg8: memref<1x32xf32, #tpu.memory_space<vmem>>, %arg9: memref<1x32xf32, #tpu.memory_space<vmem>>, %arg10: memref<2x8x32xf32, #tpu.memory_space<vmem>>, %arg11: memref<2x32xf32, #tpu.memory_space<vmem>>, %arg12: memref<2x32xf32, #tpu.memory_space<vmem>>) attributes {dimension_semantics = [#tpu.dimension_semantics<arbitrary>], iteration_bounds = array<i64: 1>, scalar_prefetch = 0 : i64, scratch_operands = 1 : i64, tpu.core_type = #tpu.core_type<tc>, window_params = [{transform_indices = @transform_0, window_bounds = array<i64: 2, 8, 32>}, {pipeline_mode = #tpu.pipeline_mode<synchronous>, transform_indices = @transform_1, window_bounds = array<i64: 32, 96>}, {pipeline_mode = #tpu.pipeline_mode<synchronous>, transform_indices = @transform_2, window_bounds = array<i64: 32, 64>}, {pipeline_mode = #tpu.pipeline_mode<synchronous>, transform_indices = @transform_3, window_bounds = array<i64: 32, 32>}, {pipeline_mode = #tpu.pipeline_mode<synchronous>, transform_indices = @transform_4, window_bounds = array<i64: 1, 32>}, {pipeline_mode = #tpu.pipeline_mode<synchronous>, transform_indices = @transform_5, window_bounds = array<i64: 1, 32>}, {pipeline_mode = #tpu.pipeline_mode<synchronous>, transform_indices = @transform_6, window_bounds = array<i64: 1, 32>}, {pipeline_mode = #tpu.pipeline_mode<synchronous>, transform_indices = @transform_7, window_bounds = array<i64: 1, 32>}, {pipeline_mode = #tpu.pipeline_mode<synchronous>, transform_indices = @transform_8, window_bounds = array<i64: 1, 32>}, {transform_indices = @transform_9, window_bounds = array<i64: 2, 8, 32>}, {pipeline_mode = #tpu.pipeline_mode<synchronous>, transform_indices = @transform_10, window_bounds = array<i64: 2, 32>}]} {
    %c0_i32 = arith.constant 0 : i32
    %0 = arith.cmpi eq, %arg0, %c0_i32 : i32
    %1 = arith.extui %0 : i1 to i32
    %c0_i32_0 = arith.constant 0 : i32
    %2 = arith.cmpi ne, %1, %c0_i32_0 : i32
    scf.if %2 {
      %cst_129 = arith.constant 0.000000e+00 : f32
      %425 = vector.broadcast %cst_129 : f32 to vector<2x32xf32>
      %c0_130 = arith.constant 0 : index
      %c0_131 = arith.constant 0 : index
      %426 = vector.load %arg12[%c0_130, %c0_131] : memref<2x32xf32, #tpu.memory_space<vmem>>, vector<2x32xf32>
      tpu.vector_store %arg12[%c0_130, %c0_131], %425 {strides = array<i32>} : memref<2x32xf32, #tpu.memory_space<vmem>>, vector<2x32xf32>,
    } else {
    }
    %c0 = arith.constant 0 : index
    %c0_1 = arith.constant 0 : index
    %c0_2 = arith.constant 0 : index
    %3 = vector.load %arg1[%c0, %c0_1, %c0_2] : memref<2x8x32xf32, #tpu.memory_space<vmem>>, vector<2x8x32xf32>
    %4 = vector.shape_cast %3 : vector<2x8x32xf32> to vector<16x32xf32>
    %c0_3 = arith.constant 0 : index
    %c0_4 = arith.constant 0 : index
    %5 = vector.load %arg2[%c0_3, %c0_4] : memref<32x96xf32, #tpu.memory_space<vmem>>, vector<32x96xf32>
    %cst = arith.constant dense<0.000000e+00> : vector<16x96xf32>
    %6 = tpu.matmul %4, %5, %cst {dimension_numbers = #tpu.dot_dimension_numbers<[1], [0], [0], [1], [0, 0, 1, 1], [], []>} : vector<16x32xf32>, vector<32x96xf32>, vector<16x96xf32> -> vector<16x96xf32>
    %7 = vector.extract_strided_slice %6 {offsets = [0, 0], sizes = [16, 32], strides = [1, 1]} : vector<16x96xf32> to vector<16x32xf32>
    %8 = vector.shape_cast %7 : vector<16x32xf32> to vector<2x8x32xf32>
    %9 = vector.extract_strided_slice %6 {offsets = [0, 32], sizes = [16, 32], strides = [1, 1]} : vector<16x96xf32> to vector<16x32xf32>
    %10 = vector.shape_cast %9 : vector<16x32xf32> to vector<2x8x32xf32>
    %11 = vector.extract_strided_slice %6 {offsets = [0, 64], sizes = [16, 32], strides = [1, 1]} : vector<16x96xf32> to vector<16x32xf32>
    %12 = vector.shape_cast %11 : vector<16x32xf32> to vector<2x8x32xf32>
    %c0_5 = arith.constant 0 : index
    %c0_6 = arith.constant 0 : index
    %13 = vector.load %arg5[%c0_5, %c0_6] : memref<1x32xf32, #tpu.memory_space<vmem>>, vector<1x32xf32>
    %c0_7 = arith.constant 0 : index
    %c0_8 = arith.constant 0 : index
    %14 = vector.load %arg6[%c0_7, %c0_8] : memref<1x32xf32, #tpu.memory_space<vmem>>, vector<1x32xf32>
    %c0_9 = arith.constant 0 : index
    %c0_10 = arith.constant 0 : index
    %15 = vector.load %arg7[%c0_9, %c0_10] : memref<1x32xf32, #tpu.memory_space<vmem>>, vector<1x32xf32>
    %c0_11 = arith.constant 0 : index
    %c0_12 = arith.constant 0 : index
    %16 = vector.load %arg12[%c0_11, %c0_12] : memref<2x32xf32, #tpu.memory_space<vmem>>, vector<2x32xf32>
    %c0_13 = arith.constant 0 : index
    %c0_14 = arith.constant 0 : index
    %17 = vector.load %arg3[%c0_13, %c0_14] : memref<32x64xf32, #tpu.memory_space<vmem>>, vector<32x64xf32>
    %cst_15 = arith.constant dense<0.000000e+00> : vector<2x64xf32>
    %18 = tpu.matmul %16, %17, %cst_15 {dimension_numbers = #tpu.dot_dimension_numbers<[1], [0], [0], [1], [0, 0, 1, 1], [], []>} : vector<2x32xf32>, vector<32x64xf32>, vector<2x64xf32> -> vector<2x64xf32>
    %19 = vector.extract_strided_slice %8 {offsets = [0, 0, 0], sizes = [2, 1, 32], strides = [1, 1, 1]} : vector<2x8x32xf32> to vector<2x1x32xf32>
    %20 = vector.shape_cast %19 : vector<2x1x32xf32> to vector<2x32xf32>
    %21 = vector.extract_strided_slice %18 {offsets = [0, 0], sizes = [2, 32], strides = [1, 1]} : vector<2x64xf32> to vector<2x32xf32>
    %22 = arith.addf %20, %21 : vector<2x32xf32>
    %23 = vector.broadcast %13 : vector<1x32xf32> to vector<2x32xf32>
    %24 = arith.addf %22, %23 : vector<2x32xf32>
    %25 = arith.negf %24 : vector<2x32xf32>
    %26 = math.exp %25 : vector<2x32xf32>
    %cst_16 = arith.constant 1.000000e+00 : f32
    %27 = vector.broadcast %cst_16 : f32 to vector<2x32xf32>
    %28 = arith.addf %27, %26 : vector<2x32xf32>
    %29 = arith.divf %27, %28 : vector<2x32xf32>
    %30 = vector.extract_strided_slice %10 {offsets = [0, 0, 0], sizes = [2, 1, 32], strides = [1, 1, 1]} : vector<2x8x32xf32> to vector<2x1x32xf32>
    %31 = vector.shape_cast %30 : vector<2x1x32xf32> to vector<2x32xf32>
    %32 = vector.extract_strided_slice %18 {offsets = [0, 32], sizes = [2, 32], strides = [1, 1]} : vector<2x64xf32> to vector<2x32xf32>
    %33 = arith.addf %31, %32 : vector<2x32xf32>
    %34 = math.tanh %33 : vector<2x32xf32>
    %35 = vector.broadcast %14 : vector<1x32xf32> to vector<2x32xf32>
    %36 = arith.mulf %34, %35 : vector<2x32xf32>
    %cst_17 = arith.constant dense<0xFF800000> : vector<2xf32>
    %37 = vector.multi_reduction <maximumf>, %36, %cst_17 [1] : vector<2x32xf32> to vector<2xf32>
    %38 = vector.shape_cast %37 : vector<2xf32> to vector<2x1xf32>
    %39 = vector.broadcast %38 : vector<2x1xf32> to vector<2x32xf32>
    %40 = arith.subf %36, %39 : vector<2x32xf32>
    %41 = math.exp %40 : vector<2x32xf32>
    %cst_18 = arith.constant dense<0.000000e+00> : vector<2xf32>
    %42 = vector.multi_reduction <add>, %41, %cst_18 [1] : vector<2x32xf32> to vector<2xf32>
    %43 = vector.shape_cast %42 : vector<2xf32> to vector<2x1xf32>
    %44 = tpu.reciprocal %43 {approx = true} : vector<2x1xf32> -> vector<2x1xf32>
    %45 = vector.broadcast %44 : vector<2x1xf32> to vector<2x32xf32>
    %46 = arith.mulf %41, %45 : vector<2x32xf32>
    %47 = arith.mulf %46, %16 : vector<2x32xf32>
    %48 = vector.extract_strided_slice %12 {offsets = [0, 0, 0], sizes = [2, 1, 32], strides = [1, 1, 1]} : vector<2x8x32xf32> to vector<2x1x32xf32>
    %49 = vector.shape_cast %48 : vector<2x1x32xf32> to vector<2x32xf32>
    %c0_19 = arith.constant 0 : index
    %c0_20 = arith.constant 0 : index
    %50 = vector.load %arg4[%c0_19, %c0_20] : memref<32x32xf32, #tpu.memory_space<vmem>>, vector<32x32xf32>
    %cst_21 = arith.constant dense<0.000000e+00> : vector<2x32xf32>
    %51 = tpu.matmul %47, %50, %cst_21 {dimension_numbers = #tpu.dot_dimension_numbers<[1], [0], [0], [1], [0, 0, 1, 1], [], []>} : vector<2x32xf32>, vector<32x32xf32>, vector<2x32xf32> -> vector<2x32xf32>
    %52 = arith.addf %49, %51 : vector<2x32xf32>
    %53 = vector.broadcast %15 : vector<1x32xf32> to vector<2x32xf32>
    %54 = arith.addf %52, %53 : vector<2x32xf32>
    %55 = math.tanh %54 : vector<2x32xf32>
    %cst_22 = arith.constant 1.000000e+00 : f32
    %56 = vector.broadcast %cst_22 : f32 to vector<2x32xf32>
    %57 = arith.subf %56, %29 : vector<2x32xf32>
    %58 = arith.mulf %57, %16 : vector<2x32xf32>
    %59 = arith.mulf %29, %55 : vector<2x32xf32>
    %60 = arith.addf %58, %59 : vector<2x32xf32>
    %c0_23 = arith.constant 0 : index
    %c0_24 = arith.constant 0 : index
    %c0_25 = arith.constant 0 : index
    %61 = vector.load %arg10[%c0_23, %c0_24, %c0_25] : memref<2x8x32xf32, #tpu.memory_space<vmem>>, vector<2x1x32xf32>
    %62 = vector.shape_cast %61 : vector<2x1x32xf32> to vector<2x32xf32>
    %63 = vector.shape_cast %60 : vector<2x32xf32> to vector<2x1x32xf32>
    tpu.vector_store %arg10[%c0_23, %c0_24, %c0_25], %63 {strides = array<i32>} : memref<2x8x32xf32, #tpu.memory_space<vmem>>, vector<2x1x32xf32>,
    %c0_26 = arith.constant 0 : index
    %c0_27 = arith.constant 0 : index
    %64 = vector.load %arg3[%c0_26, %c0_27] : memref<32x64xf32, #tpu.memory_space<vmem>>, vector<32x64xf32>
    %cst_28 = arith.constant dense<0.000000e+00> : vector<2x64xf32>
    %65 = tpu.matmul %60, %64, %cst_28 {dimension_numbers = #tpu.dot_dimension_numbers<[1], [0], [0], [1], [0, 0, 1, 1], [], []>} : vector<2x32xf32>, vector<32x64xf32>, vector<2x64xf32> -> vector<2x64xf32>
    %66 = vector.extract_strided_slice %8 {offsets = [0, 1, 0], sizes = [2, 1, 32], strides = [1, 1, 1]} : vector<2x8x32xf32> to vector<2x1x32xf32>
    %67 = vector.shape_cast %66 : vector<2x1x32xf32> to vector<2x32xf32>
    %68 = vector.extract_strided_slice %65 {offsets = [0, 0], sizes = [2, 32], strides = [1, 1]} : vector<2x64xf32> to vector<2x32xf32>
    %69 = arith.addf %67, %68 : vector<2x32xf32>
    %70 = vector.broadcast %13 : vector<1x32xf32> to vector<2x32xf32>
    %71 = arith.addf %69, %70 : vector<2x32xf32>
    %72 = arith.negf %71 : vector<2x32xf32>
    %73 = math.exp %72 : vector<2x32xf32>
    %cst_29 = arith.constant 1.000000e+00 : f32
    %74 = vector.broadcast %cst_29 : f32 to vector<2x32xf32>
    %75 = arith.addf %74, %73 : vector<2x32xf32>
    %76 = arith.divf %74, %75 : vector<2x32xf32>
    %77 = vector.extract_strided_slice %10 {offsets = [0, 1, 0], sizes = [2, 1, 32], strides = [1, 1, 1]} : vector<2x8x32xf32> to vector<2x1x32xf32>
    %78 = vector.shape_cast %77 : vector<2x1x32xf32> to vector<2x32xf32>
    %79 = vector.extract_strided_slice %65 {offsets = [0, 32], sizes = [2, 32], strides = [1, 1]} : vector<2x64xf32> to vector<2x32xf32>
    %80 = arith.addf %78, %79 : vector<2x32xf32>
    %81 = math.tanh %80 : vector<2x32xf32>
    %82 = vector.broadcast %14 : vector<1x32xf32> to vector<2x32xf32>
    %83 = arith.mulf %81, %82 : vector<2x32xf32>
    %cst_30 = arith.constant dense<0xFF800000> : vector<2xf32>
    %84 = vector.multi_reduction <maximumf>, %83, %cst_30 [1] : vector<2x32xf32> to vector<2xf32>
    %85 = vector.shape_cast %84 : vector<2xf32> to vector<2x1xf32>
    %86 = vector.broadcast %85 : vector<2x1xf32> to vector<2x32xf32>
    %87 = arith.subf %83, %86 : vector<2x32xf32>
    %88 = math.exp %87 : vector<2x32xf32>
    %cst_31 = arith.constant dense<0.000000e+00> : vector<2xf32>
    %89 = vector.multi_reduction <add>, %88, %cst_31 [1] : vector<2x32xf32> to vector<2xf32>
    %90 = vector.shape_cast %89 : vector<2xf32> to vector<2x1xf32>
    %91 = tpu.reciprocal %90 {approx = true} : vector<2x1xf32> -> vector<2x1xf32>
    %92 = vector.broadcast %91 : vector<2x1xf32> to vector<2x32xf32>
    %93 = arith.mulf %88, %92 : vector<2x32xf32>
    %94 = arith.mulf %93, %60 : vector<2x32xf32>
    %95 = vector.extract_strided_slice %12 {offsets = [0, 1, 0], sizes = [2, 1, 32], strides = [1, 1, 1]} : vector<2x8x32xf32> to vector<2x1x32xf32>
    %96 = vector.shape_cast %95 : vector<2x1x32xf32> to vector<2x32xf32>
    %c0_32 = arith.constant 0 : index
    %c0_33 = arith.constant 0 : index
    %97 = vector.load %arg4[%c0_32, %c0_33] : memref<32x32xf32, #tpu.memory_space<vmem>>, vector<32x32xf32>
    %cst_34 = arith.constant dense<0.000000e+00> : vector<2x32xf32>
    %98 = tpu.matmul %94, %97, %cst_34 {dimension_numbers = #tpu.dot_dimension_numbers<[1], [0], [0], [1], [0, 0, 1, 1], [], []>} : vector<2x32xf32>, vector<32x32xf32>, vector<2x32xf32> -> vector<2x32xf32>
    %99 = arith.addf %96, %98 : vector<2x32xf32>
    %100 = vector.broadcast %15 : vector<1x32xf32> to vector<2x32xf32>
    %101 = arith.addf %99, %100 : vector<2x32xf32>
    %102 = math.tanh %101 : vector<2x32xf32>
    %cst_35 = arith.constant 1.000000e+00 : f32
    %103 = vector.broadcast %cst_35 : f32 to vector<2x32xf32>
    %104 = arith.subf %103, %76 : vector<2x32xf32>
    %105 = arith.mulf %104, %60 : vector<2x32xf32>
    %106 = arith.mulf %76, %102 : vector<2x32xf32>
    %107 = arith.addf %105, %106 : vector<2x32xf32>
    %c0_36 = arith.constant 0 : index
    %c1 = arith.constant 1 : index
    %c0_37 = arith.constant 0 : index
    %108 = vector.load %arg10[%c0_36, %c1, %c0_37] : memref<2x8x32xf32, #tpu.memory_space<vmem>>, vector<2x1x32xf32>
    %109 = vector.shape_cast %108 : vector<2x1x32xf32> to vector<2x32xf32>
    %110 = vector.shape_cast %107 : vector<2x32xf32> to vector<2x1x32xf32>
    tpu.vector_store %arg10[%c0_36, %c1, %c0_37], %110 {strides = array<i32>} : memref<2x8x32xf32, #tpu.memory_space<vmem>>, vector<2x1x32xf32>,
    %c0_38 = arith.constant 0 : index
    %c0_39 = arith.constant 0 : index
    %111 = vector.load %arg3[%c0_38, %c0_39] : memref<32x64xf32, #tpu.memory_space<vmem>>, vector<32x64xf32>
    %cst_40 = arith.constant dense<0.000000e+00> : vector<2x64xf32>
    %112 = tpu.matmul %107, %111, %cst_40 {dimension_numbers = #tpu.dot_dimension_numbers<[1], [0], [0], [1], [0, 0, 1, 1], [], []>} : vector<2x32xf32>, vector<32x64xf32>, vector<2x64xf32> -> vector<2x64xf32>
    %113 = vector.extract_strided_slice %8 {offsets = [0, 2, 0], sizes = [2, 1, 32], strides = [1, 1, 1]} : vector<2x8x32xf32> to vector<2x1x32xf32>
    %114 = vector.shape_cast %113 : vector<2x1x32xf32> to vector<2x32xf32>
    %115 = vector.extract_strided_slice %112 {offsets = [0, 0], sizes = [2, 32], strides = [1, 1]} : vector<2x64xf32> to vector<2x32xf32>
    %116 = arith.addf %114, %115 : vector<2x32xf32>
    %117 = vector.broadcast %13 : vector<1x32xf32> to vector<2x32xf32>
    %118 = arith.addf %116, %117 : vector<2x32xf32>
    %119 = arith.negf %118 : vector<2x32xf32>
    %120 = math.exp %119 : vector<2x32xf32>
    %cst_41 = arith.constant 1.000000e+00 : f32
    %121 = vector.broadcast %cst_41 : f32 to vector<2x32xf32>
    %122 = arith.addf %121, %120 : vector<2x32xf32>
    %123 = arith.divf %121, %122 : vector<2x32xf32>
    %124 = vector.extract_strided_slice %10 {offsets = [0, 2, 0], sizes = [2, 1, 32], strides = [1, 1, 1]} : vector<2x8x32xf32> to vector<2x1x32xf32>
    %125 = vector.shape_cast %124 : vector<2x1x32xf32> to vector<2x32xf32>
    %126 = vector.extract_strided_slice %112 {offsets = [0, 32], sizes = [2, 32], strides = [1, 1]} : vector<2x64xf32> to vector<2x32xf32>
    %127 = arith.addf %125, %126 : vector<2x32xf32>
    %128 = math.tanh %127 : vector<2x32xf32>
    %129 = vector.broadcast %14 : vector<1x32xf32> to vector<2x32xf32>
    %130 = arith.mulf %128, %129 : vector<2x32xf32>
    %cst_42 = arith.constant dense<0xFF800000> : vector<2xf32>
    %131 = vector.multi_reduction <maximumf>, %130, %cst_42 [1] : vector<2x32xf32> to vector<2xf32>
    %132 = vector.shape_cast %131 : vector<2xf32> to vector<2x1xf32>
    %133 = vector.broadcast %132 : vector<2x1xf32> to vector<2x32xf32>
    %134 = arith.subf %130, %133 : vector<2x32xf32>
    %135 = math.exp %134 : vector<2x32xf32>
    %cst_43 = arith.constant dense<0.000000e+00> : vector<2xf32>
    %136 = vector.multi_reduction <add>, %135, %cst_43 [1] : vector<2x32xf32> to vector<2xf32>
    %137 = vector.shape_cast %136 : vector<2xf32> to vector<2x1xf32>
    %138 = tpu.reciprocal %137 {approx = true} : vector<2x1xf32> -> vector<2x1xf32>
    %139 = vector.broadcast %138 : vector<2x1xf32> to vector<2x32xf32>
    %140 = arith.mulf %135, %139 : vector<2x32xf32>
    %141 = arith.mulf %140, %107 : vector<2x32xf32>
    %142 = vector.extract_strided_slice %12 {offsets = [0, 2, 0], sizes = [2, 1, 32], strides = [1, 1, 1]} : vector<2x8x32xf32> to vector<2x1x32xf32>
    %143 = vector.shape_cast %142 : vector<2x1x32xf32> to vector<2x32xf32>
    %c0_44 = arith.constant 0 : index
    %c0_45 = arith.constant 0 : index
    %144 = vector.load %arg4[%c0_44, %c0_45] : memref<32x32xf32, #tpu.memory_space<vmem>>, vector<32x32xf32>
    %cst_46 = arith.constant dense<0.000000e+00> : vector<2x32xf32>
    %145 = tpu.matmul %141, %144, %cst_46 {dimension_numbers = #tpu.dot_dimension_numbers<[1], [0], [0], [1], [0, 0, 1, 1], [], []>} : vector<2x32xf32>, vector<32x32xf32>, vector<2x32xf32> -> vector<2x32xf32>
    %146 = arith.addf %143, %145 : vector<2x32xf32>
    %147 = vector.broadcast %15 : vector<1x32xf32> to vector<2x32xf32>
    %148 = arith.addf %146, %147 : vector<2x32xf32>
    %149 = math.tanh %148 : vector<2x32xf32>
    %cst_47 = arith.constant 1.000000e+00 : f32
    %150 = vector.broadcast %cst_47 : f32 to vector<2x32xf32>
    %151 = arith.subf %150, %123 : vector<2x32xf32>
    %152 = arith.mulf %151, %107 : vector<2x32xf32>
    %153 = arith.mulf %123, %149 : vector<2x32xf32>
    %154 = arith.addf %152, %153 : vector<2x32xf32>
    %c0_48 = arith.constant 0 : index
    %c2 = arith.constant 2 : index
    %c0_49 = arith.constant 0 : index
    %155 = vector.load %arg10[%c0_48, %c2, %c0_49] : memref<2x8x32xf32, #tpu.memory_space<vmem>>, vector<2x1x32xf32>
    %156 = vector.shape_cast %155 : vector<2x1x32xf32> to vector<2x32xf32>
    %157 = vector.shape_cast %154 : vector<2x32xf32> to vector<2x1x32xf32>
    tpu.vector_store %arg10[%c0_48, %c2, %c0_49], %157 {strides = array<i32>} : memref<2x8x32xf32, #tpu.memory_space<vmem>>, vector<2x1x32xf32>,
    %c0_50 = arith.constant 0 : index
    %c0_51 = arith.constant 0 : index
    %158 = vector.load %arg3[%c0_50, %c0_51] : memref<32x64xf32, #tpu.memory_space<vmem>>, vector<32x64xf32>
    %cst_52 = arith.constant dense<0.000000e+00> : vector<2x64xf32>
    %159 = tpu.matmul %154, %158, %cst_52 {dimension_numbers = #tpu.dot_dimension_numbers<[1], [0], [0], [1], [0, 0, 1, 1], [], []>} : vector<2x32xf32>, vector<32x64xf32>, vector<2x64xf32> -> vector<2x64xf32>
    %160 = vector.extract_strided_slice %8 {offsets = [0, 3, 0], sizes = [2, 1, 32], strides = [1, 1, 1]} : vector<2x8x32xf32> to vector<2x1x32xf32>
    %161 = vector.shape_cast %160 : vector<2x1x32xf32> to vector<2x32xf32>
    %162 = vector.extract_strided_slice %159 {offsets = [0, 0], sizes = [2, 32], strides = [1, 1]} : vector<2x64xf32> to vector<2x32xf32>
    %163 = arith.addf %161, %162 : vector<2x32xf32>
    %164 = vector.broadcast %13 : vector<1x32xf32> to vector<2x32xf32>
    %165 = arith.addf %163, %164 : vector<2x32xf32>
    %166 = arith.negf %165 : vector<2x32xf32>
    %167 = math.exp %166 : vector<2x32xf32>
    %cst_53 = arith.constant 1.000000e+00 : f32
    %168 = vector.broadcast %cst_53 : f32 to vector<2x32xf32>
    %169 = arith.addf %168, %167 : vector<2x32xf32>
    %170 = arith.divf %168, %169 : vector<2x32xf32>
    %171 = vector.extract_strided_slice %10 {offsets = [0, 3, 0], sizes = [2, 1, 32], strides = [1, 1, 1]} : vector<2x8x32xf32> to vector<2x1x32xf32>
    %172 = vector.shape_cast %171 : vector<2x1x32xf32> to vector<2x32xf32>
    %173 = vector.extract_strided_slice %159 {offsets = [0, 32], sizes = [2, 32], strides = [1, 1]} : vector<2x64xf32> to vector<2x32xf32>
    %174 = arith.addf %172, %173 : vector<2x32xf32>
    %175 = math.tanh %174 : vector<2x32xf32>
    %176 = vector.broadcast %14 : vector<1x32xf32> to vector<2x32xf32>
    %177 = arith.mulf %175, %176 : vector<2x32xf32>
    %cst_54 = arith.constant dense<0xFF800000> : vector<2xf32>
    %178 = vector.multi_reduction <maximumf>, %177, %cst_54 [1] : vector<2x32xf32> to vector<2xf32>
    %179 = vector.shape_cast %178 : vector<2xf32> to vector<2x1xf32>
    %180 = vector.broadcast %179 : vector<2x1xf32> to vector<2x32xf32>
    %181 = arith.subf %177, %180 : vector<2x32xf32>
    %182 = math.exp %181 : vector<2x32xf32>
    %cst_55 = arith.constant dense<0.000000e+00> : vector<2xf32>
    %183 = vector.multi_reduction <add>, %182, %cst_55 [1] : vector<2x32xf32> to vector<2xf32>
    %184 = vector.shape_cast %183 : vector<2xf32> to vector<2x1xf32>
    %185 = tpu.reciprocal %184 {approx = true} : vector<2x1xf32> -> vector<2x1xf32>
    %186 = vector.broadcast %185 : vector<2x1xf32> to vector<2x32xf32>
    %187 = arith.mulf %182, %186 : vector<2x32xf32>
    %188 = arith.mulf %187, %154 : vector<2x32xf32>
    %189 = vector.extract_strided_slice %12 {offsets = [0, 3, 0], sizes = [2, 1, 32], strides = [1, 1, 1]} : vector<2x8x32xf32> to vector<2x1x32xf32>
    %190 = vector.shape_cast %189 : vector<2x1x32xf32> to vector<2x32xf32>
    %c0_56 = arith.constant 0 : index
    %c0_57 = arith.constant 0 : index
    %191 = vector.load %arg4[%c0_56, %c0_57] : memref<32x32xf32, #tpu.memory_space<vmem>>, vector<32x32xf32>
    %cst_58 = arith.constant dense<0.000000e+00> : vector<2x32xf32>
    %192 = tpu.matmul %188, %191, %cst_58 {dimension_numbers = #tpu.dot_dimension_numbers<[1], [0], [0], [1], [0, 0, 1, 1], [], []>} : vector<2x32xf32>, vector<32x32xf32>, vector<2x32xf32> -> vector<2x32xf32>
    %193 = arith.addf %190, %192 : vector<2x32xf32>
    %194 = vector.broadcast %15 : vector<1x32xf32> to vector<2x32xf32>
    %195 = arith.addf %193, %194 : vector<2x32xf32>
    %196 = math.tanh %195 : vector<2x32xf32>
    %cst_59 = arith.constant 1.000000e+00 : f32
    %197 = vector.broadcast %cst_59 : f32 to vector<2x32xf32>
    %198 = arith.subf %197, %170 : vector<2x32xf32>
    %199 = arith.mulf %198, %154 : vector<2x32xf32>
    %200 = arith.mulf %170, %196 : vector<2x32xf32>
    %201 = arith.addf %199, %200 : vector<2x32xf32>
    %c0_60 = arith.constant 0 : index
    %c3 = arith.constant 3 : index
    %c0_61 = arith.constant 0 : index
    %202 = vector.load %arg10[%c0_60, %c3, %c0_61] : memref<2x8x32xf32, #tpu.memory_space<vmem>>, vector<2x1x32xf32>
    %203 = vector.shape_cast %202 : vector<2x1x32xf32> to vector<2x32xf32>
    %204 = vector.shape_cast %201 : vector<2x32xf32> to vector<2x1x32xf32>
    tpu.vector_store %arg10[%c0_60, %c3, %c0_61], %204 {strides = array<i32>} : memref<2x8x32xf32, #tpu.memory_space<vmem>>, vector<2x1x32xf32>,
    %c0_62 = arith.constant 0 : index
    %c0_63 = arith.constant 0 : index
    %205 = vector.load %arg3[%c0_62, %c0_63] : memref<32x64xf32, #tpu.memory_space<vmem>>, vector<32x64xf32>
    %cst_64 = arith.constant dense<0.000000e+00> : vector<2x64xf32>
    %206 = tpu.matmul %201, %205, %cst_64 {dimension_numbers = #tpu.dot_dimension_numbers<[1], [0], [0], [1], [0, 0, 1, 1], [], []>} : vector<2x32xf32>, vector<32x64xf32>, vector<2x64xf32> -> vector<2x64xf32>
    %207 = vector.extract_strided_slice %8 {offsets = [0, 4, 0], sizes = [2, 1, 32], strides = [1, 1, 1]} : vector<2x8x32xf32> to vector<2x1x32xf32>
    %208 = vector.shape_cast %207 : vector<2x1x32xf32> to vector<2x32xf32>
    %209 = vector.extract_strided_slice %206 {offsets = [0, 0], sizes = [2, 32], strides = [1, 1]} : vector<2x64xf32> to vector<2x32xf32>
    %210 = arith.addf %208, %209 : vector<2x32xf32>
    %211 = vector.broadcast %13 : vector<1x32xf32> to vector<2x32xf32>
    %212 = arith.addf %210, %211 : vector<2x32xf32>
    %213 = arith.negf %212 : vector<2x32xf32>
    %214 = math.exp %213 : vector<2x32xf32>
    %cst_65 = arith.constant 1.000000e+00 : f32
    %215 = vector.broadcast %cst_65 : f32 to vector<2x32xf32>
    %216 = arith.addf %215, %214 : vector<2x32xf32>
    %217 = arith.divf %215, %216 : vector<2x32xf32>
    %218 = vector.extract_strided_slice %10 {offsets = [0, 4, 0], sizes = [2, 1, 32], strides = [1, 1, 1]} : vector<2x8x32xf32> to vector<2x1x32xf32>
    %219 = vector.shape_cast %218 : vector<2x1x32xf32> to vector<2x32xf32>
    %220 = vector.extract_strided_slice %206 {offsets = [0, 32], sizes = [2, 32], strides = [1, 1]} : vector<2x64xf32> to vector<2x32xf32>
    %221 = arith.addf %219, %220 : vector<2x32xf32>
    %222 = math.tanh %221 : vector<2x32xf32>
    %223 = vector.broadcast %14 : vector<1x32xf32> to vector<2x32xf32>
    %224 = arith.mulf %222, %223 : vector<2x32xf32>
    %cst_66 = arith.constant dense<0xFF800000> : vector<2xf32>
    %225 = vector.multi_reduction <maximumf>, %224, %cst_66 [1] : vector<2x32xf32> to vector<2xf32>
    %226 = vector.shape_cast %225 : vector<2xf32> to vector<2x1xf32>
    %227 = vector.broadcast %226 : vector<2x1xf32> to vector<2x32xf32>
    %228 = arith.subf %224, %227 : vector<2x32xf32>
    %229 = math.exp %228 : vector<2x32xf32>
    %cst_67 = arith.constant dense<0.000000e+00> : vector<2xf32>
    %230 = vector.multi_reduction <add>, %229, %cst_67 [1] : vector<2x32xf32> to vector<2xf32>
    %231 = vector.shape_cast %230 : vector<2xf32> to vector<2x1xf32>
    %232 = tpu.reciprocal %231 {approx = true} : vector<2x1xf32> -> vector<2x1xf32>
    %233 = vector.broadcast %232 : vector<2x1xf32> to vector<2x32xf32>
    %234 = arith.mulf %229, %233 : vector<2x32xf32>
    %235 = arith.mulf %234, %201 : vector<2x32xf32>
    %236 = vector.extract_strided_slice %12 {offsets = [0, 4, 0], sizes = [2, 1, 32], strides = [1, 1, 1]} : vector<2x8x32xf32> to vector<2x1x32xf32>
    %237 = vector.shape_cast %236 : vector<2x1x32xf32> to vector<2x32xf32>
    %c0_68 = arith.constant 0 : index
    %c0_69 = arith.constant 0 : index
    %238 = vector.load %arg4[%c0_68, %c0_69] : memref<32x32xf32, #tpu.memory_space<vmem>>, vector<32x32xf32>
    %cst_70 = arith.constant dense<0.000000e+00> : vector<2x32xf32>
    %239 = tpu.matmul %235, %238, %cst_70 {dimension_numbers = #tpu.dot_dimension_numbers<[1], [0], [0], [1], [0, 0, 1, 1], [], []>} : vector<2x32xf32>, vector<32x32xf32>, vector<2x32xf32> -> vector<2x32xf32>
    %240 = arith.addf %237, %239 : vector<2x32xf32>
    %241 = vector.broadcast %15 : vector<1x32xf32> to vector<2x32xf32>
    %242 = arith.addf %240, %241 : vector<2x32xf32>
    %243 = math.tanh %242 : vector<2x32xf32>
    %cst_71 = arith.constant 1.000000e+00 : f32
    %244 = vector.broadcast %cst_71 : f32 to vector<2x32xf32>
    %245 = arith.subf %244, %217 : vector<2x32xf32>
    %246 = arith.mulf %245, %201 : vector<2x32xf32>
    %247 = arith.mulf %217, %243 : vector<2x32xf32>
    %248 = arith.addf %246, %247 : vector<2x32xf32>
    %c0_72 = arith.constant 0 : index
    %c4 = arith.constant 4 : index
    %c0_73 = arith.constant 0 : index
    %249 = vector.load %arg10[%c0_72, %c4, %c0_73] : memref<2x8x32xf32, #tpu.memory_space<vmem>>, vector<2x1x32xf32>
    %250 = vector.shape_cast %249 : vector<2x1x32xf32> to vector<2x32xf32>
    %251 = vector.shape_cast %248 : vector<2x32xf32> to vector<2x1x32xf32>
    tpu.vector_store %arg10[%c0_72, %c4, %c0_73], %251 {strides = array<i32>} : memref<2x8x32xf32, #tpu.memory_space<vmem>>, vector<2x1x32xf32>,
    %c0_74 = arith.constant 0 : index
    %c0_75 = arith.constant 0 : index
    %252 = vector.load %arg3[%c0_74, %c0_75] : memref<32x64xf32, #tpu.memory_space<vmem>>, vector<32x64xf32>
    %cst_76 = arith.constant dense<0.000000e+00> : vector<2x64xf32>
    %253 = tpu.matmul %248, %252, %cst_76 {dimension_numbers = #tpu.dot_dimension_numbers<[1], [0], [0], [1], [0, 0, 1, 1], [], []>} : vector<2x32xf32>, vector<32x64xf32>, vector<2x64xf32> -> vector<2x64xf32>
    %254 = vector.extract_strided_slice %8 {offsets = [0, 5, 0], sizes = [2, 1, 32], strides = [1, 1, 1]} : vector<2x8x32xf32> to vector<2x1x32xf32>
    %255 = vector.shape_cast %254 : vector<2x1x32xf32> to vector<2x32xf32>
    %256 = vector.extract_strided_slice %253 {offsets = [0, 0], sizes = [2, 32], strides = [1, 1]} : vector<2x64xf32> to vector<2x32xf32>
    %257 = arith.addf %255, %256 : vector<2x32xf32>
    %258 = vector.broadcast %13 : vector<1x32xf32> to vector<2x32xf32>
    %259 = arith.addf %257, %258 : vector<2x32xf32>
    %260 = arith.negf %259 : vector<2x32xf32>
    %261 = math.exp %260 : vector<2x32xf32>
    %cst_77 = arith.constant 1.000000e+00 : f32
    %262 = vector.broadcast %cst_77 : f32 to vector<2x32xf32>
    %263 = arith.addf %262, %261 : vector<2x32xf32>
    %264 = arith.divf %262, %263 : vector<2x32xf32>
    %265 = vector.extract_strided_slice %10 {offsets = [0, 5, 0], sizes = [2, 1, 32], strides = [1, 1, 1]} : vector<2x8x32xf32> to vector<2x1x32xf32>
    %266 = vector.shape_cast %265 : vector<2x1x32xf32> to vector<2x32xf32>
    %267 = vector.extract_strided_slice %253 {offsets = [0, 32], sizes = [2, 32], strides = [1, 1]} : vector<2x64xf32> to vector<2x32xf32>
    %268 = arith.addf %266, %267 : vector<2x32xf32>
    %269 = math.tanh %268 : vector<2x32xf32>
    %270 = vector.broadcast %14 : vector<1x32xf32> to vector<2x32xf32>
    %271 = arith.mulf %269, %270 : vector<2x32xf32>
    %cst_78 = arith.constant dense<0xFF800000> : vector<2xf32>
    %272 = vector.multi_reduction <maximumf>, %271, %cst_78 [1] : vector<2x32xf32> to vector<2xf32>
    %273 = vector.shape_cast %272 : vector<2xf32> to vector<2x1xf32>
    %274 = vector.broadcast %273 : vector<2x1xf32> to vector<2x32xf32>
    %275 = arith.subf %271, %274 : vector<2x32xf32>
    %276 = math.exp %275 : vector<2x32xf32>
    %cst_79 = arith.constant dense<0.000000e+00> : vector<2xf32>
    %277 = vector.multi_reduction <add>, %276, %cst_79 [1] : vector<2x32xf32> to vector<2xf32>
    %278 = vector.shape_cast %277 : vector<2xf32> to vector<2x1xf32>
    %279 = tpu.reciprocal %278 {approx = true} : vector<2x1xf32> -> vector<2x1xf32>
    %280 = vector.broadcast %279 : vector<2x1xf32> to vector<2x32xf32>
    %281 = arith.mulf %276, %280 : vector<2x32xf32>
    %282 = arith.mulf %281, %248 : vector<2x32xf32>
    %283 = vector.extract_strided_slice %12 {offsets = [0, 5, 0], sizes = [2, 1, 32], strides = [1, 1, 1]} : vector<2x8x32xf32> to vector<2x1x32xf32>
    %284 = vector.shape_cast %283 : vector<2x1x32xf32> to vector<2x32xf32>
    %c0_80 = arith.constant 0 : index
    %c0_81 = arith.constant 0 : index
    %285 = vector.load %arg4[%c0_80, %c0_81] : memref<32x32xf32, #tpu.memory_space<vmem>>, vector<32x32xf32>
    %cst_82 = arith.constant dense<0.000000e+00> : vector<2x32xf32>
    %286 = tpu.matmul %282, %285, %cst_82 {dimension_numbers = #tpu.dot_dimension_numbers<[1], [0], [0], [1], [0, 0, 1, 1], [], []>} : vector<2x32xf32>, vector<32x32xf32>, vector<2x32xf32> -> vector<2x32xf32>
    %287 = arith.addf %284, %286 : vector<2x32xf32>
    %288 = vector.broadcast %15 : vector<1x32xf32> to vector<2x32xf32>
    %289 = arith.addf %287, %288 : vector<2x32xf32>
    %290 = math.tanh %289 : vector<2x32xf32>
    %cst_83 = arith.constant 1.000000e+00 : f32
    %291 = vector.broadcast %cst_83 : f32 to vector<2x32xf32>
    %292 = arith.subf %291, %264 : vector<2x32xf32>
    %293 = arith.mulf %292, %248 : vector<2x32xf32>
    %294 = arith.mulf %264, %290 : vector<2x32xf32>
    %295 = arith.addf %293, %294 : vector<2x32xf32>
    %c0_84 = arith.constant 0 : index
    %c5 = arith.constant 5 : index
    %c0_85 = arith.constant 0 : index
    %296 = vector.load %arg10[%c0_84, %c5, %c0_85] : memref<2x8x32xf32, #tpu.memory_space<vmem>>, vector<2x1x32xf32>
    %297 = vector.shape_cast %296 : vector<2x1x32xf32> to vector<2x32xf32>
    %298 = vector.shape_cast %295 : vector<2x32xf32> to vector<2x1x32xf32>
    tpu.vector_store %arg10[%c0_84, %c5, %c0_85], %298 {strides = array<i32>} : memref<2x8x32xf32, #tpu.memory_space<vmem>>, vector<2x1x32xf32>,
    %c0_86 = arith.constant 0 : index
    %c0_87 = arith.constant 0 : index
    %299 = vector.load %arg3[%c0_86, %c0_87] : memref<32x64xf32, #tpu.memory_space<vmem>>, vector<32x64xf32>
    %cst_88 = arith.constant dense<0.000000e+00> : vector<2x64xf32>
    %300 = tpu.matmul %295, %299, %cst_88 {dimension_numbers = #tpu.dot_dimension_numbers<[1], [0], [0], [1], [0, 0, 1, 1], [], []>} : vector<2x32xf32>, vector<32x64xf32>, vector<2x64xf32> -> vector<2x64xf32>
    %301 = vector.extract_strided_slice %8 {offsets = [0, 6, 0], sizes = [2, 1, 32], strides = [1, 1, 1]} : vector<2x8x32xf32> to vector<2x1x32xf32>
    %302 = vector.shape_cast %301 : vector<2x1x32xf32> to vector<2x32xf32>
    %303 = vector.extract_strided_slice %300 {offsets = [0, 0], sizes = [2, 32], strides = [1, 1]} : vector<2x64xf32> to vector<2x32xf32>
    %304 = arith.addf %302, %303 : vector<2x32xf32>
    %305 = vector.broadcast %13 : vector<1x32xf32> to vector<2x32xf32>
    %306 = arith.addf %304, %305 : vector<2x32xf32>
    %307 = arith.negf %306 : vector<2x32xf32>
    %308 = math.exp %307 : vector<2x32xf32>
    %cst_89 = arith.constant 1.000000e+00 : f32
    %309 = vector.broadcast %cst_89 : f32 to vector<2x32xf32>
    %310 = arith.addf %309, %308 : vector<2x32xf32>
    %311 = arith.divf %309, %310 : vector<2x32xf32>
    %312 = vector.extract_strided_slice %10 {offsets = [0, 6, 0], sizes = [2, 1, 32], strides = [1, 1, 1]} : vector<2x8x32xf32> to vector<2x1x32xf32>
    %313 = vector.shape_cast %312 : vector<2x1x32xf32> to vector<2x32xf32>
    %314 = vector.extract_strided_slice %300 {offsets = [0, 32], sizes = [2, 32], strides = [1, 1]} : vector<2x64xf32> to vector<2x32xf32>
    %315 = arith.addf %313, %314 : vector<2x32xf32>
    %316 = math.tanh %315 : vector<2x32xf32>
    %317 = vector.broadcast %14 : vector<1x32xf32> to vector<2x32xf32>
    %318 = arith.mulf %316, %317 : vector<2x32xf32>
    %cst_90 = arith.constant dense<0xFF800000> : vector<2xf32>
    %319 = vector.multi_reduction <maximumf>, %318, %cst_90 [1] : vector<2x32xf32> to vector<2xf32>
    %320 = vector.shape_cast %319 : vector<2xf32> to vector<2x1xf32>
    %321 = vector.broadcast %320 : vector<2x1xf32> to vector<2x32xf32>
    %322 = arith.subf %318, %321 : vector<2x32xf32>
    %323 = math.exp %322 : vector<2x32xf32>
    %cst_91 = arith.constant dense<0.000000e+00> : vector<2xf32>
    %324 = vector.multi_reduction <add>, %323, %cst_91 [1] : vector<2x32xf32> to vector<2xf32>
    %325 = vector.shape_cast %324 : vector<2xf32> to vector<2x1xf32>
    %326 = tpu.reciprocal %325 {approx = true} : vector<2x1xf32> -> vector<2x1xf32>
    %327 = vector.broadcast %326 : vector<2x1xf32> to vector<2x32xf32>
    %328 = arith.mulf %323, %327 : vector<2x32xf32>
    %329 = arith.mulf %328, %295 : vector<2x32xf32>
    %330 = vector.extract_strided_slice %12 {offsets = [0, 6, 0], sizes = [2, 1, 32], strides = [1, 1, 1]} : vector<2x8x32xf32> to vector<2x1x32xf32>
    %331 = vector.shape_cast %330 : vector<2x1x32xf32> to vector<2x32xf32>
    %c0_92 = arith.constant 0 : index
    %c0_93 = arith.constant 0 : index
    %332 = vector.load %arg4[%c0_92, %c0_93] : memref<32x32xf32, #tpu.memory_space<vmem>>, vector<32x32xf32>
    %cst_94 = arith.constant dense<0.000000e+00> : vector<2x32xf32>
    %333 = tpu.matmul %329, %332, %cst_94 {dimension_numbers = #tpu.dot_dimension_numbers<[1], [0], [0], [1], [0, 0, 1, 1], [], []>} : vector<2x32xf32>, vector<32x32xf32>, vector<2x32xf32> -> vector<2x32xf32>
    %334 = arith.addf %331, %333 : vector<2x32xf32>
    %335 = vector.broadcast %15 : vector<1x32xf32> to vector<2x32xf32>
    %336 = arith.addf %334, %335 : vector<2x32xf32>
    %337 = math.tanh %336 : vector<2x32xf32>
    %cst_95 = arith.constant 1.000000e+00 : f32
    %338 = vector.broadcast %cst_95 : f32 to vector<2x32xf32>
    %339 = arith.subf %338, %311 : vector<2x32xf32>
    %340 = arith.mulf %339, %295 : vector<2x32xf32>
    %341 = arith.mulf %311, %337 : vector<2x32xf32>
    %342 = arith.addf %340, %341 : vector<2x32xf32>
    %c0_96 = arith.constant 0 : index
    %c6 = arith.constant 6 : index
    %c0_97 = arith.constant 0 : index
    %343 = vector.load %arg10[%c0_96, %c6, %c0_97] : memref<2x8x32xf32, #tpu.memory_space<vmem>>, vector<2x1x32xf32>
    %344 = vector.shape_cast %343 : vector<2x1x32xf32> to vector<2x32xf32>
    %345 = vector.shape_cast %342 : vector<2x32xf32> to vector<2x1x32xf32>
    tpu.vector_store %arg10[%c0_96, %c6, %c0_97], %345 {strides = array<i32>} : memref<2x8x32xf32, #tpu.memory_space<vmem>>, vector<2x1x32xf32>,
    %c0_98 = arith.constant 0 : index
    %c0_99 = arith.constant 0 : index
    %346 = vector.load %arg3[%c0_98, %c0_99] : memref<32x64xf32, #tpu.memory_space<vmem>>, vector<32x64xf32>
    %cst_100 = arith.constant dense<0.000000e+00> : vector<2x64xf32>
    %347 = tpu.matmul %342, %346, %cst_100 {dimension_numbers = #tpu.dot_dimension_numbers<[1], [0], [0], [1], [0, 0, 1, 1], [], []>} : vector<2x32xf32>, vector<32x64xf32>, vector<2x64xf32> -> vector<2x64xf32>
    %348 = vector.extract_strided_slice %8 {offsets = [0, 7, 0], sizes = [2, 1, 32], strides = [1, 1, 1]} : vector<2x8x32xf32> to vector<2x1x32xf32>
    %349 = vector.shape_cast %348 : vector<2x1x32xf32> to vector<2x32xf32>
    %350 = vector.extract_strided_slice %347 {offsets = [0, 0], sizes = [2, 32], strides = [1, 1]} : vector<2x64xf32> to vector<2x32xf32>
    %351 = arith.addf %349, %350 : vector<2x32xf32>
    %352 = vector.broadcast %13 : vector<1x32xf32> to vector<2x32xf32>
    %353 = arith.addf %351, %352 : vector<2x32xf32>
    %354 = arith.negf %353 : vector<2x32xf32>
    %355 = math.exp %354 : vector<2x32xf32>
    %cst_101 = arith.constant 1.000000e+00 : f32
    %356 = vector.broadcast %cst_101 : f32 to vector<2x32xf32>
    %357 = arith.addf %356, %355 : vector<2x32xf32>
    %358 = arith.divf %356, %357 : vector<2x32xf32>
    %359 = vector.extract_strided_slice %10 {offsets = [0, 7, 0], sizes = [2, 1, 32], strides = [1, 1, 1]} : vector<2x8x32xf32> to vector<2x1x32xf32>
    %360 = vector.shape_cast %359 : vector<2x1x32xf32> to vector<2x32xf32>
    %361 = vector.extract_strided_slice %347 {offsets = [0, 32], sizes = [2, 32], strides = [1, 1]} : vector<2x64xf32> to vector<2x32xf32>
    %362 = arith.addf %360, %361 : vector<2x32xf32>
    %363 = math.tanh %362 : vector<2x32xf32>
    %364 = vector.broadcast %14 : vector<1x32xf32> to vector<2x32xf32>
    %365 = arith.mulf %363, %364 : vector<2x32xf32>
    %cst_102 = arith.constant dense<0xFF800000> : vector<2xf32>
    %366 = vector.multi_reduction <maximumf>, %365, %cst_102 [1] : vector<2x32xf32> to vector<2xf32>
    %367 = vector.shape_cast %366 : vector<2xf32> to vector<2x1xf32>
    %368 = vector.broadcast %367 : vector<2x1xf32> to vector<2x32xf32>
    %369 = arith.subf %365, %368 : vector<2x32xf32>
    %370 = math.exp %369 : vector<2x32xf32>
    %cst_103 = arith.constant dense<0.000000e+00> : vector<2xf32>
    %371 = vector.multi_reduction <add>, %370, %cst_103 [1] : vector<2x32xf32> to vector<2xf32>
    %372 = vector.shape_cast %371 : vector<2xf32> to vector<2x1xf32>
    %373 = tpu.reciprocal %372 {approx = true} : vector<2x1xf32> -> vector<2x1xf32>
    %374 = vector.broadcast %373 : vector<2x1xf32> to vector<2x32xf32>
    %375 = arith.mulf %370, %374 : vector<2x32xf32>
    %376 = arith.mulf %375, %342 : vector<2x32xf32>
    %377 = vector.extract_strided_slice %12 {offsets = [0, 7, 0], sizes = [2, 1, 32], strides = [1, 1, 1]} : vector<2x8x32xf32> to vector<2x1x32xf32>
    %378 = vector.shape_cast %377 : vector<2x1x32xf32> to vector<2x32xf32>
    %c0_104 = arith.constant 0 : index
    %c0_105 = arith.constant 0 : index
    %379 = vector.load %arg4[%c0_104, %c0_105] : memref<32x32xf32, #tpu.memory_space<vmem>>, vector<32x32xf32>
    %cst_106 = arith.constant dense<0.000000e+00> : vector<2x32xf32>
    %380 = tpu.matmul %376, %379, %cst_106 {dimension_numbers = #tpu.dot_dimension_numbers<[1], [0], [0], [1], [0, 0, 1, 1], [], []>} : vector<2x32xf32>, vector<32x32xf32>, vector<2x32xf32> -> vector<2x32xf32>
    %381 = arith.addf %378, %380 : vector<2x32xf32>
    %382 = vector.broadcast %15 : vector<1x32xf32> to vector<2x32xf32>
    %383 = arith.addf %381, %382 : vector<2x32xf32>
    %384 = math.tanh %383 : vector<2x32xf32>
    %cst_107 = arith.constant 1.000000e+00 : f32
    %385 = vector.broadcast %cst_107 : f32 to vector<2x32xf32>
    %386 = arith.subf %385, %358 : vector<2x32xf32>
    %387 = arith.mulf %386, %342 : vector<2x32xf32>
    %388 = arith.mulf %358, %384 : vector<2x32xf32>
    %389 = arith.addf %387, %388 : vector<2x32xf32>
    %c0_108 = arith.constant 0 : index
    %c7 = arith.constant 7 : index
    %c0_109 = arith.constant 0 : index
    %390 = vector.load %arg10[%c0_108, %c7, %c0_109] : memref<2x8x32xf32, #tpu.memory_space<vmem>>, vector<2x1x32xf32>
    %391 = vector.shape_cast %390 : vector<2x1x32xf32> to vector<2x32xf32>
    %392 = vector.shape_cast %389 : vector<2x32xf32> to vector<2x1x32xf32>
    tpu.vector_store %arg10[%c0_108, %c7, %c0_109], %392 {strides = array<i32>} : memref<2x8x32xf32, #tpu.memory_space<vmem>>, vector<2x1x32xf32>,
    %c0_110 = arith.constant 0 : index
    %c0_111 = arith.constant 0 : index
    %393 = vector.load %arg12[%c0_110, %c0_111] : memref<2x32xf32, #tpu.memory_space<vmem>>, vector<2x32xf32>
    tpu.vector_store %arg12[%c0_110, %c0_111], %389 {strides = array<i32>} : memref<2x32xf32, #tpu.memory_space<vmem>>, vector<2x32xf32>,
    %c0_112 = arith.constant 0 : index
    %c0_113 = arith.constant 0 : index
    %c0_114 = arith.constant 0 : index
    %394 = vector.load %arg10[%c0_112, %c0_113, %c0_114] : memref<2x8x32xf32, #tpu.memory_space<vmem>>, vector<2x8x32xf32>
    %cst_115 = arith.constant dense<0.000000e+00> : vector<2x8xf32>
    %395 = vector.multi_reduction <add>, %394, %cst_115 [2] : vector<2x8x32xf32> to vector<2x8xf32>
    %396 = vector.shape_cast %395 : vector<2x8xf32> to vector<2x8x1xf32>
    %cst_116 = arith.constant 3.200000e+01 : f32
    %397 = vector.broadcast %cst_116 : f32 to vector<2x8x1xf32>
    %398 = arith.divf %396, %397 : vector<2x8x1xf32>
    %399 = vector.broadcast %398 : vector<2x8x1xf32> to vector<2x8x32xf32>
    %400 = arith.subf %394, %399 : vector<2x8x32xf32>
    %401 = arith.mulf %400, %400 : vector<2x8x32xf32>
    %cst_117 = arith.constant dense<0.000000e+00> : vector<2x8xf32>
    %402 = vector.multi_reduction <add>, %401, %cst_117 [2] : vector<2x8x32xf32> to vector<2x8xf32>
    %403 = vector.shape_cast %402 : vector<2x8xf32> to vector<2x8x1xf32>
    %cst_118 = arith.constant 3.200000e+01 : f32
    %404 = vector.broadcast %cst_118 : f32 to vector<2x8x1xf32>
    %405 = arith.divf %403, %404 : vector<2x8x1xf32>
    %406 = vector.broadcast %398 : vector<2x8x1xf32> to vector<2x8x32xf32>
    %407 = arith.subf %394, %406 : vector<2x8x32xf32>
    %cst_119 = arith.constant 9.99999974E-6 : f32
    %408 = vector.broadcast %cst_119 : f32 to vector<2x8x1xf32>
    %409 = arith.addf %405, %408 : vector<2x8x1xf32>
    %410 = math.rsqrt %409 : vector<2x8x1xf32>
    %411 = vector.broadcast %410 : vector<2x8x1xf32> to vector<2x8x32xf32>
    %412 = arith.mulf %407, %411 : vector<2x8x32xf32>
    %c0_120 = arith.constant 0 : index
    %c0_121 = arith.constant 0 : index
    %413 = vector.load %arg8[%c0_120, %c0_121] : memref<1x32xf32, #tpu.memory_space<vmem>>, vector<1x32xf32>
    %414 = vector.shape_cast %413 : vector<1x32xf32> to vector<1x1x32xf32>
    %415 = vector.broadcast %414 : vector<1x1x32xf32> to vector<2x8x32xf32>
    %416 = arith.mulf %412, %415 : vector<2x8x32xf32>
    %c0_122 = arith.constant 0 : index
    %c0_123 = arith.constant 0 : index
    %417 = vector.load %arg9[%c0_122, %c0_123] : memref<1x32xf32, #tpu.memory_space<vmem>>, vector<1x32xf32>
    %418 = vector.shape_cast %417 : vector<1x32xf32> to vector<1x1x32xf32>
    %419 = vector.broadcast %418 : vector<1x1x32xf32> to vector<2x8x32xf32>
    %420 = arith.addf %416, %419 : vector<2x8x32xf32>
    %c0_124 = arith.constant 0 : index
    %c0_125 = arith.constant 0 : index
    %c0_126 = arith.constant 0 : index
    %421 = vector.load %arg10[%c0_124, %c0_125, %c0_126] : memref<2x8x32xf32, #tpu.memory_space<vmem>>, vector<2x8x32xf32>
    tpu.vector_store %arg10[%c0_124, %c0_125, %c0_126], %420 {strides = array<i32>} : memref<2x8x32xf32, #tpu.memory_space<vmem>>, vector<2x8x32xf32>,
    %c0_i32_127 = arith.constant 0 : i32
    %422 = arith.cmpi eq, %arg0, %c0_i32_127 : i32
    %423 = arith.extui %422 : i1 to i32
    %c0_i32_128 = arith.constant 0 : i32
    %424 = arith.cmpi ne, %423, %c0_i32_128 : i32
    scf.if %424 {
      %c0_129 = arith.constant 0 : index
      %c0_130 = arith.constant 0 : index
      %425 = vector.load %arg11[%c0_129, %c0_130] : memref<2x32xf32, #tpu.memory_space<vmem>>, vector<2x32xf32>
      tpu.vector_store %arg11[%c0_129, %c0_130], %389 {strides = array<i32>} : memref<2x32xf32, #tpu.memory_space<vmem>>, vector<2x32xf32>,
    } else {
    }
    return
  }
  func.func @transform_0(%arg0: i32) -> (i32, i32, i32) {
    %c0_i32 = arith.constant 0 : i32
    %c0_i32_0 = arith.constant 0 : i32
    %c0_i32_1 = arith.constant 0 : i32
    return %c0_i32, %arg0, %c0_i32_0 : i32, i32, i32
  }
  func.func @transform_1(%arg0: i32) -> (i32, i32) {
    %c0_i32 = arith.constant 0 : i32
    %c0_i32_0 = arith.constant 0 : i32
    %c0_i32_1 = arith.constant 0 : i32
    return %c0_i32, %c0_i32_0 : i32, i32
  }
  func.func @transform_2(%arg0: i32) -> (i32, i32) {
    %c0_i32 = arith.constant 0 : i32
    %c0_i32_0 = arith.constant 0 : i32
    %c0_i32_1 = arith.constant 0 : i32
    return %c0_i32, %c0_i32_0 : i32, i32
  }
  func.func @transform_3(%arg0: i32) -> (i32, i32) {
    %c0_i32 = arith.constant 0 : i32
    %c0_i32_0 = arith.constant 0 : i32
    %c0_i32_1 = arith.constant 0 : i32
    return %c0_i32, %c0_i32_0 : i32, i32
  }
  func.func @transform_4(%arg0: i32) -> (i32, i32) {
    %c0_i32 = arith.constant 0 : i32
    %c0_i32_0 = arith.constant 0 : i32
    %c0_i32_1 = arith.constant 0 : i32
    return %c0_i32, %c0_i32_0 : i32, i32
  }
  func.func @transform_5(%arg0: i32) -> (i32, i32) {
    %c0_i32 = arith.constant 0 : i32
    %c0_i32_0 = arith.constant 0 : i32
    %c0_i32_1 = arith.constant 0 : i32
    return %c0_i32, %c0_i32_0 : i32, i32
  }
  func.func @transform_6(%arg0: i32) -> (i32, i32) {
    %c0_i32 = arith.constant 0 : i32
    %c0_i32_0 = arith.constant 0 : i32
    %c0_i32_1 = arith.constant 0 : i32
    return %c0_i32, %c0_i32_0 : i32, i32
  }
  func.func @transform_7(%arg0: i32) -> (i32, i32) {
    %c0_i32 = arith.constant 0 : i32
    %c0_i32_0 = arith.constant 0 : i32
    %c0_i32_1 = arith.constant 0 : i32
    return %c0_i32, %c0_i32_0 : i32, i32
  }
  func.func @transform_8(%arg0: i32) -> (i32, i32) {
    %c0_i32 = arith.constant 0 : i32
    %c0_i32_0 = arith.constant 0 : i32
    %c0_i32_1 = arith.constant 0 : i32
    return %c0_i32, %c0_i32_0 : i32, i32
  }
  func.func @transform_9(%arg0: i32) -> (i32, i32, i32) {
    %c0_i32 = arith.constant 0 : i32
    %c0_i32_0 = arith.constant 0 : i32
    %c0_i32_1 = arith.constant 0 : i32
    return %c0_i32, %arg0, %c0_i32_0 : i32, i32, i32
  }
  func.func @transform_10(%arg0: i32) -> (i32, i32) {
    %c0_i32 = arith.constant 0 : i32
    %c0_i32_0 = arith.constant 0 : i32
    %c0_i32_1 = arith.constant 0 : i32
    return %c0_i32, %c0_i32_0 : i32, i32
  }
}

module attributes {stable_mosaic.version = 11 : i64} {
  func.func @_gru_ln_kernel(%arg0: i32, %arg1: memref<2x8x4xf32, #tpu.memory_space<vmem>>, %arg2: memref<4x96xf32, #tpu.memory_space<vmem>>, %arg3: memref<32x64xf32, #tpu.memory_space<vmem>>, %arg4: memref<32x32xf32, #tpu.memory_space<vmem>>, %arg5: memref<1x32xf32, #tpu.memory_space<vmem>>, %arg6: memref<1x32xf32, #tpu.memory_space<vmem>>, %arg7: memref<1x32xf32, #tpu.memory_space<vmem>>, %arg8: memref<1x32xf32, #tpu.memory_space<vmem>>, %arg9: memref<1x32xf32, #tpu.memory_space<vmem>>, %arg10: memref<2x8x32xf32, #tpu.memory_space<vmem>>, %arg11: memref<2x32xf32, #tpu.memory_space<vmem>>, %arg12: memref<2x32xf32, #tpu.memory_space<vmem>>) attributes {dimension_semantics = [#tpu.dimension_semantics<arbitrary>], iteration_bounds = array<i64: 1>, scalar_prefetch = 0 : i64, scratch_operands = 1 : i64, tpu.core_type = #tpu.core_type<tc>, window_params = [{transform_indices = @transform_0, window_bounds = array<i64: 2, 8, 4>}, {pipeline_mode = #tpu.pipeline_mode<synchronous>, transform_indices = @transform_1, window_bounds = array<i64: 4, 96>}, {pipeline_mode = #tpu.pipeline_mode<synchronous>, transform_indices = @transform_2, window_bounds = array<i64: 32, 64>}, {pipeline_mode = #tpu.pipeline_mode<synchronous>, transform_indices = @transform_3, window_bounds = array<i64: 32, 32>}, {pipeline_mode = #tpu.pipeline_mode<synchronous>, transform_indices = @transform_4, window_bounds = array<i64: 1, 32>}, {pipeline_mode = #tpu.pipeline_mode<synchronous>, transform_indices = @transform_5, window_bounds = array<i64: 1, 32>}, {pipeline_mode = #tpu.pipeline_mode<synchronous>, transform_indices = @transform_6, window_bounds = array<i64: 1, 32>}, {pipeline_mode = #tpu.pipeline_mode<synchronous>, transform_indices = @transform_7, window_bounds = array<i64: 1, 32>}, {pipeline_mode = #tpu.pipeline_mode<synchronous>, transform_indices = @transform_8, window_bounds = array<i64: 1, 32>}, {transform_indices = @transform_9, window_bounds = array<i64: 2, 8, 32>}, {pipeline_mode = #tpu.pipeline_mode<synchronous>, transform_indices = @transform_10, window_bounds = array<i64: 2, 32>}]} {
    %c0_i32 = arith.constant 0 : i32
    %0 = arith.cmpi eq, %arg0, %c0_i32 : i32
    %1 = arith.extui %0 : i1 to i32
    %c0_i32_0 = arith.constant 0 : i32
    %2 = arith.cmpi ne, %1, %c0_i32_0 : i32
    scf.if %2 {
      %cst_129 = arith.constant 0.000000e+00 : f32
      %425 = vector.broadcast %cst_129 : f32 to vector<2x32xf32>
      %c0_130 = arith.constant 0 : index
      %c0_131 = arith.constant 0 : index
      %426 = vector.load %arg12[%c0_130, %c0_131] : memref<2x32xf32, #tpu.memory_space<vmem>>, vector<2x32xf32>
      tpu.vector_store %arg12[%c0_130, %c0_131], %425 {strides = array<i32>} : memref<2x32xf32, #tpu.memory_space<vmem>>, vector<2x32xf32>,
    } else {
    }
    %c0 = arith.constant 0 : index
    %c0_1 = arith.constant 0 : index
    %c0_2 = arith.constant 0 : index
    %3 = vector.load %arg1[%c0, %c0_1, %c0_2] : memref<2x8x4xf32, #tpu.memory_space<vmem>>, vector<2x8x4xf32>
    %4 = vector.shape_cast %3 : vector<2x8x4xf32> to vector<16x4xf32>
    %c0_3 = arith.constant 0 : index
    %c0_4 = arith.constant 0 : index
    %5 = vector.load %arg2[%c0_3, %c0_4] : memref<4x96xf32, #tpu.memory_space<vmem>>, vector<4x96xf32>
    %cst = arith.constant dense<0.000000e+00> : vector<16x96xf32>
    %6 = tpu.matmul %4, %5, %cst {dimension_numbers = #tpu.dot_dimension_numbers<[1], [0], [0], [1], [0, 0, 1, 1], [], []>} : vector<16x4xf32>, vector<4x96xf32>, vector<16x96xf32> -> vector<16x96xf32>
    %7 = vector.extract_strided_slice %6 {offsets = [0, 0], sizes = [16, 32], strides = [1, 1]} : vector<16x96xf32> to vector<16x32xf32>
    %8 = vector.shape_cast %7 : vector<16x32xf32> to vector<2x8x32xf32>
    %9 = vector.extract_strided_slice %6 {offsets = [0, 32], sizes = [16, 32], strides = [1, 1]} : vector<16x96xf32> to vector<16x32xf32>
    %10 = vector.shape_cast %9 : vector<16x32xf32> to vector<2x8x32xf32>
    %11 = vector.extract_strided_slice %6 {offsets = [0, 64], sizes = [16, 32], strides = [1, 1]} : vector<16x96xf32> to vector<16x32xf32>
    %12 = vector.shape_cast %11 : vector<16x32xf32> to vector<2x8x32xf32>
    %c0_5 = arith.constant 0 : index
    %c0_6 = arith.constant 0 : index
    %13 = vector.load %arg5[%c0_5, %c0_6] : memref<1x32xf32, #tpu.memory_space<vmem>>, vector<1x32xf32>
    %c0_7 = arith.constant 0 : index
    %c0_8 = arith.constant 0 : index
    %14 = vector.load %arg6[%c0_7, %c0_8] : memref<1x32xf32, #tpu.memory_space<vmem>>, vector<1x32xf32>
    %c0_9 = arith.constant 0 : index
    %c0_10 = arith.constant 0 : index
    %15 = vector.load %arg7[%c0_9, %c0_10] : memref<1x32xf32, #tpu.memory_space<vmem>>, vector<1x32xf32>
    %c0_11 = arith.constant 0 : index
    %c0_12 = arith.constant 0 : index
    %16 = vector.load %arg12[%c0_11, %c0_12] : memref<2x32xf32, #tpu.memory_space<vmem>>, vector<2x32xf32>
    %c0_13 = arith.constant 0 : index
    %c0_14 = arith.constant 0 : index
    %17 = vector.load %arg3[%c0_13, %c0_14] : memref<32x64xf32, #tpu.memory_space<vmem>>, vector<32x64xf32>
    %cst_15 = arith.constant dense<0.000000e+00> : vector<2x64xf32>
    %18 = tpu.matmul %16, %17, %cst_15 {dimension_numbers = #tpu.dot_dimension_numbers<[1], [0], [0], [1], [0, 0, 1, 1], [], []>} : vector<2x32xf32>, vector<32x64xf32>, vector<2x64xf32> -> vector<2x64xf32>
    %19 = vector.extract_strided_slice %8 {offsets = [0, 0, 0], sizes = [2, 1, 32], strides = [1, 1, 1]} : vector<2x8x32xf32> to vector<2x1x32xf32>
    %20 = vector.shape_cast %19 : vector<2x1x32xf32> to vector<2x32xf32>
    %21 = vector.extract_strided_slice %18 {offsets = [0, 0], sizes = [2, 32], strides = [1, 1]} : vector<2x64xf32> to vector<2x32xf32>
    %22 = arith.addf %20, %21 : vector<2x32xf32>
    %23 = vector.broadcast %13 : vector<1x32xf32> to vector<2x32xf32>
    %24 = arith.addf %22, %23 : vector<2x32xf32>
    %25 = arith.negf %24 : vector<2x32xf32>
    %26 = math.exp %25 : vector<2x32xf32>
    %cst_16 = arith.constant 1.000000e+00 : f32
    %27 = vector.broadcast %cst_16 : f32 to vector<2x32xf32>
    %28 = arith.addf %27, %26 : vector<2x32xf32>
    %29 = arith.divf %27, %28 : vector<2x32xf32>
    %30 = vector.extract_strided_slice %10 {offsets = [0, 0, 0], sizes = [2, 1, 32], strides = [1, 1, 1]} : vector<2x8x32xf32> to vector<2x1x32xf32>
    %31 = vector.shape_cast %30 : vector<2x1x32xf32> to vector<2x32xf32>
    %32 = vector.extract_strided_slice %18 {offsets = [0, 32], sizes = [2, 32], strides = [1, 1]} : vector<2x64xf32> to vector<2x32xf32>
    %33 = arith.addf %31, %32 : vector<2x32xf32>
    %34 = math.tanh %33 : vector<2x32xf32>
    %35 = vector.broadcast %14 : vector<1x32xf32> to vector<2x32xf32>
    %36 = arith.mulf %34, %35 : vector<2x32xf32>
    %cst_17 = arith.constant dense<0xFF800000> : vector<2xf32>
    %37 = vector.multi_reduction <maximumf>, %36, %cst_17 [1] : vector<2x32xf32> to vector<2xf32>
    %38 = vector.shape_cast %37 : vector<2xf32> to vector<2x1xf32>
    %39 = vector.broadcast %38 : vector<2x1xf32> to vector<2x32xf32>
    %40 = arith.subf %36, %39 : vector<2x32xf32>
    %41 = math.exp %40 : vector<2x32xf32>
    %cst_18 = arith.constant dense<0.000000e+00> : vector<2xf32>
    %42 = vector.multi_reduction <add>, %41, %cst_18 [1] : vector<2x32xf32> to vector<2xf32>
    %43 = vector.shape_cast %42 : vector<2xf32> to vector<2x1xf32>
    %44 = tpu.reciprocal %43 {approx = true} : vector<2x1xf32> -> vector<2x1xf32>
    %45 = vector.broadcast %44 : vector<2x1xf32> to vector<2x32xf32>
    %46 = arith.mulf %41, %45 : vector<2x32xf32>
    %47 = arith.mulf %46, %16 : vector<2x32xf32>
    %48 = vector.extract_strided_slice %12 {offsets = [0, 0, 0], sizes = [2, 1, 32], strides = [1, 1, 1]} : vector<2x8x32xf32> to vector<2x1x32xf32>
    %49 = vector.shape_cast %48 : vector<2x1x32xf32> to vector<2x32xf32>
    %c0_19 = arith.constant 0 : index
    %c0_20 = arith.constant 0 : index
    %50 = vector.load %arg4[%c0_19, %c0_20] : memref<32x32xf32, #tpu.memory_space<vmem>>, vector<32x32xf32>
    %cst_21 = arith.constant dense<0.000000e+00> : vector<2x32xf32>
    %51 = tpu.matmul %47, %50, %cst_21 {dimension_numbers = #tpu.dot_dimension_numbers<[1], [0], [0], [1], [0, 0, 1, 1], [], []>} : vector<2x32xf32>, vector<32x32xf32>, vector<2x32xf32> -> vector<2x32xf32>
    %52 = arith.addf %49, %51 : vector<2x32xf32>
    %53 = vector.broadcast %15 : vector<1x32xf32> to vector<2x32xf32>
    %54 = arith.addf %52, %53 : vector<2x32xf32>
    %55 = math.tanh %54 : vector<2x32xf32>
    %cst_22 = arith.constant 1.000000e+00 : f32
    %56 = vector.broadcast %cst_22 : f32 to vector<2x32xf32>
    %57 = arith.subf %56, %29 : vector<2x32xf32>
    %58 = arith.mulf %57, %16 : vector<2x32xf32>
    %59 = arith.mulf %29, %55 : vector<2x32xf32>
    %60 = arith.addf %58, %59 : vector<2x32xf32>
    %c0_23 = arith.constant 0 : index
    %c0_24 = arith.constant 0 : index
    %c0_25 = arith.constant 0 : index
    %61 = vector.load %arg10[%c0_23, %c0_24, %c0_25] : memref<2x8x32xf32, #tpu.memory_space<vmem>>, vector<2x1x32xf32>
    %62 = vector.shape_cast %61 : vector<2x1x32xf32> to vector<2x32xf32>
    %63 = vector.shape_cast %60 : vector<2x32xf32> to vector<2x1x32xf32>
    tpu.vector_store %arg10[%c0_23, %c0_24, %c0_25], %63 {strides = array<i32>} : memref<2x8x32xf32, #tpu.memory_space<vmem>>, vector<2x1x32xf32>,
    %c0_26 = arith.constant 0 : index
    %c0_27 = arith.constant 0 : index
    %64 = vector.load %arg3[%c0_26, %c0_27] : memref<32x64xf32, #tpu.memory_space<vmem>>, vector<32x64xf32>
    %cst_28 = arith.constant dense<0.000000e+00> : vector<2x64xf32>
    %65 = tpu.matmul %60, %64, %cst_28 {dimension_numbers = #tpu.dot_dimension_numbers<[1], [0], [0], [1], [0, 0, 1, 1], [], []>} : vector<2x32xf32>, vector<32x64xf32>, vector<2x64xf32> -> vector<2x64xf32>
    %66 = vector.extract_strided_slice %8 {offsets = [0, 1, 0], sizes = [2, 1, 32], strides = [1, 1, 1]} : vector<2x8x32xf32> to vector<2x1x32xf32>
    %67 = vector.shape_cast %66 : vector<2x1x32xf32> to vector<2x32xf32>
    %68 = vector.extract_strided_slice %65 {offsets = [0, 0], sizes = [2, 32], strides = [1, 1]} : vector<2x64xf32> to vector<2x32xf32>
    %69 = arith.addf %67, %68 : vector<2x32xf32>
    %70 = vector.broadcast %13 : vector<1x32xf32> to vector<2x32xf32>
    %71 = arith.addf %69, %70 : vector<2x32xf32>
    %72 = arith.negf %71 : vector<2x32xf32>
    %73 = math.exp %72 : vector<2x32xf32>
    %cst_29 = arith.constant 1.000000e+00 : f32
    %74 = vector.broadcast %cst_29 : f32 to vector<2x32xf32>
    %75 = arith.addf %74, %73 : vector<2x32xf32>
    %76 = arith.divf %74, %75 : vector<2x32xf32>
    %77 = vector.extract_strided_slice %10 {offsets = [0, 1, 0], sizes = [2, 1, 32], strides = [1, 1, 1]} : vector<2x8x32xf32> to vector<2x1x32xf32>
    %78 = vector.shape_cast %77 : vector<2x1x32xf32> to vector<2x32xf32>
    %79 = vector.extract_strided_slice %65 {offsets = [0, 32], sizes = [2, 32], strides = [1, 1]} : vector<2x64xf32> to vector<2x32xf32>
    %80 = arith.addf %78, %79 : vector<2x32xf32>
    %81 = math.tanh %80 : vector<2x32xf32>
    %82 = vector.broadcast %14 : vector<1x32xf32> to vector<2x32xf32>
    %83 = arith.mulf %81, %82 : vector<2x32xf32>
    %cst_30 = arith.constant dense<0xFF800000> : vector<2xf32>
    %84 = vector.multi_reduction <maximumf>, %83, %cst_30 [1] : vector<2x32xf32> to vector<2xf32>
    %85 = vector.shape_cast %84 : vector<2xf32> to vector<2x1xf32>
    %86 = vector.broadcast %85 : vector<2x1xf32> to vector<2x32xf32>
    %87 = arith.subf %83, %86 : vector<2x32xf32>
    %88 = math.exp %87 : vector<2x32xf32>
    %cst_31 = arith.constant dense<0.000000e+00> : vector<2xf32>
    %89 = vector.multi_reduction <add>, %88, %cst_31 [1] : vector<2x32xf32> to vector<2xf32>
    %90 = vector.shape_cast %89 : vector<2xf32> to vector<2x1xf32>
    %91 = tpu.reciprocal %90 {approx = true} : vector<2x1xf32> -> vector<2x1xf32>
    %92 = vector.broadcast %91 : vector<2x1xf32> to vector<2x32xf32>
    %93 = arith.mulf %88, %92 : vector<2x32xf32>
    %94 = arith.mulf %93, %60 : vector<2x32xf32>
    %95 = vector.extract_strided_slice %12 {offsets = [0, 1, 0], sizes = [2, 1, 32], strides = [1, 1, 1]} : vector<2x8x32xf32> to vector<2x1x32xf32>
    %96 = vector.shape_cast %95 : vector<2x1x32xf32> to vector<2x32xf32>
    %c0_32 = arith.constant 0 : index
    %c0_33 = arith.constant 0 : index
    %97 = vector.load %arg4[%c0_32, %c0_33] : memref<32x32xf32, #tpu.memory_space<vmem>>, vector<32x32xf32>
    %cst_34 = arith.constant dense<0.000000e+00> : vector<2x32xf32>
    %98 = tpu.matmul %94, %97, %cst_34 {dimension_numbers = #tpu.dot_dimension_numbers<[1], [0], [0], [1], [0, 0, 1, 1], [], []>} : vector<2x32xf32>, vector<32x32xf32>, vector<2x32xf32> -> vector<2x32xf32>
    %99 = arith.addf %96, %98 : vector<2x32xf32>
    %100 = vector.broadcast %15 : vector<1x32xf32> to vector<2x32xf32>
    %101 = arith.addf %99, %100 : vector<2x32xf32>
    %102 = math.tanh %101 : vector<2x32xf32>
    %cst_35 = arith.constant 1.000000e+00 : f32
    %103 = vector.broadcast %cst_35 : f32 to vector<2x32xf32>
    %104 = arith.subf %103, %76 : vector<2x32xf32>
    %105 = arith.mulf %104, %60 : vector<2x32xf32>
    %106 = arith.mulf %76, %102 : vector<2x32xf32>
    %107 = arith.addf %105, %106 : vector<2x32xf32>
    %c0_36 = arith.constant 0 : index
    %c1 = arith.constant 1 : index
    %c0_37 = arith.constant 0 : index
    %108 = vector.load %arg10[%c0_36, %c1, %c0_37] : memref<2x8x32xf32, #tpu.memory_space<vmem>>, vector<2x1x32xf32>
    %109 = vector.shape_cast %108 : vector<2x1x32xf32> to vector<2x32xf32>
    %110 = vector.shape_cast %107 : vector<2x32xf32> to vector<2x1x32xf32>
    tpu.vector_store %arg10[%c0_36, %c1, %c0_37], %110 {strides = array<i32>} : memref<2x8x32xf32, #tpu.memory_space<vmem>>, vector<2x1x32xf32>,
    %c0_38 = arith.constant 0 : index
    %c0_39 = arith.constant 0 : index
    %111 = vector.load %arg3[%c0_38, %c0_39] : memref<32x64xf32, #tpu.memory_space<vmem>>, vector<32x64xf32>
    %cst_40 = arith.constant dense<0.000000e+00> : vector<2x64xf32>
    %112 = tpu.matmul %107, %111, %cst_40 {dimension_numbers = #tpu.dot_dimension_numbers<[1], [0], [0], [1], [0, 0, 1, 1], [], []>} : vector<2x32xf32>, vector<32x64xf32>, vector<2x64xf32> -> vector<2x64xf32>
    %113 = vector.extract_strided_slice %8 {offsets = [0, 2, 0], sizes = [2, 1, 32], strides = [1, 1, 1]} : vector<2x8x32xf32> to vector<2x1x32xf32>
    %114 = vector.shape_cast %113 : vector<2x1x32xf32> to vector<2x32xf32>
    %115 = vector.extract_strided_slice %112 {offsets = [0, 0], sizes = [2, 32], strides = [1, 1]} : vector<2x64xf32> to vector<2x32xf32>
    %116 = arith.addf %114, %115 : vector<2x32xf32>
    %117 = vector.broadcast %13 : vector<1x32xf32> to vector<2x32xf32>
    %118 = arith.addf %116, %117 : vector<2x32xf32>
    %119 = arith.negf %118 : vector<2x32xf32>
    %120 = math.exp %119 : vector<2x32xf32>
    %cst_41 = arith.constant 1.000000e+00 : f32
    %121 = vector.broadcast %cst_41 : f32 to vector<2x32xf32>
    %122 = arith.addf %121, %120 : vector<2x32xf32>
    %123 = arith.divf %121, %122 : vector<2x32xf32>
    %124 = vector.extract_strided_slice %10 {offsets = [0, 2, 0], sizes = [2, 1, 32], strides = [1, 1, 1]} : vector<2x8x32xf32> to vector<2x1x32xf32>
    %125 = vector.shape_cast %124 : vector<2x1x32xf32> to vector<2x32xf32>
    %126 = vector.extract_strided_slice %112 {offsets = [0, 32], sizes = [2, 32], strides = [1, 1]} : vector<2x64xf32> to vector<2x32xf32>
    %127 = arith.addf %125, %126 : vector<2x32xf32>
    %128 = math.tanh %127 : vector<2x32xf32>
    %129 = vector.broadcast %14 : vector<1x32xf32> to vector<2x32xf32>
    %130 = arith.mulf %128, %129 : vector<2x32xf32>
    %cst_42 = arith.constant dense<0xFF800000> : vector<2xf32>
    %131 = vector.multi_reduction <maximumf>, %130, %cst_42 [1] : vector<2x32xf32> to vector<2xf32>
    %132 = vector.shape_cast %131 : vector<2xf32> to vector<2x1xf32>
    %133 = vector.broadcast %132 : vector<2x1xf32> to vector<2x32xf32>
    %134 = arith.subf %130, %133 : vector<2x32xf32>
    %135 = math.exp %134 : vector<2x32xf32>
    %cst_43 = arith.constant dense<0.000000e+00> : vector<2xf32>
    %136 = vector.multi_reduction <add>, %135, %cst_43 [1] : vector<2x32xf32> to vector<2xf32>
    %137 = vector.shape_cast %136 : vector<2xf32> to vector<2x1xf32>
    %138 = tpu.reciprocal %137 {approx = true} : vector<2x1xf32> -> vector<2x1xf32>
    %139 = vector.broadcast %138 : vector<2x1xf32> to vector<2x32xf32>
    %140 = arith.mulf %135, %139 : vector<2x32xf32>
    %141 = arith.mulf %140, %107 : vector<2x32xf32>
    %142 = vector.extract_strided_slice %12 {offsets = [0, 2, 0], sizes = [2, 1, 32], strides = [1, 1, 1]} : vector<2x8x32xf32> to vector<2x1x32xf32>
    %143 = vector.shape_cast %142 : vector<2x1x32xf32> to vector<2x32xf32>
    %c0_44 = arith.constant 0 : index
    %c0_45 = arith.constant 0 : index
    %144 = vector.load %arg4[%c0_44, %c0_45] : memref<32x32xf32, #tpu.memory_space<vmem>>, vector<32x32xf32>
    %cst_46 = arith.constant dense<0.000000e+00> : vector<2x32xf32>
    %145 = tpu.matmul %141, %144, %cst_46 {dimension_numbers = #tpu.dot_dimension_numbers<[1], [0], [0], [1], [0, 0, 1, 1], [], []>} : vector<2x32xf32>, vector<32x32xf32>, vector<2x32xf32> -> vector<2x32xf32>
    %146 = arith.addf %143, %145 : vector<2x32xf32>
    %147 = vector.broadcast %15 : vector<1x32xf32> to vector<2x32xf32>
    %148 = arith.addf %146, %147 : vector<2x32xf32>
    %149 = math.tanh %148 : vector<2x32xf32>
    %cst_47 = arith.constant 1.000000e+00 : f32
    %150 = vector.broadcast %cst_47 : f32 to vector<2x32xf32>
    %151 = arith.subf %150, %123 : vector<2x32xf32>
    %152 = arith.mulf %151, %107 : vector<2x32xf32>
    %153 = arith.mulf %123, %149 : vector<2x32xf32>
    %154 = arith.addf %152, %153 : vector<2x32xf32>
    %c0_48 = arith.constant 0 : index
    %c2 = arith.constant 2 : index
    %c0_49 = arith.constant 0 : index
    %155 = vector.load %arg10[%c0_48, %c2, %c0_49] : memref<2x8x32xf32, #tpu.memory_space<vmem>>, vector<2x1x32xf32>
    %156 = vector.shape_cast %155 : vector<2x1x32xf32> to vector<2x32xf32>
    %157 = vector.shape_cast %154 : vector<2x32xf32> to vector<2x1x32xf32>
    tpu.vector_store %arg10[%c0_48, %c2, %c0_49], %157 {strides = array<i32>} : memref<2x8x32xf32, #tpu.memory_space<vmem>>, vector<2x1x32xf32>,
    %c0_50 = arith.constant 0 : index
    %c0_51 = arith.constant 0 : index
    %158 = vector.load %arg3[%c0_50, %c0_51] : memref<32x64xf32, #tpu.memory_space<vmem>>, vector<32x64xf32>
    %cst_52 = arith.constant dense<0.000000e+00> : vector<2x64xf32>
    %159 = tpu.matmul %154, %158, %cst_52 {dimension_numbers = #tpu.dot_dimension_numbers<[1], [0], [0], [1], [0, 0, 1, 1], [], []>} : vector<2x32xf32>, vector<32x64xf32>, vector<2x64xf32> -> vector<2x64xf32>
    %160 = vector.extract_strided_slice %8 {offsets = [0, 3, 0], sizes = [2, 1, 32], strides = [1, 1, 1]} : vector<2x8x32xf32> to vector<2x1x32xf32>
    %161 = vector.shape_cast %160 : vector<2x1x32xf32> to vector<2x32xf32>
    %162 = vector.extract_strided_slice %159 {offsets = [0, 0], sizes = [2, 32], strides = [1, 1]} : vector<2x64xf32> to vector<2x32xf32>
    %163 = arith.addf %161, %162 : vector<2x32xf32>
    %164 = vector.broadcast %13 : vector<1x32xf32> to vector<2x32xf32>
    %165 = arith.addf %163, %164 : vector<2x32xf32>
    %166 = arith.negf %165 : vector<2x32xf32>
    %167 = math.exp %166 : vector<2x32xf32>
    %cst_53 = arith.constant 1.000000e+00 : f32
    %168 = vector.broadcast %cst_53 : f32 to vector<2x32xf32>
    %169 = arith.addf %168, %167 : vector<2x32xf32>
    %170 = arith.divf %168, %169 : vector<2x32xf32>
    %171 = vector.extract_strided_slice %10 {offsets = [0, 3, 0], sizes = [2, 1, 32], strides = [1, 1, 1]} : vector<2x8x32xf32> to vector<2x1x32xf32>
    %172 = vector.shape_cast %171 : vector<2x1x32xf32> to vector<2x32xf32>
    %173 = vector.extract_strided_slice %159 {offsets = [0, 32], sizes = [2, 32], strides = [1, 1]} : vector<2x64xf32> to vector<2x32xf32>
    %174 = arith.addf %172, %173 : vector<2x32xf32>
    %175 = math.tanh %174 : vector<2x32xf32>
    %176 = vector.broadcast %14 : vector<1x32xf32> to vector<2x32xf32>
    %177 = arith.mulf %175, %176 : vector<2x32xf32>
    %cst_54 = arith.constant dense<0xFF800000> : vector<2xf32>
    %178 = vector.multi_reduction <maximumf>, %177, %cst_54 [1] : vector<2x32xf32> to vector<2xf32>
    %179 = vector.shape_cast %178 : vector<2xf32> to vector<2x1xf32>
    %180 = vector.broadcast %179 : vector<2x1xf32> to vector<2x32xf32>
    %181 = arith.subf %177, %180 : vector<2x32xf32>
    %182 = math.exp %181 : vector<2x32xf32>
    %cst_55 = arith.constant dense<0.000000e+00> : vector<2xf32>
    %183 = vector.multi_reduction <add>, %182, %cst_55 [1] : vector<2x32xf32> to vector<2xf32>
    %184 = vector.shape_cast %183 : vector<2xf32> to vector<2x1xf32>
    %185 = tpu.reciprocal %184 {approx = true} : vector<2x1xf32> -> vector<2x1xf32>
    %186 = vector.broadcast %185 : vector<2x1xf32> to vector<2x32xf32>
    %187 = arith.mulf %182, %186 : vector<2x32xf32>
    %188 = arith.mulf %187, %154 : vector<2x32xf32>
    %189 = vector.extract_strided_slice %12 {offsets = [0, 3, 0], sizes = [2, 1, 32], strides = [1, 1, 1]} : vector<2x8x32xf32> to vector<2x1x32xf32>
    %190 = vector.shape_cast %189 : vector<2x1x32xf32> to vector<2x32xf32>
    %c0_56 = arith.constant 0 : index
    %c0_57 = arith.constant 0 : index
    %191 = vector.load %arg4[%c0_56, %c0_57] : memref<32x32xf32, #tpu.memory_space<vmem>>, vector<32x32xf32>
    %cst_58 = arith.constant dense<0.000000e+00> : vector<2x32xf32>
    %192 = tpu.matmul %188, %191, %cst_58 {dimension_numbers = #tpu.dot_dimension_numbers<[1], [0], [0], [1], [0, 0, 1, 1], [], []>} : vector<2x32xf32>, vector<32x32xf32>, vector<2x32xf32> -> vector<2x32xf32>
    %193 = arith.addf %190, %192 : vector<2x32xf32>
    %194 = vector.broadcast %15 : vector<1x32xf32> to vector<2x32xf32>
    %195 = arith.addf %193, %194 : vector<2x32xf32>
    %196 = math.tanh %195 : vector<2x32xf32>
    %cst_59 = arith.constant 1.000000e+00 : f32
    %197 = vector.broadcast %cst_59 : f32 to vector<2x32xf32>
    %198 = arith.subf %197, %170 : vector<2x32xf32>
    %199 = arith.mulf %198, %154 : vector<2x32xf32>
    %200 = arith.mulf %170, %196 : vector<2x32xf32>
    %201 = arith.addf %199, %200 : vector<2x32xf32>
    %c0_60 = arith.constant 0 : index
    %c3 = arith.constant 3 : index
    %c0_61 = arith.constant 0 : index
    %202 = vector.load %arg10[%c0_60, %c3, %c0_61] : memref<2x8x32xf32, #tpu.memory_space<vmem>>, vector<2x1x32xf32>
    %203 = vector.shape_cast %202 : vector<2x1x32xf32> to vector<2x32xf32>
    %204 = vector.shape_cast %201 : vector<2x32xf32> to vector<2x1x32xf32>
    tpu.vector_store %arg10[%c0_60, %c3, %c0_61], %204 {strides = array<i32>} : memref<2x8x32xf32, #tpu.memory_space<vmem>>, vector<2x1x32xf32>,
    %c0_62 = arith.constant 0 : index
    %c0_63 = arith.constant 0 : index
    %205 = vector.load %arg3[%c0_62, %c0_63] : memref<32x64xf32, #tpu.memory_space<vmem>>, vector<32x64xf32>
    %cst_64 = arith.constant dense<0.000000e+00> : vector<2x64xf32>
    %206 = tpu.matmul %201, %205, %cst_64 {dimension_numbers = #tpu.dot_dimension_numbers<[1], [0], [0], [1], [0, 0, 1, 1], [], []>} : vector<2x32xf32>, vector<32x64xf32>, vector<2x64xf32> -> vector<2x64xf32>
    %207 = vector.extract_strided_slice %8 {offsets = [0, 4, 0], sizes = [2, 1, 32], strides = [1, 1, 1]} : vector<2x8x32xf32> to vector<2x1x32xf32>
    %208 = vector.shape_cast %207 : vector<2x1x32xf32> to vector<2x32xf32>
    %209 = vector.extract_strided_slice %206 {offsets = [0, 0], sizes = [2, 32], strides = [1, 1]} : vector<2x64xf32> to vector<2x32xf32>
    %210 = arith.addf %208, %209 : vector<2x32xf32>
    %211 = vector.broadcast %13 : vector<1x32xf32> to vector<2x32xf32>
    %212 = arith.addf %210, %211 : vector<2x32xf32>
    %213 = arith.negf %212 : vector<2x32xf32>
    %214 = math.exp %213 : vector<2x32xf32>
    %cst_65 = arith.constant 1.000000e+00 : f32
    %215 = vector.broadcast %cst_65 : f32 to vector<2x32xf32>
    %216 = arith.addf %215, %214 : vector<2x32xf32>
    %217 = arith.divf %215, %216 : vector<2x32xf32>
    %218 = vector.extract_strided_slice %10 {offsets = [0, 4, 0], sizes = [2, 1, 32], strides = [1, 1, 1]} : vector<2x8x32xf32> to vector<2x1x32xf32>
    %219 = vector.shape_cast %218 : vector<2x1x32xf32> to vector<2x32xf32>
    %220 = vector.extract_strided_slice %206 {offsets = [0, 32], sizes = [2, 32], strides = [1, 1]} : vector<2x64xf32> to vector<2x32xf32>
    %221 = arith.addf %219, %220 : vector<2x32xf32>
    %222 = math.tanh %221 : vector<2x32xf32>
    %223 = vector.broadcast %14 : vector<1x32xf32> to vector<2x32xf32>
    %224 = arith.mulf %222, %223 : vector<2x32xf32>
    %cst_66 = arith.constant dense<0xFF800000> : vector<2xf32>
    %225 = vector.multi_reduction <maximumf>, %224, %cst_66 [1] : vector<2x32xf32> to vector<2xf32>
    %226 = vector.shape_cast %225 : vector<2xf32> to vector<2x1xf32>
    %227 = vector.broadcast %226 : vector<2x1xf32> to vector<2x32xf32>
    %228 = arith.subf %224, %227 : vector<2x32xf32>
    %229 = math.exp %228 : vector<2x32xf32>
    %cst_67 = arith.constant dense<0.000000e+00> : vector<2xf32>
    %230 = vector.multi_reduction <add>, %229, %cst_67 [1] : vector<2x32xf32> to vector<2xf32>
    %231 = vector.shape_cast %230 : vector<2xf32> to vector<2x1xf32>
    %232 = tpu.reciprocal %231 {approx = true} : vector<2x1xf32> -> vector<2x1xf32>
    %233 = vector.broadcast %232 : vector<2x1xf32> to vector<2x32xf32>
    %234 = arith.mulf %229, %233 : vector<2x32xf32>
    %235 = arith.mulf %234, %201 : vector<2x32xf32>
    %236 = vector.extract_strided_slice %12 {offsets = [0, 4, 0], sizes = [2, 1, 32], strides = [1, 1, 1]} : vector<2x8x32xf32> to vector<2x1x32xf32>
    %237 = vector.shape_cast %236 : vector<2x1x32xf32> to vector<2x32xf32>
    %c0_68 = arith.constant 0 : index
    %c0_69 = arith.constant 0 : index
    %238 = vector.load %arg4[%c0_68, %c0_69] : memref<32x32xf32, #tpu.memory_space<vmem>>, vector<32x32xf32>
    %cst_70 = arith.constant dense<0.000000e+00> : vector<2x32xf32>
    %239 = tpu.matmul %235, %238, %cst_70 {dimension_numbers = #tpu.dot_dimension_numbers<[1], [0], [0], [1], [0, 0, 1, 1], [], []>} : vector<2x32xf32>, vector<32x32xf32>, vector<2x32xf32> -> vector<2x32xf32>
    %240 = arith.addf %237, %239 : vector<2x32xf32>
    %241 = vector.broadcast %15 : vector<1x32xf32> to vector<2x32xf32>
    %242 = arith.addf %240, %241 : vector<2x32xf32>
    %243 = math.tanh %242 : vector<2x32xf32>
    %cst_71 = arith.constant 1.000000e+00 : f32
    %244 = vector.broadcast %cst_71 : f32 to vector<2x32xf32>
    %245 = arith.subf %244, %217 : vector<2x32xf32>
    %246 = arith.mulf %245, %201 : vector<2x32xf32>
    %247 = arith.mulf %217, %243 : vector<2x32xf32>
    %248 = arith.addf %246, %247 : vector<2x32xf32>
    %c0_72 = arith.constant 0 : index
    %c4 = arith.constant 4 : index
    %c0_73 = arith.constant 0 : index
    %249 = vector.load %arg10[%c0_72, %c4, %c0_73] : memref<2x8x32xf32, #tpu.memory_space<vmem>>, vector<2x1x32xf32>
    %250 = vector.shape_cast %249 : vector<2x1x32xf32> to vector<2x32xf32>
    %251 = vector.shape_cast %248 : vector<2x32xf32> to vector<2x1x32xf32>
    tpu.vector_store %arg10[%c0_72, %c4, %c0_73], %251 {strides = array<i32>} : memref<2x8x32xf32, #tpu.memory_space<vmem>>, vector<2x1x32xf32>,
    %c0_74 = arith.constant 0 : index
    %c0_75 = arith.constant 0 : index
    %252 = vector.load %arg3[%c0_74, %c0_75] : memref<32x64xf32, #tpu.memory_space<vmem>>, vector<32x64xf32>
    %cst_76 = arith.constant dense<0.000000e+00> : vector<2x64xf32>
    %253 = tpu.matmul %248, %252, %cst_76 {dimension_numbers = #tpu.dot_dimension_numbers<[1], [0], [0], [1], [0, 0, 1, 1], [], []>} : vector<2x32xf32>, vector<32x64xf32>, vector<2x64xf32> -> vector<2x64xf32>
    %254 = vector.extract_strided_slice %8 {offsets = [0, 5, 0], sizes = [2, 1, 32], strides = [1, 1, 1]} : vector<2x8x32xf32> to vector<2x1x32xf32>
    %255 = vector.shape_cast %254 : vector<2x1x32xf32> to vector<2x32xf32>
    %256 = vector.extract_strided_slice %253 {offsets = [0, 0], sizes = [2, 32], strides = [1, 1]} : vector<2x64xf32> to vector<2x32xf32>
    %257 = arith.addf %255, %256 : vector<2x32xf32>
    %258 = vector.broadcast %13 : vector<1x32xf32> to vector<2x32xf32>
    %259 = arith.addf %257, %258 : vector<2x32xf32>
    %260 = arith.negf %259 : vector<2x32xf32>
    %261 = math.exp %260 : vector<2x32xf32>
    %cst_77 = arith.constant 1.000000e+00 : f32
    %262 = vector.broadcast %cst_77 : f32 to vector<2x32xf32>
    %263 = arith.addf %262, %261 : vector<2x32xf32>
    %264 = arith.divf %262, %263 : vector<2x32xf32>
    %265 = vector.extract_strided_slice %10 {offsets = [0, 5, 0], sizes = [2, 1, 32], strides = [1, 1, 1]} : vector<2x8x32xf32> to vector<2x1x32xf32>
    %266 = vector.shape_cast %265 : vector<2x1x32xf32> to vector<2x32xf32>
    %267 = vector.extract_strided_slice %253 {offsets = [0, 32], sizes = [2, 32], strides = [1, 1]} : vector<2x64xf32> to vector<2x32xf32>
    %268 = arith.addf %266, %267 : vector<2x32xf32>
    %269 = math.tanh %268 : vector<2x32xf32>
    %270 = vector.broadcast %14 : vector<1x32xf32> to vector<2x32xf32>
    %271 = arith.mulf %269, %270 : vector<2x32xf32>
    %cst_78 = arith.constant dense<0xFF800000> : vector<2xf32>
    %272 = vector.multi_reduction <maximumf>, %271, %cst_78 [1] : vector<2x32xf32> to vector<2xf32>
    %273 = vector.shape_cast %272 : vector<2xf32> to vector<2x1xf32>
    %274 = vector.broadcast %273 : vector<2x1xf32> to vector<2x32xf32>
    %275 = arith.subf %271, %274 : vector<2x32xf32>
    %276 = math.exp %275 : vector<2x32xf32>
    %cst_79 = arith.constant dense<0.000000e+00> : vector<2xf32>
    %277 = vector.multi_reduction <add>, %276, %cst_79 [1] : vector<2x32xf32> to vector<2xf32>
    %278 = vector.shape_cast %277 : vector<2xf32> to vector<2x1xf32>
    %279 = tpu.reciprocal %278 {approx = true} : vector<2x1xf32> -> vector<2x1xf32>
    %280 = vector.broadcast %279 : vector<2x1xf32> to vector<2x32xf32>
    %281 = arith.mulf %276, %280 : vector<2x32xf32>
    %282 = arith.mulf %281, %248 : vector<2x32xf32>
    %283 = vector.extract_strided_slice %12 {offsets = [0, 5, 0], sizes = [2, 1, 32], strides = [1, 1, 1]} : vector<2x8x32xf32> to vector<2x1x32xf32>
    %284 = vector.shape_cast %283 : vector<2x1x32xf32> to vector<2x32xf32>
    %c0_80 = arith.constant 0 : index
    %c0_81 = arith.constant 0 : index
    %285 = vector.load %arg4[%c0_80, %c0_81] : memref<32x32xf32, #tpu.memory_space<vmem>>, vector<32x32xf32>
    %cst_82 = arith.constant dense<0.000000e+00> : vector<2x32xf32>
    %286 = tpu.matmul %282, %285, %cst_82 {dimension_numbers = #tpu.dot_dimension_numbers<[1], [0], [0], [1], [0, 0, 1, 1], [], []>} : vector<2x32xf32>, vector<32x32xf32>, vector<2x32xf32> -> vector<2x32xf32>
    %287 = arith.addf %284, %286 : vector<2x32xf32>
    %288 = vector.broadcast %15 : vector<1x32xf32> to vector<2x32xf32>
    %289 = arith.addf %287, %288 : vector<2x32xf32>
    %290 = math.tanh %289 : vector<2x32xf32>
    %cst_83 = arith.constant 1.000000e+00 : f32
    %291 = vector.broadcast %cst_83 : f32 to vector<2x32xf32>
    %292 = arith.subf %291, %264 : vector<2x32xf32>
    %293 = arith.mulf %292, %248 : vector<2x32xf32>
    %294 = arith.mulf %264, %290 : vector<2x32xf32>
    %295 = arith.addf %293, %294 : vector<2x32xf32>
    %c0_84 = arith.constant 0 : index
    %c5 = arith.constant 5 : index
    %c0_85 = arith.constant 0 : index
    %296 = vector.load %arg10[%c0_84, %c5, %c0_85] : memref<2x8x32xf32, #tpu.memory_space<vmem>>, vector<2x1x32xf32>
    %297 = vector.shape_cast %296 : vector<2x1x32xf32> to vector<2x32xf32>
    %298 = vector.shape_cast %295 : vector<2x32xf32> to vector<2x1x32xf32>
    tpu.vector_store %arg10[%c0_84, %c5, %c0_85], %298 {strides = array<i32>} : memref<2x8x32xf32, #tpu.memory_space<vmem>>, vector<2x1x32xf32>,
    %c0_86 = arith.constant 0 : index
    %c0_87 = arith.constant 0 : index
    %299 = vector.load %arg3[%c0_86, %c0_87] : memref<32x64xf32, #tpu.memory_space<vmem>>, vector<32x64xf32>
    %cst_88 = arith.constant dense<0.000000e+00> : vector<2x64xf32>
    %300 = tpu.matmul %295, %299, %cst_88 {dimension_numbers = #tpu.dot_dimension_numbers<[1], [0], [0], [1], [0, 0, 1, 1], [], []>} : vector<2x32xf32>, vector<32x64xf32>, vector<2x64xf32> -> vector<2x64xf32>
    %301 = vector.extract_strided_slice %8 {offsets = [0, 6, 0], sizes = [2, 1, 32], strides = [1, 1, 1]} : vector<2x8x32xf32> to vector<2x1x32xf32>
    %302 = vector.shape_cast %301 : vector<2x1x32xf32> to vector<2x32xf32>
    %303 = vector.extract_strided_slice %300 {offsets = [0, 0], sizes = [2, 32], strides = [1, 1]} : vector<2x64xf32> to vector<2x32xf32>
    %304 = arith.addf %302, %303 : vector<2x32xf32>
    %305 = vector.broadcast %13 : vector<1x32xf32> to vector<2x32xf32>
    %306 = arith.addf %304, %305 : vector<2x32xf32>
    %307 = arith.negf %306 : vector<2x32xf32>
    %308 = math.exp %307 : vector<2x32xf32>
    %cst_89 = arith.constant 1.000000e+00 : f32
    %309 = vector.broadcast %cst_89 : f32 to vector<2x32xf32>
    %310 = arith.addf %309, %308 : vector<2x32xf32>
    %311 = arith.divf %309, %310 : vector<2x32xf32>
    %312 = vector.extract_strided_slice %10 {offsets = [0, 6, 0], sizes = [2, 1, 32], strides = [1, 1, 1]} : vector<2x8x32xf32> to vector<2x1x32xf32>
    %313 = vector.shape_cast %312 : vector<2x1x32xf32> to vector<2x32xf32>
    %314 = vector.extract_strided_slice %300 {offsets = [0, 32], sizes = [2, 32], strides = [1, 1]} : vector<2x64xf32> to vector<2x32xf32>
    %315 = arith.addf %313, %314 : vector<2x32xf32>
    %316 = math.tanh %315 : vector<2x32xf32>
    %317 = vector.broadcast %14 : vector<1x32xf32> to vector<2x32xf32>
    %318 = arith.mulf %316, %317 : vector<2x32xf32>
    %cst_90 = arith.constant dense<0xFF800000> : vector<2xf32>
    %319 = vector.multi_reduction <maximumf>, %318, %cst_90 [1] : vector<2x32xf32> to vector<2xf32>
    %320 = vector.shape_cast %319 : vector<2xf32> to vector<2x1xf32>
    %321 = vector.broadcast %320 : vector<2x1xf32> to vector<2x32xf32>
    %322 = arith.subf %318, %321 : vector<2x32xf32>
    %323 = math.exp %322 : vector<2x32xf32>
    %cst_91 = arith.constant dense<0.000000e+00> : vector<2xf32>
    %324 = vector.multi_reduction <add>, %323, %cst_91 [1] : vector<2x32xf32> to vector<2xf32>
    %325 = vector.shape_cast %324 : vector<2xf32> to vector<2x1xf32>
    %326 = tpu.reciprocal %325 {approx = true} : vector<2x1xf32> -> vector<2x1xf32>
    %327 = vector.broadcast %326 : vector<2x1xf32> to vector<2x32xf32>
    %328 = arith.mulf %323, %327 : vector<2x32xf32>
    %329 = arith.mulf %328, %295 : vector<2x32xf32>
    %330 = vector.extract_strided_slice %12 {offsets = [0, 6, 0], sizes = [2, 1, 32], strides = [1, 1, 1]} : vector<2x8x32xf32> to vector<2x1x32xf32>
    %331 = vector.shape_cast %330 : vector<2x1x32xf32> to vector<2x32xf32>
    %c0_92 = arith.constant 0 : index
    %c0_93 = arith.constant 0 : index
    %332 = vector.load %arg4[%c0_92, %c0_93] : memref<32x32xf32, #tpu.memory_space<vmem>>, vector<32x32xf32>
    %cst_94 = arith.constant dense<0.000000e+00> : vector<2x32xf32>
    %333 = tpu.matmul %329, %332, %cst_94 {dimension_numbers = #tpu.dot_dimension_numbers<[1], [0], [0], [1], [0, 0, 1, 1], [], []>} : vector<2x32xf32>, vector<32x32xf32>, vector<2x32xf32> -> vector<2x32xf32>
    %334 = arith.addf %331, %333 : vector<2x32xf32>
    %335 = vector.broadcast %15 : vector<1x32xf32> to vector<2x32xf32>
    %336 = arith.addf %334, %335 : vector<2x32xf32>
    %337 = math.tanh %336 : vector<2x32xf32>
    %cst_95 = arith.constant 1.000000e+00 : f32
    %338 = vector.broadcast %cst_95 : f32 to vector<2x32xf32>
    %339 = arith.subf %338, %311 : vector<2x32xf32>
    %340 = arith.mulf %339, %295 : vector<2x32xf32>
    %341 = arith.mulf %311, %337 : vector<2x32xf32>
    %342 = arith.addf %340, %341 : vector<2x32xf32>
    %c0_96 = arith.constant 0 : index
    %c6 = arith.constant 6 : index
    %c0_97 = arith.constant 0 : index
    %343 = vector.load %arg10[%c0_96, %c6, %c0_97] : memref<2x8x32xf32, #tpu.memory_space<vmem>>, vector<2x1x32xf32>
    %344 = vector.shape_cast %343 : vector<2x1x32xf32> to vector<2x32xf32>
    %345 = vector.shape_cast %342 : vector<2x32xf32> to vector<2x1x32xf32>
    tpu.vector_store %arg10[%c0_96, %c6, %c0_97], %345 {strides = array<i32>} : memref<2x8x32xf32, #tpu.memory_space<vmem>>, vector<2x1x32xf32>,
    %c0_98 = arith.constant 0 : index
    %c0_99 = arith.constant 0 : index
    %346 = vector.load %arg3[%c0_98, %c0_99] : memref<32x64xf32, #tpu.memory_space<vmem>>, vector<32x64xf32>
    %cst_100 = arith.constant dense<0.000000e+00> : vector<2x64xf32>
    %347 = tpu.matmul %342, %346, %cst_100 {dimension_numbers = #tpu.dot_dimension_numbers<[1], [0], [0], [1], [0, 0, 1, 1], [], []>} : vector<2x32xf32>, vector<32x64xf32>, vector<2x64xf32> -> vector<2x64xf32>
    %348 = vector.extract_strided_slice %8 {offsets = [0, 7, 0], sizes = [2, 1, 32], strides = [1, 1, 1]} : vector<2x8x32xf32> to vector<2x1x32xf32>
    %349 = vector.shape_cast %348 : vector<2x1x32xf32> to vector<2x32xf32>
    %350 = vector.extract_strided_slice %347 {offsets = [0, 0], sizes = [2, 32], strides = [1, 1]} : vector<2x64xf32> to vector<2x32xf32>
    %351 = arith.addf %349, %350 : vector<2x32xf32>
    %352 = vector.broadcast %13 : vector<1x32xf32> to vector<2x32xf32>
    %353 = arith.addf %351, %352 : vector<2x32xf32>
    %354 = arith.negf %353 : vector<2x32xf32>
    %355 = math.exp %354 : vector<2x32xf32>
    %cst_101 = arith.constant 1.000000e+00 : f32
    %356 = vector.broadcast %cst_101 : f32 to vector<2x32xf32>
    %357 = arith.addf %356, %355 : vector<2x32xf32>
    %358 = arith.divf %356, %357 : vector<2x32xf32>
    %359 = vector.extract_strided_slice %10 {offsets = [0, 7, 0], sizes = [2, 1, 32], strides = [1, 1, 1]} : vector<2x8x32xf32> to vector<2x1x32xf32>
    %360 = vector.shape_cast %359 : vector<2x1x32xf32> to vector<2x32xf32>
    %361 = vector.extract_strided_slice %347 {offsets = [0, 32], sizes = [2, 32], strides = [1, 1]} : vector<2x64xf32> to vector<2x32xf32>
    %362 = arith.addf %360, %361 : vector<2x32xf32>
    %363 = math.tanh %362 : vector<2x32xf32>
    %364 = vector.broadcast %14 : vector<1x32xf32> to vector<2x32xf32>
    %365 = arith.mulf %363, %364 : vector<2x32xf32>
    %cst_102 = arith.constant dense<0xFF800000> : vector<2xf32>
    %366 = vector.multi_reduction <maximumf>, %365, %cst_102 [1] : vector<2x32xf32> to vector<2xf32>
    %367 = vector.shape_cast %366 : vector<2xf32> to vector<2x1xf32>
    %368 = vector.broadcast %367 : vector<2x1xf32> to vector<2x32xf32>
    %369 = arith.subf %365, %368 : vector<2x32xf32>
    %370 = math.exp %369 : vector<2x32xf32>
    %cst_103 = arith.constant dense<0.000000e+00> : vector<2xf32>
    %371 = vector.multi_reduction <add>, %370, %cst_103 [1] : vector<2x32xf32> to vector<2xf32>
    %372 = vector.shape_cast %371 : vector<2xf32> to vector<2x1xf32>
    %373 = tpu.reciprocal %372 {approx = true} : vector<2x1xf32> -> vector<2x1xf32>
    %374 = vector.broadcast %373 : vector<2x1xf32> to vector<2x32xf32>
    %375 = arith.mulf %370, %374 : vector<2x32xf32>
    %376 = arith.mulf %375, %342 : vector<2x32xf32>
    %377 = vector.extract_strided_slice %12 {offsets = [0, 7, 0], sizes = [2, 1, 32], strides = [1, 1, 1]} : vector<2x8x32xf32> to vector<2x1x32xf32>
    %378 = vector.shape_cast %377 : vector<2x1x32xf32> to vector<2x32xf32>
    %c0_104 = arith.constant 0 : index
    %c0_105 = arith.constant 0 : index
    %379 = vector.load %arg4[%c0_104, %c0_105] : memref<32x32xf32, #tpu.memory_space<vmem>>, vector<32x32xf32>
    %cst_106 = arith.constant dense<0.000000e+00> : vector<2x32xf32>
    %380 = tpu.matmul %376, %379, %cst_106 {dimension_numbers = #tpu.dot_dimension_numbers<[1], [0], [0], [1], [0, 0, 1, 1], [], []>} : vector<2x32xf32>, vector<32x32xf32>, vector<2x32xf32> -> vector<2x32xf32>
    %381 = arith.addf %378, %380 : vector<2x32xf32>
    %382 = vector.broadcast %15 : vector<1x32xf32> to vector<2x32xf32>
    %383 = arith.addf %381, %382 : vector<2x32xf32>
    %384 = math.tanh %383 : vector<2x32xf32>
    %cst_107 = arith.constant 1.000000e+00 : f32
    %385 = vector.broadcast %cst_107 : f32 to vector<2x32xf32>
    %386 = arith.subf %385, %358 : vector<2x32xf32>
    %387 = arith.mulf %386, %342 : vector<2x32xf32>
    %388 = arith.mulf %358, %384 : vector<2x32xf32>
    %389 = arith.addf %387, %388 : vector<2x32xf32>
    %c0_108 = arith.constant 0 : index
    %c7 = arith.constant 7 : index
    %c0_109 = arith.constant 0 : index
    %390 = vector.load %arg10[%c0_108, %c7, %c0_109] : memref<2x8x32xf32, #tpu.memory_space<vmem>>, vector<2x1x32xf32>
    %391 = vector.shape_cast %390 : vector<2x1x32xf32> to vector<2x32xf32>
    %392 = vector.shape_cast %389 : vector<2x32xf32> to vector<2x1x32xf32>
    tpu.vector_store %arg10[%c0_108, %c7, %c0_109], %392 {strides = array<i32>} : memref<2x8x32xf32, #tpu.memory_space<vmem>>, vector<2x1x32xf32>,
    %c0_110 = arith.constant 0 : index
    %c0_111 = arith.constant 0 : index
    %393 = vector.load %arg12[%c0_110, %c0_111] : memref<2x32xf32, #tpu.memory_space<vmem>>, vector<2x32xf32>
    tpu.vector_store %arg12[%c0_110, %c0_111], %389 {strides = array<i32>} : memref<2x32xf32, #tpu.memory_space<vmem>>, vector<2x32xf32>,
    %c0_112 = arith.constant 0 : index
    %c0_113 = arith.constant 0 : index
    %c0_114 = arith.constant 0 : index
    %394 = vector.load %arg10[%c0_112, %c0_113, %c0_114] : memref<2x8x32xf32, #tpu.memory_space<vmem>>, vector<2x8x32xf32>
    %cst_115 = arith.constant dense<0.000000e+00> : vector<2x8xf32>
    %395 = vector.multi_reduction <add>, %394, %cst_115 [2] : vector<2x8x32xf32> to vector<2x8xf32>
    %396 = vector.shape_cast %395 : vector<2x8xf32> to vector<2x8x1xf32>
    %cst_116 = arith.constant 3.200000e+01 : f32
    %397 = vector.broadcast %cst_116 : f32 to vector<2x8x1xf32>
    %398 = arith.divf %396, %397 : vector<2x8x1xf32>
    %399 = vector.broadcast %398 : vector<2x8x1xf32> to vector<2x8x32xf32>
    %400 = arith.subf %394, %399 : vector<2x8x32xf32>
    %401 = arith.mulf %400, %400 : vector<2x8x32xf32>
    %cst_117 = arith.constant dense<0.000000e+00> : vector<2x8xf32>
    %402 = vector.multi_reduction <add>, %401, %cst_117 [2] : vector<2x8x32xf32> to vector<2x8xf32>
    %403 = vector.shape_cast %402 : vector<2x8xf32> to vector<2x8x1xf32>
    %cst_118 = arith.constant 3.200000e+01 : f32
    %404 = vector.broadcast %cst_118 : f32 to vector<2x8x1xf32>
    %405 = arith.divf %403, %404 : vector<2x8x1xf32>
    %406 = vector.broadcast %398 : vector<2x8x1xf32> to vector<2x8x32xf32>
    %407 = arith.subf %394, %406 : vector<2x8x32xf32>
    %cst_119 = arith.constant 9.99999974E-6 : f32
    %408 = vector.broadcast %cst_119 : f32 to vector<2x8x1xf32>
    %409 = arith.addf %405, %408 : vector<2x8x1xf32>
    %410 = math.rsqrt %409 : vector<2x8x1xf32>
    %411 = vector.broadcast %410 : vector<2x8x1xf32> to vector<2x8x32xf32>
    %412 = arith.mulf %407, %411 : vector<2x8x32xf32>
    %c0_120 = arith.constant 0 : index
    %c0_121 = arith.constant 0 : index
    %413 = vector.load %arg8[%c0_120, %c0_121] : memref<1x32xf32, #tpu.memory_space<vmem>>, vector<1x32xf32>
    %414 = vector.shape_cast %413 : vector<1x32xf32> to vector<1x1x32xf32>
    %415 = vector.broadcast %414 : vector<1x1x32xf32> to vector<2x8x32xf32>
    %416 = arith.mulf %412, %415 : vector<2x8x32xf32>
    %c0_122 = arith.constant 0 : index
    %c0_123 = arith.constant 0 : index
    %417 = vector.load %arg9[%c0_122, %c0_123] : memref<1x32xf32, #tpu.memory_space<vmem>>, vector<1x32xf32>
    %418 = vector.shape_cast %417 : vector<1x32xf32> to vector<1x1x32xf32>
    %419 = vector.broadcast %418 : vector<1x1x32xf32> to vector<2x8x32xf32>
    %420 = arith.addf %416, %419 : vector<2x8x32xf32>
    %c0_124 = arith.constant 0 : index
    %c0_125 = arith.constant 0 : index
    %c0_126 = arith.constant 0 : index
    %421 = vector.load %arg10[%c0_124, %c0_125, %c0_126] : memref<2x8x32xf32, #tpu.memory_space<vmem>>, vector<2x8x32xf32>
    tpu.vector_store %arg10[%c0_124, %c0_125, %c0_126], %420 {strides = array<i32>} : memref<2x8x32xf32, #tpu.memory_space<vmem>>, vector<2x8x32xf32>,
    %c0_i32_127 = arith.constant 0 : i32
    %422 = arith.cmpi eq, %arg0, %c0_i32_127 : i32
    %423 = arith.extui %422 : i1 to i32
    %c0_i32_128 = arith.constant 0 : i32
    %424 = arith.cmpi ne, %423, %c0_i32_128 : i32
    scf.if %424 {
      %c0_129 = arith.constant 0 : index
      %c0_130 = arith.constant 0 : index
      %425 = vector.load %arg11[%c0_129, %c0_130] : memref<2x32xf32, #tpu.memory_space<vmem>>, vector<2x32xf32>
      tpu.vector_store %arg11[%c0_129, %c0_130], %389 {strides = array<i32>} : memref<2x32xf32, #tpu.memory_space<vmem>>, vector<2x32xf32>,
    } else {
    }
    return
  }
  func.func @transform_0(%arg0: i32) -> (i32, i32, i32) {
    %c0_i32 = arith.constant 0 : i32
    %c0_i32_0 = arith.constant 0 : i32
    %c0_i32_1 = arith.constant 0 : i32
    return %c0_i32, %arg0, %c0_i32_0 : i32, i32, i32
  }
  func.func @transform_1(%arg0: i32) -> (i32, i32) {
    %c0_i32 = arith.constant 0 : i32
    %c0_i32_0 = arith.constant 0 : i32
    %c0_i32_1 = arith.constant 0 : i32
    return %c0_i32, %c0_i32_0 : i32, i32
  }
  func.func @transform_2(%arg0: i32) -> (i32, i32) {
    %c0_i32 = arith.constant 0 : i32
    %c0_i32_0 = arith.constant 0 : i32
    %c0_i32_1 = arith.constant 0 : i32
    return %c0_i32, %c0_i32_0 : i32, i32
  }
  func.func @transform_3(%arg0: i32) -> (i32, i32) {
    %c0_i32 = arith.constant 0 : i32
    %c0_i32_0 = arith.constant 0 : i32
    %c0_i32_1 = arith.constant 0 : i32
    return %c0_i32, %c0_i32_0 : i32, i32
  }
  func.func @transform_4(%arg0: i32) -> (i32, i32) {
    %c0_i32 = arith.constant 0 : i32
    %c0_i32_0 = arith.constant 0 : i32
    %c0_i32_1 = arith.constant 0 : i32
    return %c0_i32, %c0_i32_0 : i32, i32
  }
  func.func @transform_5(%arg0: i32) -> (i32, i32) {
    %c0_i32 = arith.constant 0 : i32
    %c0_i32_0 = arith.constant 0 : i32
    %c0_i32_1 = arith.constant 0 : i32
    return %c0_i32, %c0_i32_0 : i32, i32
  }
  func.func @transform_6(%arg0: i32) -> (i32, i32) {
    %c0_i32 = arith.constant 0 : i32
    %c0_i32_0 = arith.constant 0 : i32
    %c0_i32_1 = arith.constant 0 : i32
    return %c0_i32, %c0_i32_0 : i32, i32
  }
  func.func @transform_7(%arg0: i32) -> (i32, i32) {
    %c0_i32 = arith.constant 0 : i32
    %c0_i32_0 = arith.constant 0 : i32
    %c0_i32_1 = arith.constant 0 : i32
    return %c0_i32, %c0_i32_0 : i32, i32
  }
  func.func @transform_8(%arg0: i32) -> (i32, i32) {
    %c0_i32 = arith.constant 0 : i32
    %c0_i32_0 = arith.constant 0 : i32
    %c0_i32_1 = arith.constant 0 : i32
    return %c0_i32, %c0_i32_0 : i32, i32
  }
  func.func @transform_9(%arg0: i32) -> (i32, i32, i32) {
    %c0_i32 = arith.constant 0 : i32
    %c0_i32_0 = arith.constant 0 : i32
    %c0_i32_1 = arith.constant 0 : i32
    return %c0_i32, %arg0, %c0_i32_0 : i32, i32, i32
  }
  func.func @transform_10(%arg0: i32) -> (i32, i32) {
    %c0_i32 = arith.constant 0 : i32
    %c0_i32_0 = arith.constant 0 : i32
    %c0_i32_1 = arith.constant 0 : i32
    return %c0_i32, %c0_i32_0 : i32, i32
  }
}

module attributes {stable_mosaic.version = 11 : i64} {
  func.func @_attn_mlp_kernel(%arg0: i32, %arg1: memref<1x8x32xf32, #tpu.memory_space<vmem>>, %arg2: memref<32x32xf32, #tpu.memory_space<vmem>>, %arg3: memref<1x32xf32, #tpu.memory_space<vmem>>, %arg4: memref<32x32xf32, #tpu.memory_space<vmem>>, %arg5: memref<1x32xf32, #tpu.memory_space<vmem>>, %arg6: memref<32x32xf32, #tpu.memory_space<vmem>>, %arg7: memref<1x32xf32, #tpu.memory_space<vmem>>, %arg8: memref<32x32xf32, #tpu.memory_space<vmem>>, %arg9: memref<1x32xf32, #tpu.memory_space<vmem>>, %arg10: memref<32x32xf32, #tpu.memory_space<vmem>>, %arg11: memref<1x32xf32, #tpu.memory_space<vmem>>, %arg12: memref<32x32xf32, #tpu.memory_space<vmem>>, %arg13: memref<1x32xf32, #tpu.memory_space<vmem>>, %arg14: memref<32x128xf32, #tpu.memory_space<vmem>>, %arg15: memref<1x128xf32, #tpu.memory_space<vmem>>, %arg16: memref<128x64xf32, #tpu.memory_space<vmem>>, %arg17: memref<1x64xf32, #tpu.memory_space<vmem>>, %arg18: memref<64x1xf32, #tpu.memory_space<vmem>>, %arg19: memref<1x1xf32, #tpu.memory_space<vmem>>, %arg20: memref<1x1x1xf32, #tpu.memory_space<vmem>>, %arg21: memref<1x4x8x8xf32, #tpu.memory_space<vmem>>) attributes {dimension_semantics = [#tpu.dimension_semantics<parallel>], iteration_bounds = array<i64: 2>, scalar_prefetch = 0 : i64, scratch_operands = 0 : i64, tpu.core_type = #tpu.core_type<tc>, window_params = [{transform_indices = @transform_0, window_bounds = array<i64: 1, 8, 32>}, {pipeline_mode = #tpu.pipeline_mode<synchronous>, transform_indices = @transform_1, window_bounds = array<i64: 32, 32>}, {pipeline_mode = #tpu.pipeline_mode<synchronous>, transform_indices = @transform_2, window_bounds = array<i64: 1, 32>}, {pipeline_mode = #tpu.pipeline_mode<synchronous>, transform_indices = @transform_3, window_bounds = array<i64: 32, 32>}, {pipeline_mode = #tpu.pipeline_mode<synchronous>, transform_indices = @transform_4, window_bounds = array<i64: 1, 32>}, {pipeline_mode = #tpu.pipeline_mode<synchronous>, transform_indices = @transform_5, window_bounds = array<i64: 32, 32>}, {pipeline_mode = #tpu.pipeline_mode<synchronous>, transform_indices = @transform_6, window_bounds = array<i64: 1, 32>}, {pipeline_mode = #tpu.pipeline_mode<synchronous>, transform_indices = @transform_7, window_bounds = array<i64: 32, 32>}, {pipeline_mode = #tpu.pipeline_mode<synchronous>, transform_indices = @transform_8, window_bounds = array<i64: 1, 32>}, {pipeline_mode = #tpu.pipeline_mode<synchronous>, transform_indices = @transform_9, window_bounds = array<i64: 32, 32>}, {pipeline_mode = #tpu.pipeline_mode<synchronous>, transform_indices = @transform_10, window_bounds = array<i64: 1, 32>}, {pipeline_mode = #tpu.pipeline_mode<synchronous>, transform_indices = @transform_11, window_bounds = array<i64: 32, 32>}, {pipeline_mode = #tpu.pipeline_mode<synchronous>, transform_indices = @transform_12, window_bounds = array<i64: 1, 32>}, {pipeline_mode = #tpu.pipeline_mode<synchronous>, transform_indices = @transform_13, window_bounds = array<i64: 32, 128>}, {pipeline_mode = #tpu.pipeline_mode<synchronous>, transform_indices = @transform_14, window_bounds = array<i64: 1, 128>}, {pipeline_mode = #tpu.pipeline_mode<synchronous>, transform_indices = @transform_15, window_bounds = array<i64: 128, 64>}, {pipeline_mode = #tpu.pipeline_mode<synchronous>, transform_indices = @transform_16, window_bounds = array<i64: 1, 64>}, {pipeline_mode = #tpu.pipeline_mode<synchronous>, transform_indices = @transform_17, window_bounds = array<i64: 64, 1>}, {pipeline_mode = #tpu.pipeline_mode<synchronous>, transform_indices = @transform_18, window_bounds = array<i64: 1, 1>}, {transform_indices = @transform_19, window_bounds = array<i64: 1, 1, 1>}, {transform_indices = @transform_20, window_bounds = array<i64: 1, 4, 8, 8>}]} {
    %c0 = arith.constant 0 : index
    %c0_0 = arith.constant 0 : index
    %c0_1 = arith.constant 0 : index
    %0 = vector.load %arg1[%c0, %c0_0, %c0_1] : memref<1x8x32xf32, #tpu.memory_space<vmem>>, vector<1x8x32xf32>
    %1 = vector.shape_cast %0 : vector<1x8x32xf32> to vector<8x32xf32>
    %c0_2 = arith.constant 0 : index
    %c0_3 = arith.constant 0 : index
    %2 = vector.load %arg2[%c0_2, %c0_3] : memref<32x32xf32, #tpu.memory_space<vmem>>, vector<32x32xf32>
    %cst = arith.constant dense<0.000000e+00> : vector<8x32xf32>
    %3 = tpu.matmul %1, %2, %cst {dimension_numbers = #tpu.dot_dimension_numbers<[1], [0], [0], [1], [0, 0, 1, 1], [], []>} : vector<8x32xf32>, vector<32x32xf32>, vector<8x32xf32> -> vector<8x32xf32>
    %c0_4 = arith.constant 0 : index
    %c0_5 = arith.constant 0 : index
    %4 = vector.load %arg3[%c0_4, %c0_5] : memref<1x32xf32, #tpu.memory_space<vmem>>, vector<1x32xf32>
    %5 = vector.broadcast %4 : vector<1x32xf32> to vector<8x32xf32>
    %6 = arith.addf %3, %5 : vector<8x32xf32>
    %c0_6 = arith.constant 0 : index
    %c0_7 = arith.constant 0 : index
    %7 = vector.load %arg4[%c0_6, %c0_7] : memref<32x32xf32, #tpu.memory_space<vmem>>, vector<32x32xf32>
    %cst_8 = arith.constant dense<0.000000e+00> : vector<8x32xf32>
    %8 = tpu.matmul %1, %7, %cst_8 {dimension_numbers = #tpu.dot_dimension_numbers<[1], [0], [0], [1], [0, 0, 1, 1], [], []>} : vector<8x32xf32>, vector<32x32xf32>, vector<8x32xf32> -> vector<8x32xf32>
    %c0_9 = arith.constant 0 : index
    %c0_10 = arith.constant 0 : index
    %9 = vector.load %arg5[%c0_9, %c0_10] : memref<1x32xf32, #tpu.memory_space<vmem>>, vector<1x32xf32>
    %10 = vector.broadcast %9 : vector<1x32xf32> to vector<8x32xf32>
    %11 = arith.addf %8, %10 : vector<8x32xf32>
    %c0_11 = arith.constant 0 : index
    %c0_12 = arith.constant 0 : index
    %12 = vector.load %arg6[%c0_11, %c0_12] : memref<32x32xf32, #tpu.memory_space<vmem>>, vector<32x32xf32>
    %cst_13 = arith.constant dense<0.000000e+00> : vector<8x32xf32>
    %13 = tpu.matmul %6, %12, %cst_13 {dimension_numbers = #tpu.dot_dimension_numbers<[1], [0], [0], [1], [0, 0, 1, 1], [], []>} : vector<8x32xf32>, vector<32x32xf32>, vector<8x32xf32> -> vector<8x32xf32>
    %c0_14 = arith.constant 0 : index
    %c0_15 = arith.constant 0 : index
    %14 = vector.load %arg7[%c0_14, %c0_15] : memref<1x32xf32, #tpu.memory_space<vmem>>, vector<1x32xf32>
    %15 = vector.broadcast %14 : vector<1x32xf32> to vector<8x32xf32>
    %16 = arith.addf %13, %15 : vector<8x32xf32>
    %c0_16 = arith.constant 0 : index
    %c0_17 = arith.constant 0 : index
    %17 = vector.load %arg8[%c0_16, %c0_17] : memref<32x32xf32, #tpu.memory_space<vmem>>, vector<32x32xf32>
    %cst_18 = arith.constant dense<0.000000e+00> : vector<8x32xf32>
    %18 = tpu.matmul %11, %17, %cst_18 {dimension_numbers = #tpu.dot_dimension_numbers<[1], [0], [0], [1], [0, 0, 1, 1], [], []>} : vector<8x32xf32>, vector<32x32xf32>, vector<8x32xf32> -> vector<8x32xf32>
    %c0_19 = arith.constant 0 : index
    %c0_20 = arith.constant 0 : index
    %19 = vector.load %arg9[%c0_19, %c0_20] : memref<1x32xf32, #tpu.memory_space<vmem>>, vector<1x32xf32>
    %20 = vector.broadcast %19 : vector<1x32xf32> to vector<8x32xf32>
    %21 = arith.addf %18, %20 : vector<8x32xf32>
    %c0_21 = arith.constant 0 : index
    %c0_22 = arith.constant 0 : index
    %22 = vector.load %arg10[%c0_21, %c0_22] : memref<32x32xf32, #tpu.memory_space<vmem>>, vector<32x32xf32>
    %cst_23 = arith.constant dense<0.000000e+00> : vector<8x32xf32>
    %23 = tpu.matmul %11, %22, %cst_23 {dimension_numbers = #tpu.dot_dimension_numbers<[1], [0], [0], [1], [0, 0, 1, 1], [], []>} : vector<8x32xf32>, vector<32x32xf32>, vector<8x32xf32> -> vector<8x32xf32>
    %c0_24 = arith.constant 0 : index
    %c0_25 = arith.constant 0 : index
    %24 = vector.load %arg11[%c0_24, %c0_25] : memref<1x32xf32, #tpu.memory_space<vmem>>, vector<1x32xf32>
    %25 = vector.broadcast %24 : vector<1x32xf32> to vector<8x32xf32>
    %26 = arith.addf %23, %25 : vector<8x32xf32>
    %27 = vector.extract_strided_slice %16 {offsets = [0, 0], sizes = [8, 8], strides = [1, 1]} : vector<8x32xf32> to vector<8x8xf32>
    %28 = vector.extract_strided_slice %21 {offsets = [0, 0], sizes = [8, 8], strides = [1, 1]} : vector<8x32xf32> to vector<8x8xf32>
    %29 = vector.extract_strided_slice %26 {offsets = [0, 0], sizes = [8, 8], strides = [1, 1]} : vector<8x32xf32> to vector<8x8xf32>
    %30 = tpu.transpose %28, [1, 0] : vector<8x8xf32> -> vector<8x8xf32>
    %cst_26 = arith.constant dense<0.000000e+00> : vector<8x8xf32>
    %31 = tpu.matmul %27, %30, %cst_26 {dimension_numbers = #tpu.dot_dimension_numbers<[1], [0], [0], [1], [0, 0, 1, 1], [], []>} : vector<8x8xf32>, vector<8x8xf32>, vector<8x8xf32> -> vector<8x8xf32>
    %cst_27 = arith.constant 0.353553385 : f32
    %32 = vector.broadcast %cst_27 : f32 to vector<8x8xf32>
    %33 = arith.mulf %31, %32 : vector<8x8xf32>
    %cst_28 = arith.constant dense<0xFF800000> : vector<8xf32>
    %34 = vector.multi_reduction <maximumf>, %33, %cst_28 [1] : vector<8x8xf32> to vector<8xf32>
    %35 = vector.shape_cast %34 : vector<8xf32> to vector<8x1xf32>
    %36 = vector.broadcast %35 : vector<8x1xf32> to vector<8x8xf32>
    %37 = arith.subf %33, %36 : vector<8x8xf32>
    %38 = math.exp %37 : vector<8x8xf32>
    %cst_29 = arith.constant dense<0.000000e+00> : vector<8xf32>
    %39 = vector.multi_reduction <add>, %38, %cst_29 [1] : vector<8x8xf32> to vector<8xf32>
    %40 = vector.shape_cast %39 : vector<8xf32> to vector<8x1xf32>
    %41 = tpu.reciprocal %40 {approx = true} : vector<8x1xf32> -> vector<8x1xf32>
    %42 = vector.broadcast %41 : vector<8x1xf32> to vector<8x8xf32>
    %43 = arith.mulf %38, %42 : vector<8x8xf32>
    %c0_30 = arith.constant 0 : index
    %c0_31 = arith.constant 0 : index
    %c0_32 = arith.constant 0 : index
    %c0_33 = arith.constant 0 : index
    %44 = vector.load %arg21[%c0_30, %c0_31, %c0_32, %c0_33] : memref<1x4x8x8xf32, #tpu.memory_space<vmem>>, vector<1x1x8x8xf32>
    %45 = vector.shape_cast %44 : vector<1x1x8x8xf32> to vector<8x8xf32>
    %46 = vector.shape_cast %43 : vector<8x8xf32> to vector<1x1x8x8xf32>
    tpu.vector_store %arg21[%c0_30, %c0_31, %c0_32, %c0_33], %46 {strides = array<i32>} : memref<1x4x8x8xf32, #tpu.memory_space<vmem>>, vector<1x1x8x8xf32>,
    %cst_34 = arith.constant dense<0.000000e+00> : vector<8x8xf32>
    %47 = tpu.matmul %43, %29, %cst_34 {dimension_numbers = #tpu.dot_dimension_numbers<[1], [0], [0], [1], [0, 0, 1, 1], [], []>} : vector<8x8xf32>, vector<8x8xf32>, vector<8x8xf32> -> vector<8x8xf32>
    %48 = vector.extract_strided_slice %16 {offsets = [0, 8], sizes = [8, 8], strides = [1, 1]} : vector<8x32xf32> to vector<8x8xf32>
    %49 = vector.extract_strided_slice %21 {offsets = [0, 8], sizes = [8, 8], strides = [1, 1]} : vector<8x32xf32> to vector<8x8xf32>
    %50 = vector.extract_strided_slice %26 {offsets = [0, 8], sizes = [8, 8], strides = [1, 1]} : vector<8x32xf32> to vector<8x8xf32>
    %51 = tpu.transpose %49, [1, 0] : vector<8x8xf32> -> vector<8x8xf32>
    %cst_35 = arith.constant dense<0.000000e+00> : vector<8x8xf32>
    %52 = tpu.matmul %48, %51, %cst_35 {dimension_numbers = #tpu.dot_dimension_numbers<[1], [0], [0], [1], [0, 0, 1, 1], [], []>} : vector<8x8xf32>, vector<8x8xf32>, vector<8x8xf32> -> vector<8x8xf32>
    %cst_36 = arith.constant 0.353553385 : f32
    %53 = vector.broadcast %cst_36 : f32 to vector<8x8xf32>
    %54 = arith.mulf %52, %53 : vector<8x8xf32>
    %cst_37 = arith.constant dense<0xFF800000> : vector<8xf32>
    %55 = vector.multi_reduction <maximumf>, %54, %cst_37 [1] : vector<8x8xf32> to vector<8xf32>
    %56 = vector.shape_cast %55 : vector<8xf32> to vector<8x1xf32>
    %57 = vector.broadcast %56 : vector<8x1xf32> to vector<8x8xf32>
    %58 = arith.subf %54, %57 : vector<8x8xf32>
    %59 = math.exp %58 : vector<8x8xf32>
    %cst_38 = arith.constant dense<0.000000e+00> : vector<8xf32>
    %60 = vector.multi_reduction <add>, %59, %cst_38 [1] : vector<8x8xf32> to vector<8xf32>
    %61 = vector.shape_cast %60 : vector<8xf32> to vector<8x1xf32>
    %62 = tpu.reciprocal %61 {approx = true} : vector<8x1xf32> -> vector<8x1xf32>
    %63 = vector.broadcast %62 : vector<8x1xf32> to vector<8x8xf32>
    %64 = arith.mulf %59, %63 : vector<8x8xf32>
    %c0_39 = arith.constant 0 : index
    %c1 = arith.constant 1 : index
    %c0_40 = arith.constant 0 : index
    %c0_41 = arith.constant 0 : index
    %65 = vector.load %arg21[%c0_39, %c1, %c0_40, %c0_41] : memref<1x4x8x8xf32, #tpu.memory_space<vmem>>, vector<1x1x8x8xf32>
    %66 = vector.shape_cast %65 : vector<1x1x8x8xf32> to vector<8x8xf32>
    %67 = vector.shape_cast %64 : vector<8x8xf32> to vector<1x1x8x8xf32>
    tpu.vector_store %arg21[%c0_39, %c1, %c0_40, %c0_41], %67 {strides = array<i32>} : memref<1x4x8x8xf32, #tpu.memory_space<vmem>>, vector<1x1x8x8xf32>,
    %cst_42 = arith.constant dense<0.000000e+00> : vector<8x8xf32>
    %68 = tpu.matmul %64, %50, %cst_42 {dimension_numbers = #tpu.dot_dimension_numbers<[1], [0], [0], [1], [0, 0, 1, 1], [], []>} : vector<8x8xf32>, vector<8x8xf32>, vector<8x8xf32> -> vector<8x8xf32>
    %69 = vector.extract_strided_slice %16 {offsets = [0, 16], sizes = [8, 8], strides = [1, 1]} : vector<8x32xf32> to vector<8x8xf32>
    %70 = vector.extract_strided_slice %21 {offsets = [0, 16], sizes = [8, 8], strides = [1, 1]} : vector<8x32xf32> to vector<8x8xf32>
    %71 = vector.extract_strided_slice %26 {offsets = [0, 16], sizes = [8, 8], strides = [1, 1]} : vector<8x32xf32> to vector<8x8xf32>
    %72 = tpu.transpose %70, [1, 0] : vector<8x8xf32> -> vector<8x8xf32>
    %cst_43 = arith.constant dense<0.000000e+00> : vector<8x8xf32>
    %73 = tpu.matmul %69, %72, %cst_43 {dimension_numbers = #tpu.dot_dimension_numbers<[1], [0], [0], [1], [0, 0, 1, 1], [], []>} : vector<8x8xf32>, vector<8x8xf32>, vector<8x8xf32> -> vector<8x8xf32>
    %cst_44 = arith.constant 0.353553385 : f32
    %74 = vector.broadcast %cst_44 : f32 to vector<8x8xf32>
    %75 = arith.mulf %73, %74 : vector<8x8xf32>
    %cst_45 = arith.constant dense<0xFF800000> : vector<8xf32>
    %76 = vector.multi_reduction <maximumf>, %75, %cst_45 [1] : vector<8x8xf32> to vector<8xf32>
    %77 = vector.shape_cast %76 : vector<8xf32> to vector<8x1xf32>
    %78 = vector.broadcast %77 : vector<8x1xf32> to vector<8x8xf32>
    %79 = arith.subf %75, %78 : vector<8x8xf32>
    %80 = math.exp %79 : vector<8x8xf32>
    %cst_46 = arith.constant dense<0.000000e+00> : vector<8xf32>
    %81 = vector.multi_reduction <add>, %80, %cst_46 [1] : vector<8x8xf32> to vector<8xf32>
    %82 = vector.shape_cast %81 : vector<8xf32> to vector<8x1xf32>
    %83 = tpu.reciprocal %82 {approx = true} : vector<8x1xf32> -> vector<8x1xf32>
    %84 = vector.broadcast %83 : vector<8x1xf32> to vector<8x8xf32>
    %85 = arith.mulf %80, %84 : vector<8x8xf32>
    %c0_47 = arith.constant 0 : index
    %c2 = arith.constant 2 : index
    %c0_48 = arith.constant 0 : index
    %c0_49 = arith.constant 0 : index
    %86 = vector.load %arg21[%c0_47, %c2, %c0_48, %c0_49] : memref<1x4x8x8xf32, #tpu.memory_space<vmem>>, vector<1x1x8x8xf32>
    %87 = vector.shape_cast %86 : vector<1x1x8x8xf32> to vector<8x8xf32>
    %88 = vector.shape_cast %85 : vector<8x8xf32> to vector<1x1x8x8xf32>
    tpu.vector_store %arg21[%c0_47, %c2, %c0_48, %c0_49], %88 {strides = array<i32>} : memref<1x4x8x8xf32, #tpu.memory_space<vmem>>, vector<1x1x8x8xf32>,
    %cst_50 = arith.constant dense<0.000000e+00> : vector<8x8xf32>
    %89 = tpu.matmul %85, %71, %cst_50 {dimension_numbers = #tpu.dot_dimension_numbers<[1], [0], [0], [1], [0, 0, 1, 1], [], []>} : vector<8x8xf32>, vector<8x8xf32>, vector<8x8xf32> -> vector<8x8xf32>
    %90 = vector.extract_strided_slice %16 {offsets = [0, 24], sizes = [8, 8], strides = [1, 1]} : vector<8x32xf32> to vector<8x8xf32>
    %91 = vector.extract_strided_slice %21 {offsets = [0, 24], sizes = [8, 8], strides = [1, 1]} : vector<8x32xf32> to vector<8x8xf32>
    %92 = vector.extract_strided_slice %26 {offsets = [0, 24], sizes = [8, 8], strides = [1, 1]} : vector<8x32xf32> to vector<8x8xf32>
    %93 = tpu.transpose %91, [1, 0] : vector<8x8xf32> -> vector<8x8xf32>
    %cst_51 = arith.constant dense<0.000000e+00> : vector<8x8xf32>
    %94 = tpu.matmul %90, %93, %cst_51 {dimension_numbers = #tpu.dot_dimension_numbers<[1], [0], [0], [1], [0, 0, 1, 1], [], []>} : vector<8x8xf32>, vector<8x8xf32>, vector<8x8xf32> -> vector<8x8xf32>
    %cst_52 = arith.constant 0.353553385 : f32
    %95 = vector.broadcast %cst_52 : f32 to vector<8x8xf32>
    %96 = arith.mulf %94, %95 : vector<8x8xf32>
    %cst_53 = arith.constant dense<0xFF800000> : vector<8xf32>
    %97 = vector.multi_reduction <maximumf>, %96, %cst_53 [1] : vector<8x8xf32> to vector<8xf32>
    %98 = vector.shape_cast %97 : vector<8xf32> to vector<8x1xf32>
    %99 = vector.broadcast %98 : vector<8x1xf32> to vector<8x8xf32>
    %100 = arith.subf %96, %99 : vector<8x8xf32>
    %101 = math.exp %100 : vector<8x8xf32>
    %cst_54 = arith.constant dense<0.000000e+00> : vector<8xf32>
    %102 = vector.multi_reduction <add>, %101, %cst_54 [1] : vector<8x8xf32> to vector<8xf32>
    %103 = vector.shape_cast %102 : vector<8xf32> to vector<8x1xf32>
    %104 = tpu.reciprocal %103 {approx = true} : vector<8x1xf32> -> vector<8x1xf32>
    %105 = vector.broadcast %104 : vector<8x1xf32> to vector<8x8xf32>
    %106 = arith.mulf %101, %105 : vector<8x8xf32>
    %c0_55 = arith.constant 0 : index
    %c3 = arith.constant 3 : index
    %c0_56 = arith.constant 0 : index
    %c0_57 = arith.constant 0 : index
    %107 = vector.load %arg21[%c0_55, %c3, %c0_56, %c0_57] : memref<1x4x8x8xf32, #tpu.memory_space<vmem>>, vector<1x1x8x8xf32>
    %108 = vector.shape_cast %107 : vector<1x1x8x8xf32> to vector<8x8xf32>
    %109 = vector.shape_cast %106 : vector<8x8xf32> to vector<1x1x8x8xf32>
    tpu.vector_store %arg21[%c0_55, %c3, %c0_56, %c0_57], %109 {strides = array<i32>} : memref<1x4x8x8xf32, #tpu.memory_space<vmem>>, vector<1x1x8x8xf32>,
    %cst_58 = arith.constant dense<0.000000e+00> : vector<8x8xf32>
    %110 = tpu.matmul %106, %92, %cst_58 {dimension_numbers = #tpu.dot_dimension_numbers<[1], [0], [0], [1], [0, 0, 1, 1], [], []>} : vector<8x8xf32>, vector<8x8xf32>, vector<8x8xf32> -> vector<8x8xf32>
    %111 = tpu.concatenate %47, %68, %89, %110 in 1 : vector<8x8xf32>, vector<8x8xf32>, vector<8x8xf32>, vector<8x8xf32> -> vector<8x32xf32>
    %c0_59 = arith.constant 0 : index
    %c0_60 = arith.constant 0 : index
    %112 = vector.load %arg12[%c0_59, %c0_60] : memref<32x32xf32, #tpu.memory_space<vmem>>, vector<32x32xf32>
    %cst_61 = arith.constant dense<0.000000e+00> : vector<8x32xf32>
    %113 = tpu.matmul %111, %112, %cst_61 {dimension_numbers = #tpu.dot_dimension_numbers<[1], [0], [0], [1], [0, 0, 1, 1], [], []>} : vector<8x32xf32>, vector<32x32xf32>, vector<8x32xf32> -> vector<8x32xf32>
    %c0_62 = arith.constant 0 : index
    %c0_63 = arith.constant 0 : index
    %114 = vector.load %arg13[%c0_62, %c0_63] : memref<1x32xf32, #tpu.memory_space<vmem>>, vector<1x32xf32>
    %115 = vector.broadcast %114 : vector<1x32xf32> to vector<8x32xf32>
    %116 = arith.addf %113, %115 : vector<8x32xf32>
    %117 = arith.addf %116, %1 : vector<8x32xf32>
    %118 = vector.extract_strided_slice %117 {offsets = [7, 0], sizes = [1, 32], strides = [1, 1]} : vector<8x32xf32> to vector<1x32xf32>
    %c0_64 = arith.constant 0 : index
    %c0_65 = arith.constant 0 : index
    %119 = vector.load %arg14[%c0_64, %c0_65] : memref<32x128xf32, #tpu.memory_space<vmem>>, vector<32x128xf32>
    %cst_66 = arith.constant dense<0.000000e+00> : vector<1x128xf32>
    %120 = tpu.matmul %118, %119, %cst_66 {dimension_numbers = #tpu.dot_dimension_numbers<[1], [0], [0], [1], [0, 0, 1, 1], [], []>} : vector<1x32xf32>, vector<32x128xf32>, vector<1x128xf32> -> vector<1x128xf32>
    %c0_67 = arith.constant 0 : index
    %c0_68 = arith.constant 0 : index
    %121 = vector.load %arg15[%c0_67, %c0_68] : memref<1x128xf32, #tpu.memory_space<vmem>>, vector<1x128xf32>
    %122 = arith.addf %120, %121 : vector<1x128xf32>
    %cst_69 = arith.constant 0.000000e+00 : f32
    %123 = vector.broadcast %cst_69 : f32 to vector<1x128xf32>
    %124 = arith.maximumf %122, %123 : vector<1x128xf32>
    %c0_70 = arith.constant 0 : index
    %c0_71 = arith.constant 0 : index
    %125 = vector.load %arg16[%c0_70, %c0_71] : memref<128x64xf32, #tpu.memory_space<vmem>>, vector<128x64xf32>
    %cst_72 = arith.constant dense<0.000000e+00> : vector<1x64xf32>
    %126 = tpu.matmul %124, %125, %cst_72 {dimension_numbers = #tpu.dot_dimension_numbers<[1], [0], [0], [1], [0, 0, 1, 1], [], []>} : vector<1x128xf32>, vector<128x64xf32>, vector<1x64xf32> -> vector<1x64xf32>
    %c0_73 = arith.constant 0 : index
    %c0_74 = arith.constant 0 : index
    %127 = vector.load %arg17[%c0_73, %c0_74] : memref<1x64xf32, #tpu.memory_space<vmem>>, vector<1x64xf32>
    %128 = arith.addf %126, %127 : vector<1x64xf32>
    %cst_75 = arith.constant 0.000000e+00 : f32
    %129 = vector.broadcast %cst_75 : f32 to vector<1x64xf32>
    %130 = arith.maximumf %128, %129 : vector<1x64xf32>
    %c0_76 = arith.constant 0 : index
    %c0_77 = arith.constant 0 : index
    %131 = vector.load %arg18[%c0_76, %c0_77] : memref<64x1xf32, #tpu.memory_space<vmem>>, vector<64x1xf32>
    %cst_78 = arith.constant dense<0.000000e+00> : vector<1x1xf32>
    %132 = tpu.matmul %130, %131, %cst_78 {dimension_numbers = #tpu.dot_dimension_numbers<[1], [0], [0], [1], [0, 0, 1, 1], [], []>} : vector<1x64xf32>, vector<64x1xf32>, vector<1x1xf32> -> vector<1x1xf32>
    %c0_79 = arith.constant 0 : index
    %c0_80 = arith.constant 0 : index
    %133 = vector.load %arg19[%c0_79, %c0_80] : memref<1x1xf32, #tpu.memory_space<vmem>>, vector<1x1xf32>
    %134 = arith.addf %132, %133 : vector<1x1xf32>
    %c0_81 = arith.constant 0 : index
    %c0_82 = arith.constant 0 : index
    %c0_83 = arith.constant 0 : index
    %135 = vector.load %arg20[%c0_81, %c0_82, %c0_83] : memref<1x1x1xf32, #tpu.memory_space<vmem>>, vector<1x1x1xf32>
    %136 = vector.shape_cast %135 : vector<1x1x1xf32> to vector<1x1xf32>
    %137 = vector.shape_cast %134 : vector<1x1xf32> to vector<1x1x1xf32>
    tpu.vector_store %arg20[%c0_81, %c0_82, %c0_83], %137 {strides = array<i32>} : memref<1x1x1xf32, #tpu.memory_space<vmem>>, vector<1x1x1xf32>,
    return
  }
  func.func @transform_0(%arg0: i32) -> (i32, i32, i32) {
    %c0_i32 = arith.constant 0 : i32
    %c0_i32_0 = arith.constant 0 : i32
    %c0_i32_1 = arith.constant 0 : i32
    return %arg0, %c0_i32, %c0_i32_0 : i32, i32, i32
  }
  func.func @transform_1(%arg0: i32) -> (i32, i32) {
    %c0_i32 = arith.constant 0 : i32
    %c0_i32_0 = arith.constant 0 : i32
    %c0_i32_1 = arith.constant 0 : i32
    return %c0_i32, %c0_i32_0 : i32, i32
  }
  func.func @transform_2(%arg0: i32) -> (i32, i32) {
    %c0_i32 = arith.constant 0 : i32
    %c0_i32_0 = arith.constant 0 : i32
    %c0_i32_1 = arith.constant 0 : i32
    return %c0_i32, %c0_i32_0 : i32, i32
  }
  func.func @transform_3(%arg0: i32) -> (i32, i32) {
    %c0_i32 = arith.constant 0 : i32
    %c0_i32_0 = arith.constant 0 : i32
    %c0_i32_1 = arith.constant 0 : i32
    return %c0_i32, %c0_i32_0 : i32, i32
  }
  func.func @transform_4(%arg0: i32) -> (i32, i32) {
    %c0_i32 = arith.constant 0 : i32
    %c0_i32_0 = arith.constant 0 : i32
    %c0_i32_1 = arith.constant 0 : i32
    return %c0_i32, %c0_i32_0 : i32, i32
  }
  func.func @transform_5(%arg0: i32) -> (i32, i32) {
    %c0_i32 = arith.constant 0 : i32
    %c0_i32_0 = arith.constant 0 : i32
    %c0_i32_1 = arith.constant 0 : i32
    return %c0_i32, %c0_i32_0 : i32, i32
  }
  func.func @transform_6(%arg0: i32) -> (i32, i32) {
    %c0_i32 = arith.constant 0 : i32
    %c0_i32_0 = arith.constant 0 : i32
    %c0_i32_1 = arith.constant 0 : i32
    return %c0_i32, %c0_i32_0 : i32, i32
  }
  func.func @transform_7(%arg0: i32) -> (i32, i32) {
    %c0_i32 = arith.constant 0 : i32
    %c0_i32_0 = arith.constant 0 : i32
    %c0_i32_1 = arith.constant 0 : i32
    return %c0_i32, %c0_i32_0 : i32, i32
  }
  func.func @transform_8(%arg0: i32) -> (i32, i32) {
    %c0_i32 = arith.constant 0 : i32
    %c0_i32_0 = arith.constant 0 : i32
    %c0_i32_1 = arith.constant 0 : i32
    return %c0_i32, %c0_i32_0 : i32, i32
  }
  func.func @transform_9(%arg0: i32) -> (i32, i32) {
    %c0_i32 = arith.constant 0 : i32
    %c0_i32_0 = arith.constant 0 : i32
    %c0_i32_1 = arith.constant 0 : i32
    return %c0_i32, %c0_i32_0 : i32, i32
  }
  func.func @transform_10(%arg0: i32) -> (i32, i32) {
    %c0_i32 = arith.constant 0 : i32
    %c0_i32_0 = arith.constant 0 : i32
    %c0_i32_1 = arith.constant 0 : i32
    return %c0_i32, %c0_i32_0 : i32, i32
  }
  func.func @transform_11(%arg0: i32) -> (i32, i32) {
    %c0_i32 = arith.constant 0 : i32
    %c0_i32_0 = arith.constant 0 : i32
    %c0_i32_1 = arith.constant 0 : i32
    return %c0_i32, %c0_i32_0 : i32, i32
  }
  func.func @transform_12(%arg0: i32) -> (i32, i32) {
    %c0_i32 = arith.constant 0 : i32
    %c0_i32_0 = arith.constant 0 : i32
    %c0_i32_1 = arith.constant 0 : i32
    return %c0_i32, %c0_i32_0 : i32, i32
  }
  func.func @transform_13(%arg0: i32) -> (i32, i32) {
    %c0_i32 = arith.constant 0 : i32
    %c0_i32_0 = arith.constant 0 : i32
    %c0_i32_1 = arith.constant 0 : i32
    return %c0_i32, %c0_i32_0 : i32, i32
  }
  func.func @transform_14(%arg0: i32) -> (i32, i32) {
    %c0_i32 = arith.constant 0 : i32
    %c0_i32_0 = arith.constant 0 : i32
    %c0_i32_1 = arith.constant 0 : i32
    return %c0_i32, %c0_i32_0 : i32, i32
  }
  func.func @transform_15(%arg0: i32) -> (i32, i32) {
    %c0_i32 = arith.constant 0 : i32
    %c0_i32_0 = arith.constant 0 : i32
    %c0_i32_1 = arith.constant 0 : i32
    return %c0_i32, %c0_i32_0 : i32, i32
  }
  func.func @transform_16(%arg0: i32) -> (i32, i32) {
    %c0_i32 = arith.constant 0 : i32
    %c0_i32_0 = arith.constant 0 : i32
    %c0_i32_1 = arith.constant 0 : i32
    return %c0_i32, %c0_i32_0 : i32, i32
  }
  func.func @transform_17(%arg0: i32) -> (i32, i32) {
    %c0_i32 = arith.constant 0 : i32
    %c0_i32_0 = arith.constant 0 : i32
    %c0_i32_1 = arith.constant 0 : i32
    return %c0_i32, %c0_i32_0 : i32, i32
  }
  func.func @transform_18(%arg0: i32) -> (i32, i32) {
    %c0_i32 = arith.constant 0 : i32
    %c0_i32_0 = arith.constant 0 : i32
    %c0_i32_1 = arith.constant 0 : i32
    return %c0_i32, %c0_i32_0 : i32, i32
  }
  func.func @transform_19(%arg0: i32) -> (i32, i32, i32) {
    %c0_i32 = arith.constant 0 : i32
    %c0_i32_0 = arith.constant 0 : i32
    %c0_i32_1 = arith.constant 0 : i32
    return %arg0, %c0_i32, %c0_i32_0 : i32, i32, i32
  }
  func.func @transform_20(%arg0: i32) -> (i32, i32, i32, i32) {
    %c0_i32 = arith.constant 0 : i32
    %c0_i32_0 = arith.constant 0 : i32
    %c0_i32_1 = arith.constant 0 : i32
    %c0_i32_2 = arith.constant 0 : i32
    return %arg0, %c0_i32, %c0_i32_0, %c0_i32_1 : i32, i32, i32, i32
  }
}

</mosaic_0001>

<bundles_post_ra>
// kernel: _lambda_.5
= control target key start
LH: loop header
LB: loop body
LE: loop exit
PB: predicated region body
PF: predicated region fallthrough
CT: control target
= control target key end

     0   :  { %s1929_s0 = inlined_call_operand.vmem [shape: f32[2,8,32], index: 0, kind: input, shape index: {}]   ;;  %s1930_s1 = inlined_call_operand.vmem [shape: f32[32,32], index: 1, kind: input, shape index: {}]   ;;  %s1931_s2 = inlined_call_operand.vmem [shape: f32[1,32], index: 2, kind: input, shape index: {}]   ;;  %s1932_s3 = inlined_call_operand.vmem [shape: f32[32,32], index: 3, kind: input, shape index: {}]   ;;  %s1933_s4 = inlined_call_operand.vmem [shape: f32[1,32], index: 4, kind: input, shape index: {}]   ;;  %s1934_s5 = inlined_call_operand.vmem [shape: f32[32,32], index: 5, kind: input, shape index: {}]   ;;  %s1935_s6 = inlined_call_operand.vmem [shape: f32[1,32], index: 6, kind: input, shape index: {}]   ;;  %s1936_s7 = inlined_call_operand.vmem [shape: f32[32,32], index: 7, kind: input, shape index: {}]   ;;  %s1937_s8 = inlined_call_operand.vmem [shape: f32[1,32], index: 8, kind: input, shape index: {}]   ;;  %s1938_s9 = inlined_call_operand.vmem [shape: f32[32,32], index: 9, kind: input, shape index: {}]   ;;  %s1939_s10 = inlined_call_operand.vmem [shape: f32[1,32], index: 10, kind: input, shape index: {}]   ;;  %s1940_s11 = inlined_call_operand.vmem [shape: f32[32,32], index: 11, kind: input, shape index: {}]   ;;  %s1941_s12 = inlined_call_operand.vmem [shape: f32[1,32], index: 12, kind: input, shape index: {}]   ;;  %s1942_s13 = inlined_call_operand.vmem [shape: f32[32,128], index: 13, kind: input, shape index: {}]   ;;  %s1943_s14 = inlined_call_operand.vmem [shape: f32[1,128], index: 14, kind: input, shape index: {}]   ;;  %s1944_s15 = inlined_call_operand.vmem [shape: f32[128,64], index: 15, kind: input, shape index: {}]   ;;  %s1945_s16 = inlined_call_operand.vmem [shape: f32[1,64], index: 16, kind: input, shape index: {}]   ;;  %s1946_s17 = inlined_call_operand.vmem [shape: f32[64,1], index: 17, kind: input, shape index: {}]   ;;  %s1947_s18 = inlined_call_operand.<no memory space> [shape: f32[1,1], index: 18, kind: input, shape index: {}]   ;;  %s1948_s19 = inlined_call_operand.vmem [shape: f32[2,1,1], index: 19, kind: output, shape index: {0}]   ;;  %s1949_s20 = inlined_call_operand.hbm [shape: f32[2,4,8,8], index: 20, kind: output, shape index: {1}]  }
   0x1   :  { %1961 = sst [smem:[#allocation12_spill]] %s1929_s0  ;;  %v26_v0 = vstv %s1947_s18 }
   0x2   :  { %1962 = sst [smem:[#allocation13_spill]] %s1930_s1  ;;  %27 = vst [vmem:[#allocation2] sm:$0x1] %v26_v0 }
   0x3   :  { %1963 = sst [smem:[#allocation14_spill]] %s1931_s2 }
   0x4   :  { %1964 = sst [smem:[#allocation15_spill]] %s1932_s3 }
   0x5   :  { %1965 = sst [smem:[#allocation16_spill]] %s1933_s4 }
   0x6   :  { %1966 = sst [smem:[#allocation17_spill]] %s1934_s5 }
   0x7   :  { %1967 = sst [smem:[#allocation18_spill]] %s1935_s6 }
   0x8   :  { %1968 = sst [smem:[#allocation19_spill]] %s1948_s19 }
   0x9   :  { %28 = vsyncpa [#allocation4], 0 }
   0xa   :  { %30 = vsyncpa [#allocation4 + $0x1], 0  ;;  %s1592_s23 = smov 0   ;;  %s1594_s24 = smov 0  }
   0xb   :  { %s1596_s2 = smov 0   ;;  %s1598_s25 = smov 0  }
   0xc LB: > { %1969 = sst [smem:[#allocation6_spill]] %s1463_s23  ;;  %s1613_s18 = sadd.s32 4294967295, %s1475_s25   ;;  %s1475_s25 = sphi %s1598_s25, %s1990_s25   ;;  %s1471_s2 = sphi %s1596_s2, %s1992_s2   ;;  %s1467_s24 = sphi %s1594_s24, %s1994_s24   ;;  %s1463_s23 = sphi %s1592_s23, %s1993_s23  }
   0xd   : > { %1970 = sst [smem:[#allocation7_spill]] %s1471_s2  ;;  %s1310_s3 = sadd.s32 4294967294, %s1475_s25  }
   0xe   : > { %1971 = sst [smem:[#allocation8_spill]] %s1475_s25  ;;  %s1617_s26 = sadd.s32 1, %s1475_s25  }
   0xf   : > { %1972 = sst [smem:[#allocation9_spill]] %s1617_s26  ;;  %s473_s27 = sadd.s32 1, %s1471_s2 }
  0x10   : > { %s470_s28 = ssub.s32 %s1475_s25, %s1617_s26  ;;  %p483_p0 = scmp.ne.s32.totalorder %s1471_s2, %s1467_s24 }
  0x11   : > { %p471_p1 = scmp.eq.s32.totalorder %s470_s28, 0  ;;  %p484_p2 = scmp.eq.s32.totalorder %s1613_s18, 1 }
  0x12   : > { %p489_p3 = scmp.ne.s32.totalorder %s1467_s24, %s1463_s23  ;;  %p490_p4 = scmp.eq.s32.totalorder %s1310_s3, 1 }
  0x13   : > { %s1628_s4 = scalar_select %p471_p1, %s1471_s2, %s473_s27  }
  0x14   : > { %p1630_p5 = por %p484_p2, %p483_p0  ;;  %p1634_p6 = por %p490_p4, %p489_p3 }
  0x15   : > { %1973 = sst [smem:[#allocation10_spill]] %s1628_s4  ;;  %p1313_p7 = scmp.ge.s32.totalorder %s1475_s25, 1 }
  0x16   : > { %s1975_s30 = scalar_select %p1634_p6, 1, 0 }
  0x17   : > { %p569_p8 = scmp.lt.s32.totalorder %s1475_s25, 3 }
  0x18   : > { %1976 = sst [smem:[#allocation11_spill]] %s1975_s30 }
  0x19   : > { %p570_p9 = pnand %p1313_p7, %p569_p8 }
  0x1a   : > { %s1977_s1 = sld [smem:[#allocation13_spill]] (!%p570_p9)  ;;  %p629_p10 = scmp.lt.s32.totalorder (!%p570_p9), %s1613_s18, 1 }
  0x1b   : > { %573 = sbr.rel (%p570_p9) target bundleno = 1604 (0x644), region = 96  ;;  %s1978_s27 = sld [smem:[#allocation15_spill]] (!%p570_p9) }
  0x1c   : > { %s1979_s0 = sld [smem:[#allocation12_spill]] (!%p570_p9)  ;;  %s1478_s4 = smov (!%p570_p9), 120  }
  0x1d   : > { %s1980_s5 = sld [smem:[#allocation17_spill]] (!%p570_p9)  ;;  %s1479_s26 = smov (!%p570_p9), 104  }
  0x1e   : > { %s1981_s2 = sld [smem:[#allocation16_spill]] (!%p570_p9)  ;;  %s1959_s19 = sand.u32 (!%p570_p9), 1, %s1467_s24  }
  0x1f   : > { %s1982_s25 = sld [smem:[#allocation14_spill]] (!%p570_p9)  ;;  %s1480_s28 = smov (!%p570_p9), 16  }
  0x20   : > { %v640_v1 = vld [vmem:[%s1977_s1 + $0x18] sm:$0xff]  ;;  %v639_v3 = vld [vmem:[%s1977_s1 + $0x10] sm:$0xff]  ;;  %v638_v5 = vld [vmem:[%s1977_s1 + $0x8] sm:$0xff]  ;;  %s1660_s22 = scalar_select %p629_p10, %s1613_s18, 1  ;;  %vm645_vm0 = vcmask 261120   ;;  %vm787_vm1 = vcmask 64512  }
  0x21   : > { %v672_v2 = vld [vmem:[%s1978_s27 + $0x18] sm:$0xff]  ;;  %661 = vmatpush.msra.mxu2 %v640_v1  ;;  %v671_v4 = vld [vmem:[%s1978_s27 + $0x10] sm:$0xff]  ;;  %v670_v6 = vld [vmem:[%s1978_s27 + $0x8] sm:$0xff]  ;;  %s1983_s6 = sld [smem:[#allocation18_spill]]  ;;  %s1958_s23 = smov 8   ;;  %vm1068_vm2 = vcmask 130048  }
  0x22   : > { %689 = vmatpush.msra.mxu1 %v672_v2  ;;  %v637_v7 = vld [vmem:[%s1977_s1] sm:$0xff]  ;;  %s1315_s30 = sshll.u32 %s1660_s22, 3  ;;  %v731_v10 = vld [vmem:[%s1936_s7 + $0x18] sm:$0xff]  ;;  %v730_v11 = vld [vmem:[%s1936_s7 + $0x10] sm:$0xff]  ;;  %vm1070_vm3 = vcmask 195584   ;;  %vm1181_vm4 = vcmask 523264  }
  0x23   : > { %662 = vmatpush.msra.mxu2 %v639_v3  ;;  %v669_v8 = vld [vmem:[%s1978_s27] sm:$0xff]  ;;  %s632_s21 = scalar_lea.vmem %s1979_s0, %s1315_s30  ;;  %v729_v12 = vld [vmem:[%s1936_s7 + $0x8] sm:$0xff]  ;;  %v762_v13 = vld [vmem:[%s1938_s9 + $0x18] sm:$0xff]  ;;  %s1482_s0 = smov 24  }
  0x24   : > { %690 = vmatpush.msra.mxu1 %v671_v4  ;;  %v1672_v9 = vld [vmem:[%s632_s21] sm:$0xff]  ;;  %779 = vmatpush.msra.mxu0 %v762_v13  ;;  %v700_v14 = vld [vmem:[%s1980_s5 + $0x18] sm:$0xff]  ;;  %v761_v16 = vld [vmem:[%s1938_s9 + $0x10] sm:$0xff]  ;;  %s1477_s21 = smov 112  }
  0x25   : > { %663 = vmatpush.msra.mxu2 %v638_v5  ;;  %v728_v15 = vld [vmem:[%s1936_s7] sm:$0xff]  ;;  %v699_v17 = vld [vmem:[%s1980_s5 + $0x10] sm:$0xff]  ;;  %v760_v18 = vld [vmem:[%s1938_s9 + $0x8] sm:$0xff] }
  0x26   : > { %691 = vmatpush.msra.mxu1 %v670_v6  ;;  %780 = vmatpush.msra.mxu0 %v761_v16  ;;  %v698_v19 = vld [vmem:[%s1980_s5 + $0x8] sm:$0xff]  ;;  %v759_v20 = vld [vmem:[%s1938_s9] sm:$0xff] }
  0x27   : > { %664 = vmatpush.msra.mxu2 %v637_v7  ;;  %v697_v21 = vld [vmem:[%s1980_s5] sm:$0xff]  ;;  %s1433_s5 = scalar_lea.hbm %s1949_s20, 64 }
  0x28   : > { %692 = vmatpush.msra.mxu1 %v669_v8  ;;  %1316 = vmatmul.msk.f32.vlgmr.msra.gmra.mxu2 %vm645_vm0, %v1672_v9  ;;  %v1391_v22 = vld [vmem:[%s1981_s2] ss:$0 sm:$0xff] }
  0x29   : > { %1317 = vmatmul.msk.f32.vlgmr.msra.gmra.mxu1 %vm645_vm0, %v1672_v9  ;;  %720 = vmatpush.msrb.mxu2 %v700_v14  ;;  %v1392_v25 = vld [vmem:[%s1982_s25] ss:$0 sm:$0xff]  ;;  %s1314_s25 = sshll.u32 %s1959_s19, 5  ;;  %s1984_s19 = sand.u32 1, %s1467_s24  }
  0x2a   : > { %751 = vmatpush.msrb.mxu1 %v731_v10  ;;  %781 = vmatpush.msra.mxu0 %v760_v18  ;;  %v1393_v28 = vld [vmem:[%s1937_s8] ss:$0 sm:$0xff]  ;;  %s1759_s30 = scalar_lea.vmem [#allocation3], %s1314_s25 }
  0x2b   : > { %721 = vmatpush.msrb.mxu2 %v699_v17  ;;  %v1394_v29 = vld [vmem:[%s1939_s10] ss:$0 sm:$0xff] }
  0x2c   : > { %752 = vmatpush.msrb.mxu1 %v730_v11  ;;  %782 = vmatpush.msra.mxu0 %v759_v20  ;;  %v1395_v34 = vld [vmem:[%s1983_s6] ss:$0 sm:$0xff] }
  0x2d   : > { %722 = vmatpush.msrb.mxu2 %v698_v19 }
  0x2e   : > { %753 = vmatpush.msrb.mxu1 %v729_v12 }
  0x2f   : > { %723 = vmatpush.msrb.mxu2 %v697_v21 }
  0x30   : > { %754 = vmatpush.msrb.mxu1 %v728_v15 }
  0xa6   : > { %v694_v23 = vpop.f32.mrf.mxu1 }
  0xa7   : > { %v695_v24 = vadd.f32 %v1391_v22, %v694_v23 }
  0xa9   : > { %1319 = vmatmul.msk.f32.vlgmr.msrb.gmra.mxu1 %vm645_vm0, %v695_v24  ;;  %1320 = vmatmul.msk.f32.vlgmr.msra.gmra.mxu0 %vm645_vm0, %v695_v24 }
  0xab   : > { %v666_v26 = vpop.f32.mrf.mxu2 }
  0xac   : > { %v667_v27 = vadd.f32 %v1392_v25, %v666_v26 }
  0xae   : > { %1318 = vmatmul.msk.f32.vlgmr.msrb.gmra.mxu2 %vm645_vm0, %v667_v27 }
 0x126   : > { %v756_v30 = vpop.f32.mrf.mxu1  ;;  %v784_v31 = vpop.f32.mrf.mxu0 }
 0x127   : > { %v757_v32 = vadd.f32 %v1393_v28, %v756_v30  ;;  %v1729_v33 = vadd.f32 %v1394_v29, %v784_v31  ;;  %v1075_v31 = vld [vmem:[%s1940_s11 + $0x18] sm:$0xff] }
 0x129   : > { %921 = vrot.lane.b32.xlu1 %v757_v32, %s1477_s21  ;;  %852 = vrot.lane.b32.xlu0 %v757_v32, %s1478_s4 }
 0x12a   : > { %1321 = vmatpush.xpose.msk.msra.mxu1 %vm787_vm1, %v757_v32  ;;  %845 = vmatpush.msra.mxu2 %v1729_v33 }
 0x131   : > { %989 = vrot.lane.b32.xlu1 %v757_v32, %s1479_s26  ;;  %v725_v35 = vpop.f32.mrf.mxu2  ;;  %v1074_v32 = vld [vmem:[%s1940_s11 + $0x10] sm:$0xff] }
 0x132   : > { %v726_v36 = vadd.f32 %v1395_v34, %v725_v35  ;;  %v1072_v34 = vld [vmem:[%s1940_s11] sm:$0xff] }
 0x134   : > { %919 = vrot.lane.b32.xlu2 %v726_v36, %s1477_s21  ;;  %850 = vrot.lane.b32.xlu0 %v726_v36, %s1478_s4 }
 0x135   : > { %1322 = vmatmul.msk.f32.vlgmr.msra.gmra.mxu1 %vm787_vm1, %v726_v36 }
 0x13c   : > { %987 = vrot.lane.b32.xlu2 %v726_v36, %s1479_s26 }
 0x18e   : > { %v920_v39 = vpop.permute.xlu2 %919 }
 0x196   : > { %v988_v42 = vpop.permute.xlu2 %987 }
 0x19b   : > { %v922_v37 = vpop.permute.xlu1 %921  ;;  %v853_v38 = vpop.permute.xlu0 %852 }
 0x19c   : > { %1328 = vmatpush.xpose.msk.msrb.mxu1 %vm787_vm1, %v922_v37  ;;  %1324 = vmatpush.xpose.msk.msra.mxu3 %vm787_vm1, %v853_v38 }
 0x19f   : > { %1329 = vmatmul.msk.f32.vlgmr.msrb.gmra.mxu1 %vm787_vm1, %v920_v39 }
 0x1a0   : > { %1095 = vmatpush.msra.mxu1 %v1075_v31 }
 0x1a2   : > { %1096 = vmatpush.msra.mxu1 %v1074_v32 }
 0x1a3   : > { %v990_v40 = vpop.permute.xlu1 %989 }
 0x1a4   : > { %1332 = vmatpush.xpose.msk.msrb.mxu3 %vm787_vm1, %v990_v40 }
 0x1a6   : > { %v851_v41 = vpop.permute.xlu0 %850 }
 0x1a7   : > { %1325 = vmatmul.msk.f32.vlgmr.msra.gmra.mxu3 %vm787_vm1, %v851_v41  ;;  %v1107_v41 = vld [vmem:[%s1942_s13 + $0x18] sm:$0xff] }
 0x1af   : > { %1333 = vmatmul.msk.f32.vlgmr.msrb.gmra.mxu3 %vm787_vm1, %v988_v42  ;;  %v1106_v42 = vld [vmem:[%s1942_s13 + $0x10] sm:$0xff] }
 0x1b2   : > { %v811_v43 = vpop.f32.mrf.mxu1 }
 0x1b3   : > { %v814_v44 = vmul.f32 0.35355338, %v811_v43  ;;  %v1105_v43 = vld [vmem:[%s1942_s13 + $0x8] sm:$0xff] }
 0x1b5   : > { %v815_v45 = vsel %vm787_vm1, %v814_v44, -inf }
 0x1b6   : > { %816 = vmax.xlane.f32.xlu0 %v815_v45  ;;  %v1149_v45 = vld [vmem:[%s1944_s15 + $0x78] sm:$0xff] }
 0x1b7   : > { %1151 = vmatpush.msra.mxu3 %v1149_v45 }
 0x21c   : > { %v944_v46 = vpop.f32.mrf.mxu1 }
 0x21d   : > { %v947_v47 = vmul.f32 0.35355338, %v944_v46  ;;  %v1148_v46 = vld [vmem:[%s1944_s15 + $0x70] sm:$0xff] }
 0x21e   : > { %1152 = vmatpush.msra.mxu3 %v1148_v46 }
 0x21f   : > { %v948_v48 = vsel %vm787_vm1, %v947_v47, -inf }
 0x220   : > { %949 = vmax.xlane.f32.xlu2 %v948_v48  ;;  %v1146_v48 = vld [vmem:[%s1944_s15 + $0x60] sm:$0xff] }
 0x229   : > { %v817_v49 = vpop.xlane.xlu0 %816 }
 0x22a   : > { %v818_v50 = vsub.f32 %v814_v44, %v817_v49  ;;  %v875_v51 = vpop.f32.mrf.mxu3  ;;  %v1104_v44 = vld [vmem:[%s1942_s13] sm:$0xff]  ;;  %v1145_v49 = vld [vmem:[%s1944_s15 + $0x58] sm:$0xff] }
 0x22b   : > { %v878_v52 = vmul.f32 0.35355338, %v875_v51  ;;  %v1143_v51 = vld [vmem:[%s1944_s15 + $0x48] sm:$0xff] }
 0x22c   : > { %v819_v53 = vmul.f32 1.442695, %v818_v50  ;;  %v1144_v50 = vld [vmem:[%s1944_s15 + $0x50] sm:$0xff] }
 0x22d   : > { %v879_v54 = vsel %vm787_vm1, %v878_v52, -inf }
 0x22e   : > { %1397 = vpow2.f32 %v819_v53  ;;  %880 = vmax.xlane.f32.xlu1 %v879_v54  ;;  %v1141_v53 = vld [vmem:[%s1944_s15 + $0x38] sm:$0xff]  ;;  %v1140_v54 = vld [vmem:[%s1944_s15 + $0x30] sm:$0xff] }
 0x232   : > { %v1012_v55 = vpop.f32.mrf.mxu3 }
 0x233   : > { %v1015_v56 = vmul.f32 0.35355338, %v1012_v55  ;;  %v1139_v55 = vld [vmem:[%s1944_s15 + $0x28] sm:$0xff] }
 0x234   : > { %v1398_v57 = vpop.eup %1397 }
 0x235   : > { %v821_v58 = vsel %vm787_vm1, %v1398_v57, 0.0  ;;  %v1016_v59 = vsel %vm787_vm1, %v1015_v56, -inf }
 0x236   : > { %822 = vadd.xlane.f32.xlu0 %v821_v58  ;;  %1017 = vmax.xlane.f32.xlu2 %v1016_v59  ;;  %v1137_v58 = vld [vmem:[%s1944_s15 + $0x18] sm:$0xff] }
 0x293   : > { %v950_v60 = vpop.xlane.xlu2 %949 }
 0x294   : > { %v951_v61 = vsub.f32 %v947_v47, %v950_v60  ;;  %v1147_v47 = vld [vmem:[%s1944_s15 + $0x68] sm:$0xff] }
 0x295   : > { %1153 = vmatpush.msra.mxu3 %v1147_v47 }
 0x296   : > { %v952_v62 = vmul.f32 1.442695, %v951_v61 }
 0x297   : > { %1154 = vmatpush.msra.mxu3 %v1146_v48 }
 0x298   : > { %1399 = vpow2.f32 %v952_v62 }
 0x299   : > { %1155 = vmatpush.msra.mxu3 %v1145_v49 }
 0x29b   : > { %1156 = vmatpush.msra.mxu3 %v1144_v50 }
 0x29d   : > { %1157 = vmatpush.msra.mxu3 %v1143_v51 }
 0x29e   : > { %v1400_v63 = vpop.eup %1399 }
 0x29f   : > { %v954_v0 = vsel %vm787_vm1, %v1400_v63, 0.0 }
 0x2a0   : > { %955 = vadd.xlane.f32.xlu2 %v954_v0  ;;  %v1135_v0 = vld [vmem:[%s1944_s15 + $0x8] sm:$0xff] }
 0x2a1   : > { %v881_v1 = vpop.xlane.xlu1 %880 }
 0x2a2   : > { %v882_v2 = vsub.f32 %v878_v52, %v881_v1  ;;  %v1142_v52 = vld [vmem:[%s1944_s15 + $0x40] sm:$0xff] }
 0x2a3   : > { %1158 = vmatpush.msra.mxu3 %v1142_v52  ;;  %v1134_v1 = vld [vmem:[%s1944_s15] sm:$0xff] }
 0x2a4   : > { %v883_v3 = vmul.f32 1.442695, %v882_v2  ;;  %v1178_v2 = vld [vmem:[%s1946_s17 + $0x30] sm:$0xff] }
 0x2a5   : > { %1159 = vmatpush.msra.mxu3 %v1141_v53 }
 0x2a6   : > { %1401 = vpow2.f32 %v883_v3  ;;  %v1177_v3 = vld [vmem:[%s1946_s17 + $0x28] sm:$0xff] }
 0x2a7   : > { %1160 = vmatpush.msra.mxu3 %v1140_v54 }
 0x2a9   : > { %v823_v4 = vpop.xlane.xlu0 %822  ;;  %v1018_v5 = vpop.xlane.xlu2 %1017  ;;  %1161 = vmatpush.msra.mxu3 %v1139_v55 }
 0x2aa   : > { %1403 = vrcp.f32 %v823_v4  ;;  %v1019_v6 = vsub.f32 %v1015_v56, %v1018_v5  ;;  %v1138_v56 = vld [vmem:[%s1944_s15 + $0x20] sm:$0xff]  ;;  %v1175_v5 = vld [vmem:[%s1946_s17 + $0x18] sm:$0xff] }
 0x2ab   : > { %1162 = vmatpush.msra.mxu3 %v1138_v56  ;;  %v1176_v4 = vld [vmem:[%s1946_s17 + $0x20] sm:$0xff] }
 0x2ac   : > { %v1402_v7 = vpop.eup %1401  ;;  %v1020_v8 = vmul.f32 1.442695, %v1019_v6  ;;  %v1108_v6 = vld [vmem:[%s1943_s14] sm:$0x1] }
 0x2ad   : > { %v885_v10 = vsel %vm787_vm1, %v1402_v7, 0.0  ;;  %1163 = vmatpush.msra.mxu3 %v1137_v58 }
 0x2ae   : > { %1405 = vpow2.f32 %v1020_v8  ;;  %886 = vadd.xlane.f32.xlu1 %v885_v10 }
 0x2b0   : > { %v1404_v11 = vpop.eup %1403 }
 0x2b1   : > { %v825_v12 = vmul.f32 %v1404_v11, %v1398_v57  ;;  %v1396_v57 = vld [vmem:[%s1941_s12] ss:$0 sm:$0xff]  ;;  %v1174_v11 = vld [vmem:[%s1946_s17 + $0x10] sm:$0xff] }
 0x2b3   : > { %826 = vst.msk [vmem:[%s1759_s30] sm:$0xff] %vm787_vm1, %v825_v12  ;;  %1323 = vmatmul.msk.f32.vlgmr.msra.gmra.mxu2 %vm787_vm1, %v825_v12  ;;  %v1173_v12 = vld [vmem:[%s1946_s17 + $0x8] sm:$0xff] }
 0x2b4   : > { %v1406_v13 = vpop.eup %1405 }
 0x2b5   : > { %v1022_v14 = vsel %vm787_vm1, %v1406_v13, 0.0 }
 0x2b6   : > { %1023 = vadd.xlane.f32.xlu0 %v1022_v14  ;;  %v1150_v14 = vld [vmem:[%s1945_s16] sm:$0x1] }
 0x2b8   : > { %961 = vrot.lane.b32.xlu2 %v1729_v33, %s1477_s21 }
 0x2c7   : > { %893 = vrot.lane.b32.xlu1 %v1729_v33, %s1478_s4  ;;  %s1344_s4 = sshll.u32 %s1613_s18, 5 }
 0x2c8   : > { %s1225_s2 = scalar_lea.hbm %s1949_s20, %s1344_s4 }
 0x2c9   : > { %s1228_s25 = sshll.u32 %s1225_s2, 4  ;;  %s1229_s25 = int_to_ptr.hbm [resolvable:$true] %s1228_s25 }
 0x2ca   : > { %1029 = vrot.lane.b32.xlu0 %v1729_v33, %s1479_s26  ;;  %v1073_v33 = vld [vmem:[%s1940_s11 + $0x8] sm:$0xff]  ;;  %s1226_s26 = sshll.u32 %s1759_s30, 4  ;;  %s1427_s1 = sshra.s32 %s1229_s25, 4  ;;  %s1227_s26 = int_to_ptr.vmem [resolvable:$true] %s1226_s26  ;;  %s1428_s1 = int_to_ptr.hbm [resolvable:$true] %s1427_s1 }
 0x2cb   : > { %1097 = vmatpush.msra.mxu1 %v1073_v33  ;;  %p1434_p0 = scmp.lt.s32.totalorder %s1428_s1, %s1949_s20 }
 0x2cd   : > { %1098 = vmatpush.msra.mxu1 %v1072_v34 }
 0x313   : > { %v956_v15 = vpop.xlane.xlu2 %955 }
 0x314   : > { %1407 = vrcp.f32 %v956_v15 }
 0x31a   : > { %v1408_v16 = vpop.eup %1407 }
 0x31b   : > { %v958_v17 = vmul.f32 %v1408_v16, %v1400_v63  ;;  %v962_v18 = vpop.permute.xlu2 %961  ;;  %v1136_v63 = vld [vmem:[%s1944_s15 + $0x10] sm:$0xff] }
 0x31c   : > { %982 = vmatpush.msrb.mxu2 %v962_v18  ;;  %1164 = vmatpush.msra.mxu3 %v1136_v63 }
 0x31d   : > { %1330 = vst.msk [vmem:[%s1759_s30 + $0x10] sm:$0xff] %vm787_vm1, %v958_v17  ;;  %1331 = vmatmul.msk.f32.vlgmr.msrb.gmra.mxu2 %vm787_vm1, %v958_v17 }
 0x31e   : > { %1125 = vmatpush.msra.mxu2 %v1107_v41  ;;  %1165 = vmatpush.msra.mxu3 %v1135_v0 }
 0x320   : > { %1126 = vmatpush.msra.mxu2 %v1106_v42  ;;  %1166 = vmatpush.msra.mxu3 %v1134_v1 }
 0x321   : > { %v887_v19 = vpop.xlane.xlu1 %886 }
 0x322   : > { %1409 = vrcp.f32 %v887_v19  ;;  %1127 = vmatpush.msra.mxu2 %v1105_v43 }
 0x324   : > { %1128 = vmatpush.msra.mxu2 %v1104_v44 }
 0x328   : > { %v1410_v20 = vpop.eup %1409 }
 0x329   : > { %v1024_v21 = vpop.xlane.xlu0 %1023  ;;  %v889_v22 = vmul.f32 %v1410_v20, %v1402_v7 }
 0x32a   : > { %1411 = vrcp.f32 %v1024_v21 }
 0x32b   : > { %1326 = vst.msk [vmem:[%s1759_s30 + $0x8] sm:$0xff] %vm787_vm1, %v889_v22 }
 0x330   : > { %v1412_v23 = vpop.eup %1411 }
 0x331   : > { %v1026_v24 = vmul.f32 %v1412_v23, %v1406_v13  ;;  %v1172_v13 = vld [vmem:[%s1946_s17] sm:$0xff] }
 0x333   : > { %1334 = vst.msk [vmem:[%s1759_s30 + $0x18] sm:$0xff] %vm787_vm1, %v1026_v24 }
 0x336   : > { %v847_v27 = vpop.f32.mrf.mxu2 }
 0x339   : > { %v894_v25 = vpop.permute.xlu1 %893 }
 0x33a   : > { %914 = vmatpush.msrb.mxu0 %v894_v25 }
 0x33b   : > { %1327 = vmatmul.msk.f32.vlgmr.msrb.gmra.mxu0 %vm787_vm1, %v889_v22 }
 0x33c   : > { %v1030_v26 = vpop.permute.xlu0 %1029 }
 0x33d   : > { %1050 = vmatpush.msra.mxu0 %v1030_v26 }
 0x343   : > { %1335 = vmatmul.msk.f32.vlgmr.msra.gmra.mxu0 %vm787_vm1, %v1026_v24 }
 0x3a0   : > { %v984_v28 = vpop.f32.mrf.mxu2 }
 0x3a1   : > { %1060 = vrot.lane.b32.xlu0 %v984_v28, %s1480_s28  ;;  %s1211_s28 = scalar_lea.sflag [#allocation4], %s1984_s19 }
 0x3b8   : > { %v916_v29 = vpop.f32.mrf.mxu0 }
 0x3b9   : > { %1056 = vrot.lane.b32.xlu1 %v916_v29, %s1958_s23 }
 0x3c0   : > { %v1052_v30 = vpop.f32.mrf.mxu0 }
 0x3c1   : > { %1064 = vrot.lane.b32.xlu2 %v1052_v30, %s1482_s0  ;;  %s1429_s0 = scalar_lea.hbm %s1428_s1, 32 }
 0x3c2   : > { %p1430_p11 = scmp.ne.s32.totalorder %s1428_s1, %s1429_s0  ;;  %p1435_p1 = scmp.lt.s32.totalorder %s1433_s5, %s1429_s0 }
 0x3c4   : > { %p1431_p12 = pnand %p1430_p11, %p1630_p5  ;;  %p1436_p2 = por %p1435_p1, %p1434_p0 }
 0x3c6   : > { %p1432_p13 = pneg %p1431_p12 }
 0x3c8   : > { %p1437_p3 = pnand %p1436_p2, %p1432_p13 }
 0x413   : > { %v1061_v36 = vpop.permute.xlu0 %1060 }
 0x41b   : > { %v1065_v38 = vpop.permute.xlu2 %1064 }
 0x42b   : > { %v1057_v35 = vpop.permute.xlu1 %1056 }
 0x42c   : > { %v1067_v37 = vsel %vm787_vm1, %v847_v27, %v1057_v35 }
 0x42d   : > { %v1069_v39 = vsel %vm1068_vm2, %v1067_v37, %v1061_v36 }
 0x42e   : > { %v1071_v40 = vsel %vm1070_vm3, %v1069_v39, %v1065_v38 }
 0x42f   : > { %1336 = vmatmul.msk.f32.vlgmr.msra.gmra.mxu1 %vm645_vm0, %v1071_v40 }
 0x4ac   : > { %v1100_v59 = vpop.f32.mrf.mxu1 }
 0x4ad   : > { %v1101_v60 = vadd.f32 %v1396_v57, %v1100_v59 }
 0x4af   : > { %v1103_v61 = vadd.f32 %v1101_v60, %v1672_v9  ;;  %v1179_v9 = vld [vmem:[%s1946_s17 + $0x38] sm:$0xff] }
 0x4b0   : > { %1193 = vmatpush.msrb.mxu0 %v1179_v9 }
 0x4b1   : > { %v1110_v62 = vrot.slane %v1103_v61, 7 }
 0x4b2   : > { %1194 = vmatpush.msrb.mxu0 %v1178_v2 }
 0x4b3   : > { %1337 = vmatmul.msk.f32.vlgmr.msra.gmra.mxu2 %vm645_vm0, %v1110_v62 }
 0x4b4   : > { %1195 = vmatpush.msrb.mxu0 %v1177_v3 }
 0x4b6   : > { %1196 = vmatpush.msrb.mxu0 %v1176_v4 }
 0x4b8   : > { %1197 = vmatpush.msrb.mxu0 %v1175_v5 }
 0x4ba   : > { %1198 = vmatpush.msrb.mxu0 %v1174_v11 }
 0x4bc   : > { %1199 = vmatpush.msrb.mxu0 %v1173_v12 }
 0x4be   : > { %1200 = vmatpush.msrb.mxu0 %v1172_v13 }
 0x536   : > { %v1130_v7 = vpop.f32.mrf.mxu2 }
 0x537   : > { %v1131_v8 = vadd.f32 %v1130_v7, %v1108_v6 }
 0x539   : > { %v1133_v10 = vmax.f32 %v1131_v8, 0.0 }
 0x53b   : > { %1167 = vmatmul.f32.vlgmr.msra.gmra.mxu3 %v1133_v10 }
 0x5be   : > { %v1168_v15 = vpop.f32.mrf.mxu3 }
 0x5bf   : > { %v1169_v16 = vadd.f32 %v1168_v15, %v1150_v14 }
 0x5c1   : > { %v1171_v17 = vmax.f32 %v1169_v16, 0.0 }
 0x5c3   : > { %1338 = vmatmul.msk.f32.vlgmr.msrb.gmra.mxu0 %vm1181_vm4, %v1171_v17 }
 0x5c4   : > { %1440 = shalt.err (!%p1437_p3)
}
 0x5c5   : > { %s1483_s30 = smov 128   ;;  %s1985_s3 = smov 8   ;;  %v1180_v18 = vld [vmem:[#allocation2] sm:$0x1]  ;;  %vm1205_vm5 = vcmask 0  }
 0x5c6   : > { %1345 = dma.vmem_to_hbm [thread:$0]  (%p1630_p5), %s1227_s26, 512, %s1229_s25, %s1211_s28, %s1483_s30, %s1483_s30, %s1985_s3  }
 0x5c7   : > { %s1986_s6 = sld [smem:[#allocation19_spill]] }
 0x5cd   : > { %s635_s18 = scalar_lea.vmem %s1986_s6, %s1660_s22 }
 0x640   : > { %v1202_v19 = vpop.f32.mrf.mxu0 }
 0x641   : > { %v1203_v20 = vadd.f32 %v1202_v19, %v1180_v18 }
 0x643   : > { %1206 = vst.msk [vmem:[%s635_s18] sm:$0x1] %vm1205_vm5, %v1203_v20 }
 0x644 PF: > { %s1987_s5 = sld [smem:[#allocation8_spill]] }
 0x645   : > { %s1988_s1 = sld [smem:[#allocation6_spill]] }
 0x64a   : > { %p1351_p4 = scmp.ge.s32.totalorder %s1987_s5, 2 }
 0x64b   : > { %s1249_s21 = sand.u32 1, %s1988_s1  }
 0x64c   : > { %p1348_p7 = pnand %p1351_p4, %p1634_p6  ;;  %s1250_s29 = scalar_lea.sflag [#allocation4], %s1249_s21 }
 0x64e   : > { %p1349_p8 = pneg %p1348_p7 }
 0x650   : > { %1458 = dma.done.wait (%p1349_p8), %s1250_s29, 512  }
 0x651   : > { %1460 = vsyncadd (%p1349_p8), %s1250_s29, 4294966784  ;;  %s1990_s25 = sld [smem:[#allocation9_spill]]  ;;  %s1993_s23 = smov %s1467_s24 }
 0x652   : > { %s1991_s26 = sld [smem:[#allocation7_spill]] }
 0x653   : > { %s1992_s2 = sld [smem:[#allocation10_spill]] }
 0x657   : > { %p33_p5 = scmp.ge.s32.totalorder %s1990_s25, 4  }
 0x658   : > { %s1994_s24 = smov %s1991_s26 }
 0x659   :  { %35 = sbr.rel (!%p33_p5) target bundleno = 12 (0xc), region = 146 }
 0x65e   :  { %1256 = vsyncpa [#allocation4], 1 }
 0x65f   :  { %1258 = vsyncpa [#allocation4 + $0x1], 1 }

// kernel: _lambda_.4
= control target key start
LH: loop header
LB: loop body
LE: loop exit
PB: predicated region body
PF: predicated region fallthrough
CT: control target
= control target key end

     0   :  { %16 = vsyncpa [#allocation4], 0  ;;  %s3004_s0 = inlined_call_operand.vmem [shape: f32[2,8,32], index: 0, kind: input, shape index: {}]   ;;  %s3005_s1 = inlined_call_operand.hbm [shape: f32[32,96], index: 1, kind: input, shape index: {}]   ;;  %s3006_s2 = inlined_call_operand.hbm [shape: f32[32,64], index: 2, kind: input, shape index: {}]   ;;  %s3007_s3 = inlined_call_operand.hbm [shape: f32[32,32], index: 3, kind: input, shape index: {}]   ;;  %s3008_s4 = inlined_call_operand.hbm [shape: f32[1,32], index: 4, kind: input, shape index: {}]   ;;  %s3009_s5 = inlined_call_operand.hbm [shape: f32[1,32], index: 5, kind: input, shape index: {}]   ;;  %s3010_s6 = inlined_call_operand.hbm [shape: f32[1,32], index: 6, kind: input, shape index: {}]   ;;  %s3011_s7 = inlined_call_operand.hbm [shape: f32[1,32], index: 7, kind: input, shape index: {}]   ;;  %s3012_s8 = inlined_call_operand.hbm [shape: f32[1,32], index: 8, kind: input, shape index: {}]   ;;  %s3013_s9 = inlined_call_operand.vmem [shape: f32[2,8,32], index: 9, kind: output, shape index: {0}]   ;;  %s3014_s10 = inlined_call_operand.hbm [shape: f32[2,32], index: 10, kind: output, shape index: {1}]  }
   0x1   :  { %17 = vsyncpa [#allocation7], 0 }
   0x2   :  { %18 = vsyncpa [#allocation10], 0 }
   0x3   :  { %19 = vsyncpa [#allocation13], 0 }
   0x4   :  { %20 = vsyncpa [#allocation16], 0 }
   0x5   :  { %21 = vsyncpa [#allocation5], 0  ;;  %s41_s15 = sshll.u32 %s3006_s2, 4  ;;  %s2369_s16 = smov [#allocation6]   ;;  %s42_s15 = int_to_ptr.hbm [resolvable:$true] %s41_s15 }
   0x6   :  { %s43_s17 = sshll.u32 %s2369_s16, 4  ;;  %s68_s20 = sshll.u32 %s3008_s4, 4  ;;  %s44_s17 = int_to_ptr.vmem [resolvable:$true] %s43_s17  ;;  %s69_s20 = int_to_ptr.hbm [resolvable:$true] %s68_s20 }
   0x7   :  { %s2370_s21 = smov 128   ;;  %s2371_s22 = smov 8  }
   0x8   :  { %49 = dma.hbm_to_vmem [thread:$0]  %s42_s15, 512, %s44_s17, [#allocation7], %s2370_s21, %s2370_s21, %s2371_s22  }
   0x9   :  { %s2372_s23 = smov [#allocation9]   ;;  %s90_s2 = sshll.u32 %s3010_s6, 4  ;;  %s91_s2 = int_to_ptr.hbm [resolvable:$true] %s90_s2 }
   0xa   :  { %s70_s24 = sshll.u32 %s2372_s23, 4  ;;  %s28_s4 = sshll.u32 %s3005_s1, 4  ;;  %s71_s24 = int_to_ptr.vmem [resolvable:$true] %s70_s24  ;;  %s29_s4 = int_to_ptr.hbm [resolvable:$true] %s28_s4 }
   0xb   :  { %73 = dma.hbm_to_vmem [thread:$0]  %s69_s20, 16, %s71_s24, [#allocation10]  }
   0xc   :  { %s2373_s29 = smov [#allocation12]   ;;  %s2374_s11 = smov [#allocation3]  }
   0xd   :  { %s92_s30 = sshll.u32 %s2373_s29, 4  ;;  %s30_s12 = sshll.u32 %s2374_s11, 4  ;;  %s93_s30 = int_to_ptr.vmem [resolvable:$true] %s92_s30  ;;  %s31_s12 = int_to_ptr.vmem [resolvable:$true] %s30_s12 }
   0xe   :  { %95 = dma.hbm_to_vmem [thread:$0]  %s91_s2, 16, %s93_s30, [#allocation13]  }
   0xf   :  { %s54_s15 = sshll.u32 %s3007_s3, 4  ;;  %s79_s1 = sshll.u32 %s3009_s5, 4  ;;  %s55_s15 = int_to_ptr.hbm [resolvable:$true] %s54_s15  ;;  %s80_s1 = int_to_ptr.hbm [resolvable:$true] %s79_s1 }
  0x10   :  { %36 = dma.hbm_to_vmem [thread:$0]  %s29_s4, 512, %s31_s12, [#allocation4], %s2370_s21, %s2370_s21, %s2371_s22  }
  0x11   :  { %s2375_s17 = smov [#allocation8]   ;;  %s2376_s19 = smov [#allocation11]  }
  0x12   :  { %s56_s18 = sshll.u32 %s2375_s17, 4  ;;  %s81_s3 = sshll.u32 %s2376_s19, 4  ;;  %s57_s18 = int_to_ptr.vmem [resolvable:$true] %s56_s18  ;;  %s82_s3 = int_to_ptr.vmem [resolvable:$true] %s81_s3 }
  0x13   :  { %62 = dma.hbm_to_vmem [thread:$0]  %s55_s15, 512, %s57_s18, [#allocation7], %s2370_s21, %s2370_s21, %s2371_s22  }
  0x14   :  { %s101_s24 = sshll.u32 %s3011_s7, 4  ;;  %s112_s5 = sshll.u32 %s3012_s8, 4  ;;  %s102_s24 = int_to_ptr.hbm [resolvable:$true] %s101_s24  ;;  %s113_s5 = int_to_ptr.hbm [resolvable:$true] %s112_s5 }
  0x15   :  { %84 = dma.hbm_to_vmem [thread:$0]  %s80_s1, 16, %s82_s3, [#allocation10]  }
  0x16   :  { %s2377_s2 = smov [#allocation14]   ;;  %s2378_s28 = smov [#allocation15]  }
  0x17   :  { %s103_s27 = sshll.u32 %s2377_s2, 4  ;;  %s114_s21 = sshll.u32 %s2378_s28, 4  ;;  %s104_s27 = int_to_ptr.vmem [resolvable:$true] %s103_s27  ;;  %s115_s21 = int_to_ptr.vmem [resolvable:$true] %s114_s21 }
  0x18   :  { %106 = dma.hbm_to_vmem [thread:$0]  %s102_s24, 16, %s104_s27, [#allocation13]  }
  0x19   :  { %117 = dma.hbm_to_vmem [thread:$0]  %s113_s5, 16, %s115_s21, [#allocation16]  }
  0x1a   :  { %2357 = dma.done.wait [#allocation4], 512  }
  0x1b   :  { %2358 = vsyncadd [#allocation4], 4294966784 }
  0x1c   :  { %2359 = dma.done.wait [#allocation7], 1024  }
  0x1d   :  { %2360 = vsyncadd [#allocation7], 4294966272 }
  0x1e   :  { %2361 = dma.done.wait [#allocation10], 32  }
  0x1f   :  { %2362 = vsyncadd [#allocation10], 4294967264 }
  0x20   :  { %2363 = dma.done.wait [#allocation13], 32  }
  0x21   :  { %2364 = vsyncadd [#allocation13], 4294967264 }
  0x22   :  { %2365 = dma.done.wait [#allocation16], 16  }
  0x23   :  { %2366 = vsyncadd [#allocation16], 4294967280  ;;  %vm154_vm0 = vcmask 254976   ;;  %v2379_v0 = vmov 0.0   ;;  %v161_v1 = vld [vmem:[#allocation3 + $0x18] sm:$0xff]  ;;  %v160_v3 = vld [vmem:[#allocation3 + $0x10] sm:$0xff] }
  0x24   :  { %155 = vst.msk [vmem:[#allocation2] sm:$0x3] %vm154_vm0, %v2379_v0  ;;  %v2474_v2 = vld [vmem:[#allocation6 + $0x18] sm:$0xff]  ;;  %181 = vmatpush.msra.mxu0 %v161_v1  ;;  %v2477_v4 = vld [vmem:[#allocation6 + $0x10] sm:$0xff]  ;;  %v159_v5 = vld [vmem:[#allocation3 + $0x8] sm:$0xff]  ;;  %vm162_vm1 = vcmask 261120  }
  0x25   :  { %215 = vmatpush.msra.mxu1 %v2474_v2  ;;  %v2479_v6 = vld [vmem:[#allocation6 + $0x8] sm:$0xff]  ;;  %v158_v7 = vld [vmem:[#allocation3] sm:$0xff]  ;;  %422 = vmatpush.msra.mxu3 %v2474_v2  ;;  %s2380_s22 = smov 32   ;;  %vm284_vm2 = vcmask 1041409   ;;  %vm287_vm3 = vcmask 517376   ;;  %v331_v57 = vld [vmem:[#allocation8 + $0x18] sm:$0xff] }
  0x26   :  { %182 = vmatpush.msra.mxu0 %v160_v3  ;;  %v2483_v8 = vld [vmem:[#allocation6] sm:$0xff]  ;;  %v330_v58 = vld [vmem:[#allocation8 + $0x10] sm:$0xff]  ;;  %352 = vmatpush.msra.mxu2 %v331_v57  ;;  %v329_v59 = vld [vmem:[#allocation8 + $0x8] sm:$0xff]  ;;  %s2382_s30 = smov 64   ;;  %vm397_vm8 = vcmask 253952   ;;  %vm483_vm13 = vcmask 1042434  }
  0x27   :  { %216 = vmatpush.msra.mxu1 %v2477_v4  ;;  %v156_v9 = vld [vmem:[%s3004_s0] sm:$0xff]  ;;  %423 = vmatpush.msra.mxu3 %v2477_v4  ;;  %v157_v12 = vld [vmem:[%s3004_s0 + $0x8] sm:$0xff]  ;;  %s2381_s0 = smov 96   ;;  %vm486_vm14 = vcmask 518401   ;;  %vm507_vm15 = vcmask 256001   ;;  %s2384_s1 = smov [#allocation17]  }
  0x28   :  { %v1951_v10 = vld [vmem:[#allocation11] ss:$0 sm:$0xff]  ;;  %183 = vmatpush.msra.mxu0 %v159_v5  ;;  %v2514_v18 = vld [vmem:[#allocation9] ss:$0 sm:$0xff]  ;;  %353 = vmatpush.msra.mxu2 %v330_v58  ;;  %s1883_s17 = sshll.u32 %s2384_s1, 4  ;;  %s1885_s3 = sshll.u32 %s3014_s10, 4  ;;  %s1884_s17 = int_to_ptr.vmem [resolvable:$true] %s1883_s17  ;;  %s1886_s3 = int_to_ptr.hbm [resolvable:$true] %s1885_s3 }
  0x29   :  { %217 = vmatpush.msra.mxu1 %v2479_v6  ;;  %276 = vrot.lane.b32.xlu0 %v1951_v10, %s2380_s22  ;;  %v328_v60 = vld [vmem:[#allocation8] sm:$0xff] }
  0x2a   :  { %424 = vmatpush.msra.mxu3 %v2479_v6  ;;  %184 = vmatpush.msra.mxu0 %v158_v7 }
  0x2b   :  { %v2490_v11 = vld [vmem:[#allocation2] sm:$0x3]  ;;  %218 = vmatpush.msra.mxu1 %v2483_v8  ;;  %1901 = vmatmul.msk.f32.vlgmr.msra.gmra.mxu0 %vm162_vm1, %v156_v9 }
  0x2c   :  { %1903 = vmatmul.msk.f32.vlgmr.msra.gmra.mxu1 %vm162_vm1, %v2490_v11  ;;  %425 = vmatpush.msra.mxu3 %v2483_v8  ;;  %v319_v20 = vrot.slane %v2490_v11, 1 }
  0x2d   :  { %815 = vmatpush.msrb.mxu0 %v2474_v2  ;;  %551 = vmatpush.msrb.mxu1 %v331_v57 }
  0x2e   :  { %322 = vrot.lane.b32.xlu2 %v319_v20, %s2380_s22  ;;  %748 = vmatpush.msrb.mxu3 %v331_v57 }
  0x2f   :  { %816 = vmatpush.msrb.mxu0 %v2477_v4  ;;  %552 = vmatpush.msrb.mxu1 %v330_v58 }
  0x30   :  { %749 = vmatpush.msrb.mxu3 %v330_v58  ;;  %354 = vmatpush.msra.mxu2 %v329_v59 }
  0x31   :  { %817 = vmatpush.msrb.mxu0 %v2479_v6  ;;  %553 = vmatpush.msrb.mxu1 %v329_v59 }
  0x32   :  { %750 = vmatpush.msrb.mxu3 %v329_v59  ;;  %355 = vmatpush.msra.mxu2 %v328_v60 }
  0x33   :  { %818 = vmatpush.msrb.mxu0 %v2483_v8  ;;  %554 = vmatpush.msrb.mxu1 %v328_v60 }
  0x34   :  { %1902 = vmatmul.msk.f32.gmra.mxu0 %vm162_vm1, %v157_v12  ;;  %616 = vmatpush.msrb.mxu2 %v2474_v2 }
  0x35   :  { %751 = vmatpush.msrb.mxu3 %v328_v60  ;;  %947 = vmatpush.msra.mxu1 %v331_v57 }
  0x36   :  { %320 = vrot.lane.b32.xlu2 %v2490_v11, %s2380_s22  ;;  %617 = vmatpush.msrb.mxu2 %v2477_v4 }
  0x37   :  { %948 = vmatpush.msra.mxu1 %v330_v58 }
  0x38   :  { %618 = vmatpush.msrb.mxu2 %v2479_v6 }
  0x39   :  { %949 = vmatpush.msra.mxu1 %v329_v59 }
  0x3a   :  { %619 = vmatpush.msrb.mxu2 %v2483_v8 }
  0x3b   :  { %950 = vmatpush.msra.mxu1 %v328_v60 }
  0x88   :  { %v323_v62 = vpop.permute.xlu2 %322 }
  0x90   :  { %v321_v5 = vpop.permute.xlu2 %320 }
  0x9b   :  { %v2521_v25 = vpop.permute.xlu0 %276 }
  0xa8   :  { %v2507_v13 = vpop.f32.mrf.mxu0 }
  0xa9   :  { %v220_v14 = vpop.f32.mrf.mxu1 }
  0xaa   :  { %v224_v15 = vrot.slane %v220_v14, 1  ;;  %v2510_v16 = vadd.f32 %v220_v14, %v2507_v13  ;;  %v1953_v14 = vld [vmem:[#allocation12] ss:$0 sm:$0xff] }
  0xac   :  { %1956 = vtanh.f32 %v2510_v16 }
  0xb1   :  { %v2512_v17 = vpop.f32.mrf.mxu0 }
  0xb2   :  { %v228_v19 = vadd.f32 %v224_v15, %v2512_v17  ;;  %v1957_v23 = vpop.eup %1956 }
  0xb3   :  { %v279_v27 = vmul.f32 %v1957_v23, %v2521_v25 }
  0xb4   :  { %1958 = vtanh.f32 %v228_v19  ;;  %v233_v21 = vadd.f32 %v2514_v18, %v228_v19 }
  0xb6   :  { %v1905_v22 = vmul.f32 -1.442695, %v233_v21 }
  0xb8   :  { %1960 = vpow2.f32 %v1905_v22 }
  0xba   :  { %v1959_v24 = vpop.eup %1958 }
  0xbb   :  { %v280_v26 = vmul.f32 %v1959_v24, %v2521_v25 }
  0xbd   :  { %v283_v28 = vrot.slane %v280_v26, 7 }
  0xbe   :  { %v1961_v29 = vpop.eup %1960 }
  0xbf   :  { %v285_v30 = vsel %vm284_vm2, %v283_v28, %v279_v27  ;;  %v241_v31 = vadd.f32 1.0, %v1961_v29 }
  0xc0   :  { %v288_v32 = vsel %vm287_vm3, %v285_v30, -inf }
  0xc1   :  { %289 = vmax.xlane.f32.xlu0 %v288_v32  ;;  %1962 = vrcp.f32 %v241_v31  ;;  %v268_v36 = vand.u32 2147483648, %v241_v31  ;;  %v266_v38 = vand.u32 2147483647, %v241_v31  ;;  %vm262_vm5 = vweird.f32 %v241_v31 }
  0xc3   :  { %v269_v40 = vor.u32 1.1754944e-38, %v268_v36  ;;  %vm267_vm7 = vcmp.eq.f32.partialorder %v266_v38, 8.507059e+37 }
  0xc7   :  { %v1963_v33 = vpop.eup %1962 }
  0xc8   :  { %v258_v34 = vmul.f32 %v1963_v33, %v241_v31  ;;  %vm263_vm4 = vweird.f32 %v1963_v33 }
  0xc9   :  { %vm264_vm6 = vmor %vm262_vm5, %vm263_vm4 }
  0xca   :  { %v259_v35 = vsub.f32 1.0, %v258_v34 }
  0xcc   :  { %v260_v37 = vmul.f32 %v1963_v33, %v259_v35 }
  0xce   :  { %v261_v39 = vadd.f32 %v1963_v33, %v260_v37 }
  0xd0   :  { %v265_v41 = vsel %vm264_vm6, %v1963_v33, %v261_v39  ;;  %vm591_vm6 = vcmask 254977  }
  0xd1   :  { %v2528_v42 = vsel %vm267_vm7, %v269_v40, %v265_v41 }
  0xd2   :  { %v380_v43 = vsub.f32 1.0, %v2528_v42 }
  0xd4   :  { %v2531_v44 = vmul.f32 %v380_v43, %v319_v20 }
 0x134   :  { %v290_v45 = vpop.xlane.xlu0 %289 }
 0x135   :  { %v292_v46 = vrot.slane %v290_v45, 1  ;;  %v295_v47 = vsub.f32 %v279_v27, %v290_v45  ;;  %v232_v27 = vadd.f32 %v2514_v18, %v2510_v16 }
 0x137   :  { %v296_v48 = vsub.f32 %v280_v26, %v292_v46  ;;  %v297_v49 = vmul.f32 1.442695, %v295_v47  ;;  %v1904_v28 = vmul.f32 -1.442695, %v232_v27 }
 0x139   :  { %v299_v50 = vmul.f32 1.442695, %v296_v48 }
 0x13b   :  { %1964 = vpow2.f32 %v299_v50 }
 0x13c   :  { %1966 = vpow2.f32 %v297_v49 }
 0x141   :  { %v1965_v51 = vpop.eup %1964 }
 0x142   :  { %v303_v52 = vrot.slane %v1965_v51, 7  ;;  %v1967_v53 = vpop.eup %1966 }
 0x144   :  { %v304_v54 = vsel %vm284_vm2, %v303_v52, %v1967_v53 }
 0x145   :  { %305 = vrot.lane.b32.xlu1 %v304_v54, %s2381_s0 }
 0x1b7   :  { %v306_v55 = vpop.permute.xlu1 %305 }
 0x1b8   :  { %v309_v56 = vsel %vm154_vm0, %v306_v55, 0.0 }
 0x1b9   :  { %310 = vadd.xlane.f32.xlu1 %v309_v56 }
 0x22c   :  { %v311_v61 = vpop.xlane.xlu1 %310 }
 0x22d   :  { %1968 = vrcp.f32 %v311_v61 }
 0x233   :  { %v1969_v63 = vpop.eup %1968 }
 0x234   :  { %v314_v0 = vrot.slane %v1969_v63, 1  ;;  %v317_v3 = vmul.f32 %v1969_v63, %v1967_v53 }
 0x236   :  { %v318_v1 = vmul.f32 %v1965_v51, %v314_v0  ;;  %v326_v10 = vmul.f32 %v321_v5, %v317_v3 }
 0x238   :  { %v327_v7 = vmul.f32 %v323_v62, %v318_v1 }
 0x23a   :  { %v334_v9 = vrot.slane %v327_v7, 7 }
 0x23c   :  { %v335_v4 = vsel %vm284_vm2, %v334_v9, %v326_v10 }
 0x23d   :  { %336 = vrot.lane.b32.xlu2 %v335_v4, %s2381_s0 }
 0x297   :  { %v337_v6 = vpop.permute.xlu2 %336 }
 0x298   :  { %1906 = vmatmul.msk.f32.vlgmr.msra.gmra.mxu2 %vm162_vm1, %v337_v6 }
 0x299   :  { %1014 = vmatpush.msra.mxu2 %v2474_v2 }
 0x31b   :  { %v357_v8 = vpop.f32.mrf.mxu2 }
 0x31c   :  { %362 = vrot.lane.b32.xlu2 %v357_v8, %s2382_s30  ;;  %v361_v12 = vrot.slane %v357_v8, 1 }
 0x324   :  { %364 = vrot.lane.b32.xlu2 %v361_v12, %s2382_s30 }
 0x32c   :  { %372 = vrot.lane.b32.xlu2 %v1953_v14, %s2382_s30 }
 0x376   :  { %v363_v15 = vpop.permute.xlu2 %362 }
 0x377   :  { %v368_v20 = vadd.f32 %v363_v15, %v2507_v13 }
 0x37e   :  { %v365_v19 = vpop.permute.xlu2 %364 }
 0x37f   :  { %v369_v21 = vadd.f32 %v365_v19, %v2512_v17 }
 0x386   :  { %v2549_v22 = vpop.permute.xlu2 %372 }
 0x387   :  { %v376_v2 = vadd.f32 %v2549_v22, %v369_v21  ;;  %v375_v23 = vadd.f32 %v2549_v22, %v368_v20 }
 0x389   :  { %1970 = vtanh.f32 %v376_v2 }
 0x38a   :  { %1972 = vtanh.f32 %v375_v23 }
 0x38b   :  { %1974 = vpow2.f32 %v1904_v28 }
 0x38f   :  { %v1971_v24 = vpop.eup %1970 }
 0x390   :  { %v1973_v26 = vpop.eup %1972  ;;  %389 = vrot.lane.b32.xlu2 %v1971_v24, %s2382_s30 }
 0x391   :  { %387 = vrot.lane.b32.xlu0 %v1973_v26, %s2382_s30  ;;  %v1975_v29 = vpop.eup %1974 }
 0x392   :  { %v240_v30 = vadd.f32 1.0, %v1975_v29 }
 0x394   :  { %1976 = vrcp.f32 %v240_v30  ;;  %v253_v38 = vand.u32 2147483648, %v240_v30  ;;  %vm247_vm10 = vweird.f32 %v240_v30  ;;  %v251_v39 = vand.u32 2147483647, %v240_v30 }
 0x396   :  { %v254_v41 = vor.u32 1.1754944e-38, %v253_v38  ;;  %vm252_vm12 = vcmp.eq.f32.partialorder %v251_v39, 8.507059e+37 }
 0x39a   :  { %v1977_v31 = vpop.eup %1976 }
 0x39b   :  { %v243_v33 = vmul.f32 %v1977_v31, %v240_v30  ;;  %vm248_vm9 = vweird.f32 %v1977_v31 }
 0x39c   :  { %vm249_vm11 = vmor %vm247_vm10, %vm248_vm9 }
 0x39d   :  { %v244_v36 = vsub.f32 1.0, %v243_v33 }
 0x39f   :  { %v245_v16 = vmul.f32 %v1977_v31, %v244_v36 }
 0x3a1   :  { %v246_v37 = vadd.f32 %v1977_v31, %v245_v16 }
 0x3a3   :  { %v250_v40 = vsel %vm249_vm11, %v1977_v31, %v246_v37 }
 0x3ea   :  { %v390_v32 = vpop.permute.xlu2 %389 }
 0x3eb   :  { %v394_v34 = vmul.f32 %v390_v32, %v2528_v42  ;;  %v255_v42 = vsel %vm252_vm12, %v254_v41, %v250_v40  ;;  %vm678_vm12 = vcmask 1043459  }
 0x3ec   :  { %v379_v43 = vsub.f32 1.0, %v255_v42 }
 0x3ed   :  { %v396_v35 = vadd.f32 %v394_v34, %v2531_v44 }
 0x3ee   :  { %v383_v44 = vmul.f32 %v379_v43, %v2490_v11 }
 0x3ef   :  { %399 = vst.msk [vmem:[%s3013_s9 + $0x8] sm:$0x1] %vm397_vm8, %v396_v35  ;;  %v2564_v47 = vrot.slane %v396_v35, 7 }
 0x403   :  { %v388_v45 = vpop.permute.xlu0 %387 }
 0x404   :  { %v393_v46 = vmul.f32 %v388_v45, %v255_v42 }
 0x406   :  { %v2566_v48 = vadd.f32 %v393_v46, %v383_v44 }
 0x408   :  { %v407_v49 = vsel %vm284_vm2, %v2564_v47, %v2566_v48  ;;  %398 = vst.msk [vmem:[%s3013_s9] sm:$0x1] %vm397_vm8, %v2566_v48  ;;  %v518_v10 = vrot.slane %v2566_v48, 7 }
 0x409   :  { %1907 = vmatmul.msk.f32.vlgmr.msra.gmra.mxu3 %vm162_vm1, %v407_v49 }
 0x48c   :  { %v427_v50 = vpop.f32.mrf.mxu3 }
 0x48d   :  { %v431_v51 = vrot.slane %v427_v50, 7  ;;  %v2578_v11 = vadd.f32 %v427_v50, %v2512_v17 }
 0x48f   :  { %v2581_v52 = vadd.f32 %v431_v51, %v2507_v13  ;;  %1978 = vtanh.f32 %v2578_v11  ;;  %v437_v50 = vadd.f32 %v2514_v18, %v2578_v11 }
 0x491   :  { %1980 = vtanh.f32 %v2581_v52  ;;  %v436_v37 = vadd.f32 %v2514_v18, %v2581_v52 }
 0x493   :  { %v1908_v38 = vmul.f32 -1.442695, %v436_v37 }
 0x495   :  { %v1979_v53 = vpop.eup %1978 }
 0x496   :  { %v479_v54 = vmul.f32 %v1979_v53, %v2521_v25 }
 0x497   :  { %v1981_v55 = vpop.eup %1980 }
 0x498   :  { %v478_v56 = vmul.f32 %v1981_v55, %v2521_v25  ;;  %v482_v57 = vrot.slane %v479_v54, 7 }
 0x49a   :  { %v484_v58 = vsel %vm483_vm13, %v482_v57, %v478_v56 }
 0x49b   :  { %v487_v59 = vsel %vm486_vm14, %v484_v58, -inf  ;;  %vm702_vm14 = vcmask 257026  }
 0x49c   :  { %488 = vmax.xlane.f32.xlu1 %v487_v59 }
 0x50f   :  { %v489_v60 = vpop.xlane.xlu1 %488 }
 0x510   :  { %v491_v61 = vrot.slane %v489_v60, 1  ;;  %v494_v62 = vsub.f32 %v478_v56, %v489_v60 }
 0x512   :  { %v495_v63 = vsub.f32 %v479_v54, %v491_v61  ;;  %v496_v0 = vmul.f32 1.442695, %v494_v62  ;;  %v1909_v54 = vmul.f32 -1.442695, %v437_v50 }
 0x514   :  { %v498_v1 = vmul.f32 1.442695, %v495_v63 }
 0x516   :  { %1982 = vpow2.f32 %v498_v1 }
 0x517   :  { %1984 = vpow2.f32 %v496_v0 }
 0x51c   :  { %v1983_v3 = vpop.eup %1982 }
 0x51d   :  { %v502_v5 = vrot.slane %v1983_v3, 7  ;;  %v1985_v7 = vpop.eup %1984 }
 0x51f   :  { %v503_v9 = vsel %vm483_vm13, %v502_v5, %v1985_v7  ;;  %vm681_vm13 = vcmask 519426  }
 0x520   :  { %504 = vrot.lane.b32.xlu2 %v503_v9, %s2381_s0 }
 0x528   :  { %519 = vrot.lane.b32.xlu2 %v518_v10, %s2380_s22 }
 0x57a   :  { %v505_v4 = vpop.permute.xlu2 %504 }
 0x57b   :  { %v508_v6 = vsel %vm507_vm15, %v505_v4, 0.0 }
 0x57c   :  { %509 = vadd.xlane.f32.xlu1 %v508_v6 }
 0x582   :  { %v520_v19 = vpop.permute.xlu2 %519 }
 0x595   :  { %521 = vrot.lane.b32.xlu1 %v2564_v47, %s2380_s22 }
 0x5ef   :  { %v510_v8 = vpop.xlane.xlu1 %509 }
 0x5f0   :  { %1986 = vrcp.f32 %v510_v8 }
 0x5f6   :  { %v1987_v12 = vpop.eup %1986 }
 0x5f7   :  { %v516_v14 = vmul.f32 %v1987_v12, %v1985_v7  ;;  %v513_v15 = vrot.slane %v1987_v12, 1 }
 0x5f9   :  { %v525_v20 = vmul.f32 %v520_v19, %v516_v14  ;;  %v517_v21 = vmul.f32 %v1983_v3, %v513_v15 }
 0x5fb   :  { %v533_v24 = vrot.slane %v525_v20, 1 }
 0x607   :  { %v522_v2 = vpop.permute.xlu1 %521 }
 0x608   :  { %v526_v23 = vmul.f32 %v522_v2, %v517_v21 }
 0x60a   :  { %v534_v26 = vsel %vm284_vm2, %v526_v23, %v533_v24 }
 0x60b   :  { %535 = vrot.lane.b32.xlu0 %v534_v26, %s2381_s0 }
 0x67d   :  { %v536_v27 = vpop.permute.xlu0 %535 }
 0x67e   :  { %1910 = vmatmul.msk.f32.vlgmr.msrb.gmra.mxu1 %vm162_vm1, %v536_v27 }
 0x6fb   :  { %v556_v28 = vpop.f32.mrf.mxu1 }
 0x6fc   :  { %v560_v29 = vrot.slane %v556_v28, 7  ;;  %563 = vrot.lane.b32.xlu0 %v556_v28, %s2382_s30 }
 0x6fe   :  { %561 = vrot.lane.b32.xlu2 %v560_v29, %s2382_s30 }
 0x758   :  { %v562_v30 = vpop.permute.xlu2 %561 }
 0x759   :  { %v567_v31 = vadd.f32 %v562_v30, %v2507_v13 }
 0x75b   :  { %v569_v32 = vadd.f32 %v567_v31, %v2549_v22 }
 0x75d   :  { %1988 = vtanh.f32 %v569_v32 }
 0x763   :  { %v1989_v33 = vpop.eup %1988 }
 0x764   :  { %581 = vrot.lane.b32.xlu2 %v1989_v33, %s2382_s30 }
 0x76e   :  { %v564_v34 = vpop.permute.xlu0 %563 }
 0x76f   :  { %v568_v35 = vadd.f32 %v564_v34, %v2512_v17 }
 0x771   :  { %v570_v36 = vadd.f32 %v568_v35, %v2549_v22 }
 0x773   :  { %1990 = vtanh.f32 %v570_v36 }
 0x774   :  { %1992 = vpow2.f32 %v1908_v38 }
 0x779   :  { %v1991_v16 = vpop.eup %1990 }
 0x77a   :  { %583 = vrot.lane.b32.xlu0 %v1991_v16, %s2382_s30  ;;  %v1993_v39 = vpop.eup %1992 }
 0x77b   :  { %v444_v40 = vadd.f32 1.0, %v1993_v39 }
 0x77d   :  { %1994 = vrcp.f32 %v444_v40  ;;  %v457_v46 = vand.u32 2147483648, %v444_v40  ;;  %vm451_vm3 = vweird.f32 %v444_v40  ;;  %v455_v49 = vand.u32 2147483647, %v444_v40 }
 0x77e   :  { %1996 = vpow2.f32 %v1909_v54 }
 0x77f   :  { %v458_v52 = vor.u32 1.1754944e-38, %v457_v46  ;;  %vm456_vm5 = vcmp.eq.f32.partialorder %v455_v49, 8.507059e+37 }
 0x783   :  { %v1995_v41 = vpop.eup %1994 }
 0x784   :  { %v447_v42 = vmul.f32 %v1995_v41, %v444_v40  ;;  %vm452_vm0 = vweird.f32 %v1995_v41  ;;  %v1997_v60 = vpop.eup %1996 }
 0x785   :  { %vm453_vm4 = vmor %vm451_vm3, %vm452_vm0  ;;  %v445_v11 = vadd.f32 1.0, %v1997_v60 }
 0x786   :  { %v448_v43 = vsub.f32 1.0, %v447_v42 }
 0x787   :  { %1998 = vrcp.f32 %v445_v11  ;;  %v472_v48 = vand.u32 2147483648, %v445_v11  ;;  %vm466_vm9 = vweird.f32 %v445_v11  ;;  %v470_v3 = vand.u32 2147483647, %v445_v11 }
 0x788   :  { %v449_v45 = vmul.f32 %v1995_v41, %v448_v43 }
 0x789   :  { %v473_v7 = vor.u32 1.1754944e-38, %v472_v48  ;;  %vm471_vm11 = vcmp.eq.f32.partialorder %v470_v3, 8.507059e+37 }
 0x78a   :  { %v450_v44 = vadd.f32 %v1995_v41, %v449_v45 }
 0x78c   :  { %v454_v51 = vsel %vm453_vm4, %v1995_v41, %v450_v44 }
 0x78d   :  { %v459_v53 = vsel %vm456_vm5, %v458_v52, %v454_v51  ;;  %v1999_v61 = vpop.eup %1998  ;;  %vm789_vm5 = vcmask 256002  }
 0x78e   :  { %v573_v55 = vsub.f32 1.0, %v459_v53  ;;  %v462_v62 = vmul.f32 %v1999_v61, %v445_v11  ;;  %vm467_vm7 = vweird.f32 %v1999_v61 }
 0x78f   :  { %vm468_vm10 = vmor %vm466_vm9, %vm467_vm7 }
 0x790   :  { %v577_v57 = vmul.f32 %v573_v55, %v518_v10  ;;  %v463_v63 = vsub.f32 1.0, %v462_v62 }
 0x792   :  { %v464_v0 = vmul.f32 %v1999_v61, %v463_v63 }
 0x794   :  { %v465_v1 = vadd.f32 %v1999_v61, %v464_v0 }
 0x796   :  { %v469_v5 = vsel %vm468_vm10, %v1999_v61, %v465_v1 }
 0x797   :  { %v474_v9 = vsel %vm471_vm11, %v473_v7, %v469_v5  ;;  %vm877_vm11 = vcmask 1044484  }
 0x798   :  { %v574_v10 = vsub.f32 1.0, %v474_v9 }
 0x79a   :  { %v578_v6 = vmul.f32 %v574_v10, %v2564_v47 }
 0x7be   :  { %v582_v56 = vpop.permute.xlu2 %581 }
 0x7bf   :  { %v587_v58 = vmul.f32 %v582_v56, %v459_v53 }
 0x7c1   :  { %v2613_v59 = vadd.f32 %v587_v58, %v577_v57 }
 0x7c3   :  { %592 = vst.msk [vmem:[%s3013_s9] sm:$0x2] %vm591_vm6, %v2613_v59  ;;  %v600_v12 = vrot.slane %v2613_v59, 1  ;;  %v713_v40 = vrot.slane %v2613_v59, 7 }
 0x7ec   :  { %v584_v4 = vpop.permute.xlu0 %583 }
 0x7ed   :  { %v588_v8 = vmul.f32 %v584_v4, %v474_v9 }
 0x7ef   :  { %v2622_v14 = vadd.f32 %v588_v8, %v578_v6 }
 0x7f1   :  { %593 = vst.msk [vmem:[%s3013_s9 + $0x8] sm:$0x2] %vm591_vm6, %v2622_v14  ;;  %v601_v15 = vsel %vm284_vm2, %v2622_v14, %v600_v12  ;;  %v714_v41 = vrot.slane %v2622_v14, 7 }
 0x7f2   :  { %1911 = vmatmul.msk.f32.vlgmr.msrb.gmra.mxu2 %vm162_vm1, %v601_v15 }
 0x875   :  { %v621_v19 = vpop.f32.mrf.mxu2 }
 0x876   :  { %v625_v20 = vrot.slane %v621_v19, 6  ;;  %v626_v21 = vrot.slane %v621_v19, 7 }
 0x878   :  { %v2633_v47 = vadd.f32 %v625_v20, %v2507_v13  ;;  %v2636_v2 = vadd.f32 %v626_v21, %v2512_v17 }
 0x87a   :  { %2000 = vtanh.f32 %v2633_v47  ;;  %v632_v9 = vadd.f32 %v2514_v18, %v2636_v2  ;;  %v631_v8 = vadd.f32 %v2514_v18, %v2633_v47 }
 0x87b   :  { %2002 = vtanh.f32 %v2636_v2 }
 0x87c   :  { %v1913_v10 = vmul.f32 -1.442695, %v632_v9  ;;  %v1912_v15 = vmul.f32 -1.442695, %v631_v8 }
 0x880   :  { %v2001_v23 = vpop.eup %2000 }
 0x881   :  { %v2003_v24 = vpop.eup %2002  ;;  %v673_v27 = vmul.f32 %v2001_v23, %v2521_v25 }
 0x882   :  { %v674_v26 = vmul.f32 %v2003_v24, %v2521_v25 }
 0x884   :  { %v677_v28 = vrot.slane %v674_v26, 7 }
 0x886   :  { %v679_v29 = vsel %vm678_vm12, %v677_v28, %v673_v27 }
 0x887   :  { %v682_v30 = vsel %vm681_vm13, %v679_v29, -inf  ;;  %vm901_vm13 = vcmask 258051  }
 0x888   :  { %683 = vmax.xlane.f32.xlu2 %v682_v30 }
 0x8fb   :  { %v684_v31 = vpop.xlane.xlu2 %683 }
 0x8fc   :  { %v686_v32 = vrot.slane %v684_v31, 1  ;;  %v689_v33 = vsub.f32 %v673_v27, %v684_v31 }
 0x8fe   :  { %v690_v34 = vsub.f32 %v674_v26, %v686_v32  ;;  %v691_v35 = vmul.f32 1.442695, %v689_v33 }
 0x900   :  { %v693_v36 = vmul.f32 1.442695, %v690_v34 }
 0x902   :  { %2004 = vpow2.f32 %v693_v36 }
 0x903   :  { %2006 = vpow2.f32 %v691_v35 }
 0x908   :  { %v2005_v16 = vpop.eup %2004 }
 0x909   :  { %v697_v37 = vrot.slane %v2005_v16, 7  ;;  %v2007_v38 = vpop.eup %2006 }
 0x90b   :  { %v698_v39 = vsel %vm678_vm12, %v697_v37, %v2007_v38  ;;  %vm880_vm12 = vcmask 520451  }
 0x90c   :  { %699 = vrot.lane.b32.xlu1 %v698_v39, %s2381_s0 }
 0x914   :  { %715 = vrot.lane.b32.xlu1 %v713_v40, %s2380_s22 }
 0x91c   :  { %717 = vrot.lane.b32.xlu1 %v714_v41, %s2380_s22 }
 0x97e   :  { %v700_v42 = vpop.permute.xlu1 %699 }
 0x97f   :  { %v703_v43 = vsel %vm702_vm14, %v700_v42, 0.0 }
 0x980   :  { %704 = vadd.xlane.f32.xlu0 %v703_v43 }
 0x986   :  { %v716_v44 = vpop.permute.xlu1 %715 }
 0x98e   :  { %v718_v53 = vpop.permute.xlu1 %717 }
 0x9f3   :  { %v705_v45 = vpop.xlane.xlu0 %704 }
 0x9f4   :  { %2008 = vrcp.f32 %v705_v45 }
 0x9fa   :  { %v2009_v46 = vpop.eup %2008 }
 0x9fb   :  { %v708_v49 = vrot.slane %v2009_v46, 1  ;;  %v711_v50 = vmul.f32 %v2009_v46, %v2007_v38 }
 0x9fd   :  { %v712_v51 = vmul.f32 %v2005_v16, %v708_v49  ;;  %v721_v52 = vmul.f32 %v716_v44, %v711_v50 }
 0x9ff   :  { %v722_v54 = vmul.f32 %v718_v53, %v712_v51  ;;  %v729_v55 = vrot.slane %v721_v52, 2 }
 0xa01   :  { %v730_v56 = vrot.slane %v722_v54, 1 }
 0xa03   :  { %v731_v57 = vsel %vm284_vm2, %v730_v56, %v729_v55 }
 0xa04   :  { %732 = vrot.lane.b32.xlu1 %v731_v57, %s2381_s0 }
 0xa76   :  { %v733_v58 = vpop.permute.xlu1 %732 }
 0xa77   :  { %1914 = vmatmul.msk.f32.vlgmr.msrb.gmra.mxu3 %vm162_vm1, %v733_v58 }
 0xafa   :  { %v753_v60 = vpop.f32.mrf.mxu3 }
 0xafb   :  { %v757_v11 = vrot.slane %v753_v60, 6  ;;  %v758_v61 = vrot.slane %v753_v60, 7 }
 0xafd   :  { %761 = vrot.lane.b32.xlu2 %v758_v61, %s2382_s30  ;;  %759 = vrot.lane.b32.xlu1 %v757_v11, %s2382_s30 }
 0xb57   :  { %v762_v62 = vpop.permute.xlu2 %761 }
 0xb58   :  { %v766_v63 = vadd.f32 %v762_v62, %v2512_v17 }
 0xb5a   :  { %v768_v0 = vadd.f32 %v766_v63, %v2549_v22 }
 0xb5c   :  { %2010 = vtanh.f32 %v768_v0 }
 0xb62   :  { %v2011_v1 = vpop.eup %2010 }
 0xb63   :  { %781 = vrot.lane.b32.xlu0 %v2011_v1, %s2382_s30 }
 0xb6f   :  { %v760_v48 = vpop.permute.xlu1 %759 }
 0xb70   :  { %v765_v3 = vadd.f32 %v760_v48, %v2507_v13 }
 0xb72   :  { %v767_v5 = vadd.f32 %v765_v3, %v2549_v22 }
 0xb74   :  { %2012 = vtanh.f32 %v767_v5 }
 0xb75   :  { %2014 = vpow2.f32 %v1913_v10 }
 0xb7a   :  { %v2013_v7 = vpop.eup %2012 }
 0xb7b   :  { %779 = vrot.lane.b32.xlu1 %v2013_v7, %s2382_s30  ;;  %v2015_v4 = vpop.eup %2014 }
 0xb7c   :  { %v640_v6 = vadd.f32 1.0, %v2015_v4 }
 0xb7e   :  { %2016 = vrcp.f32 %v640_v6  ;;  %v667_v27 = vand.u32 2147483648, %v640_v6  ;;  %vm661_vm0 = vweird.f32 %v640_v6  ;;  %v665_v2 = vand.u32 2147483647, %v640_v6 }
 0xb7f   :  { %2018 = vpow2.f32 %v1912_v15 }
 0xb80   :  { %v668_v29 = vor.u32 1.1754944e-38, %v667_v27  ;;  %vm666_vm4 = vcmp.eq.f32.partialorder %v665_v2, 8.507059e+37 }
 0xb84   :  { %v2017_v12 = vpop.eup %2016 }
 0xb85   :  { %v657_v19 = vmul.f32 %v2017_v12, %v640_v6  ;;  %v2019_v21 = vpop.eup %2018  ;;  %vm662_vm15 = vweird.f32 %v2017_v12 }
 0xb86   :  { %v639_v24 = vadd.f32 1.0, %v2019_v21  ;;  %vm663_vm3 = vmor %vm661_vm0, %vm662_vm15 }
 0xb87   :  { %v658_v20 = vsub.f32 1.0, %v657_v19 }
 0xb88   :  { %2020 = vrcp.f32 %v639_v24  ;;  %v652_v39 = vand.u32 2147483648, %v639_v24  ;;  %vm646_vm7 = vweird.f32 %v639_v24  ;;  %v650_v42 = vand.u32 2147483647, %v639_v24 }
 0xb89   :  { %v659_v23 = vmul.f32 %v2017_v12, %v658_v20 }
 0xb8a   :  { %vm651_vm10 = vcmp.eq.f32.partialorder %v650_v42, 8.507059e+37 }
 0xb8b   :  { %v660_v26 = vadd.f32 %v2017_v12, %v659_v23 }
 0xb8d   :  { %v664_v28 = vsel %vm663_vm3, %v2017_v12, %v660_v26 }
 0xb8e   :  { %v669_v30 = vsel %vm666_vm4, %v668_v29, %v664_v28  ;;  %v2021_v47 = vpop.eup %2020 }
 0xb8f   :  { %v772_v31 = vsub.f32 1.0, %v669_v30  ;;  %v642_v32 = vmul.f32 %v2021_v47, %v639_v24  ;;  %vm647_vm6 = vweird.f32 %v2021_v47 }
 0xb90   :  { %vm648_vm9 = vmor %vm646_vm7, %vm647_vm6 }
 0xb91   :  { %v776_v34 = vmul.f32 %v772_v31, %v714_v41  ;;  %v643_v16 = vsub.f32 1.0, %v642_v32  ;;  %v653_v41 = vor.u32 1.1754944e-38, %v652_v39 }
 0xb93   :  { %v644_v37 = vmul.f32 %v2021_v47, %v643_v16 }
 0xb95   :  { %v645_v38 = vadd.f32 %v2021_v47, %v644_v37 }
 0xb97   :  { %v649_v14 = vsel %vm648_vm9, %v2021_v47, %v645_v38  ;;  %vm988_vm9 = vcmask 257027  }
 0xb98   :  { %v654_v43 = vsel %vm651_vm10, %v653_v41, %v649_v14  ;;  %vm1076_vm10 = vcmask 1045509  }
 0xb99   :  { %v771_v45 = vsub.f32 1.0, %v654_v43 }
 0xb9b   :  { %v775_v46 = vmul.f32 %v771_v45, %v713_v40 }
 0xbd5   :  { %v782_v33 = vpop.permute.xlu0 %781 }
 0xbd6   :  { %v786_v35 = vmul.f32 %v782_v33, %v669_v30 }
 0xbd8   :  { %v2670_v36 = vadd.f32 %v786_v35, %v776_v34 }
 0xbda   :  { %791 = vst.msk [vmem:[%s3013_s9 + $0x8] sm:$0x4] %vm789_vm5, %v2670_v36  ;;  %v799_v51 = vrot.slane %v2670_v36, 1  ;;  %v913_v12 = vrot.slane %v2670_v36, 7 }
 0xbed   :  { %v780_v44 = vpop.permute.xlu1 %779 }
 0xbee   :  { %v785_v49 = vmul.f32 %v780_v44, %v654_v43 }
 0xbf0   :  { %v2679_v50 = vadd.f32 %v785_v49, %v775_v46 }
 0xbf2   :  { %790 = vst.msk [vmem:[%s3013_s9] sm:$0x4] %vm789_vm5, %v2679_v50  ;;  %v798_v52 = vrot.slane %v2679_v50, 2  ;;  %v912_v8 = vrot.slane %v2679_v50, 7 }
 0xbf4   :  { %v800_v53 = vsel %vm284_vm2, %v799_v51, %v798_v52 }
 0xbf5   :  { %1915 = vmatmul.msk.f32.vlgmr.msrb.gmra.mxu0 %vm162_vm1, %v800_v53 }
 0xc72   :  { %v820_v54 = vpop.f32.mrf.mxu0 }
 0xc73   :  { %v824_v59 = vrot.slane %v820_v54, 5  ;;  %v825_v40 = vrot.slane %v820_v54, 6 }
 0xc75   :  { %v2691_v55 = vadd.f32 %v824_v59, %v2507_v13  ;;  %v2694_v56 = vadd.f32 %v825_v40, %v2512_v17  ;;  %v2726_v40 = vld [vmem:[#allocation6 + $0x10] sm:$0xff] }
 0xc76   :  { %1015 = vmatpush.msra.mxu2 %v2726_v40 }
 0xc77   :  { %2022 = vtanh.f32 %v2691_v55  ;;  %v830_v45 = vadd.f32 %v2514_v18, %v2691_v55  ;;  %v831_v44 = vadd.f32 %v2514_v18, %v2694_v56  ;;  %v2729_v55 = vld [vmem:[#allocation6 + $0x8] sm:$0xff]  ;;  %v2732_v18 = vld [vmem:[#allocation6] sm:$0xff] }
 0xc78   :  { %2024 = vtanh.f32 %v2694_v56  ;;  %1016 = vmatpush.msra.mxu2 %v2729_v55 }
 0xc79   :  { %v1916_v46 = vmul.f32 -1.442695, %v830_v45  ;;  %v1917_v49 = vmul.f32 -1.442695, %v831_v44 }
 0xc7a   :  { %1017 = vmatpush.msra.mxu2 %v2732_v18 }
 0xc7d   :  { %v2023_v57 = vpop.eup %2022 }
 0xc7e   :  { %v2025_v58 = vpop.eup %2024  ;;  %v872_v11 = vmul.f32 %v2023_v57, %v2521_v25 }
 0xc7f   :  { %v873_v60 = vmul.f32 %v2025_v58, %v2521_v25 }
 0xc81   :  { %v876_v61 = vrot.slane %v873_v60, 7 }
 0xc83   :  { %v878_v62 = vsel %vm877_vm11, %v876_v61, %v872_v11 }
 0xc84   :  { %v881_v63 = vsel %vm880_vm12, %v878_v62, -inf  ;;  %vm1100_vm12 = vcmask 259076  }
 0xc85   :  { %882 = vmax.xlane.f32.xlu1 %v881_v63 }
 0xcf8   :  { %v883_v0 = vpop.xlane.xlu1 %882 }
 0xcf9   :  { %v885_v1 = vrot.slane %v883_v0, 1  ;;  %v888_v48 = vsub.f32 %v872_v11, %v883_v0 }
 0xcfb   :  { %v889_v3 = vsub.f32 %v873_v60, %v885_v1  ;;  %v890_v5 = vmul.f32 1.442695, %v888_v48 }
 0xcfd   :  { %v892_v7 = vmul.f32 1.442695, %v889_v3 }
 0xcff   :  { %2026 = vpow2.f32 %v892_v7 }
 0xd00   :  { %2028 = vpow2.f32 %v890_v5 }
 0xd05   :  { %v2027_v9 = vpop.eup %2026 }
 0xd06   :  { %v896_v10 = vrot.slane %v2027_v9, 7  ;;  %v2029_v4 = vpop.eup %2028 }
 0xd08   :  { %v897_v6 = vsel %vm877_vm11, %v896_v10, %v2029_v4  ;;  %vm1079_vm11 = vcmask 521476  }
 0xd09   :  { %898 = vrot.lane.b32.xlu2 %v897_v6, %s2381_s0 }
 0xd11   :  { %914 = vrot.lane.b32.xlu2 %v912_v8, %s2380_s22 }
 0xd19   :  { %916 = vrot.lane.b32.xlu2 %v913_v12, %s2380_s22 }
 0xd63   :  { %v899_v15 = vpop.permute.xlu2 %898 }
 0xd64   :  { %v902_v19 = vsel %vm901_vm13, %v899_v15, 0.0 }
 0xd65   :  { %903 = vadd.xlane.f32.xlu0 %v902_v19 }
 0xd6b   :  { %v915_v21 = vpop.permute.xlu2 %914 }
 0xd73   :  { %v917_v28 = vpop.permute.xlu2 %916 }
 0xdd8   :  { %v904_v20 = vpop.xlane.xlu0 %903 }
 0xdd9   :  { %2030 = vrcp.f32 %v904_v20 }
 0xddf   :  { %v2031_v23 = vpop.eup %2030 }
 0xde0   :  { %v907_v24 = vrot.slane %v2031_v23, 1  ;;  %v910_v26 = vmul.f32 %v2031_v23, %v2029_v4 }
 0xde2   :  { %v911_v27 = vmul.f32 %v2027_v9, %v907_v24  ;;  %v920_v2 = vmul.f32 %v915_v21, %v910_v26 }
 0xde4   :  { %v921_v29 = vmul.f32 %v917_v28, %v911_v27  ;;  %v928_v30 = vrot.slane %v920_v2, 3 }
 0xde6   :  { %v929_v47 = vrot.slane %v921_v29, 2 }
 0xde8   :  { %v930_v31 = vsel %vm284_vm2, %v929_v47, %v928_v30 }
 0xde9   :  { %931 = vrot.lane.b32.xlu2 %v930_v31, %s2381_s0 }
 0xe43   :  { %v932_v32 = vpop.permute.xlu2 %931 }
 0xe44   :  { %1918 = vmatmul.msk.f32.vlgmr.msra.gmra.mxu1 %vm162_vm1, %v932_v32 }
 0xec1   :  { %v952_v33 = vpop.f32.mrf.mxu1 }
 0xec2   :  { %v956_v34 = vrot.slane %v952_v33, 5  ;;  %v957_v35 = vrot.slane %v952_v33, 6 }
 0xec4   :  { %960 = vrot.lane.b32.xlu2 %v957_v35, %s2382_s30  ;;  %958 = vrot.lane.b32.xlu1 %v956_v34, %s2382_s30 }
 0xf1e   :  { %v961_v16 = vpop.permute.xlu2 %960 }
 0xf1f   :  { %v965_v37 = vadd.f32 %v961_v16, %v2512_v17 }
 0xf21   :  { %v967_v38 = vadd.f32 %v965_v37, %v2549_v22 }
 0xf23   :  { %2032 = vtanh.f32 %v967_v38 }
 0xf29   :  { %v2033_v39 = vpop.eup %2032 }
 0xf2a   :  { %980 = vrot.lane.b32.xlu0 %v2033_v39, %s2382_s30 }
 0xf36   :  { %v959_v42 = vpop.permute.xlu1 %958 }
 0xf37   :  { %v964_v14 = vadd.f32 %v959_v42, %v2507_v13 }
 0xf39   :  { %v966_v41 = vadd.f32 %v964_v14, %v2549_v22 }
 0xf3b   :  { %2034 = vtanh.f32 %v966_v41 }
 0xf3c   :  { %2036 = vpow2.f32 %v1916_v46 }
 0xf3d   :  { %2038 = vpow2.f32 %v1917_v49 }
 0xf41   :  { %v2035_v43 = vpop.eup %2034 }
 0xf42   :  { %978 = vrot.lane.b32.xlu2 %v2035_v43, %s2382_s30  ;;  %v2037_v51 = vpop.eup %2036 }
 0xf43   :  { %v2039_v52 = vpop.eup %2038  ;;  %v838_v53 = vadd.f32 1.0, %v2037_v51 }
 0xf44   :  { %v839_v54 = vadd.f32 1.0, %v2039_v52 }
 0xf45   :  { %2040 = vrcp.f32 %v838_v53  ;;  %vm845_vm0 = vweird.f32 %v838_v53  ;;  %v851_v48 = vand.u32 2147483648, %v838_v53  ;;  %v849_v5 = vand.u32 2147483647, %v838_v53 }
 0xf46   :  { %2042 = vrcp.f32 %v839_v54  ;;  %v866_v1 = vand.u32 2147483648, %v839_v54  ;;  %vm860_vm3 = vweird.f32 %v839_v54  ;;  %v864_v3 = vand.u32 2147483647, %v839_v54 }
 0xf47   :  { %v852_v4 = vor.u32 1.1754944e-38, %v851_v48  ;;  %vm850_vm7 = vcmp.eq.f32.partialorder %v849_v5, 8.507059e+37 }
 0xf48   :  { %v867_v10 = vor.u32 1.1754944e-38, %v866_v1  ;;  %vm865_vm6 = vcmp.eq.f32.partialorder %v864_v3, 8.507059e+37 }
 0xf4b   :  { %v2041_v59 = vpop.eup %2040 }
 0xf4c   :  { %v2043_v57 = vpop.eup %2042  ;;  %v841_v58 = vmul.f32 %v2041_v59, %v838_v53  ;;  %vm846_vm14 = vweird.f32 %v2041_v59 }
 0xf4d   :  { %v856_v56 = vmul.f32 %v2043_v57, %v839_v54  ;;  %vm861_vm15 = vweird.f32 %v2043_v57  ;;  %vm847_vm4 = vmor %vm845_vm0, %vm846_vm14 }
 0xf4e   :  { %v842_v11 = vsub.f32 1.0, %v841_v58  ;;  %vm862_vm5 = vmor %vm860_vm3, %vm861_vm15  ;;  %v1123_v58 = vld [vmem:[#allocation8 + $0x10] sm:$0xff]  ;;  %vm1187_vm3 = vcmask 258052  }
 0xf4f   :  { %v857_v60 = vsub.f32 1.0, %v856_v56  ;;  %v1124_v56 = vld [vmem:[#allocation8 + $0x18] sm:$0xff] }
 0xf50   :  { %v843_v62 = vmul.f32 %v2041_v59, %v842_v11  ;;  %1146 = vmatpush.msra.mxu3 %v1124_v56  ;;  %1345 = vmatpush.msrb.mxu1 %v1124_v56  ;;  %v1121_v11 = vld [vmem:[#allocation8] sm:$0xff] }
 0xf51   :  { %v858_v61 = vmul.f32 %v2043_v57, %v857_v60  ;;  %v1122_v60 = vld [vmem:[#allocation8 + $0x8] sm:$0xff] }
 0xf52   :  { %v844_v0 = vadd.f32 %v2041_v59, %v843_v62  ;;  %1147 = vmatpush.msra.mxu3 %v1123_v58  ;;  %1346 = vmatpush.msrb.mxu1 %v1123_v58 }
 0xf53   :  { %v859_v63 = vadd.f32 %v2043_v57, %v858_v61 }
 0xf54   :  { %v848_v9 = vsel %vm847_vm4, %v2041_v59, %v844_v0  ;;  %1148 = vmatpush.msra.mxu3 %v1122_v60  ;;  %1347 = vmatpush.msrb.mxu1 %v1122_v60 }
 0xf55   :  { %v863_v7 = vsel %vm862_vm5, %v2043_v57, %v859_v63  ;;  %v853_v15 = vsel %vm850_vm7, %v852_v4, %v848_v9 }
 0xf56   :  { %v868_v6 = vsel %vm865_vm6, %v867_v10, %v863_v7  ;;  %v970_v20 = vsub.f32 1.0, %v853_v15  ;;  %1149 = vmatpush.msra.mxu3 %v1121_v11  ;;  %1348 = vmatpush.msrb.mxu1 %v1121_v11 }
 0xf57   :  { %v971_v19 = vsub.f32 1.0, %v868_v6 }
 0xf58   :  { %v974_v27 = vmul.f32 %v970_v20, %v912_v8  ;;  %1544 = vmatpush.msrb.mxu3 %v1124_v56  ;;  %1754 = vmatpush.msra.mxu1 %v1124_v56 }
 0xf59   :  { %v975_v24 = vmul.f32 %v971_v19, %v913_v12 }
 0xf5a   :  { %1545 = vmatpush.msrb.mxu3 %v1123_v58  ;;  %1755 = vmatpush.msra.mxu1 %v1123_v58 }
 0xf5c   :  { %1546 = vmatpush.msrb.mxu3 %v1122_v60  ;;  %1756 = vmatpush.msra.mxu1 %v1122_v60 }
 0xf5e   :  { %1547 = vmatpush.msrb.mxu3 %v1121_v11  ;;  %1757 = vmatpush.msra.mxu1 %v1121_v11 }
 0xf9c   :  { %v981_v21 = vpop.permute.xlu0 %980  ;;  %v979_v23 = vpop.permute.xlu2 %978 }
 0xf9d   :  { %v985_v26 = vmul.f32 %v981_v21, %v868_v6  ;;  %v984_v2 = vmul.f32 %v979_v23, %v853_v15 }
 0xf9f   :  { %v2739_v28 = vadd.f32 %v985_v26, %v975_v24  ;;  %v2741_v29 = vadd.f32 %v984_v2, %v974_v27 }
 0xfa1   :  { %990 = vst.msk [vmem:[%s3013_s9 + $0x8] sm:$0x8] %vm988_vm9, %v2739_v28  ;;  %v998_v30 = vrot.slane %v2739_v28, 2  ;;  %v997_v36 = vrot.slane %v2741_v29, 3  ;;  %v1111_v12 = vrot.slane %v2741_v29, 7  ;;  %v1112_v8 = vrot.slane %v2739_v28, 7 }
 0xfa2   :  { %989 = vst.msk [vmem:[%s3013_s9] sm:$0x8] %vm988_vm9, %v2741_v29  ;;  %vm1275_vm9 = vcmask 1046534  }
 0xfa3   :  { %1113 = vrot.lane.b32.xlu0 %v1111_v12, %s2380_s22  ;;  %v999_v50 = vsel %vm284_vm2, %v998_v30, %v997_v36 }
 0xfa4   :  { %1919 = vmatmul.msk.f32.vlgmr.msra.gmra.mxu2 %vm162_vm1, %v999_v50  ;;  %v2787_v50 = vld [vmem:[#allocation9] ss:$0 sm:$0xff] }
 0xfab   :  { %1115 = vrot.lane.b32.xlu0 %v1112_v8, %s2380_s22 }
0x1015   :  { %v1114_v62 = vpop.permute.xlu0 %1113 }
0x101d   :  { %v1116_v5 = vpop.permute.xlu0 %1115 }
0x1027   :  { %v1019_v47 = vpop.f32.mrf.mxu2 }
0x1028   :  { %v1023_v31 = vrot.slane %v1019_v47, 4  ;;  %v1024_v32 = vrot.slane %v1019_v47, 5 }
0x102a   :  { %v2764_v33 = vadd.f32 %v1023_v31, %v2507_v13  ;;  %v2767_v34 = vadd.f32 %v1024_v32, %v2512_v17 }
0x102c   :  { %2044 = vtanh.f32 %v2764_v33  ;;  %v1030_v47 = vadd.f32 %v2787_v50, %v2767_v34 }
0x102d   :  { %2046 = vtanh.f32 %v2767_v34 }
0x102e   :  { %v1921_v31 = vmul.f32 -1.442695, %v1030_v47 }
0x1032   :  { %v2045_v35 = vpop.eup %2044 }
0x1033   :  { %v2047_v16 = vpop.eup %2046  ;;  %v1071_v38 = vmul.f32 %v2045_v35, %v2521_v25 }
0x1034   :  { %v1072_v37 = vmul.f32 %v2047_v16, %v2521_v25  ;;  %v1029_v16 = vadd.f32 %v2787_v50, %v2764_v33 }
0x1036   :  { %v1075_v39 = vrot.slane %v1072_v37, 7 }
0x1038   :  { %v1077_v42 = vsel %vm1076_vm10, %v1075_v39, %v1071_v38  ;;  %v1193_v39 = vld [vmem:[#allocation6 + $0x18] sm:$0xff] }
0x1039   :  { %v1080_v14 = vsel %vm1079_vm11, %v1077_v42, -inf  ;;  %1213 = vmatpush.msra.mxu0 %v1193_v39  ;;  %1412 = vmatpush.msrb.mxu2 %v1193_v39  ;;  %vm1299_vm11 = vcmask 260101  }
0x103a   :  { %1081 = vmax.xlane.f32.xlu2 %v1080_v14 }
0x103b   :  { %1214 = vmatpush.msra.mxu0 %v2726_v40  ;;  %1413 = vmatpush.msrb.mxu2 %v2726_v40 }
0x103d   :  { %1215 = vmatpush.msra.mxu0 %v2729_v55  ;;  %1414 = vmatpush.msrb.mxu2 %v2729_v55 }
0x103f   :  { %1216 = vmatpush.msra.mxu0 %v2732_v18  ;;  %1415 = vmatpush.msrb.mxu2 %v2732_v18 }
0x1041   :  { %1611 = vmatpush.msrb.mxu0 %v1193_v39 }
0x1043   :  { %1612 = vmatpush.msrb.mxu0 %v2726_v40 }
0x1045   :  { %1613 = vmatpush.msrb.mxu0 %v2729_v55 }
0x1047   :  { %1614 = vmatpush.msrb.mxu0 %v2732_v18 }
0x10ad   :  { %v1082_v41 = vpop.xlane.xlu2 %1081 }
0x10ae   :  { %v1084_v43 = vrot.slane %v1082_v41, 1  ;;  %v1087_v45 = vsub.f32 %v1071_v38, %v1082_v41  ;;  %v1920_v38 = vmul.f32 -1.442695, %v1029_v16 }
0x10b0   :  { %v1088_v44 = vsub.f32 %v1072_v37, %v1084_v43  ;;  %v1089_v46 = vmul.f32 1.442695, %v1087_v45 }
0x10b2   :  { %v1091_v49 = vmul.f32 1.442695, %v1088_v44 }
0x10b4   :  { %2048 = vpow2.f32 %v1091_v49 }
0x10b5   :  { %2050 = vpow2.f32 %v1089_v46 }
0x10ba   :  { %v2049_v51 = vpop.eup %2048 }
0x10bb   :  { %v1095_v52 = vrot.slane %v2049_v51, 7  ;;  %v2051_v53 = vpop.eup %2050 }
0x10bd   :  { %v1096_v54 = vsel %vm1076_vm10, %v1095_v52, %v2051_v53  ;;  %vm1278_vm10 = vcmask 522501  }
0x10be   :  { %1097 = vrot.lane.b32.xlu1 %v1096_v54, %s2381_s0 }
0x1130   :  { %v1098_v59 = vpop.permute.xlu1 %1097 }
0x1131   :  { %v1101_v57 = vsel %vm1100_vm12, %v1098_v59, 0.0 }
0x1132   :  { %1102 = vadd.xlane.f32.xlu1 %v1101_v57 }
0x11a5   :  { %v1103_v61 = vpop.xlane.xlu1 %1102 }
0x11a6   :  { %2052 = vrcp.f32 %v1103_v61 }
0x11ac   :  { %v2053_v63 = vpop.eup %2052 }
0x11ad   :  { %v1106_v0 = vrot.slane %v2053_v63, 1  ;;  %v1109_v1 = vmul.f32 %v2053_v63, %v2051_v53 }
0x11af   :  { %v1110_v48 = vmul.f32 %v2049_v51, %v1106_v0  ;;  %v1119_v3 = vmul.f32 %v1114_v62, %v1109_v1 }
0x11b1   :  { %v1120_v7 = vmul.f32 %v1116_v5, %v1110_v48  ;;  %v1127_v9 = vrot.slane %v1119_v3, 4 }
0x11b3   :  { %v1128_v10 = vrot.slane %v1120_v7, 3 }
0x11b5   :  { %v1129_v4 = vsel %vm284_vm2, %v1128_v10, %v1127_v9 }
0x11b6   :  { %1130 = vrot.lane.b32.xlu0 %v1129_v4, %s2381_s0 }
0x1228   :  { %v1131_v6 = vpop.permute.xlu0 %1130 }
0x1229   :  { %1922 = vmatmul.msk.f32.vlgmr.msra.gmra.mxu3 %vm162_vm1, %v1131_v6 }
0x12ac   :  { %v1151_v15 = vpop.f32.mrf.mxu3 }
0x12ad   :  { %v1155_v19 = vrot.slane %v1151_v15, 4  ;;  %v1156_v20 = vrot.slane %v1151_v15, 5 }
0x12af   :  { %1159 = vrot.lane.b32.xlu2 %v1156_v20, %s2382_s30  ;;  %1157 = vrot.lane.b32.xlu0 %v1155_v19, %s2382_s30 }
0x1309   :  { %v1160_v21 = vpop.permute.xlu2 %1159 }
0x130a   :  { %v1164_v23 = vadd.f32 %v1160_v21, %v2512_v17 }
0x130c   :  { %v1166_v24 = vadd.f32 %v1164_v23, %v2549_v22 }
0x130e   :  { %2054 = vtanh.f32 %v1166_v24 }
0x1314   :  { %v2055_v26 = vpop.eup %2054 }
0x1315   :  { %1179 = vrot.lane.b32.xlu1 %v2055_v26, %s2382_s30 }
0x1321   :  { %v1158_v27 = vpop.permute.xlu0 %1157 }
0x1322   :  { %v1163_v2 = vadd.f32 %v1158_v27, %v2507_v13 }
0x1324   :  { %v1165_v30 = vadd.f32 %v1163_v2, %v2549_v22 }
0x1326   :  { %2056 = vtanh.f32 %v1165_v30 }
0x1327   :  { %2058 = vpow2.f32 %v1921_v31 }
0x132c   :  { %v2057_v36 = vpop.eup %2056 }
0x132d   :  { %1177 = vrot.lane.b32.xlu0 %v2057_v36, %s2382_s30  ;;  %v2059_v32 = vpop.eup %2058 }
0x132e   :  { %v1038_v35 = vadd.f32 1.0, %v2059_v32 }
0x1330   :  { %2060 = vrcp.f32 %v1038_v35  ;;  %v1065_v45 = vand.u32 2147483648, %v1038_v35  ;;  %vm1059_vm14 = vweird.f32 %v1038_v35  ;;  %v1063_v44 = vand.u32 2147483647, %v1038_v35 }
0x1331   :  { %2062 = vpow2.f32 %v1920_v38 }
0x1332   :  { %v1066_v49 = vor.u32 1.1754944e-38, %v1065_v45  ;;  %vm1064_vm0 = vcmp.eq.f32.partialorder %v1063_v44, 8.507059e+37 }
0x1336   :  { %v2061_v37 = vpop.eup %2060 }
0x1337   :  { %v1055_v42 = vmul.f32 %v2061_v37, %v1038_v35  ;;  %v2063_v33 = vpop.eup %2062  ;;  %vm1060_vm13 = vweird.f32 %v2061_v37 }
0x1338   :  { %v1037_v41 = vadd.f32 1.0, %v2063_v33  ;;  %vm1061_vm15 = vmor %vm1059_vm14, %vm1060_vm13 }
0x1339   :  { %v1056_v34 = vsub.f32 1.0, %v1055_v42 }
0x133a   :  { %2064 = vrcp.f32 %v1037_v41  ;;  %v1050_v60 = vand.u32 2147483648, %v1037_v41  ;;  %vm1044_vm5 = vweird.f32 %v1037_v41  ;;  %v1048_v11 = vand.u32 2147483647, %v1037_v41 }
0x133b   :  { %v1057_v14 = vmul.f32 %v2061_v37, %v1056_v34 }
0x133c   :  { %vm1049_vm7 = vcmp.eq.f32.partialorder %v1048_v11, 8.507059e+37 }
0x133d   :  { %v1058_v43 = vadd.f32 %v2061_v37, %v1057_v14 }
0x133f   :  { %v1062_v46 = vsel %vm1061_vm15, %v2061_v37, %v1058_v43 }
0x1340   :  { %v1067_v51 = vsel %vm1064_vm0, %v1066_v49, %v1062_v46  ;;  %v2065_v52 = vpop.eup %2064  ;;  %vm1386_vm0 = vcmask 259077  }
0x1341   :  { %v1170_v53 = vsub.f32 1.0, %v1067_v51  ;;  %v1040_v54 = vmul.f32 %v2065_v52, %v1037_v41  ;;  %vm1045_vm4 = vweird.f32 %v2065_v52 }
0x1342   :  { %vm1046_vm6 = vmor %vm1044_vm5, %vm1045_vm4 }
0x1343   :  { %v1174_v55 = vmul.f32 %v1170_v53, %v1112_v8  ;;  %v1041_v18 = vsub.f32 1.0, %v1040_v54  ;;  %v1051_v8 = vor.u32 1.1754944e-38, %v1050_v60 }
0x1345   :  { %v1042_v56 = vmul.f32 %v2065_v52, %v1041_v18 }
0x1347   :  { %v1043_v58 = vadd.f32 %v2065_v52, %v1042_v56 }
0x1349   :  { %v1047_v28 = vsel %vm1046_vm6, %v2065_v52, %v1043_v58 }
0x134a   :  { %v1052_v61 = vsel %vm1049_vm7, %v1051_v8, %v1047_v28  ;;  %vm1474_vm7 = vcmask 1047559  }
0x134b   :  { %v1169_v62 = vsub.f32 1.0, %v1052_v61 }
0x134d   :  { %v1173_v0 = vmul.f32 %v1169_v62, %v1111_v12 }
0x1387   :  { %v1180_v40 = vpop.permute.xlu1 %1179 }
0x1388   :  { %v1184_v59 = vmul.f32 %v1180_v40, %v1067_v51 }
0x138a   :  { %v2804_v57 = vadd.f32 %v1184_v59, %v1174_v55 }
0x138c   :  { %1189 = vst.msk [vmem:[%s3013_s9 + $0x8] sm:$0x10] %vm1187_vm3, %v2804_v57  ;;  %v1197_v3 = vrot.slane %v2804_v57, 3  ;;  %v1311_v12 = vrot.slane %v2804_v57, 7 }
0x139f   :  { %v1178_v63 = vpop.permute.xlu0 %1177 }
0x13a0   :  { %v1183_v1 = vmul.f32 %v1178_v63, %v1052_v61 }
0x13a2   :  { %v2813_v48 = vadd.f32 %v1183_v1, %v1173_v0 }
0x13a4   :  { %1188 = vst.msk [vmem:[%s3013_s9] sm:$0x10] %vm1187_vm3, %v2813_v48  ;;  %v1196_v5 = vrot.slane %v2813_v48, 4  ;;  %v1310_v7 = vrot.slane %v2813_v48, 7 }
0x13a6   :  { %1312 = vrot.lane.b32.xlu1 %v1310_v7, %s2380_s22  ;;  %v1198_v29 = vsel %vm284_vm2, %v1197_v3, %v1196_v5 }
0x13a7   :  { %1923 = vmatmul.msk.f32.vlgmr.msra.gmra.mxu0 %vm162_vm1, %v1198_v29 }
0x13ae   :  { %1314 = vrot.lane.b32.xlu1 %v1311_v12, %s2380_s22 }
0x1418   :  { %v1313_v33 = vpop.permute.xlu1 %1312 }
0x1420   :  { %v1315_v46 = vpop.permute.xlu1 %1314 }
0x1424   :  { %v1218_v9 = vpop.f32.mrf.mxu0 }
0x1425   :  { %v1222_v10 = vrot.slane %v1218_v9, 3  ;;  %v1223_v4 = vrot.slane %v1218_v9, 4 }
0x1427   :  { %v2833_v6 = vadd.f32 %v1222_v10, %v2507_v13  ;;  %v2836_v15 = vadd.f32 %v1223_v4, %v2512_v17 }
0x1429   :  { %2066 = vtanh.f32 %v2833_v6  ;;  %v1229_v62 = vadd.f32 %v2787_v50, %v2836_v15  ;;  %v1228_v3 = vadd.f32 %v2787_v50, %v2833_v6 }
0x142a   :  { %2068 = vtanh.f32 %v2836_v15 }
0x142b   :  { %v1925_v63 = vmul.f32 -1.442695, %v1229_v62  ;;  %v1924_v29 = vmul.f32 -1.442695, %v1228_v3 }
0x142f   :  { %v2067_v19 = vpop.eup %2066 }
0x1430   :  { %v2069_v20 = vpop.eup %2068  ;;  %v1270_v23 = vmul.f32 %v2067_v19, %v2521_v25 }
0x1431   :  { %v1271_v21 = vmul.f32 %v2069_v20, %v2521_v25 }
0x1433   :  { %v1274_v24 = vrot.slane %v1271_v21, 7 }
0x1435   :  { %v1276_v26 = vsel %vm1275_vm9, %v1274_v24, %v1270_v23 }
0x1436   :  { %v1279_v27 = vsel %vm1278_vm10, %v1276_v26, -inf  ;;  %vm1498_vm10 = vcmask 261126  }
0x1437   :  { %1280 = vmax.xlane.f32.xlu0 %v1279_v27 }
0x14aa   :  { %v1281_v2 = vpop.xlane.xlu0 %1280 }
0x14ab   :  { %v1283_v30 = vrot.slane %v1281_v2, 1  ;;  %v1286_v36 = vsub.f32 %v1270_v23, %v1281_v2 }
0x14ad   :  { %v1287_v47 = vsub.f32 %v1271_v21, %v1283_v30  ;;  %v1288_v31 = vmul.f32 1.442695, %v1286_v36 }
0x14af   :  { %v1290_v32 = vmul.f32 1.442695, %v1287_v47 }
0x14b1   :  { %2070 = vpow2.f32 %v1290_v32 }
0x14b2   :  { %2072 = vpow2.f32 %v1288_v31 }
0x14b7   :  { %v2071_v35 = vpop.eup %2070 }
0x14b8   :  { %v1294_v16 = vrot.slane %v2071_v35, 7  ;;  %v2073_v37 = vpop.eup %2072 }
0x14ba   :  { %v1295_v38 = vsel %vm1275_vm9, %v1294_v16, %v2073_v37  ;;  %vm1477_vm9 = vcmask 523526  }
0x14bb   :  { %1296 = vrot.lane.b32.xlu2 %v1295_v38, %s2381_s0 }
0x1515   :  { %v1297_v39 = vpop.permute.xlu2 %1296 }
0x1516   :  { %v1300_v42 = vsel %vm1299_vm11, %v1297_v39, 0.0 }
0x1517   :  { %1301 = vadd.xlane.f32.xlu2 %v1300_v42 }
0x158a   :  { %v1302_v34 = vpop.xlane.xlu2 %1301 }
0x158b   :  { %2074 = vrcp.f32 %v1302_v34 }
0x1591   :  { %v2075_v14 = vpop.eup %2074 }
0x1592   :  { %v1305_v41 = vrot.slane %v2075_v14, 1  ;;  %v1308_v43 = vmul.f32 %v2075_v14, %v2073_v37 }
0x1594   :  { %v1309_v45 = vmul.f32 %v2071_v35, %v1305_v41  ;;  %v1318_v44 = vmul.f32 %v1313_v33, %v1308_v43 }
0x1596   :  { %v1319_v49 = vmul.f32 %v1315_v46, %v1309_v45  ;;  %v1326_v51 = vrot.slane %v1318_v44, 5 }
0x1598   :  { %v1327_v52 = vrot.slane %v1319_v49, 4 }
0x159a   :  { %v1328_v53 = vsel %vm284_vm2, %v1327_v52, %v1326_v51 }
0x159b   :  { %1329 = vrot.lane.b32.xlu1 %v1328_v53, %s2381_s0 }
0x160d   :  { %v1330_v54 = vpop.permute.xlu1 %1329 }
0x160e   :  { %1926 = vmatmul.msk.f32.vlgmr.msrb.gmra.mxu1 %vm162_vm1, %v1330_v54 }
0x168b   :  { %v1350_v40 = vpop.f32.mrf.mxu1 }
0x168c   :  { %v1354_v55 = vrot.slane %v1350_v40, 3  ;;  %v1355_v59 = vrot.slane %v1350_v40, 4 }
0x168e   :  { %1358 = vrot.lane.b32.xlu1 %v1355_v59, %s2382_s30  ;;  %1356 = vrot.lane.b32.xlu0 %v1354_v55, %s2382_s30 }
0x1700   :  { %v1359_v18 = vpop.permute.xlu1 %1358  ;;  %v1357_v56 = vpop.permute.xlu0 %1356 }
0x1701   :  { %v1363_v58 = vadd.f32 %v1359_v18, %v2512_v17  ;;  %v1362_v60 = vadd.f32 %v1357_v56, %v2507_v13 }
0x1703   :  { %v1365_v11 = vadd.f32 %v1363_v58, %v2549_v22  ;;  %v1364_v28 = vadd.f32 %v1362_v60, %v2549_v22 }
0x1705   :  { %2076 = vtanh.f32 %v1365_v11 }
0x1706   :  { %2078 = vtanh.f32 %v1364_v28 }
0x1707   :  { %2080 = vpow2.f32 %v1925_v63 }
0x170b   :  { %v2077_v8 = vpop.eup %2076 }
0x170c   :  { %v2079_v61 = vpop.eup %2078  ;;  %1378 = vrot.lane.b32.xlu2 %v2077_v8, %s2382_s30 }
0x170d   :  { %1376 = vrot.lane.b32.xlu1 %v2079_v61, %s2382_s30  ;;  %v2081_v0 = vpop.eup %2080 }
0x170e   :  { %v1237_v1 = vadd.f32 1.0, %v2081_v0 }
0x1710   :  { %2082 = vrcp.f32 %v1237_v1  ;;  %v1264_v23 = vand.u32 2147483648, %v1237_v1  ;;  %vm1258_vm13 = vweird.f32 %v1237_v1  ;;  %v1262_v15 = vand.u32 2147483647, %v1237_v1 }
0x1711   :  { %2084 = vpow2.f32 %v1924_v29 }
0x1712   :  { %v1265_v26 = vor.u32 1.1754944e-38, %v1264_v23  ;;  %vm1263_vm15 = vcmp.eq.f32.partialorder %v1262_v15, 8.507059e+37 }
0x1716   :  { %v2083_v5 = vpop.eup %2082 }
0x1717   :  { %v1254_v9 = vmul.f32 %v2083_v5, %v1237_v1  ;;  %v2085_v19 = vpop.eup %2084  ;;  %vm1259_vm12 = vweird.f32 %v2083_v5 }
0x1718   :  { %v1236_v20 = vadd.f32 1.0, %v2085_v19  ;;  %vm1260_vm14 = vmor %vm1258_vm13, %vm1259_vm12 }
0x1719   :  { %v1255_v10 = vsub.f32 1.0, %v1254_v9 }
0x171a   :  { %2086 = vrcp.f32 %v1236_v20  ;;  %v1249_v38 = vand.u32 2147483648, %v1236_v20  ;;  %vm1243_vm4 = vweird.f32 %v1236_v20  ;;  %v1247_v39 = vand.u32 2147483647, %v1236_v20 }
0x171b   :  { %v1256_v4 = vmul.f32 %v2083_v5, %v1255_v10 }
0x171c   :  { %vm1248_vm6 = vcmp.eq.f32.partialorder %v1247_v39, 8.507059e+37 }
0x171d   :  { %v1257_v21 = vadd.f32 %v2083_v5, %v1256_v4 }
0x171f   :  { %v1261_v24 = vsel %vm1260_vm14, %v2083_v5, %v1257_v21 }
0x1720   :  { %v1266_v27 = vsel %vm1263_vm15, %v1265_v26, %v1261_v24  ;;  %v2087_v6 = vpop.eup %2086  ;;  %vm1585_vm15 = vcmask 260102  }
0x1721   :  { %v1369_v2 = vsub.f32 1.0, %v1266_v27  ;;  %v1239_v36 = vmul.f32 %v2087_v6, %v1236_v20  ;;  %vm1244_vm3 = vweird.f32 %v2087_v6 }
0x1722   :  { %vm1245_vm5 = vmor %vm1243_vm4, %vm1244_vm3 }
0x1723   :  { %v1373_v47 = vmul.f32 %v1369_v2, %v1311_v12  ;;  %v1240_v35 = vsub.f32 1.0, %v1239_v36  ;;  %v1250_v12 = vor.u32 1.1754944e-38, %v1249_v38 }
0x1725   :  { %v1241_v16 = vmul.f32 %v2087_v6, %v1240_v35 }
0x1727   :  { %v1242_v37 = vadd.f32 %v2087_v6, %v1241_v16 }
0x1729   :  { %v1246_v57 = vsel %vm1245_vm5, %v2087_v6, %v1242_v37 }
0x172a   :  { %v1251_v42 = vsel %vm1248_vm6, %v1250_v12, %v1246_v57  ;;  %vm1675_vm6 = vcmask 523527  }
0x172b   :  { %v1368_v34 = vsub.f32 1.0, %v1251_v42 }
0x172d   :  { %v1372_v14 = vmul.f32 %v1368_v34, %v1310_v7 }
0x1766   :  { %v1379_v30 = vpop.permute.xlu2 %1378 }
0x1767   :  { %v1383_v31 = vmul.f32 %v1379_v30, %v1266_v27 }
0x1769   :  { %v2862_v32 = vadd.f32 %v1383_v31, %v1373_v47 }
0x176b   :  { %1388 = vst.msk [vmem:[%s3013_s9 + $0x8] sm:$0x20] %vm1386_vm0, %v2862_v32  ;;  %v1396_v45 = vrot.slane %v2862_v32, 4  ;;  %v1510_v7 = vrot.slane %v2862_v32, 7 }
0x177f   :  { %v1377_v33 = vpop.permute.xlu1 %1376 }
0x1780   :  { %v1382_v41 = vmul.f32 %v1377_v33, %v1251_v42 }
0x1782   :  { %v2871_v43 = vadd.f32 %v1382_v41, %v1372_v14 }
0x1784   :  { %1387 = vst.msk [vmem:[%s3013_s9] sm:$0x20] %vm1386_vm0, %v2871_v43  ;;  %v1395_v44 = vrot.slane %v2871_v43, 5  ;;  %v1509_v46 = vrot.slane %v2871_v43, 7 }
0x1786   :  { %1511 = vrot.lane.b32.xlu2 %v1509_v46, %s2380_s22  ;;  %v1397_v48 = vsel %vm284_vm2, %v1396_v45, %v1395_v44 }
0x1787   :  { %1927 = vmatmul.msk.f32.vlgmr.msrb.gmra.mxu2 %vm162_vm1, %v1397_v48 }
0x178e   :  { %1513 = vrot.lane.b32.xlu2 %v1510_v7, %s2380_s22 }
0x17e0   :  { %v1512_v4 = vpop.permute.xlu2 %1511 }
0x17e8   :  { %v1514_v24 = vpop.permute.xlu2 %1513 }
0x180a   :  { %v1417_v49 = vpop.f32.mrf.mxu2 }
0x180b   :  { %v1421_v51 = vrot.slane %v1417_v49, 2  ;;  %v1422_v52 = vrot.slane %v1417_v49, 3 }
0x180d   :  { %v2891_v53 = vadd.f32 %v1421_v51, %v2507_v13  ;;  %v2894_v54 = vadd.f32 %v1422_v52, %v2512_v17 }
0x180f   :  { %2088 = vtanh.f32 %v2891_v53  ;;  %v1428_v34 = vadd.f32 %v2787_v50, %v2894_v54 }
0x1810   :  { %2090 = vtanh.f32 %v2894_v54  ;;  %v1427_v54 = vadd.f32 %v2787_v50, %v2891_v53 }
0x1811   :  { %v1929_v33 = vmul.f32 -1.442695, %v1428_v34 }
0x1815   :  { %v2089_v40 = vpop.eup %2088 }
0x1816   :  { %v2091_v55 = vpop.eup %2090  ;;  %v1469_v18 = vmul.f32 %v2089_v40, %v2521_v25 }
0x1817   :  { %v1470_v59 = vmul.f32 %v2091_v55, %v2521_v25 }
0x1819   :  { %v1473_v56 = vrot.slane %v1470_v59, 7 }
0x181b   :  { %v1475_v58 = vsel %vm1474_vm7, %v1473_v56, %v1469_v18  ;;  %v1928_v56 = vmul.f32 -1.442695, %v1427_v54 }
0x181c   :  { %v1478_v60 = vsel %vm1477_vm9, %v1475_v58, -inf }
0x181d   :  { %1479 = vmax.xlane.f32.xlu0 %v1478_v60 }
0x1890   :  { %v1480_v11 = vpop.xlane.xlu0 %1479 }
0x1891   :  { %v1482_v28 = vrot.slane %v1480_v11, 1  ;;  %v1485_v8 = vsub.f32 %v1469_v18, %v1480_v11 }
0x1893   :  { %v1486_v61 = vsub.f32 %v1470_v59, %v1482_v28  ;;  %v1487_v62 = vmul.f32 1.442695, %v1485_v8 }
0x1895   :  { %v1489_v63 = vmul.f32 1.442695, %v1486_v61 }
0x1897   :  { %2092 = vpow2.f32 %v1489_v63 }
0x1898   :  { %2094 = vpow2.f32 %v1487_v62 }
0x189d   :  { %v2093_v0 = vpop.eup %2092 }
0x189e   :  { %v1493_v1 = vrot.slane %v2093_v0, 7  ;;  %v2095_v3 = vpop.eup %2094 }
0x18a0   :  { %v1494_v5 = vsel %vm1474_vm7, %v1493_v1, %v2095_v3  ;;  %vm1679_vm7 = vcmask 516352  }
0x18a1   :  { %1495 = vrot.lane.b32.xlu1 %v1494_v5, %s2381_s0 }
0x1913   :  { %v1496_v29 = vpop.permute.xlu1 %1495 }
0x1914   :  { %v1499_v9 = vsel %vm1498_vm10, %v1496_v29, 0.0 }
0x1915   :  { %1500 = vadd.xlane.f32.xlu1 %v1499_v9 }
0x1988   :  { %v1501_v10 = vpop.xlane.xlu1 %1500 }
0x1989   :  { %2096 = vrcp.f32 %v1501_v10 }
0x198f   :  { %v2097_v19 = vpop.eup %2096 }
0x1990   :  { %v1504_v20 = vrot.slane %v2097_v19, 1  ;;  %v1507_v21 = vmul.f32 %v2097_v19, %v2095_v3 }
0x1992   :  { %v1508_v23 = vmul.f32 %v2093_v0, %v1504_v20  ;;  %v1517_v15 = vmul.f32 %v1512_v4, %v1507_v21 }
0x1994   :  { %v1518_v26 = vmul.f32 %v1514_v24, %v1508_v23  ;;  %v1525_v27 = vrot.slane %v1517_v15, 6 }
0x1996   :  { %v1526_v6 = vrot.slane %v1518_v26, 5 }
0x1998   :  { %v1527_v2 = vsel %vm284_vm2, %v1526_v6, %v1525_v27 }
0x1999   :  { %1528 = vrot.lane.b32.xlu2 %v1527_v2, %s2381_s0 }
0x19f3   :  { %v1529_v30 = vpop.permute.xlu2 %1528 }
0x19f4   :  { %1930 = vmatmul.msk.f32.vlgmr.msrb.gmra.mxu3 %vm162_vm1, %v1529_v30 }
0x1a77   :  { %v1549_v36 = vpop.f32.mrf.mxu3 }
0x1a78   :  { %v1553_v47 = vrot.slane %v1549_v36, 2  ;;  %v1554_v31 = vrot.slane %v1549_v36, 3 }
0x1a7a   :  { %1557 = vrot.lane.b32.xlu2 %v1554_v31, %s2382_s30  ;;  %1555 = vrot.lane.b32.xlu0 %v1553_v47, %s2382_s30 }
0x1ad4   :  { %v1558_v35 = vpop.permute.xlu2 %1557 }
0x1ad5   :  { %v1562_v16 = vadd.f32 %v1558_v35, %v2512_v17 }
0x1ad7   :  { %v1564_v37 = vadd.f32 %v1562_v16, %v2549_v22 }
0x1ad9   :  { %2098 = vtanh.f32 %v1564_v37 }
0x1adf   :  { %v2099_v38 = vpop.eup %2098 }
0x1ae0   :  { %1577 = vrot.lane.b32.xlu2 %v2099_v38, %s2382_s30 }
0x1aec   :  { %v1556_v39 = vpop.permute.xlu0 %1555 }
0x1aed   :  { %v1561_v57 = vadd.f32 %v1556_v39, %v2507_v13 }
0x1aef   :  { %v1563_v12 = vadd.f32 %v1561_v57, %v2549_v22 }
0x1af1   :  { %2100 = vtanh.f32 %v1563_v12 }
0x1af2   :  { %2102 = vpow2.f32 %v1929_v33 }
0x1af7   :  { %v2101_v42 = vpop.eup %2100 }
0x1af8   :  { %1575 = vrot.lane.b32.xlu1 %v2101_v42, %s2382_s30  ;;  %v2103_v14 = vpop.eup %2102 }
0x1af9   :  { %v1436_v41 = vadd.f32 1.0, %v2103_v14 }
0x1afb   :  { %2104 = vrcp.f32 %v1436_v41  ;;  %v1463_v52 = vand.u32 2147483648, %v1436_v41  ;;  %vm1457_vm12 = vweird.f32 %v1436_v41  ;;  %v1461_v40 = vand.u32 2147483647, %v1436_v41 }
0x1afc   :  { %2106 = vpow2.f32 %v1928_v56 }
0x1afd   :  { %v1464_v59 = vor.u32 1.1754944e-38, %v1463_v52  ;;  %vm1462_vm14 = vcmp.eq.f32.partialorder %v1461_v40, 8.507059e+37 }
0x1b01   :  { %v2105_v45 = vpop.eup %2104 }
0x1b02   :  { %v1453_v44 = vmul.f32 %v2105_v45, %v1436_v41  ;;  %vm1458_vm11 = vweird.f32 %v2105_v45  ;;  %v2107_v53 = vpop.eup %2106 }
0x1b03   :  { %vm1459_vm13 = vmor %vm1457_vm12, %vm1458_vm11  ;;  %v1435_v61 = vadd.f32 1.0, %v2107_v53 }
0x1b04   :  { %v1454_v48 = vsub.f32 1.0, %v1453_v44 }
0x1b05   :  { %2108 = vrcp.f32 %v1435_v61  ;;  %v1448_v32 = vand.u32 2147483648, %v1435_v61  ;;  %vm1442_vm3 = vweird.f32 %v1435_v61 }
0x1b06   :  { %v1455_v49 = vmul.f32 %v2105_v45, %v1454_v48 }
0x1b07   :  { %v1449_v29 = vor.u32 1.1754944e-38, %v1448_v32 }
0x1b08   :  { %v1456_v51 = vadd.f32 %v2105_v45, %v1455_v49 }
0x1b0a   :  { %v1460_v55 = vsel %vm1459_vm13, %v2105_v45, %v1456_v51  ;;  %vm1703_vm13 = vcmask 261127  }
0x1b0b   :  { %v1465_v18 = vsel %vm1462_vm14, %v1464_v59, %v1460_v55  ;;  %v2109_v62 = vpop.eup %2108 }
0x1b0c   :  { %v1568_v58 = vsub.f32 1.0, %v1465_v18  ;;  %v1438_v63 = vmul.f32 %v2109_v62, %v1435_v61  ;;  %vm1443_vm0 = vweird.f32 %v2109_v62 }
0x1b0d   :  { %vm1444_vm4 = vmor %vm1442_vm3, %vm1443_vm0 }
0x1b0e   :  { %v1572_v11 = vmul.f32 %v1568_v58, %v1510_v7  ;;  %v1439_v0 = vsub.f32 1.0, %v1438_v63  ;;  %v1446_v7 = vand.u32 2147483647, %v1435_v61 }
0x1b10   :  { %v1440_v1 = vmul.f32 %v2109_v62, %v1439_v0  ;;  %vm1447_vm5 = vcmp.eq.f32.partialorder %v1446_v7, 8.507059e+37 }
0x1b12   :  { %v1441_v3 = vadd.f32 %v2109_v62, %v1440_v1 }
0x1b14   :  { %v1445_v5 = vsel %vm1444_vm4, %v2109_v62, %v1441_v3 }
0x1b15   :  { %v1450_v9 = vsel %vm1447_vm5, %v1449_v29, %v1445_v5 }
0x1b16   :  { %v1567_v10 = vsub.f32 1.0, %v1450_v9 }
0x1b18   :  { %v1571_v19 = vmul.f32 %v1567_v10, %v1509_v46 }
0x1b3a   :  { %v1578_v60 = vpop.permute.xlu2 %1577 }
0x1b3b   :  { %v1582_v28 = vmul.f32 %v1578_v60, %v1465_v18 }
0x1b3d   :  { %v2920_v8 = vadd.f32 %v1582_v28, %v1572_v11 }
0x1b3f   :  { %1587 = vst.msk [vmem:[%s3013_s9 + $0x8] sm:$0x40] %vm1585_vm15, %v2920_v8  ;;  %v1595_v23 = vrot.slane %v2920_v8, 5  ;;  %v1720_v0 = vrot.slane %v2920_v8, 7 }
0x1b6a   :  { %v1576_v4 = vpop.permute.xlu1 %1575 }
0x1b6b   :  { %v1581_v20 = vmul.f32 %v1576_v4, %v1450_v9 }
0x1b6d   :  { %v1583_v21 = vadd.f32 %v1581_v20, %v1571_v19 }
0x1b6f   :  { %1586 = vst.msk [vmem:[%s3013_s9] sm:$0x40] %vm1585_vm15, %v1583_v21  ;;  %v1594_v15 = vrot.slane %v1583_v21, 6  ;;  %v1719_v44 = vrot.slane %v1583_v21, 7 }
0x1b71   :  { %v1596_v24 = vsel %vm284_vm2, %v1595_v23, %v1594_v15 }
0x1b72   :  { %1931 = vmatmul.msk.f32.vlgmr.msrb.gmra.mxu0 %vm162_vm1, %v1596_v24 }
0x1bef   :  { %v1616_v26 = vpop.f32.mrf.mxu0 }
0x1bf0   :  { %v1620_v27 = vrot.slane %v1616_v26, 1  ;;  %v1621_v6 = vrot.slane %v1616_v26, 2 }
0x1bf2   :  { %v1624_v43 = vadd.f32 %v1620_v27, %v2507_v13  ;;  %v2938_v46 = vadd.f32 %v1621_v6, %v2512_v17 }
0x1bf4   :  { %v1626_v2 = vadd.f32 %v2787_v50, %v1624_v43  ;;  %2110 = vtanh.f32 %v1624_v43 }
0x1bf5   :  { %2112 = vtanh.f32 %v2938_v46 }
0x1bf6   :  { %v1932_v30 = vmul.f32 -1.442695, %v1626_v2 }
0x1bf8   :  { %2114 = vpow2.f32 %v1932_v30 }
0x1bfa   :  { %v2111_v36 = vpop.eup %2110 }
0x1bfb   :  { %v2113_v47 = vpop.eup %2112  ;;  %v1668_v31 = vmul.f32 %v2111_v36, %v2521_v25 }
0x1bfc   :  { %v1669_v35 = vmul.f32 %v2113_v47, %v2521_v25 }
0x1bfd   :  { %v1676_v16 = vsel %vm1675_vm6, %v1668_v31, -inf }
0x1bfe   :  { %v2115_v37 = vpop.eup %2114  ;;  %1677 = vmax.xlane.f32.xlu0 %v1676_v16  ;;  %v1672_v38 = vrot.slane %v1669_v35, 7  ;;  %v1627_v16 = vadd.f32 %v2787_v50, %v2938_v46 }
0x1bff   :  { %v1634_v39 = vadd.f32 1.0, %v2115_v37 }
0x1c00   :  { %v1680_v57 = vsel %vm1679_vm7, %v1672_v38, -inf  ;;  %v1933_v37 = vmul.f32 -1.442695, %v1627_v16 }
0x1c01   :  { %2116 = vrcp.f32 %v1634_v39  ;;  %1681 = vmax.xlane.f32.xlu2 %v1680_v57  ;;  %v1647_v33 = vand.u32 2147483648, %v1634_v39  ;;  %v1645_v41 = vand.u32 2147483647, %v1634_v39  ;;  %vm1641_vm10 = vweird.f32 %v1634_v39 }
0x1c03   :  { %v1648_v25 = vor.u32 1.1754944e-38, %v1647_v33  ;;  %vm1646_vm12 = vcmp.eq.f32.partialorder %v1645_v41, 8.507059e+37 }
0x1c07   :  { %v2117_v12 = vpop.eup %2116 }
0x1c08   :  { %v1637_v42 = vmul.f32 %v2117_v12, %v1634_v39  ;;  %vm1642_vm9 = vweird.f32 %v2117_v12 }
0x1c09   :  { %vm1643_vm11 = vmor %vm1641_vm10, %vm1642_vm9 }
0x1c0a   :  { %v1638_v34 = vsub.f32 1.0, %v1637_v42 }
0x1c0c   :  { %v1639_v14 = vmul.f32 %v2117_v12, %v1638_v34 }
0x1c0e   :  { %v1640_v45 = vadd.f32 %v2117_v12, %v1639_v14 }
0x1c10   :  { %v1644_v48 = vsel %vm1643_vm11, %v2117_v12, %v1640_v45 }
0x1c11   :  { %v2944_v49 = vsel %vm1646_vm12, %v1648_v25, %v1644_v48 }
0x1c12   :  { %1721 = vrot.lane.b32.xlu0 %v1719_v44, %s2380_s22  ;;  %v1777_v51 = vsub.f32 1.0, %v2944_v49 }
0x1c14   :  { %v2948_v52 = vmul.f32 %v1777_v51, %v1719_v44 }
0x1c71   :  { %v1678_v18 = vpop.xlane.xlu0 %1677 }
0x1c72   :  { %v1688_v56 = vsub.f32 %v1668_v31, %v1678_v18 }
0x1c74   :  { %v1682_v40 = vpop.xlane.xlu2 %1681  ;;  %v1690_v60 = vmul.f32 1.442695, %v1688_v56 }
0x1c75   :  { %v1685_v55 = vrot.slane %v1682_v40, 1 }
0x1c77   :  { %v1689_v59 = vsub.f32 %v1669_v35, %v1685_v55 }
0x1c79   :  { %v1692_v54 = vmul.f32 1.442695, %v1689_v59 }
0x1c7b   :  { %2118 = vpow2.f32 %v1692_v54 }
0x1c7c   :  { %2120 = vpow2.f32 %v1690_v60 }
0x1c81   :  { %v2119_v58 = vpop.eup %2118 }
0x1c82   :  { %v1696_v11 = vrot.slane %v2119_v58, 7  ;;  %v2121_v28 = vpop.eup %2120 }
0x1c84   :  { %1699 = vrot.lane.b32.xlu1 %v1696_v11, %s2381_s0  ;;  %v1722_v4 = vpop.permute.xlu0 %1721 }
0x1c8c   :  { %1697 = vrot.lane.b32.xlu1 %v2121_v28, %s2381_s0 }
0x1cf6   :  { %v1700_v53 = vpop.permute.xlu1 %1699 }
0x1cf7   :  { %v1707_v61 = vsel %vm397_vm8, %v1700_v53, 0.0 }
0x1cf8   :  { %1708 = vadd.xlane.f32.xlu1 %v1707_v61 }
0x1cfe   :  { %v1698_v62 = vpop.permute.xlu1 %1697 }
0x1cff   :  { %v1704_v63 = vsel %vm1703_vm13, %v1698_v62, 0.0 }
0x1d00   :  { %1705 = vadd.xlane.f32.xlu2 %v1704_v63 }
0x1d18   :  { %1723 = vrot.lane.b32.xlu2 %v1720_v0, %s2380_s22 }
0x1d6b   :  { %v1709_v1 = vpop.xlane.xlu1 %1708 }
0x1d6c   :  { %2122 = vrcp.f32 %v1709_v1 }
0x1d72   :  { %v2123_v3 = vpop.eup %2122 }
0x1d73   :  { %v1706_v32 = vpop.xlane.xlu2 %1705  ;;  %v1714_v7 = vrot.slane %v2123_v3, 1 }
0x1d74   :  { %2124 = vrcp.f32 %v1706_v32 }
0x1d75   :  { %v1718_v29 = vmul.f32 %v2119_v58, %v1714_v7  ;;  %v2383_v58 = vmov 32.0  }
0x1d7a   :  { %v2125_v5 = vpop.eup %2124 }
0x1d7b   :  { %v1717_v9 = vmul.f32 %v2125_v5, %v2121_v28  ;;  %v1724_v10 = vpop.permute.xlu2 %1723 }
0x1d7c   :  { %v1728_v19 = vmul.f32 %v1724_v10, %v1718_v29 }
0x1d7d   :  { %v1727_v20 = vmul.f32 %v1722_v4, %v1717_v9 }
0x1d7e   :  { %v1736_v21 = vrot.slane %v1728_v19, 6 }
0x1d7f   :  { %v1735_v23 = vrot.slane %v1727_v20, 7 }
0x1d81   :  { %v1737_v15 = vsel %vm284_vm2, %v1736_v21, %v1735_v23 }
0x1d82   :  { %1738 = vrot.lane.b32.xlu0 %v1737_v15, %s2381_s0 }
0x1df4   :  { %v1739_v8 = vpop.permute.xlu0 %1738 }
0x1df5   :  { %1934 = vmatmul.msk.f32.vlgmr.msra.gmra.mxu1 %vm162_vm1, %v1739_v8 }
0x1e72   :  { %v1759_v24 = vpop.f32.mrf.mxu1 }
0x1e73   :  { %v1763_v26 = vrot.slane %v1759_v24, 1  ;;  %v1764_v27 = vrot.slane %v1759_v24, 2  ;;  %v1954_v24 = vld [vmem:[#allocation14] ss:$0 sm:$0xff] }
0x1e75   :  { %1767 = vrot.lane.b32.xlu2 %v1764_v27, %s2382_s30  ;;  %1765 = vrot.lane.b32.xlu0 %v1763_v26, %s2382_s30  ;;  %v1955_v27 = vld [vmem:[#allocation15] ss:$0 sm:$0xff] }
0x1ecf   :  { %v1768_v6 = vpop.permute.xlu2 %1767 }
0x1ed0   :  { %v1772_v43 = vadd.f32 %v1768_v6, %v2512_v17 }
0x1ed2   :  { %v1774_v2 = vadd.f32 %v1772_v43, %v2549_v22 }
0x1ed4   :  { %2126 = vtanh.f32 %v1774_v2 }
0x1eda   :  { %v2127_v30 = vpop.eup %2126 }
0x1edb   :  { %1787 = vrot.lane.b32.xlu0 %v2127_v30, %s2382_s30 }
0x1ee7   :  { %v1766_v36 = vpop.permute.xlu0 %1765 }
0x1ee8   :  { %v1771_v47 = vadd.f32 %v1766_v36, %v2507_v13 }
0x1eea   :  { %v1773_v31 = vadd.f32 %v1771_v47, %v2549_v22 }
0x1eec   :  { %2128 = vtanh.f32 %v1773_v31 }
0x1eed   :  { %2130 = vpow2.f32 %v1933_v37 }
0x1ef2   :  { %v2129_v35 = vpop.eup %2128 }
0x1ef3   :  { %1785 = vrot.lane.b32.xlu1 %v2129_v35, %s2382_s30  ;;  %v2131_v17 = vpop.eup %2130 }
0x1ef4   :  { %v1635_v38 = vadd.f32 1.0, %v2131_v17 }
0x1ef6   :  { %2132 = vrcp.f32 %v1635_v38  ;;  %v1662_v13 = vand.u32 2147483648, %v1635_v38  ;;  %vm1656_vm14 = vweird.f32 %v1635_v38  ;;  %v1660_v22 = vand.u32 2147483647, %v1635_v38 }
0x1ef7   :  { %2134 = vrcp.f32 %v2383_v58 }
0x1ef8   :  { %v1663_v14 = vor.u32 1.1754944e-38, %v1662_v13  ;;  %vm1661_vm0 = vcmp.eq.f32.partialorder %v1660_v22, 8.507059e+37 }
0x1efc   :  { %v2133_v39 = vpop.eup %2132 }
0x1efd   :  { %v1652_v57 = vmul.f32 %v2133_v39, %v1635_v38  ;;  %vm1657_vm2 = vweird.f32 %v2133_v39 }
0x1efe   :  { %vm1658_vm15 = vmor %vm1656_vm14, %vm1657_vm2 }
0x1eff   :  { %v1653_v12 = vsub.f32 1.0, %v1652_v57 }
0x1f01   :  { %v1654_v42 = vmul.f32 %v2133_v39, %v1653_v12 }
0x1f03   :  { %v1655_v34 = vadd.f32 %v2133_v39, %v1654_v42 }
0x1f05   :  { %v1659_v33 = vsel %vm1658_vm15, %v2133_v39, %v1655_v34 }
0x1f06   :  { %v1664_v41 = vsel %vm1661_vm0, %v1663_v14, %v1659_v33 }
0x1f07   :  { %v1778_v50 = vsub.f32 1.0, %v1664_v41 }
0x1f09   :  { %v1782_v45 = vmul.f32 %v1778_v50, %v1720_v0 }
0x1f4d   :  { %v1788_v46 = vpop.permute.xlu0 %1787 }
0x1f4e   :  { %v1792_v25 = vmul.f32 %v1788_v46, %v1664_v41 }
0x1f50   :  { %v1794_v44 = vadd.f32 %v1792_v25, %v1782_v45 }
0x1f52   :  { %1796 = vst.msk [vmem:[%s3013_s9 + $0x8] sm:$0x80] %vm1703_vm13, %v1794_v44  ;;  %v1799_v48 = vrot.slane %v1794_v44, 7 }
0x1f54   :  { %1803 = vst.msk [vmem:[#allocation2 + $0x1] sm:$0x1] %vm397_vm8, %v1799_v48 }
0x1f55   :  { %1875 = vst.msk [vmem:[#allocation17 + $0x1] sm:$0x1] %vm397_vm8, %v1799_v48 }
0x1f59   :  { %v1805_v51 = vld [vmem:[%s3013_s9 + $0x8] sm:$0xff] }
0x1f5a   :  { %v1809_v40 = vsel %vm162_vm1, %v1805_v51, 0.0 }
0x1f5b   :  { %1810 = vadd.xlane.f32.xlu0 %v1809_v40 }
0x1f65   :  { %v1786_v55 = vpop.permute.xlu1 %1785 }
0x1f66   :  { %v1791_v59 = vmul.f32 %v1786_v55, %v2944_v49  ;;  %v2135_v49 = vpop.eup %2134 }
0x1f67   :  { %vm1817_vm8 = vweird.f32 %v2135_v49 }
0x1f68   :  { %v1793_v54 = vadd.f32 %v1791_v59, %v2948_v52  ;;  %v1813_v52 = vmul.f32 32.0, %v2135_v49 }
0x1f6a   :  { %1795 = vst.msk [vmem:[%s3013_s9] sm:$0x80] %vm1703_vm13, %v1793_v54  ;;  %v1814_v60 = vsub.f32 1.0, %v1813_v52 }
0x1f6b   :  { %1802 = vst.msk [vmem:[#allocation2 - $0x7] sm:$0x80] %vm1703_vm13, %v1793_v54 }
0x1f6c   :  { %1874 = vst.msk [vmem:[#allocation17 - $0x7] sm:$0x80] %vm1703_vm13, %v1793_v54  ;;  %v1815_v11 = vmul.f32 %v2135_v49, %v1814_v60 }
0x1f6d   :  { %1888 = dma.vmem_to_hbm [thread:$0]  %s1884_s17, 32, %s1886_s3, [#allocation5]  }
0x1f6e   :  { %v1816_v28 = vadd.f32 %v2135_v49, %v1815_v11 }
0x1f70   :  { %v1818_v53 = vsel %vm1817_vm8, %v2135_v49, %v1816_v28 }
0x1f71   :  { %v1804_v18 = vld [vmem:[%s3013_s9] sm:$0xff] }
0x1f72   :  { %v1806_v56 = vsel %vm162_vm1, %v1804_v18, 0.0 }
0x1f73   :  { %1807 = vadd.xlane.f32.xlu2 %v1806_v56 }
0x1fce   :  { %v1811_v61 = vpop.xlane.xlu0 %1810 }
0x1fcf   :  { %v1820_v62 = vmul.f32 %v1818_v53, %v1811_v61 }
0x1fd1   :  { %v1822_v63 = vsub.f32 %v1805_v51, %v1820_v62 }
0x1fd3   :  { %v1824_v0 = vmul.f32 %v1822_v63, %v1822_v63 }
0x1fd5   :  { %v1828_v1 = vsel %vm162_vm1, %v1824_v0, 0.0 }
0x1fd6   :  { %1829 = vadd.xlane.f32.xlu2 %v1828_v1 }
0x1fe6   :  { %v1808_v3 = vpop.xlane.xlu2 %1807 }
0x1fe7   :  { %v1819_v32 = vmul.f32 %v1818_v53, %v1808_v3 }
0x1fe9   :  { %v1821_v7 = vsub.f32 %v1804_v18, %v1819_v32 }
0x1feb   :  { %v1823_v5 = vmul.f32 %v1821_v7, %v1821_v7 }
0x1fed   :  { %v1825_v29 = vsel %vm162_vm1, %v1823_v5, 0.0 }
0x1fee   :  { %1826 = vadd.xlane.f32.xlu1 %v1825_v29 }
0x2049   :  { %v1830_v9 = vpop.xlane.xlu2 %1829 }
0x204a   :  { %v1832_v10 = vmul.f32 %v1830_v9, %v1818_v53 }
0x204c   :  { %v1834_v4 = vadd.f32 1e-05, %v1832_v10 }
0x204e   :  { %2136 = vrsqrt.f32 %v1834_v4  ;;  %vm1851_vm4 = vweird.f32 %v1834_v4 }
0x2054   :  { %v2137_v19 = vpop.eup %2136 }
0x2055   :  { %v1846_v20 = vmul.f32 %v2137_v19, %v1834_v4  ;;  %vm1852_vm3 = vweird.f32 %v2137_v19 }
0x2056   :  { %vm1853_vm5 = vmor %vm1851_vm4, %vm1852_vm3 }
0x2057   :  { %v1847_v21 = vmul.f32 %v2137_v19, %v1846_v20 }
0x2059   :  { %v1848_v23 = vmul.f32 0.5, %v1847_v21 }
0x205b   :  { %v1849_v15 = vsub.f32 1.5, %v1848_v23 }
0x205d   :  { %v1850_v8 = vmul.f32 %v2137_v19, %v1849_v15 }
0x205f   :  { %v1854_v26 = vsel %vm1853_vm5, %v2137_v19, %v1850_v8 }
0x2060   :  { %v1856_v6 = vmul.f32 %v1854_v26, %v1822_v63 }
0x2061   :  { %v1827_v43 = vpop.xlane.xlu1 %1826 }
0x2062   :  { %v1862_v2 = vmul.f32 %v1954_v24, %v1856_v6  ;;  %v1831_v30 = vmul.f32 %v1827_v43, %v1818_v53 }
0x2064   :  { %v1868_v36 = vadd.f32 %v1955_v27, %v1862_v2  ;;  %v1833_v47 = vadd.f32 1e-05, %v1831_v30 }
0x2066   :  { %1870 = vst.msk [vmem:[%s3013_s9 + $0x8] sm:$0xff] %vm162_vm1, %v1868_v36  ;;  %2138 = vrsqrt.f32 %v1833_v47  ;;  %vm1841_vm7 = vweird.f32 %v1833_v47 }
0x206c   :  { %v2139_v31 = vpop.eup %2138 }
0x206d   :  { %v1836_v35 = vmul.f32 %v2139_v31, %v1833_v47  ;;  %vm1842_vm6 = vweird.f32 %v2139_v31 }
0x206e   :  { %vm1843_vm9 = vmor %vm1841_vm7, %vm1842_vm6 }
0x206f   :  { %v1837_v16 = vmul.f32 %v2139_v31, %v1836_v35 }
0x2071   :  { %v1838_v37 = vmul.f32 0.5, %v1837_v16 }
0x2073   :  { %v1839_v17 = vsub.f32 1.5, %v1838_v37 }
0x2075   :  { %v1840_v38 = vmul.f32 %v2139_v31, %v1839_v17 }
0x2077   :  { %v1844_v39 = vsel %vm1843_vm9, %v2139_v31, %v1840_v38 }
0x2078   :  { %v1855_v57 = vmul.f32 %v1844_v39, %v1821_v7 }
0x207a   :  { %v1861_v12 = vmul.f32 %v1954_v24, %v1855_v57 }
0x207c   :  { %v1867_v42 = vadd.f32 %v1955_v27, %v1861_v12 }
0x207e   :  { %1869 = vst.msk [vmem:[%s3013_s9] sm:$0xff] %vm162_vm1, %v1867_v42 }
0x207f   :  { %2367 = dma.done.wait [#allocation5], 32  }
0x2080   :  { %2368 = vsyncadd [#allocation5], 4294967264 }
0x2081   :  { %1895 = vsyncpa [#allocation4], 1 }
0x2082   :  { %1896 = vsyncpa [#allocation7], 1 }
0x2083   :  { %1897 = vsyncpa [#allocation10], 1 }
0x2084   :  { %1898 = vsyncpa [#allocation13], 1 }
0x2085   :  { %1899 = vsyncpa [#allocation16], 1 }
0x2086   :  { %1900 = vsyncpa [#allocation5], 1 }

// kernel: _lambda_.3
= control target key start
LH: loop header
LB: loop body
LE: loop exit
PB: predicated region body
PF: predicated region fallthrough
CT: control target
= control target key end

     0   :  { %16 = vsyncpa [#allocation4], 0  ;;  %s3002_s0 = inlined_call_operand.vmem [shape: f32[2,8,4], index: 0, kind: input, shape index: {}]   ;;  %s3003_s1 = inlined_call_operand.hbm [shape: f32[4,96], index: 1, kind: input, shape index: {}]   ;;  %s3004_s2 = inlined_call_operand.hbm [shape: f32[32,64], index: 2, kind: input, shape index: {}]   ;;  %s3005_s3 = inlined_call_operand.hbm [shape: f32[32,32], index: 3, kind: input, shape index: {}]   ;;  %s3006_s4 = inlined_call_operand.hbm [shape: f32[1,32], index: 4, kind: input, shape index: {}]   ;;  %s3007_s5 = inlined_call_operand.hbm [shape: f32[1,32], index: 5, kind: input, shape index: {}]   ;;  %s3008_s6 = inlined_call_operand.hbm [shape: f32[1,32], index: 6, kind: input, shape index: {}]   ;;  %s3009_s7 = inlined_call_operand.hbm [shape: f32[1,32], index: 7, kind: input, shape index: {}]   ;;  %s3010_s8 = inlined_call_operand.hbm [shape: f32[1,32], index: 8, kind: input, shape index: {}]   ;;  %s3011_s9 = inlined_call_operand.vmem [shape: f32[2,8,32], index: 9, kind: output, shape index: {0}]   ;;  %s3012_s10 = inlined_call_operand.hbm [shape: f32[2,32], index: 10, kind: output, shape index: {1}]  }
   0x1   :  { %17 = vsyncpa [#allocation7], 0 }
   0x2   :  { %18 = vsyncpa [#allocation10], 0 }
   0x3   :  { %19 = vsyncpa [#allocation13], 0 }
   0x4   :  { %20 = vsyncpa [#allocation16], 0  ;;  %s39_s15 = sshll.u32 %s3004_s2, 4  ;;  %s40_s15 = int_to_ptr.hbm [resolvable:$true] %s39_s15 }
   0x5   :  { %21 = vsyncpa [#allocation5], 0  ;;  %s2370_s16 = smov [#allocation6]   ;;  %s66_s20 = sshll.u32 %s3006_s4, 4  ;;  %s67_s20 = int_to_ptr.hbm [resolvable:$true] %s66_s20 }
   0x6   :  { %s41_s17 = sshll.u32 %s2370_s16, 4  ;;  %s2371_s21 = smov 128   ;;  %s42_s17 = int_to_ptr.vmem [resolvable:$true] %s41_s17 }
   0x7   :  { %s2372_s22 = smov 8   ;;  %s2373_s23 = smov [#allocation9]  }
   0x8   :  { %47 = dma.hbm_to_vmem [thread:$0]  %s40_s15, 512, %s42_s17, [#allocation7], %s2371_s21, %s2371_s21, %s2372_s22  }
   0x9   :  { %s68_s24 = sshll.u32 %s2373_s23, 4  ;;  %s88_s26 = sshll.u32 %s3008_s6, 4  ;;  %s69_s24 = int_to_ptr.vmem [resolvable:$true] %s68_s24  ;;  %s89_s26 = int_to_ptr.hbm [resolvable:$true] %s88_s26 }
   0xa   :  { %71 = dma.hbm_to_vmem [thread:$0]  %s67_s20, 16, %s69_s24, [#allocation10]  }
   0xb   :  { %s29_s4 = sshll.u32 %s3003_s1, 4  ;;  %s2374_s29 = smov [#allocation12]   ;;  %s30_s4 = int_to_ptr.hbm [resolvable:$true] %s29_s4 }
   0xc   :  { %s90_s30 = sshll.u32 %s2374_s29, 4  ;;  %s2375_s11 = smov [#allocation3]   ;;  %s91_s30 = int_to_ptr.vmem [resolvable:$true] %s90_s30 }
   0xd   :  { %93 = dma.hbm_to_vmem [thread:$0]  %s89_s26, 16, %s91_s30, [#allocation13]  }
   0xe   :  { %s31_s12 = sshll.u32 %s2375_s11, 4  ;;  %s52_s15 = sshll.u32 %s3005_s3, 4  ;;  %s32_s12 = int_to_ptr.vmem [resolvable:$true] %s31_s12  ;;  %s53_s15 = int_to_ptr.hbm [resolvable:$true] %s52_s15 }
   0xf   :  { %34 = dma.hbm_to_vmem [thread:$0]  %s30_s4, 64, %s32_s12, [#allocation4]  }
  0x10   :  { %s77_s17 = sshll.u32 %s3007_s5, 4  ;;  %s2376_s18 = smov [#allocation8]   ;;  %s78_s17 = int_to_ptr.hbm [resolvable:$true] %s77_s17 }
  0x11   :  { %s54_s1 = sshll.u32 %s2376_s18, 4  ;;  %s2377_s19 = smov [#allocation11]   ;;  %s55_s1 = int_to_ptr.vmem [resolvable:$true] %s54_s1 }
  0x12   :  { %60 = dma.hbm_to_vmem [thread:$0]  %s53_s15, 512, %s55_s1, [#allocation7], %s2371_s21, %s2371_s21, %s2372_s22  }
  0x13   :  { %s79_s20 = sshll.u32 %s2377_s19, 4  ;;  %s99_s3 = sshll.u32 %s3009_s7, 4  ;;  %s80_s20 = int_to_ptr.vmem [resolvable:$true] %s79_s20  ;;  %s100_s3 = int_to_ptr.hbm [resolvable:$true] %s99_s3 }
  0x14   :  { %82 = dma.hbm_to_vmem [thread:$0]  %s78_s17, 16, %s80_s20, [#allocation10]  }
  0x15   :  { %s110_s5 = sshll.u32 %s3010_s8, 4  ;;  %s2378_s26 = smov [#allocation14]   ;;  %s111_s5 = int_to_ptr.hbm [resolvable:$true] %s110_s5 }
  0x16   :  { %s101_s27 = sshll.u32 %s2378_s26, 4  ;;  %s2379_s28 = smov [#allocation15]   ;;  %s102_s27 = int_to_ptr.vmem [resolvable:$true] %s101_s27 }
  0x17   :  { %104 = dma.hbm_to_vmem [thread:$0]  %s100_s3, 16, %s102_s27, [#allocation13]  }
  0x18   :  { %s112_s21 = sshll.u32 %s2379_s28, 4  ;;  %s113_s21 = int_to_ptr.vmem [resolvable:$true] %s112_s21 }
  0x19   :  { %115 = dma.hbm_to_vmem [thread:$0]  %s111_s5, 16, %s113_s21, [#allocation16]  }
  0x1a   :  { %2358 = dma.done.wait [#allocation4], 64  }
  0x1b   :  { %2359 = vsyncadd [#allocation4], 4294967232 }
  0x1c   :  { %2360 = dma.done.wait [#allocation7], 1024  }
  0x1d   :  { %2361 = vsyncadd [#allocation7], 4294966272 }
  0x1e   :  { %2362 = dma.done.wait [#allocation10], 32  }
  0x1f   :  { %2363 = vsyncadd [#allocation10], 4294967264 }
  0x20   :  { %2364 = dma.done.wait [#allocation13], 32  }
  0x21   :  { %2365 = vsyncadd [#allocation13], 4294967264 }
  0x22   :  { %2366 = dma.done.wait [#allocation16], 16  }
  0x23   :  { %2367 = vsyncadd [#allocation16], 4294967280  ;;  %vm152_vm0 = vcmask 254976   ;;  %v2380_v0 = vmov 0.0   ;;  %vm164_vm1 = vcmask 1043456   ;;  %vm157_vm2 = vcmask 31744  }
  0x24   :  { %153 = vst.msk [vmem:[#allocation2] sm:$0x3] %vm152_vm0, %v2380_v0  ;;  %v156_v1 = vld [vmem:[#allocation3] sm:$0xf]  ;;  %v2478_v4 = vld [vmem:[#allocation6 + $0x10] sm:$0xff]  ;;  %v2481_v5 = vld [vmem:[#allocation6 + $0x8] sm:$0xff] }
  0x25   :  { %v2472_v2 = vld [vmem:[#allocation6 + $0x18] sm:$0xff]  ;;  %1901 = vmatpush.msk.msra.mxu0 %vm164_vm1, %v156_v1  ;;  %v1952_v6 = vld [vmem:[#allocation11] ss:$0 sm:$0xff]  ;;  %vm199_vm3 = vcmask 261120   ;;  %s2381_s22 = smov 32   ;;  %vm284_vm4 = vcmask 1041409  }
  0x26   :  { %v154_v3 = vld [vmem:[%s3002_s0] sm:$0xff]  ;;  %215 = vmatpush.msra.mxu1 %v2472_v2  ;;  %422 = vmatpush.msra.mxu3 %v2472_v2  ;;  %v155_v9 = vld [vmem:[%s3002_s0 + $0x8] sm:$0xff]  ;;  %vm287_vm5 = vcmask 517376   ;;  %s2382_s0 = smov 96   ;;  %v330_v55 = vld [vmem:[#allocation8 + $0x10] sm:$0xff]  ;;  %s2383_s30 = smov 64  }
  0x27   :  { %1902 = vmatmul.msk.f32.vlgmr.msra.gmra.mxu0 %vm157_vm2, %v154_v3  ;;  %v2486_v7 = vld [vmem:[#allocation6] sm:$0xff]  ;;  %276 = vrot.lane.b32.xlu0 %v1952_v6, %s2381_s22  ;;  %v331_v54 = vld [vmem:[#allocation8 + $0x18] sm:$0xff]  ;;  %v329_v56 = vld [vmem:[#allocation8 + $0x8] sm:$0xff]  ;;  %vm397_vm10 = vcmask 253952   ;;  %vm483_vm15 = vcmask 1042434   ;;  %vm507_vm1 = vcmask 256001  }
  0x28   :  { %216 = vmatpush.msra.mxu1 %v2478_v4  ;;  %815 = vmatpush.msrb.mxu0 %v2472_v2  ;;  %v2512_v15 = vld [vmem:[#allocation9] ss:$0 sm:$0xff]  ;;  %s2385_s17 = smov [#allocation17]   ;;  %s1885_s20 = sshll.u32 %s3012_s10, 4  ;;  %s1886_s20 = int_to_ptr.hbm [resolvable:$true] %s1885_s20 }
  0x29   :  { %423 = vmatpush.msra.mxu3 %v2478_v4  ;;  %352 = vmatpush.msra.mxu2 %v331_v54  ;;  %v328_v57 = vld [vmem:[#allocation8] sm:$0xff]  ;;  %s1883_s18 = sshll.u32 %s2385_s17, 4  ;;  %s1884_s18 = int_to_ptr.vmem [resolvable:$true] %s1883_s18 }
  0x2a   :  { %217 = vmatpush.msra.mxu1 %v2481_v5  ;;  %816 = vmatpush.msrb.mxu0 %v2478_v4 }
  0x2b   :  { %v2490_v8 = vld [vmem:[#allocation2] sm:$0x3]  ;;  %424 = vmatpush.msra.mxu3 %v2481_v5  ;;  %353 = vmatpush.msra.mxu2 %v330_v55 }
  0x2c   :  { %218 = vmatpush.msra.mxu1 %v2486_v7  ;;  %817 = vmatpush.msrb.mxu0 %v2481_v5  ;;  %v319_v17 = vrot.slane %v2490_v8, 1 }
  0x2d   :  { %1904 = vmatmul.msk.f32.vlgmr.msra.gmra.mxu1 %vm199_vm3, %v2490_v8  ;;  %425 = vmatpush.msra.mxu3 %v2486_v7 }
  0x2e   :  { %818 = vmatpush.msrb.mxu0 %v2486_v7  ;;  %322 = vrot.lane.b32.xlu2 %v319_v17, %s2381_s22 }
  0x2f   :  { %1903 = vmatmul.msk.f32.gmra.mxu0 %vm157_vm2, %v155_v9  ;;  %551 = vmatpush.msrb.mxu1 %v331_v54 }
  0x30   :  { %748 = vmatpush.msrb.mxu3 %v331_v54  ;;  %354 = vmatpush.msra.mxu2 %v329_v56 }
  0x31   :  { %552 = vmatpush.msrb.mxu1 %v330_v55 }
  0x32   :  { %749 = vmatpush.msrb.mxu3 %v330_v55  ;;  %355 = vmatpush.msra.mxu2 %v328_v57 }
  0x33   :  { %553 = vmatpush.msrb.mxu1 %v329_v56 }
  0x34   :  { %750 = vmatpush.msrb.mxu3 %v329_v56  ;;  %616 = vmatpush.msrb.mxu2 %v2472_v2 }
  0x35   :  { %554 = vmatpush.msrb.mxu1 %v328_v57 }
  0x36   :  { %320 = vrot.lane.b32.xlu2 %v2490_v8, %s2381_s22  ;;  %751 = vmatpush.msrb.mxu3 %v328_v57 }
  0x37   :  { %947 = vmatpush.msra.mxu1 %v331_v54  ;;  %617 = vmatpush.msrb.mxu2 %v2478_v4 }
  0x39   :  { %948 = vmatpush.msra.mxu1 %v330_v55  ;;  %618 = vmatpush.msrb.mxu2 %v2481_v5 }
  0x3b   :  { %949 = vmatpush.msra.mxu1 %v329_v56  ;;  %619 = vmatpush.msrb.mxu2 %v2486_v7 }
  0x3d   :  { %950 = vmatpush.msra.mxu1 %v328_v57 }
  0x88   :  { %v323_v59 = vpop.permute.xlu2 %322 }
  0x90   :  { %v321_v0 = vpop.permute.xlu2 %320 }
  0x99   :  { %v2519_v22 = vpop.permute.xlu0 %276 }
  0xa4   :  { %v2505_v10 = vpop.f32.mrf.mxu0 }
  0xaa   :  { %v220_v11 = vpop.f32.mrf.mxu1 }
  0xab   :  { %v224_v12 = vrot.slane %v220_v11, 1  ;;  %v2508_v13 = vadd.f32 %v220_v11, %v2505_v10  ;;  %v1954_v11 = vld [vmem:[#allocation12] ss:$0 sm:$0xff] }
  0xac   :  { %v2510_v14 = vpop.f32.mrf.mxu0 }
  0xad   :  { %v228_v16 = vadd.f32 %v224_v12, %v2510_v14  ;;  %1957 = vtanh.f32 %v2508_v13 }
  0xaf   :  { %1959 = vtanh.f32 %v228_v16  ;;  %v233_v18 = vadd.f32 %v2512_v15, %v228_v16 }
  0xb1   :  { %v1906_v19 = vmul.f32 -1.442695, %v233_v18 }
  0xb3   :  { %1961 = vpow2.f32 %v1906_v19  ;;  %v1958_v20 = vpop.eup %1957 }
  0xb4   :  { %v279_v24 = vmul.f32 %v1958_v20, %v2519_v22 }
  0xb5   :  { %v1960_v21 = vpop.eup %1959 }
  0xb6   :  { %v280_v23 = vmul.f32 %v1960_v21, %v2519_v22 }
  0xb8   :  { %v283_v25 = vrot.slane %v280_v23, 7 }
  0xb9   :  { %v1962_v26 = vpop.eup %1961 }
  0xba   :  { %v285_v27 = vsel %vm284_vm4, %v283_v25, %v279_v24  ;;  %v241_v28 = vadd.f32 1.0, %v1962_v26 }
  0xbb   :  { %v288_v29 = vsel %vm287_vm5, %v285_v27, -inf }
  0xbc   :  { %289 = vmax.xlane.f32.xlu0 %v288_v29  ;;  %1963 = vrcp.f32 %v241_v28  ;;  %v268_v33 = vand.u32 2147483648, %v241_v28  ;;  %v266_v35 = vand.u32 2147483647, %v241_v28  ;;  %vm262_vm7 = vweird.f32 %v241_v28 }
  0xbe   :  { %v269_v37 = vor.u32 1.1754944e-38, %v268_v33  ;;  %vm267_vm9 = vcmp.eq.f32.partialorder %v266_v35, 8.507059e+37 }
  0xc2   :  { %v1964_v30 = vpop.eup %1963 }
  0xc3   :  { %v258_v31 = vmul.f32 %v1964_v30, %v241_v28  ;;  %vm263_vm6 = vweird.f32 %v1964_v30 }
  0xc4   :  { %vm264_vm8 = vmor %vm262_vm7, %vm263_vm6 }
  0xc5   :  { %v259_v32 = vsub.f32 1.0, %v258_v31 }
  0xc7   :  { %v260_v34 = vmul.f32 %v1964_v30, %v259_v32 }
  0xc9   :  { %v261_v36 = vadd.f32 %v1964_v30, %v260_v34 }
  0xcb   :  { %v265_v38 = vsel %vm264_vm8, %v1964_v30, %v261_v36  ;;  %vm591_vm8 = vcmask 254977  }
  0xcc   :  { %v2526_v39 = vsel %vm267_vm9, %v269_v37, %v265_v38 }
  0xcd   :  { %v380_v40 = vsub.f32 1.0, %v2526_v39 }
  0xcf   :  { %v2529_v41 = vmul.f32 %v380_v40, %v319_v17 }
 0x12f   :  { %v290_v42 = vpop.xlane.xlu0 %289 }
 0x130   :  { %v292_v43 = vrot.slane %v290_v42, 1  ;;  %v295_v44 = vsub.f32 %v279_v24, %v290_v42  ;;  %v232_v24 = vadd.f32 %v2512_v15, %v2508_v13 }
 0x132   :  { %v296_v45 = vsub.f32 %v280_v23, %v292_v43  ;;  %v297_v46 = vmul.f32 1.442695, %v295_v44  ;;  %v1905_v25 = vmul.f32 -1.442695, %v232_v24 }
 0x134   :  { %v299_v47 = vmul.f32 1.442695, %v296_v45 }
 0x136   :  { %1965 = vpow2.f32 %v299_v47 }
 0x137   :  { %1967 = vpow2.f32 %v297_v46 }
 0x13c   :  { %v1966_v48 = vpop.eup %1965 }
 0x13d   :  { %v303_v49 = vrot.slane %v1966_v48, 7  ;;  %v1968_v50 = vpop.eup %1967 }
 0x13f   :  { %v304_v51 = vsel %vm284_vm4, %v303_v49, %v1968_v50 }
 0x140   :  { %305 = vrot.lane.b32.xlu1 %v304_v51, %s2382_s0 }
 0x1b2   :  { %v306_v52 = vpop.permute.xlu1 %305 }
 0x1b3   :  { %v309_v53 = vsel %vm152_vm0, %v306_v52, 0.0  ;;  %vm486_vm0 = vcmask 518401  }
 0x1b4   :  { %310 = vadd.xlane.f32.xlu1 %v309_v53 }
 0x227   :  { %v311_v58 = vpop.xlane.xlu1 %310 }
 0x228   :  { %1969 = vrcp.f32 %v311_v58 }
 0x22e   :  { %v1970_v60 = vpop.eup %1969 }
 0x22f   :  { %v314_v61 = vrot.slane %v1970_v60, 1  ;;  %v317_v63 = vmul.f32 %v1970_v60, %v1968_v50 }
 0x231   :  { %v318_v62 = vmul.f32 %v1966_v48, %v314_v61  ;;  %v326_v6 = vmul.f32 %v321_v0, %v317_v63 }
 0x233   :  { %v327_v1 = vmul.f32 %v323_v59, %v318_v62 }
 0x235   :  { %v334_v3 = vrot.slane %v327_v1, 7 }
 0x237   :  { %v335_v4 = vsel %vm284_vm4, %v334_v3, %v326_v6 }
 0x238   :  { %336 = vrot.lane.b32.xlu2 %v335_v4, %s2382_s0 }
 0x292   :  { %v337_v5 = vpop.permute.xlu2 %336 }
 0x293   :  { %1907 = vmatmul.msk.f32.vlgmr.msra.gmra.mxu2 %vm199_vm3, %v337_v5 }
 0x294   :  { %1014 = vmatpush.msra.mxu2 %v2472_v2 }
 0x316   :  { %v357_v7 = vpop.f32.mrf.mxu2 }
 0x317   :  { %362 = vrot.lane.b32.xlu2 %v357_v7, %s2383_s30  ;;  %v361_v9 = vrot.slane %v357_v7, 1 }
 0x31f   :  { %364 = vrot.lane.b32.xlu2 %v361_v9, %s2383_s30 }
 0x327   :  { %372 = vrot.lane.b32.xlu2 %v1954_v11, %s2383_s30 }
 0x371   :  { %v363_v12 = vpop.permute.xlu2 %362 }
 0x372   :  { %v368_v17 = vadd.f32 %v363_v12, %v2505_v10 }
 0x379   :  { %v365_v16 = vpop.permute.xlu2 %364 }
 0x37a   :  { %v369_v18 = vadd.f32 %v365_v16, %v2510_v14 }
 0x381   :  { %v2547_v19 = vpop.permute.xlu2 %372 }
 0x382   :  { %v376_v2 = vadd.f32 %v2547_v19, %v369_v18  ;;  %v375_v20 = vadd.f32 %v2547_v19, %v368_v17 }
 0x384   :  { %1971 = vtanh.f32 %v376_v2 }
 0x385   :  { %1973 = vtanh.f32 %v375_v20 }
 0x386   :  { %1975 = vpow2.f32 %v1905_v25 }
 0x38a   :  { %v1972_v21 = vpop.eup %1971 }
 0x38b   :  { %v1974_v23 = vpop.eup %1973  ;;  %389 = vrot.lane.b32.xlu2 %v1972_v21, %s2383_s30 }
 0x38c   :  { %387 = vrot.lane.b32.xlu0 %v1974_v23, %s2383_s30  ;;  %v1976_v26 = vpop.eup %1975 }
 0x38d   :  { %v240_v27 = vadd.f32 1.0, %v1976_v26 }
 0x38f   :  { %1977 = vrcp.f32 %v240_v27  ;;  %v253_v35 = vand.u32 2147483648, %v240_v27  ;;  %vm247_vm12 = vweird.f32 %v240_v27  ;;  %v251_v36 = vand.u32 2147483647, %v240_v27 }
 0x391   :  { %v254_v38 = vor.u32 1.1754944e-38, %v253_v35  ;;  %vm252_vm14 = vcmp.eq.f32.partialorder %v251_v36, 8.507059e+37 }
 0x395   :  { %v1978_v28 = vpop.eup %1977 }
 0x396   :  { %v243_v30 = vmul.f32 %v1978_v28, %v240_v27  ;;  %vm248_vm11 = vweird.f32 %v1978_v28 }
 0x397   :  { %vm249_vm13 = vmor %vm247_vm12, %vm248_vm11 }
 0x398   :  { %v244_v33 = vsub.f32 1.0, %v243_v30 }
 0x39a   :  { %v245_v13 = vmul.f32 %v1978_v28, %v244_v33 }
 0x39c   :  { %v246_v34 = vadd.f32 %v1978_v28, %v245_v13 }
 0x39e   :  { %v250_v37 = vsel %vm249_vm13, %v1978_v28, %v246_v34 }
 0x3e5   :  { %v390_v29 = vpop.permute.xlu2 %389 }
 0x3e6   :  { %v394_v31 = vmul.f32 %v390_v29, %v2526_v39  ;;  %v255_v39 = vsel %vm252_vm14, %v254_v38, %v250_v37  ;;  %vm678_vm14 = vcmask 1043459  }
 0x3e7   :  { %v379_v40 = vsub.f32 1.0, %v255_v39 }
 0x3e8   :  { %v396_v32 = vadd.f32 %v394_v31, %v2529_v41 }
 0x3e9   :  { %v383_v41 = vmul.f32 %v379_v40, %v2490_v8 }
 0x3ea   :  { %399 = vst.msk [vmem:[%s3011_s9 + $0x8] sm:$0x1] %vm397_vm10, %v396_v32  ;;  %v2562_v44 = vrot.slane %v396_v32, 7 }
 0x3fe   :  { %v388_v42 = vpop.permute.xlu0 %387 }
 0x3ff   :  { %v393_v43 = vmul.f32 %v388_v42, %v255_v39 }
 0x401   :  { %v2564_v45 = vadd.f32 %v393_v43, %v383_v41 }
 0x403   :  { %v407_v46 = vsel %vm284_vm4, %v2562_v44, %v2564_v45  ;;  %398 = vst.msk [vmem:[%s3011_s9] sm:$0x1] %vm397_vm10, %v2564_v45  ;;  %v518_v6 = vrot.slane %v2564_v45, 7 }
 0x404   :  { %1908 = vmatmul.msk.f32.vlgmr.msra.gmra.mxu3 %vm199_vm3, %v407_v46 }
 0x487   :  { %v427_v47 = vpop.f32.mrf.mxu3 }
 0x488   :  { %v431_v48 = vrot.slane %v427_v47, 7  ;;  %v2576_v8 = vadd.f32 %v427_v47, %v2510_v14 }
 0x48a   :  { %v2579_v49 = vadd.f32 %v431_v48, %v2505_v10  ;;  %1979 = vtanh.f32 %v2576_v8  ;;  %v437_v47 = vadd.f32 %v2512_v15, %v2576_v8 }
 0x48c   :  { %1981 = vtanh.f32 %v2579_v49  ;;  %v436_v34 = vadd.f32 %v2512_v15, %v2579_v49 }
 0x48e   :  { %v1909_v35 = vmul.f32 -1.442695, %v436_v34 }
 0x490   :  { %v1980_v50 = vpop.eup %1979 }
 0x491   :  { %v479_v51 = vmul.f32 %v1980_v50, %v2519_v22 }
 0x492   :  { %v1982_v52 = vpop.eup %1981 }
 0x493   :  { %v478_v53 = vmul.f32 %v1982_v52, %v2519_v22  ;;  %v482_v54 = vrot.slane %v479_v51, 7 }
 0x495   :  { %v484_v55 = vsel %vm483_vm15, %v482_v54, %v478_v53 }
 0x496   :  { %v487_v56 = vsel %vm486_vm0, %v484_v55, -inf  ;;  %vm702_vm0 = vcmask 257026  }
 0x497   :  { %488 = vmax.xlane.f32.xlu1 %v487_v56 }
 0x50a   :  { %v489_v57 = vpop.xlane.xlu1 %488 }
 0x50b   :  { %v491_v58 = vrot.slane %v489_v57, 1  ;;  %v494_v59 = vsub.f32 %v478_v53, %v489_v57 }
 0x50d   :  { %v495_v60 = vsub.f32 %v479_v51, %v491_v58  ;;  %v496_v61 = vmul.f32 1.442695, %v494_v59  ;;  %v1910_v51 = vmul.f32 -1.442695, %v437_v47 }
 0x50f   :  { %v498_v62 = vmul.f32 1.442695, %v495_v60 }
 0x511   :  { %1983 = vpow2.f32 %v498_v62 }
 0x512   :  { %1985 = vpow2.f32 %v496_v61 }
 0x517   :  { %v1984_v63 = vpop.eup %1983 }
 0x518   :  { %v502_v0 = vrot.slane %v1984_v63, 7  ;;  %v1986_v1 = vpop.eup %1985 }
 0x51a   :  { %v503_v3 = vsel %vm483_vm15, %v502_v0, %v1986_v1  ;;  %vm681_vm15 = vcmask 519426  }
 0x51b   :  { %504 = vrot.lane.b32.xlu2 %v503_v3, %s2382_s0 }
 0x523   :  { %519 = vrot.lane.b32.xlu2 %v518_v6, %s2381_s22 }
 0x575   :  { %v505_v4 = vpop.permute.xlu2 %504 }
 0x576   :  { %v508_v5 = vsel %vm507_vm1, %v505_v4, 0.0 }
 0x577   :  { %509 = vadd.xlane.f32.xlu1 %v508_v5 }
 0x57d   :  { %v520_v16 = vpop.permute.xlu2 %519 }
 0x590   :  { %521 = vrot.lane.b32.xlu1 %v2562_v44, %s2381_s22 }
 0x5ea   :  { %v510_v7 = vpop.xlane.xlu1 %509 }
 0x5eb   :  { %1987 = vrcp.f32 %v510_v7 }
 0x5f1   :  { %v1988_v9 = vpop.eup %1987 }
 0x5f2   :  { %v516_v11 = vmul.f32 %v1988_v9, %v1986_v1  ;;  %v513_v12 = vrot.slane %v1988_v9, 1 }
 0x5f4   :  { %v525_v17 = vmul.f32 %v520_v16, %v516_v11  ;;  %v517_v18 = vmul.f32 %v1984_v63, %v513_v12 }
 0x5f6   :  { %v533_v21 = vrot.slane %v525_v17, 1 }
 0x602   :  { %v522_v2 = vpop.permute.xlu1 %521 }
 0x603   :  { %v526_v20 = vmul.f32 %v522_v2, %v517_v18 }
 0x605   :  { %v534_v23 = vsel %vm284_vm4, %v526_v20, %v533_v21 }
 0x606   :  { %535 = vrot.lane.b32.xlu0 %v534_v23, %s2382_s0 }
 0x678   :  { %v536_v24 = vpop.permute.xlu0 %535 }
 0x679   :  { %1911 = vmatmul.msk.f32.vlgmr.msrb.gmra.mxu1 %vm199_vm3, %v536_v24 }
 0x6f6   :  { %v556_v25 = vpop.f32.mrf.mxu1 }
 0x6f7   :  { %v560_v26 = vrot.slane %v556_v25, 7  ;;  %563 = vrot.lane.b32.xlu0 %v556_v25, %s2383_s30 }
 0x6f9   :  { %561 = vrot.lane.b32.xlu2 %v560_v26, %s2383_s30 }
 0x753   :  { %v562_v27 = vpop.permute.xlu2 %561 }
 0x754   :  { %v567_v28 = vadd.f32 %v562_v27, %v2505_v10 }
 0x756   :  { %v569_v29 = vadd.f32 %v567_v28, %v2547_v19 }
 0x758   :  { %1989 = vtanh.f32 %v569_v29 }
 0x75e   :  { %v1990_v30 = vpop.eup %1989 }
 0x75f   :  { %581 = vrot.lane.b32.xlu2 %v1990_v30, %s2383_s30 }
 0x769   :  { %v564_v31 = vpop.permute.xlu0 %563 }
 0x76a   :  { %v568_v32 = vadd.f32 %v564_v31, %v2510_v14 }
 0x76c   :  { %v570_v33 = vadd.f32 %v568_v32, %v2547_v19 }
 0x76e   :  { %1991 = vtanh.f32 %v570_v33 }
 0x76f   :  { %1993 = vpow2.f32 %v1909_v35 }
 0x774   :  { %v1992_v13 = vpop.eup %1991 }
 0x775   :  { %583 = vrot.lane.b32.xlu0 %v1992_v13, %s2383_s30  ;;  %v1994_v36 = vpop.eup %1993 }
 0x776   :  { %v444_v37 = vadd.f32 1.0, %v1994_v36 }
 0x778   :  { %1995 = vrcp.f32 %v444_v37  ;;  %v457_v43 = vand.u32 2147483648, %v444_v37  ;;  %vm451_vm5 = vweird.f32 %v444_v37  ;;  %v455_v46 = vand.u32 2147483647, %v444_v37 }
 0x779   :  { %1997 = vpow2.f32 %v1910_v51 }
 0x77a   :  { %v458_v49 = vor.u32 1.1754944e-38, %v457_v43  ;;  %vm456_vm7 = vcmp.eq.f32.partialorder %v455_v46, 8.507059e+37 }
 0x77e   :  { %v1996_v38 = vpop.eup %1995 }
 0x77f   :  { %v447_v39 = vmul.f32 %v1996_v38, %v444_v37  ;;  %vm452_vm2 = vweird.f32 %v1996_v38  ;;  %v1998_v57 = vpop.eup %1997 }
 0x780   :  { %vm453_vm6 = vmor %vm451_vm5, %vm452_vm2  ;;  %v445_v8 = vadd.f32 1.0, %v1998_v57 }
 0x781   :  { %v448_v40 = vsub.f32 1.0, %v447_v39 }
 0x782   :  { %1999 = vrcp.f32 %v445_v8  ;;  %v472_v45 = vand.u32 2147483648, %v445_v8  ;;  %vm466_vm11 = vweird.f32 %v445_v8  ;;  %v470_v63 = vand.u32 2147483647, %v445_v8 }
 0x783   :  { %v449_v42 = vmul.f32 %v1996_v38, %v448_v40 }
 0x784   :  { %v473_v1 = vor.u32 1.1754944e-38, %v472_v45  ;;  %vm471_vm13 = vcmp.eq.f32.partialorder %v470_v63, 8.507059e+37 }
 0x785   :  { %v450_v41 = vadd.f32 %v1996_v38, %v449_v42 }
 0x787   :  { %v454_v48 = vsel %vm453_vm6, %v1996_v38, %v450_v41 }
 0x788   :  { %v459_v50 = vsel %vm456_vm7, %v458_v49, %v454_v48  ;;  %v2000_v58 = vpop.eup %1999  ;;  %vm789_vm7 = vcmask 256002  }
 0x789   :  { %v573_v52 = vsub.f32 1.0, %v459_v50  ;;  %v462_v59 = vmul.f32 %v2000_v58, %v445_v8  ;;  %vm467_vm9 = vweird.f32 %v2000_v58 }
 0x78a   :  { %vm468_vm12 = vmor %vm466_vm11, %vm467_vm9 }
 0x78b   :  { %v577_v54 = vmul.f32 %v573_v52, %v518_v6  ;;  %v463_v60 = vsub.f32 1.0, %v462_v59 }
 0x78d   :  { %v464_v61 = vmul.f32 %v2000_v58, %v463_v60 }
 0x78f   :  { %v465_v62 = vadd.f32 %v2000_v58, %v464_v61 }
 0x791   :  { %v469_v0 = vsel %vm468_vm12, %v2000_v58, %v465_v62 }
 0x792   :  { %v474_v3 = vsel %vm471_vm13, %v473_v1, %v469_v0  ;;  %vm877_vm13 = vcmask 1044484  }
 0x793   :  { %v574_v6 = vsub.f32 1.0, %v474_v3 }
 0x795   :  { %v578_v5 = vmul.f32 %v574_v6, %v2562_v44 }
 0x7b9   :  { %v582_v53 = vpop.permute.xlu2 %581 }
 0x7ba   :  { %v587_v55 = vmul.f32 %v582_v53, %v459_v50 }
 0x7bc   :  { %v2611_v56 = vadd.f32 %v587_v55, %v577_v54 }
 0x7be   :  { %592 = vst.msk [vmem:[%s3011_s9] sm:$0x2] %vm591_vm8, %v2611_v56  ;;  %v600_v9 = vrot.slane %v2611_v56, 1  ;;  %v713_v37 = vrot.slane %v2611_v56, 7 }
 0x7e7   :  { %v584_v4 = vpop.permute.xlu0 %583 }
 0x7e8   :  { %v588_v7 = vmul.f32 %v584_v4, %v474_v3 }
 0x7ea   :  { %v2620_v11 = vadd.f32 %v588_v7, %v578_v5 }
 0x7ec   :  { %593 = vst.msk [vmem:[%s3011_s9 + $0x8] sm:$0x2] %vm591_vm8, %v2620_v11  ;;  %v601_v12 = vsel %vm284_vm4, %v2620_v11, %v600_v9  ;;  %v714_v38 = vrot.slane %v2620_v11, 7 }
 0x7ed   :  { %1912 = vmatmul.msk.f32.vlgmr.msrb.gmra.mxu2 %vm199_vm3, %v601_v12 }
 0x870   :  { %v621_v16 = vpop.f32.mrf.mxu2 }
 0x871   :  { %v625_v17 = vrot.slane %v621_v16, 6  ;;  %v626_v18 = vrot.slane %v621_v16, 7 }
 0x873   :  { %v2631_v44 = vadd.f32 %v625_v17, %v2505_v10  ;;  %v2634_v2 = vadd.f32 %v626_v18, %v2510_v14 }
 0x875   :  { %2001 = vtanh.f32 %v2631_v44  ;;  %v632_v3 = vadd.f32 %v2512_v15, %v2634_v2  ;;  %v631_v7 = vadd.f32 %v2512_v15, %v2631_v44 }
 0x876   :  { %2003 = vtanh.f32 %v2634_v2 }
 0x877   :  { %v1914_v6 = vmul.f32 -1.442695, %v632_v3  ;;  %v1913_v12 = vmul.f32 -1.442695, %v631_v7 }
 0x87b   :  { %v2002_v20 = vpop.eup %2001 }
 0x87c   :  { %v2004_v21 = vpop.eup %2003  ;;  %v673_v24 = vmul.f32 %v2002_v20, %v2519_v22 }
 0x87d   :  { %v674_v23 = vmul.f32 %v2004_v21, %v2519_v22 }
 0x87f   :  { %v677_v25 = vrot.slane %v674_v23, 7 }
 0x881   :  { %v679_v26 = vsel %vm678_vm14, %v677_v25, %v673_v24 }
 0x882   :  { %v682_v27 = vsel %vm681_vm15, %v679_v26, -inf  ;;  %vm901_vm15 = vcmask 258051  }
 0x883   :  { %683 = vmax.xlane.f32.xlu2 %v682_v27 }
 0x8f6   :  { %v684_v28 = vpop.xlane.xlu2 %683 }
 0x8f7   :  { %v686_v29 = vrot.slane %v684_v28, 1  ;;  %v689_v30 = vsub.f32 %v673_v24, %v684_v28 }
 0x8f9   :  { %v690_v31 = vsub.f32 %v674_v23, %v686_v29  ;;  %v691_v32 = vmul.f32 1.442695, %v689_v30 }
 0x8fb   :  { %v693_v33 = vmul.f32 1.442695, %v690_v31 }
 0x8fd   :  { %2005 = vpow2.f32 %v693_v33 }
 0x8fe   :  { %2007 = vpow2.f32 %v691_v32 }
 0x903   :  { %v2006_v13 = vpop.eup %2005 }
 0x904   :  { %v697_v34 = vrot.slane %v2006_v13, 7  ;;  %v2008_v35 = vpop.eup %2007 }
 0x906   :  { %v698_v36 = vsel %vm678_vm14, %v697_v34, %v2008_v35  ;;  %vm880_vm14 = vcmask 520451  }
 0x907   :  { %699 = vrot.lane.b32.xlu1 %v698_v36, %s2382_s0 }
 0x90f   :  { %715 = vrot.lane.b32.xlu1 %v713_v37, %s2381_s22 }
 0x917   :  { %717 = vrot.lane.b32.xlu1 %v714_v38, %s2381_s22 }
 0x979   :  { %v700_v39 = vpop.permute.xlu1 %699 }
 0x97a   :  { %v703_v40 = vsel %vm702_vm0, %v700_v39, 0.0 }
 0x97b   :  { %704 = vadd.xlane.f32.xlu0 %v703_v40 }
 0x981   :  { %v716_v41 = vpop.permute.xlu1 %715 }
 0x989   :  { %v718_v50 = vpop.permute.xlu1 %717 }
 0x9ee   :  { %v705_v42 = vpop.xlane.xlu0 %704 }
 0x9ef   :  { %2009 = vrcp.f32 %v705_v42 }
 0x9f5   :  { %v2010_v43 = vpop.eup %2009 }
 0x9f6   :  { %v708_v46 = vrot.slane %v2010_v43, 1  ;;  %v711_v47 = vmul.f32 %v2010_v43, %v2008_v35 }
 0x9f8   :  { %v712_v48 = vmul.f32 %v2006_v13, %v708_v46  ;;  %v721_v49 = vmul.f32 %v716_v41, %v711_v47 }
 0x9fa   :  { %v722_v51 = vmul.f32 %v718_v50, %v712_v48  ;;  %v729_v52 = vrot.slane %v721_v49, 2 }
 0x9fc   :  { %v730_v53 = vrot.slane %v722_v51, 1 }
 0x9fe   :  { %v731_v54 = vsel %vm284_vm4, %v730_v53, %v729_v52 }
 0x9ff   :  { %732 = vrot.lane.b32.xlu1 %v731_v54, %s2382_s0 }
 0xa71   :  { %v733_v55 = vpop.permute.xlu1 %732 }
 0xa72   :  { %1915 = vmatmul.msk.f32.vlgmr.msrb.gmra.mxu3 %vm199_vm3, %v733_v55 }
 0xaf5   :  { %v753_v57 = vpop.f32.mrf.mxu3 }
 0xaf6   :  { %v757_v8 = vrot.slane %v753_v57, 6  ;;  %v758_v58 = vrot.slane %v753_v57, 7 }
 0xaf8   :  { %761 = vrot.lane.b32.xlu2 %v758_v58, %s2383_s30  ;;  %759 = vrot.lane.b32.xlu1 %v757_v8, %s2383_s30 }
 0xb52   :  { %v762_v59 = vpop.permute.xlu2 %761 }
 0xb53   :  { %v766_v60 = vadd.f32 %v762_v59, %v2510_v14 }
 0xb55   :  { %v768_v61 = vadd.f32 %v766_v60, %v2547_v19 }
 0xb57   :  { %2011 = vtanh.f32 %v768_v61 }
 0xb5d   :  { %v2012_v62 = vpop.eup %2011 }
 0xb5e   :  { %781 = vrot.lane.b32.xlu0 %v2012_v62, %s2383_s30 }
 0xb6a   :  { %v760_v45 = vpop.permute.xlu1 %759 }
 0xb6b   :  { %v765_v63 = vadd.f32 %v760_v45, %v2505_v10 }
 0xb6d   :  { %v767_v0 = vadd.f32 %v765_v63, %v2547_v19 }
 0xb6f   :  { %2013 = vtanh.f32 %v767_v0 }
 0xb70   :  { %2015 = vpow2.f32 %v1914_v6 }
 0xb75   :  { %v2014_v1 = vpop.eup %2013 }
 0xb76   :  { %779 = vrot.lane.b32.xlu1 %v2014_v1, %s2383_s30  ;;  %v2016_v4 = vpop.eup %2015 }
 0xb77   :  { %v640_v5 = vadd.f32 1.0, %v2016_v4 }
 0xb79   :  { %2017 = vrcp.f32 %v640_v5  ;;  %v667_v24 = vand.u32 2147483648, %v640_v5  ;;  %vm661_vm2 = vweird.f32 %v640_v5  ;;  %v665_v2 = vand.u32 2147483647, %v640_v5 }
 0xb7a   :  { %2019 = vpow2.f32 %v1913_v12 }
 0xb7b   :  { %v668_v26 = vor.u32 1.1754944e-38, %v667_v24  ;;  %vm666_vm6 = vcmp.eq.f32.partialorder %v665_v2, 8.507059e+37 }
 0xb7f   :  { %v2018_v9 = vpop.eup %2017 }
 0xb80   :  { %v657_v16 = vmul.f32 %v2018_v9, %v640_v5  ;;  %v2020_v18 = vpop.eup %2019  ;;  %vm662_vm1 = vweird.f32 %v2018_v9 }
 0xb81   :  { %v639_v21 = vadd.f32 1.0, %v2020_v18  ;;  %vm663_vm5 = vmor %vm661_vm2, %vm662_vm1 }
 0xb82   :  { %v658_v17 = vsub.f32 1.0, %v657_v16 }
 0xb83   :  { %2021 = vrcp.f32 %v639_v21  ;;  %v652_v36 = vand.u32 2147483648, %v639_v21  ;;  %vm646_vm9 = vweird.f32 %v639_v21  ;;  %v650_v39 = vand.u32 2147483647, %v639_v21 }
 0xb84   :  { %v659_v20 = vmul.f32 %v2018_v9, %v658_v17 }
 0xb85   :  { %vm651_vm12 = vcmp.eq.f32.partialorder %v650_v39, 8.507059e+37 }
 0xb86   :  { %v660_v23 = vadd.f32 %v2018_v9, %v659_v20 }
 0xb88   :  { %v664_v25 = vsel %vm663_vm5, %v2018_v9, %v660_v23 }
 0xb89   :  { %v669_v27 = vsel %vm666_vm6, %v668_v26, %v664_v25  ;;  %v2022_v44 = vpop.eup %2021 }
 0xb8a   :  { %v772_v28 = vsub.f32 1.0, %v669_v27  ;;  %v642_v29 = vmul.f32 %v2022_v44, %v639_v21  ;;  %vm647_vm8 = vweird.f32 %v2022_v44 }
 0xb8b   :  { %vm648_vm11 = vmor %vm646_vm9, %vm647_vm8 }
 0xb8c   :  { %v776_v31 = vmul.f32 %v772_v28, %v714_v38  ;;  %v643_v13 = vsub.f32 1.0, %v642_v29  ;;  %v653_v38 = vor.u32 1.1754944e-38, %v652_v36 }
 0xb8e   :  { %v644_v34 = vmul.f32 %v2022_v44, %v643_v13 }
 0xb90   :  { %v645_v35 = vadd.f32 %v2022_v44, %v644_v34 }
 0xb92   :  { %v649_v11 = vsel %vm648_vm11, %v2022_v44, %v645_v35  ;;  %vm988_vm11 = vcmask 257027  }
 0xb93   :  { %v654_v40 = vsel %vm651_vm12, %v653_v38, %v649_v11  ;;  %vm1076_vm12 = vcmask 1045509  }
 0xb94   :  { %v771_v42 = vsub.f32 1.0, %v654_v40 }
 0xb96   :  { %v775_v43 = vmul.f32 %v771_v42, %v713_v37 }
 0xbd0   :  { %v782_v30 = vpop.permute.xlu0 %781 }
 0xbd1   :  { %v786_v32 = vmul.f32 %v782_v30, %v669_v27 }
 0xbd3   :  { %v2668_v33 = vadd.f32 %v786_v32, %v776_v31 }
 0xbd5   :  { %791 = vst.msk [vmem:[%s3011_s9 + $0x8] sm:$0x4] %vm789_vm7, %v2668_v33  ;;  %v799_v48 = vrot.slane %v2668_v33, 1  ;;  %v913_v9 = vrot.slane %v2668_v33, 7 }
 0xbe8   :  { %v780_v41 = vpop.permute.xlu1 %779 }
 0xbe9   :  { %v785_v46 = vmul.f32 %v780_v41, %v654_v40 }
 0xbeb   :  { %v2677_v47 = vadd.f32 %v785_v46, %v775_v43 }
 0xbed   :  { %790 = vst.msk [vmem:[%s3011_s9] sm:$0x4] %vm789_vm7, %v2677_v47  ;;  %v798_v49 = vrot.slane %v2677_v47, 2  ;;  %v912_v7 = vrot.slane %v2677_v47, 7 }
 0xbef   :  { %v800_v50 = vsel %vm284_vm4, %v799_v48, %v798_v49 }
 0xbf0   :  { %1916 = vmatmul.msk.f32.vlgmr.msrb.gmra.mxu0 %vm199_vm3, %v800_v50 }
 0xc6d   :  { %v820_v51 = vpop.f32.mrf.mxu0 }
 0xc6e   :  { %v824_v56 = vrot.slane %v820_v51, 5  ;;  %v825_v37 = vrot.slane %v820_v51, 6 }
 0xc70   :  { %v2689_v52 = vadd.f32 %v824_v56, %v2505_v10  ;;  %v2692_v53 = vadd.f32 %v825_v37, %v2510_v14  ;;  %v2724_v37 = vld [vmem:[#allocation6 + $0x10] sm:$0xff] }
 0xc71   :  { %1015 = vmatpush.msra.mxu2 %v2724_v37 }
 0xc72   :  { %2023 = vtanh.f32 %v2689_v52  ;;  %v830_v42 = vadd.f32 %v2512_v15, %v2689_v52  ;;  %v831_v41 = vadd.f32 %v2512_v15, %v2692_v53  ;;  %v2727_v52 = vld [vmem:[#allocation6 + $0x8] sm:$0xff]  ;;  %v2730_v15 = vld [vmem:[#allocation6] sm:$0xff] }
 0xc73   :  { %2025 = vtanh.f32 %v2692_v53  ;;  %1016 = vmatpush.msra.mxu2 %v2727_v52 }
 0xc74   :  { %v1917_v43 = vmul.f32 -1.442695, %v830_v42  ;;  %v1918_v46 = vmul.f32 -1.442695, %v831_v41 }
 0xc75   :  { %1017 = vmatpush.msra.mxu2 %v2730_v15 }
 0xc78   :  { %v2024_v54 = vpop.eup %2023 }
 0xc79   :  { %v2026_v55 = vpop.eup %2025  ;;  %v872_v8 = vmul.f32 %v2024_v54, %v2519_v22 }
 0xc7a   :  { %v873_v57 = vmul.f32 %v2026_v55, %v2519_v22 }
 0xc7c   :  { %v876_v58 = vrot.slane %v873_v57, 7 }
 0xc7e   :  { %v878_v59 = vsel %vm877_vm13, %v876_v58, %v872_v8 }
 0xc7f   :  { %v881_v60 = vsel %vm880_vm14, %v878_v59, -inf  ;;  %vm1100_vm14 = vcmask 259076  }
 0xc80   :  { %882 = vmax.xlane.f32.xlu1 %v881_v60 }
 0xcf3   :  { %v883_v61 = vpop.xlane.xlu1 %882 }
 0xcf4   :  { %v885_v62 = vrot.slane %v883_v61, 1  ;;  %v888_v45 = vsub.f32 %v872_v8, %v883_v61 }
 0xcf6   :  { %v889_v63 = vsub.f32 %v873_v57, %v885_v62  ;;  %v890_v0 = vmul.f32 1.442695, %v888_v45 }
 0xcf8   :  { %v892_v1 = vmul.f32 1.442695, %v889_v63 }
 0xcfa   :  { %2027 = vpow2.f32 %v892_v1 }
 0xcfb   :  { %2029 = vpow2.f32 %v890_v0 }
 0xd00   :  { %v2028_v3 = vpop.eup %2027 }
 0xd01   :  { %v896_v6 = vrot.slane %v2028_v3, 7  ;;  %v2030_v4 = vpop.eup %2029 }
 0xd03   :  { %v897_v5 = vsel %vm877_vm13, %v896_v6, %v2030_v4  ;;  %vm1079_vm13 = vcmask 521476  }
 0xd04   :  { %898 = vrot.lane.b32.xlu2 %v897_v5, %s2382_s0 }
 0xd0c   :  { %914 = vrot.lane.b32.xlu2 %v912_v7, %s2381_s22 }
 0xd14   :  { %916 = vrot.lane.b32.xlu2 %v913_v9, %s2381_s22 }
 0xd5e   :  { %v899_v12 = vpop.permute.xlu2 %898 }
 0xd5f   :  { %v902_v16 = vsel %vm901_vm15, %v899_v12, 0.0 }
 0xd60   :  { %903 = vadd.xlane.f32.xlu0 %v902_v16 }
 0xd66   :  { %v915_v18 = vpop.permute.xlu2 %914 }
 0xd6e   :  { %v917_v25 = vpop.permute.xlu2 %916 }
 0xdd3   :  { %v904_v17 = vpop.xlane.xlu0 %903 }
 0xdd4   :  { %2031 = vrcp.f32 %v904_v17 }
 0xdda   :  { %v2032_v20 = vpop.eup %2031 }
 0xddb   :  { %v907_v21 = vrot.slane %v2032_v20, 1  ;;  %v910_v23 = vmul.f32 %v2032_v20, %v2030_v4 }
 0xddd   :  { %v911_v24 = vmul.f32 %v2028_v3, %v907_v21  ;;  %v920_v2 = vmul.f32 %v915_v18, %v910_v23 }
 0xddf   :  { %v921_v26 = vmul.f32 %v917_v25, %v911_v24  ;;  %v928_v27 = vrot.slane %v920_v2, 3 }
 0xde1   :  { %v929_v44 = vrot.slane %v921_v26, 2 }
 0xde3   :  { %v930_v28 = vsel %vm284_vm4, %v929_v44, %v928_v27 }
 0xde4   :  { %931 = vrot.lane.b32.xlu2 %v930_v28, %s2382_s0 }
 0xe3e   :  { %v932_v29 = vpop.permute.xlu2 %931 }
 0xe3f   :  { %1919 = vmatmul.msk.f32.vlgmr.msra.gmra.mxu1 %vm199_vm3, %v932_v29 }
 0xebc   :  { %v952_v30 = vpop.f32.mrf.mxu1 }
 0xebd   :  { %v956_v31 = vrot.slane %v952_v30, 5  ;;  %v957_v32 = vrot.slane %v952_v30, 6 }
 0xebf   :  { %960 = vrot.lane.b32.xlu2 %v957_v32, %s2383_s30  ;;  %958 = vrot.lane.b32.xlu1 %v956_v31, %s2383_s30 }
 0xf19   :  { %v961_v13 = vpop.permute.xlu2 %960 }
 0xf1a   :  { %v965_v34 = vadd.f32 %v961_v13, %v2510_v14 }
 0xf1c   :  { %v967_v35 = vadd.f32 %v965_v34, %v2547_v19 }
 0xf1e   :  { %2033 = vtanh.f32 %v967_v35 }
 0xf24   :  { %v2034_v36 = vpop.eup %2033 }
 0xf25   :  { %980 = vrot.lane.b32.xlu0 %v2034_v36, %s2383_s30 }
 0xf31   :  { %v959_v39 = vpop.permute.xlu1 %958 }
 0xf32   :  { %v964_v11 = vadd.f32 %v959_v39, %v2505_v10 }
 0xf34   :  { %v966_v38 = vadd.f32 %v964_v11, %v2547_v19 }
 0xf36   :  { %2035 = vtanh.f32 %v966_v38 }
 0xf37   :  { %2037 = vpow2.f32 %v1917_v43 }
 0xf38   :  { %2039 = vpow2.f32 %v1918_v46 }
 0xf3c   :  { %v2036_v40 = vpop.eup %2035 }
 0xf3d   :  { %978 = vrot.lane.b32.xlu2 %v2036_v40, %s2383_s30  ;;  %v2038_v48 = vpop.eup %2037 }
 0xf3e   :  { %v2040_v49 = vpop.eup %2039  ;;  %v838_v50 = vadd.f32 1.0, %v2038_v48 }
 0xf3f   :  { %v839_v51 = vadd.f32 1.0, %v2040_v49 }
 0xf40   :  { %2041 = vrcp.f32 %v838_v50  ;;  %vm845_vm2 = vweird.f32 %v838_v50  ;;  %v851_v45 = vand.u32 2147483648, %v838_v50  ;;  %v849_v0 = vand.u32 2147483647, %v838_v50 }
 0xf41   :  { %2043 = vrcp.f32 %v839_v51  ;;  %v866_v62 = vand.u32 2147483648, %v839_v51  ;;  %vm860_vm5 = vweird.f32 %v839_v51  ;;  %v864_v63 = vand.u32 2147483647, %v839_v51 }
 0xf42   :  { %v852_v4 = vor.u32 1.1754944e-38, %v851_v45  ;;  %vm850_vm9 = vcmp.eq.f32.partialorder %v849_v0, 8.507059e+37 }
 0xf43   :  { %v867_v6 = vor.u32 1.1754944e-38, %v866_v62  ;;  %vm865_vm8 = vcmp.eq.f32.partialorder %v864_v63, 8.507059e+37 }
 0xf46   :  { %v2042_v56 = vpop.eup %2041 }
 0xf47   :  { %v2044_v54 = vpop.eup %2043  ;;  %v841_v55 = vmul.f32 %v2042_v56, %v838_v50  ;;  %vm846_vm0 = vweird.f32 %v2042_v56 }
 0xf48   :  { %v856_v53 = vmul.f32 %v2044_v54, %v839_v51  ;;  %vm861_vm1 = vweird.f32 %v2044_v54  ;;  %vm847_vm6 = vmor %vm845_vm2, %vm846_vm0 }
 0xf49   :  { %v842_v8 = vsub.f32 1.0, %v841_v55  ;;  %vm862_vm7 = vmor %vm860_vm5, %vm861_vm1  ;;  %v1123_v55 = vld [vmem:[#allocation8 + $0x10] sm:$0xff]  ;;  %vm1187_vm5 = vcmask 258052  }
 0xf4a   :  { %v857_v57 = vsub.f32 1.0, %v856_v53  ;;  %v1124_v53 = vld [vmem:[#allocation8 + $0x18] sm:$0xff] }
 0xf4b   :  { %v843_v59 = vmul.f32 %v2042_v56, %v842_v8  ;;  %1146 = vmatpush.msra.mxu3 %v1124_v53  ;;  %1345 = vmatpush.msrb.mxu1 %v1124_v53  ;;  %v1121_v8 = vld [vmem:[#allocation8] sm:$0xff] }
 0xf4c   :  { %v858_v58 = vmul.f32 %v2044_v54, %v857_v57  ;;  %v1122_v57 = vld [vmem:[#allocation8 + $0x8] sm:$0xff] }
 0xf4d   :  { %v844_v61 = vadd.f32 %v2042_v56, %v843_v59  ;;  %1147 = vmatpush.msra.mxu3 %v1123_v55  ;;  %1346 = vmatpush.msrb.mxu1 %v1123_v55 }
 0xf4e   :  { %v859_v60 = vadd.f32 %v2044_v54, %v858_v58 }
 0xf4f   :  { %v848_v3 = vsel %vm847_vm6, %v2042_v56, %v844_v61  ;;  %1148 = vmatpush.msra.mxu3 %v1122_v57  ;;  %1347 = vmatpush.msrb.mxu1 %v1122_v57 }
 0xf50   :  { %v863_v1 = vsel %vm862_vm7, %v2044_v54, %v859_v60  ;;  %v853_v12 = vsel %vm850_vm9, %v852_v4, %v848_v3 }
 0xf51   :  { %v868_v5 = vsel %vm865_vm8, %v867_v6, %v863_v1  ;;  %v970_v17 = vsub.f32 1.0, %v853_v12  ;;  %1149 = vmatpush.msra.mxu3 %v1121_v8  ;;  %1348 = vmatpush.msrb.mxu1 %v1121_v8 }
 0xf52   :  { %v971_v16 = vsub.f32 1.0, %v868_v5 }
 0xf53   :  { %v974_v24 = vmul.f32 %v970_v17, %v912_v7  ;;  %1544 = vmatpush.msrb.mxu3 %v1124_v53  ;;  %1754 = vmatpush.msra.mxu1 %v1124_v53 }
 0xf54   :  { %v975_v21 = vmul.f32 %v971_v16, %v913_v9 }
 0xf55   :  { %1545 = vmatpush.msrb.mxu3 %v1123_v55  ;;  %1755 = vmatpush.msra.mxu1 %v1123_v55 }
 0xf57   :  { %1546 = vmatpush.msrb.mxu3 %v1122_v57  ;;  %1756 = vmatpush.msra.mxu1 %v1122_v57 }
 0xf59   :  { %1547 = vmatpush.msrb.mxu3 %v1121_v8  ;;  %1757 = vmatpush.msra.mxu1 %v1121_v8 }
 0xf97   :  { %v981_v18 = vpop.permute.xlu0 %980  ;;  %v979_v20 = vpop.permute.xlu2 %978 }
 0xf98   :  { %v985_v23 = vmul.f32 %v981_v18, %v868_v5  ;;  %v984_v2 = vmul.f32 %v979_v20, %v853_v12 }
 0xf9a   :  { %v2737_v25 = vadd.f32 %v985_v23, %v975_v21  ;;  %v2739_v26 = vadd.f32 %v984_v2, %v974_v24 }
 0xf9c   :  { %990 = vst.msk [vmem:[%s3011_s9 + $0x8] sm:$0x8] %vm988_vm11, %v2737_v25  ;;  %v998_v27 = vrot.slane %v2737_v25, 2  ;;  %v997_v33 = vrot.slane %v2739_v26, 3  ;;  %v1111_v9 = vrot.slane %v2739_v26, 7  ;;  %v1112_v7 = vrot.slane %v2737_v25, 7 }
 0xf9d   :  { %989 = vst.msk [vmem:[%s3011_s9] sm:$0x8] %vm988_vm11, %v2739_v26  ;;  %vm1275_vm11 = vcmask 1046534  }
 0xf9e   :  { %1113 = vrot.lane.b32.xlu0 %v1111_v9, %s2381_s22  ;;  %v999_v47 = vsel %vm284_vm4, %v998_v27, %v997_v33 }
 0xf9f   :  { %1920 = vmatmul.msk.f32.vlgmr.msra.gmra.mxu2 %vm199_vm3, %v999_v47  ;;  %v2785_v47 = vld [vmem:[#allocation9] ss:$0 sm:$0xff] }
 0xfa6   :  { %1115 = vrot.lane.b32.xlu0 %v1112_v7, %s2381_s22 }
0x1010   :  { %v1114_v59 = vpop.permute.xlu0 %1113 }
0x1018   :  { %v1116_v0 = vpop.permute.xlu0 %1115 }
0x1022   :  { %v1019_v44 = vpop.f32.mrf.mxu2 }
0x1023   :  { %v1023_v28 = vrot.slane %v1019_v44, 4  ;;  %v1024_v29 = vrot.slane %v1019_v44, 5 }
0x1025   :  { %v2762_v30 = vadd.f32 %v1023_v28, %v2505_v10  ;;  %v2765_v31 = vadd.f32 %v1024_v29, %v2510_v14 }
0x1027   :  { %2045 = vtanh.f32 %v2762_v30  ;;  %v1030_v44 = vadd.f32 %v2785_v47, %v2765_v31 }
0x1028   :  { %2047 = vtanh.f32 %v2765_v31 }
0x1029   :  { %v1922_v28 = vmul.f32 -1.442695, %v1030_v44 }
0x102d   :  { %v2046_v32 = vpop.eup %2045 }
0x102e   :  { %v2048_v13 = vpop.eup %2047  ;;  %v1071_v35 = vmul.f32 %v2046_v32, %v2519_v22 }
0x102f   :  { %v1072_v34 = vmul.f32 %v2048_v13, %v2519_v22  ;;  %v1029_v13 = vadd.f32 %v2785_v47, %v2762_v30 }
0x1031   :  { %v1075_v36 = vrot.slane %v1072_v34, 7 }
0x1033   :  { %v1077_v39 = vsel %vm1076_vm12, %v1075_v36, %v1071_v35  ;;  %v1193_v36 = vld [vmem:[#allocation6 + $0x18] sm:$0xff] }
0x1034   :  { %v1080_v11 = vsel %vm1079_vm13, %v1077_v39, -inf  ;;  %1213 = vmatpush.msra.mxu0 %v1193_v36  ;;  %1412 = vmatpush.msrb.mxu2 %v1193_v36  ;;  %vm1299_vm13 = vcmask 260101  }
0x1035   :  { %1081 = vmax.xlane.f32.xlu2 %v1080_v11 }
0x1036   :  { %1214 = vmatpush.msra.mxu0 %v2724_v37  ;;  %1413 = vmatpush.msrb.mxu2 %v2724_v37 }
0x1038   :  { %1215 = vmatpush.msra.mxu0 %v2727_v52  ;;  %1414 = vmatpush.msrb.mxu2 %v2727_v52 }
0x103a   :  { %1216 = vmatpush.msra.mxu0 %v2730_v15  ;;  %1415 = vmatpush.msrb.mxu2 %v2730_v15 }
0x103c   :  { %1611 = vmatpush.msrb.mxu0 %v1193_v36 }
0x103e   :  { %1612 = vmatpush.msrb.mxu0 %v2724_v37 }
0x1040   :  { %1613 = vmatpush.msrb.mxu0 %v2727_v52 }
0x1042   :  { %1614 = vmatpush.msrb.mxu0 %v2730_v15 }
0x10a8   :  { %v1082_v38 = vpop.xlane.xlu2 %1081 }
0x10a9   :  { %v1084_v40 = vrot.slane %v1082_v38, 1  ;;  %v1087_v42 = vsub.f32 %v1071_v35, %v1082_v38  ;;  %v1921_v35 = vmul.f32 -1.442695, %v1029_v13 }
0x10ab   :  { %v1088_v41 = vsub.f32 %v1072_v34, %v1084_v40  ;;  %v1089_v43 = vmul.f32 1.442695, %v1087_v42 }
0x10ad   :  { %v1091_v46 = vmul.f32 1.442695, %v1088_v41 }
0x10af   :  { %2049 = vpow2.f32 %v1091_v46 }
0x10b0   :  { %2051 = vpow2.f32 %v1089_v43 }
0x10b5   :  { %v2050_v48 = vpop.eup %2049 }
0x10b6   :  { %v1095_v49 = vrot.slane %v2050_v48, 7  ;;  %v2052_v50 = vpop.eup %2051 }
0x10b8   :  { %v1096_v51 = vsel %vm1076_vm12, %v1095_v49, %v2052_v50  ;;  %vm1278_vm12 = vcmask 522501  }
0x10b9   :  { %1097 = vrot.lane.b32.xlu1 %v1096_v51, %s2382_s0 }
0x112b   :  { %v1098_v56 = vpop.permute.xlu1 %1097 }
0x112c   :  { %v1101_v54 = vsel %vm1100_vm14, %v1098_v56, 0.0 }
0x112d   :  { %1102 = vadd.xlane.f32.xlu1 %v1101_v54 }
0x11a0   :  { %v1103_v58 = vpop.xlane.xlu1 %1102 }
0x11a1   :  { %2053 = vrcp.f32 %v1103_v58 }
0x11a7   :  { %v2054_v60 = vpop.eup %2053 }
0x11a8   :  { %v1106_v61 = vrot.slane %v2054_v60, 1  ;;  %v1109_v62 = vmul.f32 %v2054_v60, %v2052_v50 }
0x11aa   :  { %v1110_v45 = vmul.f32 %v2050_v48, %v1106_v61  ;;  %v1119_v63 = vmul.f32 %v1114_v59, %v1109_v62 }
0x11ac   :  { %v1120_v1 = vmul.f32 %v1116_v0, %v1110_v45  ;;  %v1127_v3 = vrot.slane %v1119_v63, 4 }
0x11ae   :  { %v1128_v6 = vrot.slane %v1120_v1, 3 }
0x11b0   :  { %v1129_v4 = vsel %vm284_vm4, %v1128_v6, %v1127_v3 }
0x11b1   :  { %1130 = vrot.lane.b32.xlu0 %v1129_v4, %s2382_s0 }
0x1223   :  { %v1131_v5 = vpop.permute.xlu0 %1130 }
0x1224   :  { %1923 = vmatmul.msk.f32.vlgmr.msra.gmra.mxu3 %vm199_vm3, %v1131_v5 }
0x12a7   :  { %v1151_v12 = vpop.f32.mrf.mxu3 }
0x12a8   :  { %v1155_v16 = vrot.slane %v1151_v12, 4  ;;  %v1156_v17 = vrot.slane %v1151_v12, 5 }
0x12aa   :  { %1159 = vrot.lane.b32.xlu2 %v1156_v17, %s2383_s30  ;;  %1157 = vrot.lane.b32.xlu0 %v1155_v16, %s2383_s30 }
0x1304   :  { %v1160_v18 = vpop.permute.xlu2 %1159 }
0x1305   :  { %v1164_v20 = vadd.f32 %v1160_v18, %v2510_v14 }
0x1307   :  { %v1166_v21 = vadd.f32 %v1164_v20, %v2547_v19 }
0x1309   :  { %2055 = vtanh.f32 %v1166_v21 }
0x130f   :  { %v2056_v23 = vpop.eup %2055 }
0x1310   :  { %1179 = vrot.lane.b32.xlu1 %v2056_v23, %s2383_s30 }
0x131c   :  { %v1158_v24 = vpop.permute.xlu0 %1157 }
0x131d   :  { %v1163_v2 = vadd.f32 %v1158_v24, %v2505_v10 }
0x131f   :  { %v1165_v27 = vadd.f32 %v1163_v2, %v2547_v19 }
0x1321   :  { %2057 = vtanh.f32 %v1165_v27 }
0x1322   :  { %2059 = vpow2.f32 %v1922_v28 }
0x1327   :  { %v2058_v33 = vpop.eup %2057 }
0x1328   :  { %1177 = vrot.lane.b32.xlu0 %v2058_v33, %s2383_s30  ;;  %v2060_v29 = vpop.eup %2059 }
0x1329   :  { %v1038_v32 = vadd.f32 1.0, %v2060_v29 }
0x132b   :  { %2061 = vrcp.f32 %v1038_v32  ;;  %v1065_v42 = vand.u32 2147483648, %v1038_v32  ;;  %vm1059_vm0 = vweird.f32 %v1038_v32  ;;  %v1063_v41 = vand.u32 2147483647, %v1038_v32 }
0x132c   :  { %2063 = vpow2.f32 %v1921_v35 }
0x132d   :  { %v1066_v46 = vor.u32 1.1754944e-38, %v1065_v42  ;;  %vm1064_vm2 = vcmp.eq.f32.partialorder %v1063_v41, 8.507059e+37 }
0x1331   :  { %v2062_v34 = vpop.eup %2061 }
0x1332   :  { %v1055_v39 = vmul.f32 %v2062_v34, %v1038_v32  ;;  %v2064_v30 = vpop.eup %2063  ;;  %vm1060_vm15 = vweird.f32 %v2062_v34 }
0x1333   :  { %v1037_v38 = vadd.f32 1.0, %v2064_v30  ;;  %vm1061_vm1 = vmor %vm1059_vm0, %vm1060_vm15 }
0x1334   :  { %v1056_v31 = vsub.f32 1.0, %v1055_v39 }
0x1335   :  { %2065 = vrcp.f32 %v1037_v38  ;;  %v1050_v57 = vand.u32 2147483648, %v1037_v38  ;;  %vm1044_vm7 = vweird.f32 %v1037_v38  ;;  %v1048_v8 = vand.u32 2147483647, %v1037_v38 }
0x1336   :  { %v1057_v11 = vmul.f32 %v2062_v34, %v1056_v31 }
0x1337   :  { %vm1049_vm9 = vcmp.eq.f32.partialorder %v1048_v8, 8.507059e+37 }
0x1338   :  { %v1058_v40 = vadd.f32 %v2062_v34, %v1057_v11 }
0x133a   :  { %v1062_v43 = vsel %vm1061_vm1, %v2062_v34, %v1058_v40 }
0x133b   :  { %v1067_v48 = vsel %vm1064_vm2, %v1066_v46, %v1062_v43  ;;  %v2066_v49 = vpop.eup %2065  ;;  %vm1386_vm2 = vcmask 259077  }
0x133c   :  { %v1170_v50 = vsub.f32 1.0, %v1067_v48  ;;  %v1040_v51 = vmul.f32 %v2066_v49, %v1037_v38  ;;  %vm1045_vm6 = vweird.f32 %v2066_v49 }
0x133d   :  { %vm1046_vm8 = vmor %vm1044_vm7, %vm1045_vm6 }
0x133e   :  { %v1174_v52 = vmul.f32 %v1170_v50, %v1112_v7  ;;  %v1041_v15 = vsub.f32 1.0, %v1040_v51  ;;  %v1051_v7 = vor.u32 1.1754944e-38, %v1050_v57 }
0x1340   :  { %v1042_v53 = vmul.f32 %v2066_v49, %v1041_v15 }
0x1342   :  { %v1043_v55 = vadd.f32 %v2066_v49, %v1042_v53 }
0x1344   :  { %v1047_v25 = vsel %vm1046_vm8, %v2066_v49, %v1043_v55 }
0x1345   :  { %v1052_v58 = vsel %vm1049_vm9, %v1051_v7, %v1047_v25  ;;  %vm1474_vm9 = vcmask 1047559  }
0x1346   :  { %v1169_v59 = vsub.f32 1.0, %v1052_v58 }
0x1348   :  { %v1173_v61 = vmul.f32 %v1169_v59, %v1111_v9 }
0x1382   :  { %v1180_v37 = vpop.permute.xlu1 %1179 }
0x1383   :  { %v1184_v56 = vmul.f32 %v1180_v37, %v1067_v48 }
0x1385   :  { %v2802_v54 = vadd.f32 %v1184_v56, %v1174_v52 }
0x1387   :  { %1189 = vst.msk [vmem:[%s3011_s9 + $0x8] sm:$0x10] %vm1187_vm5, %v2802_v54  ;;  %v1197_v63 = vrot.slane %v2802_v54, 3  ;;  %v1311_v9 = vrot.slane %v2802_v54, 7 }
0x139a   :  { %v1178_v60 = vpop.permute.xlu0 %1177 }
0x139b   :  { %v1183_v62 = vmul.f32 %v1178_v60, %v1052_v58 }
0x139d   :  { %v2811_v45 = vadd.f32 %v1183_v62, %v1173_v61 }
0x139f   :  { %1188 = vst.msk [vmem:[%s3011_s9] sm:$0x10] %vm1187_vm5, %v2811_v45  ;;  %v1196_v0 = vrot.slane %v2811_v45, 4  ;;  %v1310_v1 = vrot.slane %v2811_v45, 7 }
0x13a1   :  { %1312 = vrot.lane.b32.xlu1 %v1310_v1, %s2381_s22  ;;  %v1198_v26 = vsel %vm284_vm4, %v1197_v63, %v1196_v0 }
0x13a2   :  { %1924 = vmatmul.msk.f32.vlgmr.msra.gmra.mxu0 %vm199_vm3, %v1198_v26 }
0x13a9   :  { %1314 = vrot.lane.b32.xlu1 %v1311_v9, %s2381_s22 }
0x1413   :  { %v1313_v30 = vpop.permute.xlu1 %1312 }
0x141b   :  { %v1315_v43 = vpop.permute.xlu1 %1314 }
0x141f   :  { %v1218_v3 = vpop.f32.mrf.mxu0 }
0x1420   :  { %v1222_v6 = vrot.slane %v1218_v3, 3  ;;  %v1223_v4 = vrot.slane %v1218_v3, 4 }
0x1422   :  { %v2831_v5 = vadd.f32 %v1222_v6, %v2505_v10  ;;  %v2834_v12 = vadd.f32 %v1223_v4, %v2510_v14 }
0x1424   :  { %2067 = vtanh.f32 %v2831_v5  ;;  %v1229_v59 = vadd.f32 %v2785_v47, %v2834_v12  ;;  %v1228_v63 = vadd.f32 %v2785_v47, %v2831_v5 }
0x1425   :  { %2069 = vtanh.f32 %v2834_v12 }
0x1426   :  { %v1926_v60 = vmul.f32 -1.442695, %v1229_v59  ;;  %v1925_v26 = vmul.f32 -1.442695, %v1228_v63 }
0x142a   :  { %v2068_v16 = vpop.eup %2067 }
0x142b   :  { %v2070_v17 = vpop.eup %2069  ;;  %v1270_v20 = vmul.f32 %v2068_v16, %v2519_v22 }
0x142c   :  { %v1271_v18 = vmul.f32 %v2070_v17, %v2519_v22 }
0x142e   :  { %v1274_v21 = vrot.slane %v1271_v18, 7 }
0x1430   :  { %v1276_v23 = vsel %vm1275_vm11, %v1274_v21, %v1270_v20 }
0x1431   :  { %v1279_v24 = vsel %vm1278_vm12, %v1276_v23, -inf  ;;  %vm1498_vm12 = vcmask 261126  }
0x1432   :  { %1280 = vmax.xlane.f32.xlu0 %v1279_v24 }
0x14a5   :  { %v1281_v2 = vpop.xlane.xlu0 %1280 }
0x14a6   :  { %v1283_v27 = vrot.slane %v1281_v2, 1  ;;  %v1286_v33 = vsub.f32 %v1270_v20, %v1281_v2 }
0x14a8   :  { %v1287_v44 = vsub.f32 %v1271_v18, %v1283_v27  ;;  %v1288_v28 = vmul.f32 1.442695, %v1286_v33 }
0x14aa   :  { %v1290_v29 = vmul.f32 1.442695, %v1287_v44 }
0x14ac   :  { %2071 = vpow2.f32 %v1290_v29 }
0x14ad   :  { %2073 = vpow2.f32 %v1288_v28 }
0x14b2   :  { %v2072_v32 = vpop.eup %2071 }
0x14b3   :  { %v1294_v13 = vrot.slane %v2072_v32, 7  ;;  %v2074_v34 = vpop.eup %2073 }
0x14b5   :  { %v1295_v35 = vsel %vm1275_vm11, %v1294_v13, %v2074_v34  ;;  %vm1477_vm11 = vcmask 523526  }
0x14b6   :  { %1296 = vrot.lane.b32.xlu2 %v1295_v35, %s2382_s0 }
0x1510   :  { %v1297_v36 = vpop.permute.xlu2 %1296 }
0x1511   :  { %v1300_v39 = vsel %vm1299_vm13, %v1297_v36, 0.0 }
0x1512   :  { %1301 = vadd.xlane.f32.xlu2 %v1300_v39 }
0x1585   :  { %v1302_v31 = vpop.xlane.xlu2 %1301 }
0x1586   :  { %2075 = vrcp.f32 %v1302_v31 }
0x158c   :  { %v2076_v11 = vpop.eup %2075 }
0x158d   :  { %v1305_v38 = vrot.slane %v2076_v11, 1  ;;  %v1308_v40 = vmul.f32 %v2076_v11, %v2074_v34 }
0x158f   :  { %v1309_v42 = vmul.f32 %v2072_v32, %v1305_v38  ;;  %v1318_v41 = vmul.f32 %v1313_v30, %v1308_v40 }
0x1591   :  { %v1319_v46 = vmul.f32 %v1315_v43, %v1309_v42  ;;  %v1326_v48 = vrot.slane %v1318_v41, 5 }
0x1593   :  { %v1327_v49 = vrot.slane %v1319_v46, 4 }
0x1595   :  { %v1328_v50 = vsel %vm284_vm4, %v1327_v49, %v1326_v48 }
0x1596   :  { %1329 = vrot.lane.b32.xlu1 %v1328_v50, %s2382_s0 }
0x1608   :  { %v1330_v51 = vpop.permute.xlu1 %1329 }
0x1609   :  { %1927 = vmatmul.msk.f32.vlgmr.msrb.gmra.mxu1 %vm199_vm3, %v1330_v51 }
0x1686   :  { %v1350_v37 = vpop.f32.mrf.mxu1 }
0x1687   :  { %v1354_v52 = vrot.slane %v1350_v37, 3  ;;  %v1355_v56 = vrot.slane %v1350_v37, 4 }
0x1689   :  { %1358 = vrot.lane.b32.xlu1 %v1355_v56, %s2383_s30  ;;  %1356 = vrot.lane.b32.xlu0 %v1354_v52, %s2383_s30 }
0x16fb   :  { %v1359_v15 = vpop.permute.xlu1 %1358  ;;  %v1357_v53 = vpop.permute.xlu0 %1356 }
0x16fc   :  { %v1363_v55 = vadd.f32 %v1359_v15, %v2510_v14  ;;  %v1362_v57 = vadd.f32 %v1357_v53, %v2505_v10 }
0x16fe   :  { %v1365_v8 = vadd.f32 %v1363_v55, %v2547_v19  ;;  %v1364_v25 = vadd.f32 %v1362_v57, %v2547_v19 }
0x1700   :  { %2077 = vtanh.f32 %v1365_v8 }
0x1701   :  { %2079 = vtanh.f32 %v1364_v25 }
0x1702   :  { %2081 = vpow2.f32 %v1926_v60 }
0x1706   :  { %v2078_v7 = vpop.eup %2077 }
0x1707   :  { %v2080_v58 = vpop.eup %2079  ;;  %1378 = vrot.lane.b32.xlu2 %v2078_v7, %s2383_s30 }
0x1708   :  { %1376 = vrot.lane.b32.xlu1 %v2080_v58, %s2383_s30  ;;  %v2082_v61 = vpop.eup %2081 }
0x1709   :  { %v1237_v62 = vadd.f32 1.0, %v2082_v61 }
0x170b   :  { %2083 = vrcp.f32 %v1237_v62  ;;  %v1264_v20 = vand.u32 2147483648, %v1237_v62  ;;  %vm1258_vm15 = vweird.f32 %v1237_v62  ;;  %v1262_v12 = vand.u32 2147483647, %v1237_v62 }
0x170c   :  { %2085 = vpow2.f32 %v1925_v26 }
0x170d   :  { %v1265_v23 = vor.u32 1.1754944e-38, %v1264_v20  ;;  %vm1263_vm1 = vcmp.eq.f32.partialorder %v1262_v12, 8.507059e+37 }
0x1711   :  { %v2084_v0 = vpop.eup %2083 }
0x1712   :  { %v1254_v3 = vmul.f32 %v2084_v0, %v1237_v62  ;;  %v2086_v16 = vpop.eup %2085  ;;  %vm1259_vm14 = vweird.f32 %v2084_v0 }
0x1713   :  { %v1236_v17 = vadd.f32 1.0, %v2086_v16  ;;  %vm1260_vm0 = vmor %vm1258_vm15, %vm1259_vm14 }
0x1714   :  { %v1255_v6 = vsub.f32 1.0, %v1254_v3 }
0x1715   :  { %2087 = vrcp.f32 %v1236_v17  ;;  %v1249_v35 = vand.u32 2147483648, %v1236_v17  ;;  %vm1243_vm6 = vweird.f32 %v1236_v17  ;;  %v1247_v36 = vand.u32 2147483647, %v1236_v17 }
0x1716   :  { %v1256_v4 = vmul.f32 %v2084_v0, %v1255_v6 }
0x1717   :  { %vm1248_vm8 = vcmp.eq.f32.partialorder %v1247_v36, 8.507059e+37 }
0x1718   :  { %v1257_v18 = vadd.f32 %v2084_v0, %v1256_v4 }
0x171a   :  { %v1261_v21 = vsel %vm1260_vm0, %v2084_v0, %v1257_v18 }
0x171b   :  { %v1266_v24 = vsel %vm1263_vm1, %v1265_v23, %v1261_v21  ;;  %v2088_v5 = vpop.eup %2087  ;;  %vm1585_vm1 = vcmask 260102  }
0x171c   :  { %v1369_v2 = vsub.f32 1.0, %v1266_v24  ;;  %v1239_v33 = vmul.f32 %v2088_v5, %v1236_v17  ;;  %vm1244_vm5 = vweird.f32 %v2088_v5 }
0x171d   :  { %vm1245_vm7 = vmor %vm1243_vm6, %vm1244_vm5 }
0x171e   :  { %v1373_v44 = vmul.f32 %v1369_v2, %v1311_v9  ;;  %v1240_v32 = vsub.f32 1.0, %v1239_v33  ;;  %v1250_v9 = vor.u32 1.1754944e-38, %v1249_v35 }
0x1720   :  { %v1241_v13 = vmul.f32 %v2088_v5, %v1240_v32 }
0x1722   :  { %v1242_v34 = vadd.f32 %v2088_v5, %v1241_v13 }
0x1724   :  { %v1246_v54 = vsel %vm1245_vm7, %v2088_v5, %v1242_v34 }
0x1725   :  { %v1251_v39 = vsel %vm1248_vm8, %v1250_v9, %v1246_v54  ;;  %vm1675_vm8 = vcmask 523527  }
0x1726   :  { %v1368_v31 = vsub.f32 1.0, %v1251_v39 }
0x1728   :  { %v1372_v11 = vmul.f32 %v1368_v31, %v1310_v1 }
0x1761   :  { %v1379_v27 = vpop.permute.xlu2 %1378 }
0x1762   :  { %v1383_v28 = vmul.f32 %v1379_v27, %v1266_v24 }
0x1764   :  { %v2860_v29 = vadd.f32 %v1383_v28, %v1373_v44 }
0x1766   :  { %1388 = vst.msk [vmem:[%s3011_s9 + $0x8] sm:$0x20] %vm1386_vm2, %v2860_v29  ;;  %v1396_v42 = vrot.slane %v2860_v29, 4  ;;  %v1510_v1 = vrot.slane %v2860_v29, 7 }
0x177a   :  { %v1377_v30 = vpop.permute.xlu1 %1376 }
0x177b   :  { %v1382_v38 = vmul.f32 %v1377_v30, %v1251_v39 }
0x177d   :  { %v2869_v40 = vadd.f32 %v1382_v38, %v1372_v11 }
0x177f   :  { %1387 = vst.msk [vmem:[%s3011_s9] sm:$0x20] %vm1386_vm2, %v2869_v40  ;;  %v1395_v41 = vrot.slane %v2869_v40, 5  ;;  %v1509_v43 = vrot.slane %v2869_v40, 7 }
0x1781   :  { %1511 = vrot.lane.b32.xlu2 %v1509_v43, %s2381_s22  ;;  %v1397_v45 = vsel %vm284_vm4, %v1396_v42, %v1395_v41 }
0x1782   :  { %1928 = vmatmul.msk.f32.vlgmr.msrb.gmra.mxu2 %vm199_vm3, %v1397_v45 }
0x1789   :  { %1513 = vrot.lane.b32.xlu2 %v1510_v1, %s2381_s22 }
0x17db   :  { %v1512_v4 = vpop.permute.xlu2 %1511 }
0x17e3   :  { %v1514_v21 = vpop.permute.xlu2 %1513 }
0x1805   :  { %v1417_v46 = vpop.f32.mrf.mxu2 }
0x1806   :  { %v1421_v48 = vrot.slane %v1417_v46, 2  ;;  %v1422_v49 = vrot.slane %v1417_v46, 3 }
0x1808   :  { %v2889_v50 = vadd.f32 %v1421_v48, %v2505_v10  ;;  %v2892_v51 = vadd.f32 %v1422_v49, %v2510_v14 }
0x180a   :  { %2089 = vtanh.f32 %v2889_v50  ;;  %v1428_v31 = vadd.f32 %v2785_v47, %v2892_v51 }
0x180b   :  { %2091 = vtanh.f32 %v2892_v51  ;;  %v1427_v51 = vadd.f32 %v2785_v47, %v2889_v50 }
0x180c   :  { %v1930_v30 = vmul.f32 -1.442695, %v1428_v31 }
0x1810   :  { %v2090_v37 = vpop.eup %2089 }
0x1811   :  { %v2092_v52 = vpop.eup %2091  ;;  %v1469_v15 = vmul.f32 %v2090_v37, %v2519_v22 }
0x1812   :  { %v1470_v56 = vmul.f32 %v2092_v52, %v2519_v22 }
0x1814   :  { %v1473_v53 = vrot.slane %v1470_v56, 7 }
0x1816   :  { %v1475_v55 = vsel %vm1474_vm9, %v1473_v53, %v1469_v15  ;;  %v1929_v53 = vmul.f32 -1.442695, %v1427_v51 }
0x1817   :  { %v1478_v57 = vsel %vm1477_vm11, %v1475_v55, -inf }
0x1818   :  { %1479 = vmax.xlane.f32.xlu0 %v1478_v57 }
0x188b   :  { %v1480_v8 = vpop.xlane.xlu0 %1479 }
0x188c   :  { %v1482_v25 = vrot.slane %v1480_v8, 1  ;;  %v1485_v7 = vsub.f32 %v1469_v15, %v1480_v8 }
0x188e   :  { %v1486_v58 = vsub.f32 %v1470_v56, %v1482_v25  ;;  %v1487_v59 = vmul.f32 1.442695, %v1485_v7 }
0x1890   :  { %v1489_v60 = vmul.f32 1.442695, %v1486_v58 }
0x1892   :  { %2093 = vpow2.f32 %v1489_v60 }
0x1893   :  { %2095 = vpow2.f32 %v1487_v59 }
0x1898   :  { %v2094_v61 = vpop.eup %2093 }
0x1899   :  { %v1493_v62 = vrot.slane %v2094_v61, 7  ;;  %v2096_v63 = vpop.eup %2095 }
0x189b   :  { %v1494_v0 = vsel %vm1474_vm9, %v1493_v62, %v2096_v63  ;;  %vm1679_vm9 = vcmask 516352  }
0x189c   :  { %1495 = vrot.lane.b32.xlu1 %v1494_v0, %s2382_s0 }
0x190e   :  { %v1496_v26 = vpop.permute.xlu1 %1495 }
0x190f   :  { %v1499_v3 = vsel %vm1498_vm12, %v1496_v26, 0.0 }
0x1910   :  { %1500 = vadd.xlane.f32.xlu1 %v1499_v3 }
0x1983   :  { %v1501_v6 = vpop.xlane.xlu1 %1500 }
0x1984   :  { %2097 = vrcp.f32 %v1501_v6 }
0x198a   :  { %v2098_v16 = vpop.eup %2097 }
0x198b   :  { %v1504_v17 = vrot.slane %v2098_v16, 1  ;;  %v1507_v18 = vmul.f32 %v2098_v16, %v2096_v63 }
0x198d   :  { %v1508_v20 = vmul.f32 %v2094_v61, %v1504_v17  ;;  %v1517_v12 = vmul.f32 %v1512_v4, %v1507_v18 }
0x198f   :  { %v1518_v23 = vmul.f32 %v1514_v21, %v1508_v20  ;;  %v1525_v24 = vrot.slane %v1517_v12, 6 }
0x1991   :  { %v1526_v5 = vrot.slane %v1518_v23, 5 }
0x1993   :  { %v1527_v2 = vsel %vm284_vm4, %v1526_v5, %v1525_v24 }
0x1994   :  { %1528 = vrot.lane.b32.xlu2 %v1527_v2, %s2382_s0 }
0x19ee   :  { %v1529_v27 = vpop.permute.xlu2 %1528 }
0x19ef   :  { %1931 = vmatmul.msk.f32.vlgmr.msrb.gmra.mxu3 %vm199_vm3, %v1529_v27 }
0x1a72   :  { %v1549_v33 = vpop.f32.mrf.mxu3 }
0x1a73   :  { %v1553_v44 = vrot.slane %v1549_v33, 2  ;;  %v1554_v28 = vrot.slane %v1549_v33, 3 }
0x1a75   :  { %1557 = vrot.lane.b32.xlu2 %v1554_v28, %s2383_s30  ;;  %1555 = vrot.lane.b32.xlu0 %v1553_v44, %s2383_s30 }
0x1acf   :  { %v1558_v32 = vpop.permute.xlu2 %1557 }
0x1ad0   :  { %v1562_v13 = vadd.f32 %v1558_v32, %v2510_v14 }
0x1ad2   :  { %v1564_v34 = vadd.f32 %v1562_v13, %v2547_v19 }
0x1ad4   :  { %2099 = vtanh.f32 %v1564_v34 }
0x1ada   :  { %v2100_v35 = vpop.eup %2099 }
0x1adb   :  { %1577 = vrot.lane.b32.xlu2 %v2100_v35, %s2383_s30 }
0x1ae7   :  { %v1556_v36 = vpop.permute.xlu0 %1555 }
0x1ae8   :  { %v1561_v54 = vadd.f32 %v1556_v36, %v2505_v10 }
0x1aea   :  { %v1563_v9 = vadd.f32 %v1561_v54, %v2547_v19 }
0x1aec   :  { %2101 = vtanh.f32 %v1563_v9 }
0x1aed   :  { %2103 = vpow2.f32 %v1930_v30 }
0x1af2   :  { %v2102_v39 = vpop.eup %2101 }
0x1af3   :  { %1575 = vrot.lane.b32.xlu1 %v2102_v39, %s2383_s30  ;;  %v2104_v11 = vpop.eup %2103 }
0x1af4   :  { %v1436_v38 = vadd.f32 1.0, %v2104_v11 }
0x1af6   :  { %2105 = vrcp.f32 %v1436_v38  ;;  %v1463_v49 = vand.u32 2147483648, %v1436_v38  ;;  %vm1457_vm14 = vweird.f32 %v1436_v38  ;;  %v1461_v37 = vand.u32 2147483647, %v1436_v38 }
0x1af7   :  { %2107 = vpow2.f32 %v1929_v53 }
0x1af8   :  { %v1464_v56 = vor.u32 1.1754944e-38, %v1463_v49  ;;  %vm1462_vm0 = vcmp.eq.f32.partialorder %v1461_v37, 8.507059e+37 }
0x1afc   :  { %v2106_v42 = vpop.eup %2105 }
0x1afd   :  { %v1453_v41 = vmul.f32 %v2106_v42, %v1436_v38  ;;  %vm1458_vm13 = vweird.f32 %v2106_v42  ;;  %v2108_v50 = vpop.eup %2107 }
0x1afe   :  { %vm1459_vm15 = vmor %vm1457_vm14, %vm1458_vm13  ;;  %v1435_v58 = vadd.f32 1.0, %v2108_v50 }
0x1aff   :  { %v1454_v45 = vsub.f32 1.0, %v1453_v41 }
0x1b00   :  { %2109 = vrcp.f32 %v1435_v58  ;;  %v1448_v29 = vand.u32 2147483648, %v1435_v58  ;;  %vm1442_vm5 = vweird.f32 %v1435_v58 }
0x1b01   :  { %v1455_v46 = vmul.f32 %v2106_v42, %v1454_v45 }
0x1b02   :  { %v1449_v26 = vor.u32 1.1754944e-38, %v1448_v29 }
0x1b03   :  { %v1456_v48 = vadd.f32 %v2106_v42, %v1455_v46 }
0x1b05   :  { %v1460_v52 = vsel %vm1459_vm15, %v2106_v42, %v1456_v48  ;;  %vm1703_vm15 = vcmask 261127  }
0x1b06   :  { %v1465_v15 = vsel %vm1462_vm0, %v1464_v56, %v1460_v52  ;;  %v2110_v59 = vpop.eup %2109 }
0x1b07   :  { %v1568_v55 = vsub.f32 1.0, %v1465_v15  ;;  %v1438_v60 = vmul.f32 %v2110_v59, %v1435_v58  ;;  %vm1443_vm2 = vweird.f32 %v2110_v59 }
0x1b08   :  { %vm1444_vm6 = vmor %vm1442_vm5, %vm1443_vm2 }
0x1b09   :  { %v1572_v8 = vmul.f32 %v1568_v55, %v1510_v1  ;;  %v1439_v61 = vsub.f32 1.0, %v1438_v60  ;;  %v1446_v1 = vand.u32 2147483647, %v1435_v58 }
0x1b0b   :  { %v1440_v62 = vmul.f32 %v2110_v59, %v1439_v61  ;;  %vm1447_vm7 = vcmp.eq.f32.partialorder %v1446_v1, 8.507059e+37 }
0x1b0d   :  { %v1441_v63 = vadd.f32 %v2110_v59, %v1440_v62 }
0x1b0f   :  { %v1445_v0 = vsel %vm1444_vm6, %v2110_v59, %v1441_v63 }
0x1b10   :  { %v1450_v3 = vsel %vm1447_vm7, %v1449_v26, %v1445_v0 }
0x1b11   :  { %v1567_v6 = vsub.f32 1.0, %v1450_v3 }
0x1b13   :  { %v1571_v16 = vmul.f32 %v1567_v6, %v1509_v43 }
0x1b35   :  { %v1578_v57 = vpop.permute.xlu2 %1577 }
0x1b36   :  { %v1582_v25 = vmul.f32 %v1578_v57, %v1465_v15 }
0x1b38   :  { %v2918_v7 = vadd.f32 %v1582_v25, %v1572_v8 }
0x1b3a   :  { %1587 = vst.msk [vmem:[%s3011_s9 + $0x8] sm:$0x40] %vm1585_vm1, %v2918_v7  ;;  %v1595_v20 = vrot.slane %v2918_v7, 5  ;;  %v1720_v61 = vrot.slane %v2918_v7, 7 }
0x1b65   :  { %v1576_v4 = vpop.permute.xlu1 %1575 }
0x1b66   :  { %v1581_v17 = vmul.f32 %v1576_v4, %v1450_v3 }
0x1b68   :  { %v1583_v18 = vadd.f32 %v1581_v17, %v1571_v16 }
0x1b6a   :  { %1586 = vst.msk [vmem:[%s3011_s9] sm:$0x40] %vm1585_vm1, %v1583_v18  ;;  %v1594_v12 = vrot.slane %v1583_v18, 6  ;;  %v1719_v41 = vrot.slane %v1583_v18, 7 }
0x1b6c   :  { %v1596_v21 = vsel %vm284_vm4, %v1595_v20, %v1594_v12 }
0x1b6d   :  { %1932 = vmatmul.msk.f32.vlgmr.msrb.gmra.mxu0 %vm199_vm3, %v1596_v21 }
0x1bea   :  { %v1616_v23 = vpop.f32.mrf.mxu0 }
0x1beb   :  { %v1620_v24 = vrot.slane %v1616_v23, 1  ;;  %v1621_v5 = vrot.slane %v1616_v23, 2 }
0x1bed   :  { %v1624_v40 = vadd.f32 %v1620_v24, %v2505_v10  ;;  %v2936_v43 = vadd.f32 %v1621_v5, %v2510_v14 }
0x1bef   :  { %v1626_v2 = vadd.f32 %v2785_v47, %v1624_v40  ;;  %2111 = vtanh.f32 %v1624_v40 }
0x1bf0   :  { %2113 = vtanh.f32 %v2936_v43 }
0x1bf1   :  { %v1933_v27 = vmul.f32 -1.442695, %v1626_v2 }
0x1bf3   :  { %2115 = vpow2.f32 %v1933_v27 }
0x1bf5   :  { %v2112_v33 = vpop.eup %2111 }
0x1bf6   :  { %v2114_v44 = vpop.eup %2113  ;;  %v1668_v28 = vmul.f32 %v2112_v33, %v2519_v22 }
0x1bf7   :  { %v1669_v32 = vmul.f32 %v2114_v44, %v2519_v22 }
0x1bf8   :  { %v1676_v13 = vsel %vm1675_vm8, %v1668_v28, -inf }
0x1bf9   :  { %v2116_v34 = vpop.eup %2115  ;;  %1677 = vmax.xlane.f32.xlu0 %v1676_v13  ;;  %v1672_v35 = vrot.slane %v1669_v32, 7  ;;  %v1627_v13 = vadd.f32 %v2785_v47, %v2936_v43 }
0x1bfa   :  { %v1634_v36 = vadd.f32 1.0, %v2116_v34 }
0x1bfb   :  { %v1680_v54 = vsel %vm1679_vm9, %v1672_v35, -inf  ;;  %v1934_v34 = vmul.f32 -1.442695, %v1627_v13 }
0x1bfc   :  { %2117 = vrcp.f32 %v1634_v36  ;;  %1681 = vmax.xlane.f32.xlu2 %v1680_v54  ;;  %v1647_v30 = vand.u32 2147483648, %v1634_v36  ;;  %v1645_v38 = vand.u32 2147483647, %v1634_v36  ;;  %vm1641_vm12 = vweird.f32 %v1634_v36 }
0x1bfe   :  { %v1648_v22 = vor.u32 1.1754944e-38, %v1647_v30  ;;  %vm1646_vm14 = vcmp.eq.f32.partialorder %v1645_v38, 8.507059e+37 }
0x1c02   :  { %v2118_v9 = vpop.eup %2117 }
0x1c03   :  { %v1637_v39 = vmul.f32 %v2118_v9, %v1634_v36  ;;  %vm1642_vm11 = vweird.f32 %v2118_v9 }
0x1c04   :  { %vm1643_vm13 = vmor %vm1641_vm12, %vm1642_vm11 }
0x1c05   :  { %v1638_v31 = vsub.f32 1.0, %v1637_v39 }
0x1c07   :  { %v1639_v11 = vmul.f32 %v2118_v9, %v1638_v31 }
0x1c09   :  { %v1640_v42 = vadd.f32 %v2118_v9, %v1639_v11 }
0x1c0b   :  { %v1644_v45 = vsel %vm1643_vm13, %v2118_v9, %v1640_v42 }
0x1c0c   :  { %v2942_v46 = vsel %vm1646_vm14, %v1648_v22, %v1644_v45 }
0x1c0d   :  { %1721 = vrot.lane.b32.xlu0 %v1719_v41, %s2381_s22  ;;  %v1777_v48 = vsub.f32 1.0, %v2942_v46 }
0x1c0f   :  { %v2946_v49 = vmul.f32 %v1777_v48, %v1719_v41 }
0x1c6c   :  { %v1678_v15 = vpop.xlane.xlu0 %1677 }
0x1c6d   :  { %v1688_v53 = vsub.f32 %v1668_v28, %v1678_v15 }
0x1c6f   :  { %v1682_v37 = vpop.xlane.xlu2 %1681  ;;  %v1690_v57 = vmul.f32 1.442695, %v1688_v53 }
0x1c70   :  { %v1685_v52 = vrot.slane %v1682_v37, 1 }
0x1c72   :  { %v1689_v56 = vsub.f32 %v1669_v32, %v1685_v52 }
0x1c74   :  { %v1692_v51 = vmul.f32 1.442695, %v1689_v56 }
0x1c76   :  { %2119 = vpow2.f32 %v1692_v51 }
0x1c77   :  { %2121 = vpow2.f32 %v1690_v57 }
0x1c7c   :  { %v2120_v55 = vpop.eup %2119 }
0x1c7d   :  { %v1696_v8 = vrot.slane %v2120_v55, 7  ;;  %v2122_v25 = vpop.eup %2121 }
0x1c7f   :  { %1699 = vrot.lane.b32.xlu1 %v1696_v8, %s2382_s0  ;;  %v1722_v4 = vpop.permute.xlu0 %1721 }
0x1c87   :  { %1697 = vrot.lane.b32.xlu1 %v2122_v25, %s2382_s0 }
0x1cf1   :  { %v1700_v50 = vpop.permute.xlu1 %1699 }
0x1cf2   :  { %v1707_v58 = vsel %vm397_vm10, %v1700_v50, 0.0 }
0x1cf3   :  { %1708 = vadd.xlane.f32.xlu1 %v1707_v58 }
0x1cf9   :  { %v1698_v59 = vpop.permute.xlu1 %1697 }
0x1cfa   :  { %v1704_v60 = vsel %vm1703_vm15, %v1698_v59, 0.0 }
0x1cfb   :  { %1705 = vadd.xlane.f32.xlu2 %v1704_v60 }
0x1d13   :  { %1723 = vrot.lane.b32.xlu2 %v1720_v61, %s2381_s22 }
0x1d66   :  { %v1709_v62 = vpop.xlane.xlu1 %1708 }
0x1d67   :  { %2123 = vrcp.f32 %v1709_v62 }
0x1d6d   :  { %v2124_v63 = vpop.eup %2123 }
0x1d6e   :  { %v1706_v29 = vpop.xlane.xlu2 %1705  ;;  %v1714_v1 = vrot.slane %v2124_v63, 1 }
0x1d6f   :  { %2125 = vrcp.f32 %v1706_v29 }
0x1d70   :  { %v1718_v26 = vmul.f32 %v2120_v55, %v1714_v1  ;;  %v2384_v55 = vmov 32.0  }
0x1d75   :  { %v2126_v0 = vpop.eup %2125 }
0x1d76   :  { %v1717_v3 = vmul.f32 %v2126_v0, %v2122_v25  ;;  %v1724_v6 = vpop.permute.xlu2 %1723 }
0x1d77   :  { %v1728_v16 = vmul.f32 %v1724_v6, %v1718_v26 }
0x1d78   :  { %v1727_v17 = vmul.f32 %v1722_v4, %v1717_v3 }
0x1d79   :  { %v1736_v18 = vrot.slane %v1728_v16, 6 }
0x1d7a   :  { %v1735_v20 = vrot.slane %v1727_v17, 7 }
0x1d7c   :  { %v1737_v12 = vsel %vm284_vm4, %v1736_v18, %v1735_v20 }
0x1d7d   :  { %1738 = vrot.lane.b32.xlu0 %v1737_v12, %s2382_s0 }
0x1def   :  { %v1739_v7 = vpop.permute.xlu0 %1738 }
0x1df0   :  { %1935 = vmatmul.msk.f32.vlgmr.msra.gmra.mxu1 %vm199_vm3, %v1739_v7 }
0x1e6d   :  { %v1759_v21 = vpop.f32.mrf.mxu1 }
0x1e6e   :  { %v1763_v23 = vrot.slane %v1759_v21, 1  ;;  %v1764_v24 = vrot.slane %v1759_v21, 2  ;;  %v1955_v21 = vld [vmem:[#allocation14] ss:$0 sm:$0xff] }
0x1e70   :  { %1767 = vrot.lane.b32.xlu2 %v1764_v24, %s2383_s30  ;;  %1765 = vrot.lane.b32.xlu0 %v1763_v23, %s2383_s30  ;;  %v1956_v24 = vld [vmem:[#allocation15] ss:$0 sm:$0xff] }
0x1eca   :  { %v1768_v5 = vpop.permute.xlu2 %1767 }
0x1ecb   :  { %v1772_v40 = vadd.f32 %v1768_v5, %v2510_v14 }
0x1ecd   :  { %v1774_v2 = vadd.f32 %v1772_v40, %v2547_v19 }
0x1ecf   :  { %2127 = vtanh.f32 %v1774_v2 }
0x1ed5   :  { %v2128_v27 = vpop.eup %2127 }
0x1ed6   :  { %1787 = vrot.lane.b32.xlu0 %v2128_v27, %s2383_s30 }
0x1ee2   :  { %v1766_v33 = vpop.permute.xlu0 %1765 }
0x1ee3   :  { %v1771_v44 = vadd.f32 %v1766_v33, %v2505_v10 }
0x1ee5   :  { %v1773_v28 = vadd.f32 %v1771_v44, %v2547_v19 }
0x1ee7   :  { %2129 = vtanh.f32 %v1773_v28 }
0x1ee8   :  { %2131 = vpow2.f32 %v1934_v34 }
0x1eed   :  { %v2130_v32 = vpop.eup %2129 }
0x1eee   :  { %1785 = vrot.lane.b32.xlu1 %v2130_v32, %s2383_s30  ;;  %v2132_v14 = vpop.eup %2131 }
0x1eef   :  { %v1635_v35 = vadd.f32 1.0, %v2132_v14 }
0x1ef1   :  { %2133 = vrcp.f32 %v1635_v35  ;;  %v1662_v10 = vand.u32 2147483648, %v1635_v35  ;;  %vm1656_vm0 = vweird.f32 %v1635_v35  ;;  %v1660_v19 = vand.u32 2147483647, %v1635_v35 }
0x1ef2   :  { %2135 = vrcp.f32 %v2384_v55 }
0x1ef3   :  { %v1663_v11 = vor.u32 1.1754944e-38, %v1662_v10  ;;  %vm1661_vm2 = vcmp.eq.f32.partialorder %v1660_v19, 8.507059e+37 }
0x1ef7   :  { %v2134_v36 = vpop.eup %2133 }
0x1ef8   :  { %v1652_v54 = vmul.f32 %v2134_v36, %v1635_v35  ;;  %vm1657_vm4 = vweird.f32 %v2134_v36 }
0x1ef9   :  { %vm1658_vm1 = vmor %vm1656_vm0, %vm1657_vm4 }
0x1efa   :  { %v1653_v9 = vsub.f32 1.0, %v1652_v54 }
0x1efc   :  { %v1654_v39 = vmul.f32 %v2134_v36, %v1653_v9 }
0x1efe   :  { %v1655_v31 = vadd.f32 %v2134_v36, %v1654_v39 }
0x1f00   :  { %v1659_v30 = vsel %vm1658_vm1, %v2134_v36, %v1655_v31 }
0x1f01   :  { %v1664_v38 = vsel %vm1661_vm2, %v1663_v11, %v1659_v30 }
0x1f02   :  { %v1778_v47 = vsub.f32 1.0, %v1664_v38 }
0x1f04   :  { %v1782_v42 = vmul.f32 %v1778_v47, %v1720_v61 }
0x1f48   :  { %v1788_v43 = vpop.permute.xlu0 %1787 }
0x1f49   :  { %v1792_v22 = vmul.f32 %v1788_v43, %v1664_v38 }
0x1f4b   :  { %v1794_v41 = vadd.f32 %v1792_v22, %v1782_v42 }
0x1f4d   :  { %1796 = vst.msk [vmem:[%s3011_s9 + $0x8] sm:$0x80] %vm1703_vm15, %v1794_v41  ;;  %v1799_v45 = vrot.slane %v1794_v41, 7 }
0x1f4f   :  { %1803 = vst.msk [vmem:[#allocation2 + $0x1] sm:$0x1] %vm397_vm10, %v1799_v45 }
0x1f50   :  { %1875 = vst.msk [vmem:[#allocation17 + $0x1] sm:$0x1] %vm397_vm10, %v1799_v45 }
0x1f54   :  { %v1805_v48 = vld [vmem:[%s3011_s9 + $0x8] sm:$0xff] }
0x1f55   :  { %v1809_v37 = vsel %vm199_vm3, %v1805_v48, 0.0 }
0x1f56   :  { %1810 = vadd.xlane.f32.xlu0 %v1809_v37 }
0x1f60   :  { %v1786_v52 = vpop.permute.xlu1 %1785 }
0x1f61   :  { %v1791_v56 = vmul.f32 %v1786_v52, %v2942_v46  ;;  %v2136_v46 = vpop.eup %2135 }
0x1f62   :  { %vm1817_vm10 = vweird.f32 %v2136_v46 }
0x1f63   :  { %v1793_v51 = vadd.f32 %v1791_v56, %v2946_v49  ;;  %v1813_v49 = vmul.f32 32.0, %v2136_v46 }
0x1f65   :  { %1795 = vst.msk [vmem:[%s3011_s9] sm:$0x80] %vm1703_vm15, %v1793_v51  ;;  %v1814_v57 = vsub.f32 1.0, %v1813_v49 }
0x1f66   :  { %1802 = vst.msk [vmem:[#allocation2 - $0x7] sm:$0x80] %vm1703_vm15, %v1793_v51 }
0x1f67   :  { %1874 = vst.msk [vmem:[#allocation17 - $0x7] sm:$0x80] %vm1703_vm15, %v1793_v51  ;;  %v1815_v8 = vmul.f32 %v2136_v46, %v1814_v57 }
0x1f68   :  { %1888 = dma.vmem_to_hbm [thread:$0]  %s1884_s18, 32, %s1886_s20, [#allocation5]  }
0x1f69   :  { %v1816_v25 = vadd.f32 %v2136_v46, %v1815_v8 }
0x1f6b   :  { %v1818_v50 = vsel %vm1817_vm10, %v2136_v46, %v1816_v25 }
0x1f6c   :  { %v1804_v15 = vld [vmem:[%s3011_s9] sm:$0xff] }
0x1f6d   :  { %v1806_v53 = vsel %vm199_vm3, %v1804_v15, 0.0 }
0x1f6e   :  { %1807 = vadd.xlane.f32.xlu2 %v1806_v53 }
0x1fc9   :  { %v1811_v58 = vpop.xlane.xlu0 %1810 }
0x1fca   :  { %v1820_v59 = vmul.f32 %v1818_v50, %v1811_v58 }
0x1fcc   :  { %v1822_v60 = vsub.f32 %v1805_v48, %v1820_v59 }
0x1fce   :  { %v1824_v61 = vmul.f32 %v1822_v60, %v1822_v60 }
0x1fd0   :  { %v1828_v62 = vsel %vm199_vm3, %v1824_v61, 0.0 }
0x1fd1   :  { %1829 = vadd.xlane.f32.xlu2 %v1828_v62 }
0x1fe1   :  { %v1808_v63 = vpop.xlane.xlu2 %1807 }
0x1fe2   :  { %v1819_v29 = vmul.f32 %v1818_v50, %v1808_v63 }
0x1fe4   :  { %v1821_v1 = vsub.f32 %v1804_v15, %v1819_v29 }
0x1fe6   :  { %v1823_v0 = vmul.f32 %v1821_v1, %v1821_v1 }
0x1fe8   :  { %v1825_v26 = vsel %vm199_vm3, %v1823_v0, 0.0 }
0x1fe9   :  { %1826 = vadd.xlane.f32.xlu1 %v1825_v26 }
0x2044   :  { %v1830_v3 = vpop.xlane.xlu2 %1829 }
0x2045   :  { %v1832_v6 = vmul.f32 %v1830_v3, %v1818_v50 }
0x2047   :  { %v1834_v4 = vadd.f32 1e-05, %v1832_v6 }
0x2049   :  { %2137 = vrsqrt.f32 %v1834_v4  ;;  %vm1851_vm6 = vweird.f32 %v1834_v4 }
0x204f   :  { %v2138_v16 = vpop.eup %2137 }
0x2050   :  { %v1846_v17 = vmul.f32 %v2138_v16, %v1834_v4  ;;  %vm1852_vm5 = vweird.f32 %v2138_v16 }
0x2051   :  { %vm1853_vm7 = vmor %vm1851_vm6, %vm1852_vm5 }
0x2052   :  { %v1847_v18 = vmul.f32 %v2138_v16, %v1846_v17 }
0x2054   :  { %v1848_v20 = vmul.f32 0.5, %v1847_v18 }
0x2056   :  { %v1849_v12 = vsub.f32 1.5, %v1848_v20 }
0x2058   :  { %v1850_v7 = vmul.f32 %v2138_v16, %v1849_v12 }
0x205a   :  { %v1854_v23 = vsel %vm1853_vm7, %v2138_v16, %v1850_v7 }
0x205b   :  { %v1856_v5 = vmul.f32 %v1854_v23, %v1822_v60 }
0x205c   :  { %v1827_v40 = vpop.xlane.xlu1 %1826 }
0x205d   :  { %v1862_v2 = vmul.f32 %v1955_v21, %v1856_v5  ;;  %v1831_v27 = vmul.f32 %v1827_v40, %v1818_v50 }
0x205f   :  { %v1868_v33 = vadd.f32 %v1956_v24, %v1862_v2  ;;  %v1833_v44 = vadd.f32 1e-05, %v1831_v27 }
0x2061   :  { %1870 = vst.msk [vmem:[%s3011_s9 + $0x8] sm:$0xff] %vm199_vm3, %v1868_v33  ;;  %2139 = vrsqrt.f32 %v1833_v44  ;;  %vm1841_vm9 = vweird.f32 %v1833_v44 }
0x2067   :  { %v2140_v28 = vpop.eup %2139 }
0x2068   :  { %v1836_v32 = vmul.f32 %v2140_v28, %v1833_v44  ;;  %vm1842_vm8 = vweird.f32 %v2140_v28 }
0x2069   :  { %vm1843_vm11 = vmor %vm1841_vm9, %vm1842_vm8 }
0x206a   :  { %v1837_v13 = vmul.f32 %v2140_v28, %v1836_v32 }
0x206c   :  { %v1838_v34 = vmul.f32 0.5, %v1837_v13 }
0x206e   :  { %v1839_v14 = vsub.f32 1.5, %v1838_v34 }
0x2070   :  { %v1840_v35 = vmul.f32 %v2140_v28, %v1839_v14 }
0x2072   :  { %v1844_v36 = vsel %vm1843_vm11, %v2140_v28, %v1840_v35 }
0x2073   :  { %v1855_v54 = vmul.f32 %v1844_v36, %v1821_v1 }
0x2075   :  { %v1861_v9 = vmul.f32 %v1955_v21, %v1855_v54 }
0x2077   :  { %v1867_v39 = vadd.f32 %v1956_v24, %v1861_v9 }
0x2079   :  { %1869 = vst.msk [vmem:[%s3011_s9] sm:$0xff] %vm199_vm3, %v1867_v39 }
0x207a   :  { %2368 = dma.done.wait [#allocation5], 32  }
0x207b   :  { %2369 = vsyncadd [#allocation5], 4294967264 }
0x207c   :  { %1895 = vsyncpa [#allocation4], 1 }
0x207d   :  { %1896 = vsyncpa [#allocation7], 1 }
0x207e   :  { %1897 = vsyncpa [#allocation10], 1 }
0x207f   :  { %1898 = vsyncpa [#allocation13], 1 }
0x2080   :  { %1899 = vsyncpa [#allocation16], 1 }
0x2081   :  { %1900 = vsyncpa [#allocation5], 1 }

</bundles_post_ra>
